<compile_context>
chip_gen: v7x
topology: tpu7x:2x2x1
jax: 0.10.0
libtpu: 0.0.40
codegen_flags: <defaults>
</compile_context>

<pallas_src>
import functools

import jax
import jax.numpy as jnp
from jax.experimental import pallas as pl
from jax.experimental.pallas import tpu as pltpu

# True f32 matmuls for the XLA reference path too, so the 1e-4 checks are fair.
jax.config.update("jax_default_matmul_precision", "highest")

# ---- synthetic config (mirrors DistanceNet.__init__) -------------------------
N_FEATURES = 512        # resnet18 .fc.in_features
N_MODEL_FEATURES = 128  # config.n_model_features
_LANE = 128
_HW_TILE_TARGET = 2048                  # (tile_hw, 512) f32 intermediate ~4 MiB
_VMEM_LIMIT_BYTES = 32 * 1024 * 1024    # > v5e's 16 MiB default scoped limit


# ----------------------------- fused FeatureExtractor kernel ------------------
def _feature_extractor_kernel(inv_hw, x_ref, wbt_ref, bb_ref, wfct_ref, bfc_ref,
                              o_ref, acc_ref):
    # x_ref:    (1, Cin, tile_hw) lane-dense pixel block of image i, hw-tile t
    # wbt_ref:  (Cf, Cin)    bb_ref:  (Cf, 1)
    # wfct_ref: (nmf, Cf)    bfc_ref: (nmf, 1)
    # o_ref:    (1, nmf, 1)  per-image embedding (written only on the last tile)
    # acc_ref:  (Cf, 1)      per-image running spatial sum of ReLU'd features
    t = pl.program_id(1)

    @pl.when(t == 0)
    def _():
        acc_ref[...] = jnp.zeros_like(acc_ref)

    # K=Cin(=3) pointwise "conv" on the MXU (K is padded internally); only the
    # bias add + ReLU stay on the VPU, so the VALU slots are no longer binding.
    y = jnp.dot(wbt_ref[...], x_ref[0],
                preferred_element_type=jnp.float32,
                precision=jax.lax.Precision.HIGHEST)       # (Cf, tile_hw)
    y = jnp.maximum(y + bb_ref[...], 0.0)                  # bias + ReLU

    # Spatial partial sum on the XLU (lane reduce) so the projection (MXU) and
    # the reduce use different bundle slots.
    acc_ref[...] += jnp.sum(y, axis=1, keepdims=True)      # (Cf, 1)

    @pl.when(t == pl.num_programs(1) - 1)
    def _():
        pooled = acc_ref[...] * inv_hw                     # AdaptiveAvgPool2d((1,1))
        emb = jnp.dot(wfct_ref[...], pooled,
                      preferred_element_type=jnp.float32,
                      precision=jax.lax.Precision.HIGHEST) + bfc_ref[...]
        o_ref[0] = emb                                     # (nmf, 1) Linear head


def _pick_hw_tile(hw, target=_HW_TILE_TARGET):
    # Whole image when it is small; otherwise the largest multiple-of-128
    # divisor of HW <= target (lane-dense blocks, no partial tiles -> no
    # masking needed for the pooled mean).
    if hw <= target:
        return hw
    best = 0
    for t in range(128, target + 1, 128):
        if hw % t == 0:
            best = t
    # TODO(synk): fallback takes the full image as one tile (correct, but for
    # very large awkward HW it may need a larger vmem_limit_bytes).
    return best if best else hw


def feature_extractor(x_nchw, params):
    """FeatureExtractor.forward: backbone -> avg-pool -> Linear, fully fused."""
    wb, bb = params["backbone_w"], params["backbone_b"]    # (3, Cf), (Cf,)
    wfc, bfc = params["fc_w"], params["fc_b"]               # (Cf, nmf), (nmf,)
    N, C, H, W = x_nchw.shape
    HW = H * W
    Cf = wb.shape[1]
    nmf = wfc.shape[1]

    x = x_nchw.reshape(N, C, HW)          # free view of NCHW, no transpose
    tile_hw = _pick_hw_tile(HW)
    assert HW % tile_hw == 0
    n_tiles = HW // tile_hw

    kernel = functools.partial(_feature_extractor_kernel, 1.0 / HW)
    out = pl.pallas_call(
        kernel,
        out_shape=jax.ShapeDtypeStruct((N, nmf, 1), jnp.float32),
        grid=(N, n_tiles),
        in_specs=[
            pl.BlockSpec((1, C, tile_hw), lambda i, t: (i, 0, t)),
            pl.BlockSpec((Cf, C), lambda i, t: (0, 0)),
            pl.BlockSpec((Cf, 1), lambda i, t: (0, 0)),
            pl.BlockSpec((nmf, Cf), lambda i, t: (0, 0)),
            pl.BlockSpec((nmf, 1), lambda i, t: (0, 0)),
        ],
        out_specs=pl.BlockSpec((1, nmf, 1), lambda i, t: (i, 0, 0)),
        scratch_shapes=[pltpu.VMEM((Cf, 1), jnp.float32)],
        compiler_params=pltpu.CompilerParams(
            dimension_semantics=("parallel", "arbitrary"),
            vmem_limit_bytes=_VMEM_LIMIT_BYTES),
    )(x, wb.T, bb.reshape(Cf, 1), wfc.T, bfc.reshape(nmf, 1))
    return out.reshape(N, nmf)


def distance_net_forward(x_nchw, params):
    """DistanceNet.forward: embeddings = feature_extractor(x); chunk(2)."""
    embeddings = feature_extractor(x_nchw, params)
    n = embeddings.shape[0]
    return embeddings[: n // 2], embeddings[n // 2:]


# ----------------------------- fused cc_similarity_net kernel -----------------
def _cc_simnet_kernel(aa_ref, pn_ref, w1a_ref, w1b_ref, b1_ref,
                      w2_ref, b2_ref, w3_ref, b3_ref, we_ref, be_ref, o_ref):
    def lrelu(v):
        return jnp.maximum(v, 0.01 * v)    # F.leaky_relu default slope, 2 VALU ops

    def dot(a, b):
        return jnp.dot(a, b, preferred_element_type=jnp.float32,
                       precision=jax.lax.Precision.HIGHEST)

    # cat((anchors, x), dim=1) @ w1  ==  anchors @ w1[:nmf] + x @ w1[nmf:]
    # Both branches are batched: rows [0,B) are (anchor, positive), rows [B,2B)
    # are (anchor, negative).
    h = lrelu(dot(aa_ref[...], w1a_ref[...]) + dot(pn_ref[...], w1b_ref[...])
              + b1_ref[...])
    h = lrelu(dot(h, w2_ref[...]) + b2_ref[...])
    h = lrelu(dot(h, w3_ref[...]) + b3_ref[...])
    o_ref[...] = jax.nn.sigmoid(dot(h, we_ref[...]) + be_ref[...])  # (2B, 128)


def pack_sim_params(sim_params):
    """One-time packing of SimilarityNet weights into kernel-ready layouts."""
    (w1, b1), (w2, b2), (w3, b3), (we, be) = sim_params
    nmf = w2.shape[0]
    # Lane-dense padded logit head: real column is column 0, rest are zeros.
    we_pad = jnp.zeros((nmf, _LANE), jnp.float32).at[:, 0].set(we[:, 0])
    be_pad = jnp.zeros((1, _LANE), jnp.float32).at[0, 0].set(be[0])
    return (w1[:nmf], w1[nmf:], b1.reshape(1, nmf),
            w2, b2.reshape(1, nmf),
            w3, b3.reshape(1, nmf),
            we_pad, be_pad)


def cc_similarity_net(anchors, positives, negatives, packed_sim):
    """DistanceNet.cc_similarity_net: both SimilarityNet passes in ONE kernel."""
    B, nmf = anchors.shape
    aa = jnp.concatenate([anchors, anchors], axis=0)        # (2B, nmf)
    pn = jnp.concatenate([positives, negatives], axis=0)    # (2B, nmf)

    args = (aa, pn) + tuple(packed_sim)
    # Bind ndim explicitly (avoids the late-binding lambda bug).
    in_specs = [pl.BlockSpec(a.shape, lambda i, _nd=a.ndim: (0,) * _nd)
                for a in args]

    out = pl.pallas_call(
        _cc_simnet_kernel,
        out_shape=jax.ShapeDtypeStruct((2 * B, _LANE), jnp.float32),
        grid=(1,),
        in_specs=in_specs,
        out_specs=pl.BlockSpec((2 * B, _LANE), lambda i: (0, 0)),
    )(*args)
    return out[:B, :1], out[B:, :1]


# ----------------------------- parameter init ---------------------------------
def init_params(key):
    ks = jax.random.split(key, 12)
    nf, nmf = N_FEATURES, N_MODEL_FEATURES

    def lin(k, fan_in, fan_out):
        kw, kb = jax.random.split(k)
        bound = 1.0 / (fan_in ** 0.5)
        w = jax.random.uniform(kw, (fan_in, fan_out), jnp.float32, -bound, bound)
        b = jax.random.uniform(kb, (fan_out,), jnp.float32, -bound, bound)
        return w, b

    backbone_w, backbone_b = lin(ks[0], 3, nf)
    fc_w, fc_b = lin(ks[1], nf, nmf)
    sim_params = (
        lin(ks[2], 2 * nmf, nmf),
        lin(ks[3], nmf, nmf),
        lin(ks[4], nmf, nmf),
        lin(ks[5], nmf, 1),
    )
    return {
        "backbone_w": backbone_w,
        "backbone_b": backbone_b,
        "fc_w": fc_w,
        "fc_b": fc_b,
        "sim": sim_params,
        "sim_packed": pack_sim_params(sim_params),   # hoisted out of the call path
    }


# ----------------------------- main -------------------------------------------
if __name__ == "__main__":
    key = jax.random.PRNGKey(0)
    kx, kp = jax.random.split(key)

    # batch must be even for .chunk(2); NCHW like the PyTorch module expects.
    x = jax.random.normal(kx, (4, 3, 16, 16), jnp.float32)
    params = init_params(kp)

    original_emb, transf_emb = distance_net_forward(x, params)
    jax.block_until_ready((original_emb, transf_emb))

    # exercise the SimilarityNet path too (DistanceNet.cc_similarity_net)
    a_p_out, a_n_out = cc_similarity_net(
        original_emb, transf_emb, transf_emb[::-1], params["sim_packed"]
    )
    jax.block_until_ready((a_p_out, a_n_out))

    # ---- pure-JAX reference checks ----
    xf = jnp.transpose(x, (0, 2, 3, 1)).reshape(-1, 3)
    feat_ref = jnp.maximum(xf @ params["backbone_w"] + params["backbone_b"], 0.0)
    feat_ref = feat_ref.reshape(4, 16 * 16, N_FEATURES)
    emb_ref = feat_ref.mean(axis=1) @ params["fc_w"] + params["fc_b"]
    emb = jnp.concatenate((original_emb, transf_emb), axis=0)
    assert jnp.allclose(emb, emb_ref, rtol=1e-4, atol=1e-4), "embedding mismatch"

    def simnet_ref(inp, prm):
        (w1, b1), (w2, b2), (w3, b3), (we, be) = prm
        h = jax.nn.leaky_relu(inp @ w1 + b1, 0.01)
        h = jax.nn.leaky_relu(h @ w2 + b2, 0.01)
        h = jax.nn.leaky_relu(h @ w3 + b3, 0.01)
        return jax.nn.sigmoid(h @ we + be)

    ap_ref = simnet_ref(jnp.concatenate((original_emb, transf_emb), 1), params["sim"])
    an_ref = simnet_ref(jnp.concatenate((original_emb, transf_emb[::-1]), 1),
                        params["sim"])
    assert jnp.allclose(a_p_out, ap_ref, rtol=1e-4, atol=1e-4), "simnet a_p mismatch"
    assert jnp.allclose(a_n_out, an_ref, rtol=1e-4, atol=1e-4), "simnet a_n mismatch"

    assert original_emb.shape == (2, N_MODEL_FEATURES)
    assert transf_emb.shape == (2, N_MODEL_FEATURES)

    print("KERNEL_OK")
</pallas_src>

<mosaic_0001>
module attributes {stable_mosaic.version = 11 : i64} {
  func.func @_feature_extractor_kernel(%arg0: i32, %arg1: i32, %arg2: memref<1x3x256xf32, #tpu.memory_space<vmem>>, %arg3: memref<512x3xf32, #tpu.memory_space<vmem>>, %arg4: memref<512x1xf32, #tpu.memory_space<vmem>>, %arg5: memref<128x512xf32, #tpu.memory_space<vmem>>, %arg6: memref<128x1xf32, #tpu.memory_space<vmem>>, %arg7: memref<1x128x1xf32, #tpu.memory_space<vmem>>, %arg8: memref<512x1xf32, #tpu.memory_space<vmem>>) attributes {dimension_semantics = [#tpu.dimension_semantics<parallel>, #tpu.dimension_semantics<arbitrary>], iteration_bounds = array<i64: 4, 1>, scalar_prefetch = 0 : i64, scratch_operands = 1 : i64, tpu.core_type = #tpu.core_type<tc>, window_params = [{transform_indices = @transform_0, window_bounds = array<i64: 1, 3, 256>}, {pipeline_mode = #tpu.pipeline_mode<synchronous>, transform_indices = @transform_1, window_bounds = array<i64: 512, 3>}, {pipeline_mode = #tpu.pipeline_mode<synchronous>, transform_indices = @transform_2, window_bounds = array<i64: 512, 1>}, {pipeline_mode = #tpu.pipeline_mode<synchronous>, transform_indices = @transform_3, window_bounds = array<i64: 128, 512>}, {pipeline_mode = #tpu.pipeline_mode<synchronous>, transform_indices = @transform_4, window_bounds = array<i64: 128, 1>}, {transform_indices = @transform_5, window_bounds = array<i64: 1, 128, 1>}]} {
    %c0_i32 = arith.constant 0 : i32
    %0 = arith.cmpi eq, %arg1, %c0_i32 : i32
    %1 = arith.extui %0 : i1 to i32
    %c0_i32_0 = arith.constant 0 : i32
    %2 = arith.cmpi ne, %1, %c0_i32_0 : i32
    scf.if %2 {
      %cst_15 = arith.constant 0.000000e+00 : f32
      %20 = vector.broadcast %cst_15 : f32 to vector<512x1xf32>
      %c0_16 = arith.constant 0 : index
      %c0_17 = arith.constant 0 : index
      %21 = vector.load %arg8[%c0_16, %c0_17] : memref<512x1xf32, #tpu.memory_space<vmem>>, vector<512x1xf32>
      tpu.vector_store %arg8[%c0_16, %c0_17], %20 {strides = array<i32>} : memref<512x1xf32, #tpu.memory_space<vmem>>, vector<512x1xf32>,
    } else {
    }
    %c0 = arith.constant 0 : index
    %c0_1 = arith.constant 0 : index
    %3 = vector.load %arg3[%c0, %c0_1] : memref<512x3xf32, #tpu.memory_space<vmem>>, vector<512x3xf32>
    %c0_2 = arith.constant 0 : index
    %c0_3 = arith.constant 0 : index
    %c0_4 = arith.constant 0 : index
    %4 = vector.load %arg2[%c0_2, %c0_3, %c0_4] : memref<1x3x256xf32, #tpu.memory_space<vmem>>, vector<1x3x256xf32>
    %5 = vector.shape_cast %4 : vector<1x3x256xf32> to vector<3x256xf32>
    %cst = arith.constant dense<0.000000e+00> : vector<512x256xf32>
    %6 = tpu.matmul %3, %5, %cst {dimension_numbers = #tpu.dot_dimension_numbers<[1], [0], [0], [1], [0, 0, 1, 1], [], []>, precision = #tpu.contract_precision<fp32>} : vector<512x3xf32>, vector<3x256xf32>, vector<512x256xf32> -> vector<512x256xf32>
    %c0_5 = arith.constant 0 : index
    %c0_6 = arith.constant 0 : index
    %7 = vector.load %arg4[%c0_5, %c0_6] : memref<512x1xf32, #tpu.memory_space<vmem>>, vector<512x1xf32>
    %8 = vector.broadcast %7 : vector<512x1xf32> to vector<512x256xf32>
    %9 = arith.addf %6, %8 : vector<512x256xf32>
    %cst_7 = arith.constant 0.000000e+00 : f32
    %10 = vector.broadcast %cst_7 : f32 to vector<512x256xf32>
    %11 = arith.maximumf %9, %10 : vector<512x256xf32>
    %c0_8 = arith.constant 0 : index
    %c0_9 = arith.constant 0 : index
    %12 = vector.load %arg8[%c0_8, %c0_9] : memref<512x1xf32, #tpu.memory_space<vmem>>, vector<512x1xf32>
    %cst_10 = arith.constant dense<0.000000e+00> : vector<512xf32>
    %13 = vector.multi_reduction <add>, %11, %cst_10 [1] : vector<512x256xf32> to vector<512xf32>
    %14 = vector.shape_cast %13 : vector<512xf32> to vector<512x1xf32>
    %15 = arith.addf %12, %14 : vector<512x1xf32>
    %c0_11 = arith.constant 0 : index
    %c0_12 = arith.constant 0 : index
    %16 = vector.load %arg8[%c0_11, %c0_12] : memref<512x1xf32, #tpu.memory_space<vmem>>, vector<512x1xf32>
    tpu.vector_store %arg8[%c0_11, %c0_12], %15 {strides = array<i32>} : memref<512x1xf32, #tpu.memory_space<vmem>>, vector<512x1xf32>,
    %c0_i32_13 = arith.constant 0 : i32
    %17 = arith.cmpi eq, %arg1, %c0_i32_13 : i32
    %18 = arith.extui %17 : i1 to i32
    %c0_i32_14 = arith.constant 0 : i32
    %19 = arith.cmpi ne, %18, %c0_i32_14 : i32
    scf.if %19 {
      %c0_15 = arith.constant 0 : index
      %c0_16 = arith.constant 0 : index
      %20 = vector.load %arg8[%c0_15, %c0_16] : memref<512x1xf32, #tpu.memory_space<vmem>>, vector<512x1xf32>
      %cst_17 = arith.constant 3.906250e-03 : f32
      %21 = vector.broadcast %cst_17 : f32 to vector<512x1xf32>
      %22 = arith.mulf %20, %21 : vector<512x1xf32>
      %c0_18 = arith.constant 0 : index
      %c0_19 = arith.constant 0 : index
      %23 = vector.load %arg5[%c0_18, %c0_19] : memref<128x512xf32, #tpu.memory_space<vmem>>, vector<128x512xf32>
      %cst_20 = arith.constant dense<0.000000e+00> : vector<128x1xf32>
      %24 = tpu.matmul %23, %22, %cst_20 {dimension_numbers = #tpu.dot_dimension_numbers<[1], [0], [0], [1], [0, 0, 1, 1], [], []>, precision = #tpu.contract_precision<fp32>} : vector<128x512xf32>, vector<512x1xf32>, vector<128x1xf32> -> vector<128x1xf32>
      %c0_21 = arith.constant 0 : index
      %c0_22 = arith.constant 0 : index
      %25 = vector.load %arg6[%c0_21, %c0_22] : memref<128x1xf32, #tpu.memory_space<vmem>>, vector<128x1xf32>
      %26 = arith.addf %24, %25 : vector<128x1xf32>
      %c0_23 = arith.constant 0 : index
      %c0_24 = arith.constant 0 : index
      %c0_25 = arith.constant 0 : index
      %27 = vector.load %arg7[%c0_23, %c0_24, %c0_25] : memref<1x128x1xf32, #tpu.memory_space<vmem>>, vector<1x128x1xf32>
      %28 = vector.shape_cast %27 : vector<1x128x1xf32> to vector<128x1xf32>
      %29 = vector.shape_cast %26 : vector<128x1xf32> to vector<1x128x1xf32>
      tpu.vector_store %arg7[%c0_23, %c0_24, %c0_25], %29 {strides = array<i32>} : memref<1x128x1xf32, #tpu.memory_space<vmem>>, vector<1x128x1xf32>,
    } else {
    }
    return
  }
  func.func @transform_0(%arg0: i32, %arg1: i32) -> (i32, i32, i32) {
    %c0_i32 = arith.constant 0 : i32
    %c0_i32_0 = arith.constant 0 : i32
    return %arg0, %c0_i32, %arg1 : i32, i32, i32
  }
  func.func @transform_1(%arg0: i32, %arg1: i32) -> (i32, i32) {
    %c0_i32 = arith.constant 0 : i32
    %c0_i32_0 = arith.constant 0 : i32
    %c0_i32_1 = arith.constant 0 : i32
    return %c0_i32, %c0_i32_0 : i32, i32
  }
  func.func @transform_2(%arg0: i32, %arg1: i32) -> (i32, i32) {
    %c0_i32 = arith.constant 0 : i32
    %c0_i32_0 = arith.constant 0 : i32
    %c0_i32_1 = arith.constant 0 : i32
    return %c0_i32, %c0_i32_0 : i32, i32
  }
  func.func @transform_3(%arg0: i32, %arg1: i32) -> (i32, i32) {
    %c0_i32 = arith.constant 0 : i32
    %c0_i32_0 = arith.constant 0 : i32
    %c0_i32_1 = arith.constant 0 : i32
    return %c0_i32, %c0_i32_0 : i32, i32
  }
  func.func @transform_4(%arg0: i32, %arg1: i32) -> (i32, i32) {
    %c0_i32 = arith.constant 0 : i32
    %c0_i32_0 = arith.constant 0 : i32
    %c0_i32_1 = arith.constant 0 : i32
    return %c0_i32, %c0_i32_0 : i32, i32
  }
  func.func @transform_5(%arg0: i32, %arg1: i32) -> (i32, i32, i32) {
    %c0_i32 = arith.constant 0 : i32
    %c0_i32_0 = arith.constant 0 : i32
    %c0_i32_1 = arith.constant 0 : i32
    return %arg0, %c0_i32, %c0_i32_0 : i32, i32, i32
  }
}

</mosaic_0001>

<bundles_post_ra>
// kernel: tpu_custom_call.1
= control target key start
LH: loop header
LB: loop body
LE: loop exit
PB: predicated region body
PF: predicated region fallthrough
CT: control target
= control target key end

     0   :  { %s10948_s18 = smov 0   ;;  %s10950_s19 = smov 0   ;;  %s17199_s0 = inlined_call_operand.vmem [shape: f32[4,3,256], index: 0, kind: input, shape index: {}]   ;;  %s17200_s1 = inlined_call_operand.vmem [shape: f32[512,3], index: 1, kind: input, shape index: {}]   ;;  %s17201_s2 = inlined_call_operand.vmem [shape: f32[512,1], index: 2, kind: input, shape index: {}]   ;;  %s17202_s3 = inlined_call_operand.vmem [shape: f32[128,512], index: 3, kind: input, shape index: {}]   ;;  %s17203_s4 = inlined_call_operand.vmem [shape: f32[128,1], index: 4, kind: input, shape index: {}]   ;;  %s17204_s5 = inlined_call_operand.vmem [shape: f32[4,128,1], index: 5, kind: output, shape index: {}]  }
   0x1   :  { %s10952_s20 = smov 0  }
   0x2 LB: > { %s27_s21 = sadd.s32 1, %s10910_s19  ;;  %p8740_p0 = scmp.ge.s32.totalorder %s10914_s20, 1  ;;  %s10914_s20 = sphi %s10952_s20, %s15_s20   ;;  %s10910_s19 = sphi %s10950_s19, %s19516_s19   ;;  %s10906_s18 = sphi %s10948_s18, %s19515_s18  }
   0x3   : > { %p29_p1 = scmp.ge.s32.totalorder %s27_s21, 4  ;;  %p206_p2 = scmp.lt.s32.totalorder %s10914_s20, 5 }
   0x5   : > { %s19518_s21 = smov (%p29_p1, %s27_s21), 0  ;;  %p207_p3 = pnand %p8740_p0, %p206_p2 }
   0x7   : > { %210 = sbr.rel (%p207_p3) target bundleno = 2455 (0x997), region = 40 }
   0xe   : > { %p239_p4 = scmp.lt.s32.totalorder %s10906_s18, 3  ;;  %v10916_v0 = vmov 0.0   ;;  %vm966_vm0 = vcmask 1042432   ;;  %v322_v10 = vld [vmem:[%s17200_s1] sm:$0xff]  ;;  %vm773_vm1 = vcmask 23552   ;;  %v323_v15 = vld [vmem:[%s17200_s1 + $0x8] sm:$0xff] }
   0xf   : > { %1816 = vmatprep.mubr.f32.mxu0 %v10916_v0  ;;  %1037 = vmatprep.mubr.f32.mxu1 %v10916_v0  ;;  %v10997_v13 = vsel %vm773_vm1, %v322_v10, 0  ;;  %v11010_v19 = vsel %vm773_vm1, %v323_v15, 0  ;;  %v324_v20 = vld [vmem:[%s17200_s1 + $0x10] sm:$0xff]  ;;  %v325_v23 = vld [vmem:[%s17200_s1 + $0x18] sm:$0xff]  ;;  %v326_v26 = vld [vmem:[%s17200_s1 + $0x20] sm:$0xff]  ;;  %vm257_vm2 = vcmask 7168  }
  0x10   : > { %s19520_s18 = smov (!%p239_p4, %s10906_s18), 3  ;;  %v11007_v18 = vand.u32 4294901760, %v10997_v13  ;;  %v11019_v21 = vand.u32 4294901760, %v11010_v19  ;;  %v11024_v22 = vsel %vm773_vm1, %v324_v20, 0  ;;  %v11037_v25 = vsel %vm773_vm1, %v325_v23, 0  ;;  %v327_v29 = vld [vmem:[%s17200_s1 + $0x28] sm:$0xff] }
  0x11   : > { %s8747_s22 = sshll.u32 %s19520_s18, 3  ;;  %v11033_v24 = vand.u32 4294901760, %v11024_v22  ;;  %v11044_v27 = vand.u32 4294901760, %v11037_v25  ;;  %v11048_v28 = vsel %vm773_vm1, %v326_v26, 0  ;;  %v11059_v31 = vsel %vm773_vm1, %v327_v29, 0  ;;  %v328_v32 = vld [vmem:[%s17200_s1 + $0x30] sm:$0xff] }
  0x12   : > { %s246_s25 = scalar_lea.vmem %s17199_s0, %s8747_s22  ;;  %17941 = vst [vmem:[#allocation7_spill] sm:$0xff] %v11007_v18  ;;  %17942 = vst [vmem:[#allocation8_spill] sm:$0xff] %v11019_v21  ;;  %v11055_v30 = vand.u32 4294901760, %v11048_v28  ;;  %v11066_v33 = vand.u32 4294901760, %v11059_v31  ;;  %v11070_v34 = vsel %vm773_vm1, %v328_v32, 0  ;;  %v329_v35 = vld [vmem:[%s17200_s1 + $0x38] sm:$0xff] }
  0x13   : > { %v386_v1 = vld [vmem:[%s246_s25] sm:$0x77]  ;;  %17943 = vst [vmem:[#allocation9_spill] sm:$0xff] %v11033_v24  ;;  %17944 = vst [vmem:[#allocation10_spill] sm:$0xff] %v11044_v27  ;;  %v11077_v36 = vand.u32 4294901760, %v11070_v34  ;;  %v11081_v37 = vsel %vm773_vm1, %v329_v35, 0 }
  0x14   : > { %v772_v2 = vcombine.high %v386_v1, %v386_v1  ;;  %v967_v3 = vsel %vm966_vm0, %v386_v1, 0  ;;  %17945 = vst [vmem:[#allocation11_spill] sm:$0xff] %v11055_v30  ;;  %17946 = vst [vmem:[#allocation12_spill] sm:$0xff] %v11066_v33  ;;  %v330_v38 = vld [vmem:[%s17200_s1 + $0x40] sm:$0xff]  ;;  %v11088_v39 = vand.u32 4294901760, %v11081_v37  ;;  %v331_v41 = vld [vmem:[%s17200_s1 + $0x48] sm:$0xff] }
  0x15   : > { %v10974_v4 = vand.u32 4294901760, %v967_v3  ;;  %17947 = vst [vmem:[#allocation13_spill] sm:$0xff] %v11077_v36  ;;  %v11092_v40 = vsel %vm773_vm1, %v330_v38, 0  ;;  %v11103_v43 = vsel %vm773_vm1, %v331_v41, 0  ;;  %v332_v44 = vld [vmem:[%s17200_s1 + $0x50] sm:$0xff]  ;;  %v333_v47 = vld [vmem:[%s17200_s1 + $0x58] sm:$0xff] }
  0x16   : > { %v969_v5 = vsel %vm966_vm0, %v772_v2, 0  ;;  %17948 = vst [vmem:[#allocation14_spill] sm:$0xff] %v11088_v39  ;;  %v11099_v42 = vand.u32 4294901760, %v11092_v40  ;;  %v11110_v45 = vand.u32 4294901760, %v11103_v43  ;;  %v11114_v46 = vsel %vm773_vm1, %v332_v44, 0  ;;  %v334_v50 = vld [vmem:[%s17200_s1 + $0x60] sm:$0xff] }
  0x17   : > { %17937 = vst [vmem:[#allocation3_spill] sm:$0xff] %v10974_v4  ;;  %v10976_v6 = vand.u32 4294901760, %v969_v5  ;;  %v10979_v7 = vsub.f32 %v967_v3, %v10974_v4  ;;  %v11121_v48 = vand.u32 4294901760, %v11114_v46  ;;  %v11125_v49 = vsel %vm773_vm1, %v333_v47, 0  ;;  %v335_v53 = vld [vmem:[%s17200_s1 + $0x68] sm:$0xff]  ;;  %v336_v56 = vld [vmem:[%s17200_s1 + $0x70] sm:$0xff] }
  0x18   : > { %17949 = vst [vmem:[#allocation15_spill] sm:$0xff] %v11099_v42  ;;  %17950 = vst [vmem:[#allocation16_spill] sm:$0xff] %v11110_v45  ;;  %v11132_v51 = vand.u32 4294901760, %v11125_v49  ;;  %v11136_v52 = vsel %vm773_vm1, %v334_v50, 0  ;;  %v11147_v55 = vsel %vm773_vm1, %v335_v53, 0  ;;  %v11158_v58 = vsel %vm773_vm1, %v336_v56, 0 }
  0x19   : > { %17938 = vst [vmem:[#allocation4_spill] sm:$0xff] %v10976_v6  ;;  %17939 = vst [vmem:[#allocation5_spill] sm:$0xff] %v10979_v7  ;;  %v10982_v8 = vsub.f32 %v969_v5, %v10976_v6  ;;  %v17206_v9 = vand.u32 4294901760, %v10979_v7  ;;  %972 = vmatprep.subr.mxu1 %v10976_v6  ;;  %v11143_v54 = vand.u32 4294901760, %v11136_v52  ;;  %v11154_v57 = vand.u32 4294901760, %v11147_v55  ;;  %v337_v59 = vld [vmem:[%s17200_s1 + $0x78] sm:$0xff] }
  0x1a   : > { %974 = vmatpush1.msra.mxu1 %v10974_v4  ;;  %17951 = vst [vmem:[#allocation17_spill] sm:$0xff] %v11121_v48  ;;  %17952 = vst [vmem:[#allocation18_spill] sm:$0xff] %v11132_v51  ;;  %v11165_v60 = vand.u32 4294901760, %v11158_v58  ;;  %v11169_v61 = vsel %vm773_vm1, %v337_v59, 0  ;;  %v338_v62 = vld [vmem:[%s17200_s1 + $0x80] sm:$0xff]  ;;  %v339_v2 = vld [vmem:[%s17200_s1 + $0x88] sm:$0xff] }
  0x1b   : > { %v17207_v11 = vand.u32 4294901760, %v10982_v8  ;;  %v10994_v12 = vsub.f32 %v10979_v7, %v17206_v9  ;;  %17953 = vst [vmem:[#allocation19_spill] sm:$0xff] %v11143_v54  ;;  %17954 = vst [vmem:[#allocation20_spill] sm:$0xff] %v11154_v57  ;;  %v11176_v63 = vand.u32 4294901760, %v11169_v61  ;;  %v11180_v1 = vsel %vm773_vm1, %v338_v62, 0  ;;  %v340_v10 = vld [vmem:[%s17200_s1 + $0x90] sm:$0xff] }
  0x1c   : > { %17955 = vst [vmem:[#allocation21_spill] sm:$0xff] %v11165_v60  ;;  %v11187_v3 = vand.u32 4294901760, %v11180_v1  ;;  %v11191_v5 = vsel %vm773_vm1, %v339_v2, 0  ;;  %v11202_v15 = vsel %vm773_vm1, %v340_v10, 0  ;;  %v342_v26 = vld [vmem:[%s17200_s1 + $0xa0] sm:$0xff]  ;;  %v343_v35 = vld [vmem:[%s17200_s1 + $0xa8] sm:$0xff] }
  0x1d   : > { %17940 = vst [vmem:[#allocation6_spill] sm:$0xff] %v10994_v12  ;;  %v1745_v14 = vsub.f32 %v10982_v8, %v17207_v11  ;;  %v17205_v16 = vand.u32 4294901760, %v10994_v12  ;;  %17956 = vst [vmem:[#allocation22_spill] sm:$0xff] %v11176_v63  ;;  %v11209_v20 = vand.u32 4294901760, %v11202_v15  ;;  %v11224_v32 = vsel %vm773_vm1, %v342_v26, 0  ;;  %v344_v44 = vld [vmem:[%s17200_s1 + $0xb0] sm:$0xff] }
  0x1e   : > { %17957 = vst [vmem:[#allocation23_spill] sm:$0xff] %v11187_v3  ;;  %v11231_v38 = vand.u32 4294901760, %v11224_v32  ;;  %v11235_v41 = vsel %vm773_vm1, %v343_v35, 0  ;;  %v11246_v50 = vsel %vm773_vm1, %v344_v44, 0  ;;  %v345_v53 = vld [vmem:[%s17200_s1 + $0xb8] sm:$0xff]  ;;  %v346_v62 = vld [vmem:[%s17200_s1 + $0xc0] sm:$0xff] }
  0x1f   : > { %v1746_v17 = vand.u32 4294901760, %v1745_v14  ;;  %v11198_v14 = vand.u32 4294901760, %v11191_v5  ;;  %17959 = vst [vmem:[#allocation25_spill] sm:$0xff] %v11209_v20  ;;  %v11242_v47 = vand.u32 4294901760, %v11235_v41  ;;  %v11253_v56 = vand.u32 4294901760, %v11246_v50  ;;  %v348_v44 = vld [vmem:[%s17200_s1 + $0xd0] sm:$0xff] }
  0x20   : > { %17961 = vst [vmem:[#allocation27_spill] sm:$0xff] %v11231_v38  ;;  %v11257_v59 = vsel %vm773_vm1, %v345_v53, 0  ;;  %v11268_v10 = vsel %vm773_vm1, %v346_v62, 0  ;;  %v11290_v62 = vsel %vm773_vm1, %v348_v44, 0  ;;  %v350_v11 = vld [vmem:[%s17200_s1 + $0xe0] sm:$0xff]  ;;  %258 = vst.msk [vmem:[#allocation2] sm:$0xff] %vm257_vm2, %v10916_v0 }
  0x21   : > { %1747 = vmatprep.subr.mxu0 %v1746_v17  ;;  %10093 = vmatprep.subr.mxu1 %v1746_v17  ;;  %17958 = vst [vmem:[#allocation24_spill] sm:$0xff] %v11198_v14  ;;  %v341_v17 = vld [vmem:[%s17200_s1 + $0x98] sm:$0xff]  ;;  %17962 = vst [vmem:[#allocation28_spill] sm:$0xff] %v11242_v47  ;;  %v11264_v2 = vand.u32 4294901760, %v11257_v59  ;;  %v11275_v26 = vand.u32 4294901760, %v11268_v10  ;;  %v11312_v12 = vsel %vm773_vm1, %v350_v11, 0 }
  0x22   : > { %1753 = vmatpush1.msra.mxu0 %v17205_v16  ;;  %v11213_v23 = vsel %vm773_vm1, %v341_v17, 0  ;;  %17963 = vst [vmem:[#allocation29_spill] sm:$0xff] %v11253_v56  ;;  %v347_v17 = vld [vmem:[%s17200_s1 + $0xc8] sm:$0xff]  ;;  %v349_v16 = vld [vmem:[%s17200_s1 + $0xd8] sm:$0xff]  ;;  %17970 = vst [vmem:[#allocation36_spill] sm:$0xff] %v11312_v12  ;;  %s8748_s22 = sshll.u32 %s19520_s18, 7 }
  0x23   : > { %1818 = vmatmul.mubr.f32.vlgmr.msra.gmra.mrb[0].mxu0 %v11007_v18  ;;  %2267 = vmatprep.subr.mxu0 %v10982_v8  ;;  %v11220_v29 = vand.u32 4294901760, %v11213_v23  ;;  %17964 = vst [vmem:[#allocation30_spill] sm:$0xff] %v11264_v2  ;;  %17965 = vst [vmem:[#allocation31_spill] sm:$0xff] %v11275_v26  ;;  %v11279_v35 = vsel %vm773_vm1, %v347_v17, 0  ;;  %v11297_v17 = vand.u32 4294901760, %v11290_v62  ;;  %v11301_v9 = vsel %vm773_vm1, %v349_v16, 0  ;;  %s17140_s25 = scalar_lea.vmem %s17204_s5, %s8748_s22 }
  0x24   : > { %1823 = vmatprep.mubr.f32.mxu0 %v10916_v0  ;;  %2270 = vmatpush1.msra.mxu0 %v10979_v7  ;;  %v11286_v53 = vand.u32 4294901760, %v11279_v35  ;;  %17968 = vst [vmem:[#allocation34_spill] sm:$0xff] %v11301_v9  ;;  %v11308_v44 = vand.u32 4294901760, %v11301_v9  ;;  %v11319_v16 = vand.u32 4294901760, %v11312_v12  ;;  %v352_v9 = vld [vmem:[%s17200_s1 + $0xf0] sm:$0xff]  ;;  %v353_v12 = vld [vmem:[%s17200_s1 + $0xf8] sm:$0xff] }
  0x25   : > { %2847 = vmatprep.subr.mxu0 %v10976_v6  ;;  %17960 = vst [vmem:[#allocation26_spill] sm:$0xff] %v11220_v29  ;;  %17967 = vst [vmem:[#allocation33_spill] sm:$0xff] %v11297_v17  ;;  %v351_v6 = vld [vmem:[%s17200_s1 + $0xe8] sm:$0xff] }
  0x26   : > { %17966 = vst [vmem:[#allocation32_spill] sm:$0xff] %v11286_v53  ;;  %17969 = vst [vmem:[#allocation35_spill] sm:$0xff] %v11308_v44  ;;  %v11323_v7 = vsel %vm773_vm1, %v351_v6, 0 }
  0x27   : > { %1825 = vmatmul.mubr.f32.gmra.mrb[2].mxu0 %v11019_v21  ;;  %17971 = vst [vmem:[#allocation37_spill] sm:$0xff] %v11319_v16  ;;  %17972 = vst [vmem:[#allocation38_spill] sm:$0xff] %v11323_v7  ;;  %v11330_v11 = vand.u32 4294901760, %v11323_v7 }
  0x28   : > { %1830 = vmatprep.mubr.f32.mxu0 %v10916_v0  ;;  %259 = vst.msk [vmem:[#allocation2 + $0x8] sm:$0xff] %vm257_vm2, %v10916_v0  ;;  %260 = vst.msk [vmem:[#allocation2 + $0x10] sm:$0xff] %vm257_vm2, %v10916_v0 }
  0x29   : > { %17973 = vst [vmem:[#allocation39_spill] sm:$0xff] %v11330_v11  ;;  %261 = vst.msk [vmem:[#allocation2 + $0x18] sm:$0xff] %vm257_vm2, %v10916_v0 }
  0x2a   : > { %262 = vst.msk [vmem:[#allocation2 + $0x20] sm:$0xff] %vm257_vm2, %v10916_v0  ;;  %263 = vst.msk [vmem:[#allocation2 + $0x28] sm:$0xff] %vm257_vm2, %v10916_v0 }
  0x2b   : > { %1832 = vmatmul.mubr.f32.gmra.mrb[4].mxu0 %v11033_v24  ;;  %264 = vst.msk [vmem:[#allocation2 + $0x30] sm:$0xff] %vm257_vm2, %v10916_v0  ;;  %265 = vst.msk [vmem:[#allocation2 + $0x38] sm:$0xff] %vm257_vm2, %v10916_v0 }
  0x2c   : > { %1837 = vmatprep.mubr.f32.mxu0 %v10916_v0  ;;  %266 = vst.msk [vmem:[#allocation2 + $0x40] sm:$0xff] %vm257_vm2, %v10916_v0  ;;  %267 = vst.msk [vmem:[#allocation2 + $0x48] sm:$0xff] %vm257_vm2, %v10916_v0 }
  0x2d   : > { %268 = vst.msk [vmem:[#allocation2 + $0x50] sm:$0xff] %vm257_vm2, %v10916_v0  ;;  %269 = vst.msk [vmem:[#allocation2 + $0x58] sm:$0xff] %vm257_vm2, %v10916_v0 }
  0x2e   : > { %270 = vst.msk [vmem:[#allocation2 + $0x60] sm:$0xff] %vm257_vm2, %v10916_v0  ;;  %271 = vst.msk [vmem:[#allocation2 + $0x68] sm:$0xff] %vm257_vm2, %v10916_v0 }
  0x2f   : > { %1839 = vmatmul.mubr.f32.gmra.mrb[6].mxu0 %v11044_v27  ;;  %272 = vst.msk [vmem:[#allocation2 + $0x70] sm:$0xff] %vm257_vm2, %v10916_v0  ;;  %273 = vst.msk [vmem:[#allocation2 + $0x78] sm:$0xff] %vm257_vm2, %v10916_v0 }
  0x30   : > { %1844 = vmatprep.mubr.f32.mxu0 %v10916_v0  ;;  %274 = vst.msk [vmem:[#allocation2 + $0x80] sm:$0xff] %vm257_vm2, %v10916_v0  ;;  %275 = vst.msk [vmem:[#allocation2 + $0x88] sm:$0xff] %vm257_vm2, %v10916_v0 }
  0x31   : > { %276 = vst.msk [vmem:[#allocation2 + $0x90] sm:$0xff] %vm257_vm2, %v10916_v0  ;;  %277 = vst.msk [vmem:[#allocation2 + $0x98] sm:$0xff] %vm257_vm2, %v10916_v0 }
  0x32   : > { %278 = vst.msk [vmem:[#allocation2 + $0xa0] sm:$0xff] %vm257_vm2, %v10916_v0  ;;  %279 = vst.msk [vmem:[#allocation2 + $0xa8] sm:$0xff] %vm257_vm2, %v10916_v0 }
  0x33   : > { %1846 = vmatmul.mubr.f32.gmra.mrb[8].mxu0 %v11055_v30  ;;  %280 = vst.msk [vmem:[#allocation2 + $0xb0] sm:$0xff] %vm257_vm2, %v10916_v0  ;;  %281 = vst.msk [vmem:[#allocation2 + $0xb8] sm:$0xff] %vm257_vm2, %v10916_v0 }
  0x34   : > { %1851 = vmatprep.mubr.f32.mxu0 %v10916_v0  ;;  %282 = vst.msk [vmem:[#allocation2 + $0xc0] sm:$0xff] %vm257_vm2, %v10916_v0  ;;  %283 = vst.msk [vmem:[#allocation2 + $0xc8] sm:$0xff] %vm257_vm2, %v10916_v0 }
  0x35   : > { %284 = vst.msk [vmem:[#allocation2 + $0xd0] sm:$0xff] %vm257_vm2, %v10916_v0  ;;  %285 = vst.msk [vmem:[#allocation2 + $0xd8] sm:$0xff] %vm257_vm2, %v10916_v0 }
  0x36   : > { %286 = vst.msk [vmem:[#allocation2 + $0xe0] sm:$0xff] %vm257_vm2, %v10916_v0  ;;  %287 = vst.msk [vmem:[#allocation2 + $0xe8] sm:$0xff] %vm257_vm2, %v10916_v0 }
  0x37   : > { %1853 = vmatmul.mubr.f32.gmra.mrb[10].mxu0 %v11066_v33  ;;  %288 = vst.msk [vmem:[#allocation2 + $0xf0] sm:$0xff] %vm257_vm2, %v10916_v0  ;;  %289 = vst.msk [vmem:[#allocation2 + $0xf8] sm:$0xff] %vm257_vm2, %v10916_v0 }
  0x38   : > { %1858 = vmatprep.mubr.f32.mxu0 %v10916_v0  ;;  %290 = vst.msk [vmem:[#allocation2 + $0x100] sm:$0xff] %vm257_vm2, %v10916_v0  ;;  %291 = vst.msk [vmem:[#allocation2 + $0x108] sm:$0xff] %vm257_vm2, %v10916_v0 }
  0x39   : > { %292 = vst.msk [vmem:[#allocation2 + $0x110] sm:$0xff] %vm257_vm2, %v10916_v0  ;;  %293 = vst.msk [vmem:[#allocation2 + $0x118] sm:$0xff] %vm257_vm2, %v10916_v0 }
  0x3a   : > { %294 = vst.msk [vmem:[#allocation2 + $0x120] sm:$0xff] %vm257_vm2, %v10916_v0  ;;  %295 = vst.msk [vmem:[#allocation2 + $0x128] sm:$0xff] %vm257_vm2, %v10916_v0 }
  0x3b   : > { %1860 = vmatmul.mubr.f32.gmra.mrb[12].mxu0 %v11077_v36  ;;  %296 = vst.msk [vmem:[#allocation2 + $0x130] sm:$0xff] %vm257_vm2, %v10916_v0  ;;  %297 = vst.msk [vmem:[#allocation2 + $0x138] sm:$0xff] %vm257_vm2, %v10916_v0 }
  0x3c   : > { %1865 = vmatprep.mubr.f32.mxu0 %v10916_v0  ;;  %298 = vst.msk [vmem:[#allocation2 + $0x140] sm:$0xff] %vm257_vm2, %v10916_v0  ;;  %299 = vst.msk [vmem:[#allocation2 + $0x148] sm:$0xff] %vm257_vm2, %v10916_v0 }
  0x3d   : > { %300 = vst.msk [vmem:[#allocation2 + $0x150] sm:$0xff] %vm257_vm2, %v10916_v0  ;;  %301 = vst.msk [vmem:[#allocation2 + $0x158] sm:$0xff] %vm257_vm2, %v10916_v0 }
  0x3e   : > { %302 = vst.msk [vmem:[#allocation2 + $0x160] sm:$0xff] %vm257_vm2, %v10916_v0  ;;  %303 = vst.msk [vmem:[#allocation2 + $0x168] sm:$0xff] %vm257_vm2, %v10916_v0 }
  0x3f   : > { %1867 = vmatmul.mubr.f32.gmra.mrb[14].mxu0 %v11088_v39  ;;  %304 = vst.msk [vmem:[#allocation2 + $0x170] sm:$0xff] %vm257_vm2, %v10916_v0  ;;  %305 = vst.msk [vmem:[#allocation2 + $0x178] sm:$0xff] %vm257_vm2, %v10916_v0 }
  0x40   : > { %1872 = vmatprep.mubr.f32.mxu0 %v10916_v0  ;;  %306 = vst.msk [vmem:[#allocation2 + $0x180] sm:$0xff] %vm257_vm2, %v10916_v0  ;;  %307 = vst.msk [vmem:[#allocation2 + $0x188] sm:$0xff] %vm257_vm2, %v10916_v0 }
  0x41   : > { %308 = vst.msk [vmem:[#allocation2 + $0x190] sm:$0xff] %vm257_vm2, %v10916_v0  ;;  %309 = vst.msk [vmem:[#allocation2 + $0x198] sm:$0xff] %vm257_vm2, %v10916_v0 }
  0x42   : > { %310 = vst.msk [vmem:[#allocation2 + $0x1a0] sm:$0xff] %vm257_vm2, %v10916_v0  ;;  %311 = vst.msk [vmem:[#allocation2 + $0x1a8] sm:$0xff] %vm257_vm2, %v10916_v0 }
  0x43   : > { %1874 = vmatmul.mubr.f32.gmra.mrb[16].mxu0 %v11099_v42  ;;  %312 = vst.msk [vmem:[#allocation2 + $0x1b0] sm:$0xff] %vm257_vm2, %v10916_v0  ;;  %313 = vst.msk [vmem:[#allocation2 + $0x1b8] sm:$0xff] %vm257_vm2, %v10916_v0 }
  0x44   : > { %1879 = vmatprep.mubr.f32.mxu0 %v10916_v0  ;;  %314 = vst.msk [vmem:[#allocation2 + $0x1c0] sm:$0xff] %vm257_vm2, %v10916_v0  ;;  %315 = vst.msk [vmem:[#allocation2 + $0x1c8] sm:$0xff] %vm257_vm2, %v10916_v0 }
  0x45   : > { %316 = vst.msk [vmem:[#allocation2 + $0x1d0] sm:$0xff] %vm257_vm2, %v10916_v0  ;;  %317 = vst.msk [vmem:[#allocation2 + $0x1d8] sm:$0xff] %vm257_vm2, %v10916_v0 }
  0x46   : > { %318 = vst.msk [vmem:[#allocation2 + $0x1e0] sm:$0xff] %vm257_vm2, %v10916_v0  ;;  %319 = vst.msk [vmem:[#allocation2 + $0x1e8] sm:$0xff] %vm257_vm2, %v10916_v0 }
  0x47   : > { %1881 = vmatmul.mubr.f32.gmra.mrb[18].mxu0 %v11110_v45  ;;  %320 = vst.msk [vmem:[#allocation2 + $0x1f0] sm:$0xff] %vm257_vm2, %v10916_v0  ;;  %321 = vst.msk [vmem:[#allocation2 + $0x1f8] sm:$0xff] %vm257_vm2, %v10916_v0 }
  0x48   : > { %1886 = vmatprep.mubr.f32.mxu0 %v10916_v0 }
  0x4b   : > { %1888 = vmatmul.mubr.f32.gmra.mrb[20].mxu0 %v11121_v48 }
  0x4c   : > { %1893 = vmatprep.mubr.f32.mxu0 %v10916_v0 }
  0x4f   : > { %1895 = vmatmul.mubr.f32.gmra.mrb[22].mxu0 %v11132_v51 }
  0x50   : > { %1900 = vmatprep.mubr.f32.mxu0 %v10916_v0 }
  0x53   : > { %1902 = vmatmul.mubr.f32.gmra.mrb[24].mxu0 %v11143_v54 }
  0x54   : > { %1907 = vmatprep.mubr.f32.mxu0 %v10916_v0 }
  0x57   : > { %1909 = vmatmul.mubr.f32.gmra.mrb[26].mxu0 %v11154_v57 }
  0x58   : > { %1914 = vmatprep.mubr.f32.mxu0 %v10916_v0 }
  0x5b   : > { %1916 = vmatmul.mubr.f32.gmra.mrb[28].mxu0 %v11165_v60 }
  0x5c   : > { %1921 = vmatprep.mubr.f32.mxu0 %v10916_v0 }
  0x5f   : > { %1923 = vmatmul.mubr.f32.gmra.mrb[30].mxu0 %v11176_v63 }
  0x60   : > { %1928 = vmatprep.mubr.f32.mxu0 %v10916_v0 }
  0x63   : > { %1930 = vmatmul.mubr.f32.gmra.mrb[32].mxu0 %v11187_v3 }
  0x64   : > { %1935 = vmatprep.mubr.f32.mxu0 %v10916_v0 }
  0x67   : > { %1937 = vmatmul.mubr.f32.gmra.mrb[34].mxu0 %v11198_v14 }
  0x68   : > { %1942 = vmatprep.mubr.f32.mxu0 %v10916_v0 }
  0x6b   : > { %1944 = vmatmul.mubr.f32.gmra.mrb[36].mxu0 %v11209_v20 }
  0x6c   : > { %1949 = vmatprep.mubr.f32.mxu0 %v10916_v0 }
  0x6f   : > { %1951 = vmatmul.mubr.f32.gmra.mrb[38].mxu0 %v11220_v29 }
  0x70   : > { %1956 = vmatprep.mubr.f32.mxu0 %v10916_v0 }
  0x73   : > { %1958 = vmatmul.mubr.f32.gmra.mrb[40].mxu0 %v11231_v38 }
  0x74   : > { %1963 = vmatprep.mubr.f32.mxu0 %v10916_v0 }
  0x77   : > { %1965 = vmatmul.mubr.f32.gmra.mrb[42].mxu0 %v11242_v47 }
  0x78   : > { %1970 = vmatprep.mubr.f32.mxu0 %v10916_v0 }
  0x7b   : > { %1972 = vmatmul.mubr.f32.gmra.mrb[44].mxu0 %v11253_v56 }
  0x7c   : > { %1977 = vmatprep.mubr.f32.mxu0 %v10916_v0 }
  0x7f   : > { %1979 = vmatmul.mubr.f32.gmra.mrb[46].mxu0 %v11264_v2 }
  0x80   : > { %1984 = vmatprep.mubr.f32.mxu0 %v10916_v0 }
  0x83   : > { %1986 = vmatmul.mubr.f32.gmra.mrb[48].mxu0 %v11275_v26 }
  0x84   : > { %1991 = vmatprep.mubr.f32.mxu0 %v10916_v0 }
  0x87   : > { %1993 = vmatmul.mubr.f32.gmra.mrb[50].mxu0 %v11286_v53 }
  0x88   : > { %1998 = vmatprep.mubr.f32.mxu0 %v10916_v0 }
  0x8b   : > { %2000 = vmatmul.mubr.f32.gmra.mrb[52].mxu0 %v11297_v17 }
  0x8c   : > { %2005 = vmatprep.mubr.f32.mxu0 %v10916_v0 }
  0x8f   : > { %2007 = vmatmul.mubr.f32.gmra.mrb[54].mxu0 %v11308_v44  ;;  %v11334_v44 = vsel %vm773_vm1, %v352_v9, 0  ;;  %v11354_v9 = vsub.f32 %v10997_v13, %v11007_v18  ;;  %v11370_v13 = vsub.f32 %v11024_v22, %v11033_v24  ;;  %v11388_v22 = vsub.f32 %v11059_v31, %v11066_v33 }
  0x90   : > { %2012 = vmatprep.mubr.f32.mxu0 %v10916_v0  ;;  %v11341_v6 = vand.u32 4294901760, %v11334_v44  ;;  %v11406_v31 = vsub.f32 %v11092_v40, %v11099_v42  ;;  %v11424_v40 = vsub.f32 %v11125_v49, %v11132_v51  ;;  %v11442_v49 = vsub.f32 %v11158_v58, %v11165_v60 }
  0x91   : > { %v11460_v58 = vsub.f32 %v11191_v5, %v11198_v14  ;;  %v11478_v5 = vsub.f32 %v11224_v32, %v11231_v38  ;;  %v11496_v32 = vsub.f32 %v11257_v59, %v11264_v2  ;;  %v11514_v59 = vsub.f32 %v11290_v62, %v11297_v17  ;;  %v17982_v62 = vld [vmem:[#allocation38_spill] sm:$0xff] }
  0x92   : > { %17974 = vst [vmem:[#allocation40_spill] sm:$0xff] %v11341_v6  ;;  %v11532_v17 = vsub.f32 %v17982_v62, %v11330_v11  ;;  %v355_v62 = vld [vmem:[%s17200_s1 + $0x108] sm:$0xff] }
  0x93   : > { %2014 = vmatmul.mubr.f32.gmra.mrb[56].mxu0 %v11319_v16  ;;  %v11345_v16 = vsel %vm773_vm1, %v353_v12, 0  ;;  %v11361_v12 = vsub.f32 %v11010_v19, %v11019_v21  ;;  %v11376_v19 = vsub.f32 %v11037_v25, %v11044_v27  ;;  %v11394_v25 = vsub.f32 %v11070_v34, %v11077_v36 }
  0x94   : > { %2019 = vmatprep.mubr.f32.mxu0 %v10916_v0  ;;  %17975 = vst [vmem:[#allocation41_spill] sm:$0xff] %v11345_v16  ;;  %v11349_v7 = vand.u32 4294901760, %v11345_v16  ;;  %v17977_v16 = vand.u32 4294901760, %v10982_v8  ;;  %v11382_v8 = vsub.f32 %v11048_v28, %v11055_v30  ;;  %v11400_v28 = vsub.f32 %v11081_v37, %v11088_v39 }
  0x95   : > { %v11412_v34 = vsub.f32 %v11103_v43, %v11110_v45  ;;  %v11418_v37 = vsub.f32 %v11114_v46, %v11121_v48  ;;  %v11430_v43 = vsub.f32 %v11136_v52, %v11143_v54  ;;  %v11436_v46 = vsub.f32 %v11147_v55, %v11154_v57 }
  0x96   : > { %17976 = vst [vmem:[#allocation42_spill] sm:$0xff] %v11349_v7  ;;  %v11448_v52 = vsub.f32 %v11169_v61, %v11176_v63  ;;  %v11454_v55 = vsub.f32 %v11180_v1, %v11187_v3  ;;  %v11466_v61 = vsub.f32 %v11202_v15, %v11209_v20  ;;  %v11472_v1 = vsub.f32 %v11213_v23, %v11220_v29 }
  0x97   : > { %2021 = vmatmul.mubr.f32.gmra.mrb[58].mxu0 %v11330_v11  ;;  %v11484_v15 = vsub.f32 %v11235_v41, %v11242_v47  ;;  %v11490_v23 = vsub.f32 %v11246_v50, %v11253_v56  ;;  %v11502_v41 = vsub.f32 %v11268_v10, %v11275_v26  ;;  %v11508_v50 = vsub.f32 %v11279_v35, %v11286_v53  ;;  %v17978_v10 = vld [vmem:[#allocation35_spill] sm:$0xff]  ;;  %v17980_v35 = vld [vmem:[#allocation37_spill] sm:$0xff]  ;;  %v17981_v53 = vld [vmem:[#allocation36_spill] sm:$0xff] }
  0x98   : > { %2026 = vmatprep.mubr.f32.mxu0 %v10916_v0  ;;  %v11526_v2 = vsub.f32 %v17981_v53, %v17980_v35  ;;  %v11541_v53 = vsub.f32 %v11334_v44, %v11341_v6  ;;  %v874_v44 = vsel %vm773_vm1, %v355_v62, 0 }
  0x99   : > { %v11564_v47 = vand.u32 4294901760, %v874_v44 }
  0x9b   : > { %2028 = vmatmul.mubr.f32.gmra.mrb[60].mxu0 %v11341_v6  ;;  %v17983_v11 = vld [vmem:[#allocation41_spill] sm:$0xff]  ;;  %17985 = vst [vmem:[#allocation36_spill] sm:$0xff] %v11564_v47  ;;  %v11573_v62 = vsub.f32 %v874_v44, %v11564_v47  ;;  %v359_v47 = vld [vmem:[%s17200_s1 + $0x128] sm:$0xff] }
  0x9c   : > { %2033 = vmatprep.mubr.f32.mxu0 %v10916_v0 }
  0x9f   : > { %2035 = vmatmul.mubr.f32.gmra.mrb[62].mxu0 %v11349_v7 }
  0xa0   : > { %2333 = vmatprep.mubr.f32.mxu0 %v10916_v0 }
  0xa3   : > { %2336 = vmatmul.mubr.f32.vlgmr.msra.gmra.mrb[0].mxu0 %v11354_v9 }
  0xa4   : > { %2341 = vmatprep.mubr.f32.mxu0 %v10916_v0  ;;  %2849 = vmatpush1.msra.mxu0 %v10974_v4 }
  0xa5   : > { %3492 = vmatprep.subr.mxu0 %v17977_v16  ;;  %v17979_v16 = vld [vmem:[#allocation34_spill] sm:$0xff] }
  0xa6   : > { %v11520_v26 = vsub.f32 %v17979_v16, %v17978_v10  ;;  %v354_v16 = vld [vmem:[%s17200_s1 + $0x100] sm:$0xff]  ;;  %v11551_v10 = vsub.f32 %v17983_v11, %v11349_v7  ;;  %v357_v7 = vld [vmem:[%s17200_s1 + $0x118] sm:$0xff] }
  0xa7   : > { %2344 = vmatmul.mubr.f32.gmra.mrb[2].mxu0 %v11361_v12  ;;  %v871_v35 = vsel %vm773_vm1, %v354_v16, 0  ;;  %v356_v16 = vld [vmem:[%s17200_s1 + $0x110] sm:$0xff] }
  0xa8   : > { %2349 = vmatprep.mubr.f32.mxu0 %v10916_v0  ;;  %v11553_v56 = vand.u32 4294901760, %v871_v35  ;;  %v877_v11 = vsel %vm773_vm1, %v356_v16, 0 }
  0xa9   : > { %v11575_v38 = vand.u32 4294901760, %v877_v11 }
  0xaa   : > { %17984 = vst [vmem:[#allocation34_spill] sm:$0xff] %v11553_v56  ;;  %v11562_v6 = vsub.f32 %v871_v35, %v11553_v56  ;;  %v880_v35 = vsel %vm773_vm1, %v357_v7, 0  ;;  %v358_v56 = vld [vmem:[%s17200_s1 + $0x120] sm:$0xff] }
  0xab   : > { %2352 = vmatmul.mubr.f32.gmra.mrb[4].mxu0 %v11370_v13  ;;  %17986 = vst [vmem:[#allocation38_spill] sm:$0xff] %v11575_v38  ;;  %v11584_v16 = vsub.f32 %v877_v11, %v11575_v38  ;;  %v11586_v29 = vand.u32 4294901760, %v880_v35  ;;  %v883_v44 = vsel %vm773_vm1, %v358_v56, 0  ;;  %v886_v11 = vsel %vm773_vm1, %v359_v47, 0  ;;  %v360_v38 = vld [vmem:[%s17200_s1 + $0x130] sm:$0xff] }
  0xac   : > { %2357 = vmatprep.mubr.f32.mxu0 %v10916_v0  ;;  %v11597_v20 = vand.u32 4294901760, %v883_v44  ;;  %v11608_v14 = vand.u32 4294901760, %v886_v11 }
  0xad   : > { %17987 = vst [vmem:[#allocation41_spill] sm:$0xff] %v11586_v29  ;;  %v11595_v7 = vsub.f32 %v880_v35, %v11586_v29  ;;  %v889_v35 = vsel %vm773_vm1, %v360_v38, 0  ;;  %v361_v29 = vld [vmem:[%s17200_s1 + $0x138] sm:$0xff] }
  0xae   : > { %17988 = vst [vmem:[#allocation43_spill] sm:$0xff] %v11597_v20  ;;  %v11606_v56 = vsub.f32 %v883_v44, %v11597_v20  ;;  %17989 = vst [vmem:[#allocation44_spill] sm:$0xff] %v11608_v14  ;;  %v11617_v47 = vsub.f32 %v886_v11, %v11608_v14  ;;  %v11619_v3 = vand.u32 4294901760, %v889_v35  ;;  %v892_v44 = vsel %vm773_vm1, %v361_v29, 0  ;;  %v362_v20 = vld [vmem:[%s17200_s1 + $0x140] sm:$0xff]  ;;  %v363_v14 = vld [vmem:[%s17200_s1 + $0x148] sm:$0xff] }
  0xaf   : > { %2360 = vmatmul.mubr.f32.gmra.mrb[6].mxu0 %v11376_v19  ;;  %v11630_v63 = vand.u32 4294901760, %v892_v44  ;;  %v895_v11 = vsel %vm773_vm1, %v362_v20, 0 }
  0xb0   : > { %2365 = vmatprep.mubr.f32.mxu0 %v10916_v0  ;;  %17990 = vst [vmem:[#allocation45_spill] sm:$0xff] %v11619_v3  ;;  %v11628_v38 = vsub.f32 %v889_v35, %v11619_v3  ;;  %v11641_v60 = vand.u32 4294901760, %v895_v11  ;;  %v898_v35 = vsel %vm773_vm1, %v363_v14, 0  ;;  %v364_v3 = vld [vmem:[%s17200_s1 + $0x150] sm:$0xff] }
  0xb1   : > { %17991 = vst [vmem:[#allocation46_spill] sm:$0xff] %v11630_v63  ;;  %v11639_v29 = vsub.f32 %v892_v44, %v11630_v63  ;;  %v11652_v57 = vand.u32 4294901760, %v898_v35  ;;  %v901_v44 = vsel %vm773_vm1, %v364_v3, 0  ;;  %v365_v63 = vld [vmem:[%s17200_s1 + $0x158] sm:$0xff] }
  0xb2   : > { %17992 = vst [vmem:[#allocation47_spill] sm:$0xff] %v11641_v60  ;;  %v11650_v20 = vsub.f32 %v895_v11, %v11641_v60  ;;  %v11663_v54 = vand.u32 4294901760, %v901_v44  ;;  %v904_v11 = vsel %vm773_vm1, %v365_v63, 0  ;;  %v366_v60 = vld [vmem:[%s17200_s1 + $0x160] sm:$0xff] }
  0xb3   : > { %2368 = vmatmul.mubr.f32.gmra.mrb[8].mxu0 %v11382_v8  ;;  %17993 = vst [vmem:[#allocation48_spill] sm:$0xff] %v11652_v57  ;;  %v11661_v14 = vsub.f32 %v898_v35, %v11652_v57  ;;  %v11674_v51 = vand.u32 4294901760, %v904_v11  ;;  %v907_v35 = vsel %vm773_vm1, %v366_v60, 0  ;;  %v367_v57 = vld [vmem:[%s17200_s1 + $0x168] sm:$0xff] }
  0xb4   : > { %2373 = vmatprep.mubr.f32.mxu0 %v10916_v0  ;;  %17994 = vst [vmem:[#allocation49_spill] sm:$0xff] %v11663_v54  ;;  %v11672_v3 = vsub.f32 %v901_v44, %v11663_v54  ;;  %v11685_v48 = vand.u32 4294901760, %v907_v35  ;;  %v910_v44 = vsel %vm773_vm1, %v367_v57, 0  ;;  %v368_v54 = vld [vmem:[%s17200_s1 + $0x170] sm:$0xff] }
  0xb5   : > { %17995 = vst [vmem:[#allocation50_spill] sm:$0xff] %v11674_v51  ;;  %v11683_v63 = vsub.f32 %v904_v11, %v11674_v51  ;;  %v11696_v45 = vand.u32 4294901760, %v910_v44  ;;  %v913_v11 = vsel %vm773_vm1, %v368_v54, 0  ;;  %v369_v51 = vld [vmem:[%s17200_s1 + $0x178] sm:$0xff] }
  0xb6   : > { %17996 = vst [vmem:[#allocation51_spill] sm:$0xff] %v11685_v48  ;;  %v11694_v60 = vsub.f32 %v907_v35, %v11685_v48  ;;  %v11707_v42 = vand.u32 4294901760, %v913_v11  ;;  %v916_v35 = vsel %vm773_vm1, %v369_v51, 0  ;;  %v370_v48 = vld [vmem:[%s17200_s1 + $0x180] sm:$0xff] }
  0xb7   : > { %2376 = vmatmul.mubr.f32.gmra.mrb[10].mxu0 %v11388_v22  ;;  %17997 = vst [vmem:[#allocation52_spill] sm:$0xff] %v11696_v45  ;;  %v11705_v57 = vsub.f32 %v910_v44, %v11696_v45  ;;  %v11718_v39 = vand.u32 4294901760, %v916_v35  ;;  %v919_v44 = vsel %vm773_vm1, %v370_v48, 0  ;;  %v371_v45 = vld [vmem:[%s17200_s1 + $0x188] sm:$0xff] }
  0xb8   : > { %2381 = vmatprep.mubr.f32.mxu0 %v10916_v0  ;;  %17998 = vst [vmem:[#allocation53_spill] sm:$0xff] %v11707_v42  ;;  %v11716_v54 = vsub.f32 %v913_v11, %v11707_v42  ;;  %v11729_v36 = vand.u32 4294901760, %v919_v44  ;;  %v922_v11 = vsel %vm773_vm1, %v371_v45, 0  ;;  %v372_v42 = vld [vmem:[%s17200_s1 + $0x190] sm:$0xff] }
  0xb9   : > { %17999 = vst [vmem:[#allocation54_spill] sm:$0xff] %v11718_v39  ;;  %v11727_v51 = vsub.f32 %v916_v35, %v11718_v39  ;;  %v11740_v33 = vand.u32 4294901760, %v922_v11  ;;  %v925_v35 = vsel %vm773_vm1, %v372_v42, 0  ;;  %v373_v39 = vld [vmem:[%s17200_s1 + $0x198] sm:$0xff] }
  0xba   : > { %18000 = vst [vmem:[#allocation55_spill] sm:$0xff] %v11729_v36  ;;  %v11738_v48 = vsub.f32 %v919_v44, %v11729_v36  ;;  %v11751_v30 = vand.u32 4294901760, %v925_v35  ;;  %v928_v44 = vsel %vm773_vm1, %v373_v39, 0  ;;  %v374_v36 = vld [vmem:[%s17200_s1 + $0x1a0] sm:$0xff] }
  0xbb   : > { %2384 = vmatmul.mubr.f32.gmra.mrb[12].mxu0 %v11394_v25  ;;  %18001 = vst [vmem:[#allocation56_spill] sm:$0xff] %v11740_v33  ;;  %v11749_v45 = vsub.f32 %v922_v11, %v11740_v33  ;;  %v11762_v27 = vand.u32 4294901760, %v928_v44  ;;  %v931_v11 = vsel %vm773_vm1, %v374_v36, 0  ;;  %v375_v33 = vld [vmem:[%s17200_s1 + $0x1a8] sm:$0xff] }
  0xbc   : > { %2389 = vmatprep.mubr.f32.mxu0 %v10916_v0  ;;  %18003 = vst [vmem:[#allocation58_spill] sm:$0xff] %v11751_v30  ;;  %v11760_v42 = vsub.f32 %v925_v35, %v11751_v30  ;;  %v11773_v24 = vand.u32 4294901760, %v931_v11  ;;  %v934_v35 = vsel %vm773_vm1, %v375_v33, 0  ;;  %v376_v30 = vld [vmem:[%s17200_s1 + $0x1b0] sm:$0xff] }
  0xbd   : > { %18002 = vst [vmem:[#allocation57_spill] sm:$0xff] %v11749_v45  ;;  %18005 = vst [vmem:[#allocation60_spill] sm:$0xff] %v11762_v27  ;;  %v11771_v39 = vsub.f32 %v928_v44, %v11762_v27  ;;  %v11784_v21 = vand.u32 4294901760, %v934_v35  ;;  %v937_v44 = vsel %vm773_vm1, %v376_v30, 0  ;;  %v377_v27 = vld [vmem:[%s17200_s1 + $0x1b8] sm:$0xff] }
  0xbe   : > { %18004 = vst [vmem:[#allocation59_spill] sm:$0xff] %v11760_v42  ;;  %18007 = vst [vmem:[#allocation62_spill] sm:$0xff] %v11773_v24  ;;  %v11782_v36 = vsub.f32 %v931_v11, %v11773_v24  ;;  %v11795_v4 = vand.u32 4294901760, %v937_v44  ;;  %v940_v11 = vsel %vm773_vm1, %v377_v27, 0  ;;  %v378_v24 = vld [vmem:[%s17200_s1 + $0x1c0] sm:$0xff] }
  0xbf   : > { %2392 = vmatmul.mubr.f32.gmra.mrb[14].mxu0 %v11400_v28  ;;  %18006 = vst [vmem:[#allocation61_spill] sm:$0xff] %v11771_v39  ;;  %18009 = vst [vmem:[#allocation64_spill] sm:$0xff] %v11784_v21  ;;  %v11793_v33 = vsub.f32 %v934_v35, %v11784_v21  ;;  %v11806_v18 = vand.u32 4294901760, %v940_v11  ;;  %v943_v35 = vsel %vm773_vm1, %v378_v24, 0  ;;  %v379_v21 = vld [vmem:[%s17200_s1 + $0x1c8] sm:$0xff] }
  0xc0   : > { %2397 = vmatprep.mubr.f32.mxu0 %v10916_v0  ;;  %18008 = vst [vmem:[#allocation63_spill] sm:$0xff] %v11782_v36  ;;  %18011 = vst [vmem:[#allocation66_spill] sm:$0xff] %v11795_v4  ;;  %v11804_v30 = vsub.f32 %v937_v44, %v11795_v4  ;;  %v946_v44 = vsel %vm773_vm1, %v379_v21, 0  ;;  %v380_v4 = vld [vmem:[%s17200_s1 + $0x1d0] sm:$0xff] }
  0xc1   : > { %18010 = vst [vmem:[#allocation65_spill] sm:$0xff] %v11793_v33  ;;  %18013 = vst [vmem:[#allocation68_spill] sm:$0xff] %v11806_v18  ;;  %v11815_v27 = vsub.f32 %v940_v11, %v11806_v18  ;;  %v949_v11 = vsel %vm773_vm1, %v380_v4, 0  ;;  %v381_v18 = vld [vmem:[%s17200_s1 + $0x1d8] sm:$0xff] }
  0xc2   : > { %18012 = vst [vmem:[#allocation67_spill] sm:$0xff] %v11804_v30 }
  0xc3   : > { %2400 = vmatmul.mubr.f32.gmra.mrb[16].mxu0 %v11406_v31  ;;  %18014 = vst [vmem:[#allocation69_spill] sm:$0xff] %v11815_v27 }
  0xc4   : > { %2405 = vmatprep.mubr.f32.mxu0 %v10916_v0 }
  0xc7   : > { %2408 = vmatmul.mubr.f32.gmra.mrb[18].mxu0 %v11412_v34 }
  0xc8   : > { %2413 = vmatprep.mubr.f32.mxu0 %v10916_v0 }
  0xcb   : > { %2416 = vmatmul.mubr.f32.gmra.mrb[20].mxu0 %v11418_v37 }
  0xcc   : > { %2421 = vmatprep.mubr.f32.mxu0 %v10916_v0 }
  0xcf   : > { %2424 = vmatmul.mubr.f32.gmra.mrb[22].mxu0 %v11424_v40 }
  0xd0   : > { %2429 = vmatprep.mubr.f32.mxu0 %v10916_v0 }
  0xd3   : > { %2432 = vmatmul.mubr.f32.gmra.mrb[24].mxu0 %v11430_v43 }
  0xd4   : > { %2437 = vmatprep.mubr.f32.mxu0 %v10916_v0 }
  0xd7   : > { %2440 = vmatmul.mubr.f32.gmra.mrb[26].mxu0 %v11436_v46 }
  0xd8   : > { %2445 = vmatprep.mubr.f32.mxu0 %v10916_v0 }
  0xdb   : > { %2448 = vmatmul.mubr.f32.gmra.mrb[28].mxu0 %v11442_v49 }
  0xdc   : > { %2453 = vmatprep.mubr.f32.mxu0 %v10916_v0 }
  0xdf   : > { %2456 = vmatmul.mubr.f32.gmra.mrb[30].mxu0 %v11448_v52 }
  0xe0   : > { %2461 = vmatprep.mubr.f32.mxu0 %v10916_v0 }
  0xe3   : > { %2464 = vmatmul.mubr.f32.gmra.mrb[32].mxu0 %v11454_v55 }
  0xe4   : > { %2469 = vmatprep.mubr.f32.mxu0 %v10916_v0 }
  0xe7   : > { %2472 = vmatmul.mubr.f32.gmra.mrb[34].mxu0 %v11460_v58 }
  0xe8   : > { %2477 = vmatprep.mubr.f32.mxu0 %v10916_v0 }
  0xeb   : > { %2480 = vmatmul.mubr.f32.gmra.mrb[36].mxu0 %v11466_v61 }
  0xec   : > { %2485 = vmatprep.mubr.f32.mxu0 %v10916_v0 }
  0xef   : > { %2488 = vmatmul.mubr.f32.gmra.mrb[38].mxu0 %v11472_v1 }
  0xf0   : > { %2493 = vmatprep.mubr.f32.mxu0 %v10916_v0 }
  0xf3   : > { %2496 = vmatmul.mubr.f32.gmra.mrb[40].mxu0 %v11478_v5 }
  0xf4   : > { %2501 = vmatprep.mubr.f32.mxu0 %v10916_v0 }
  0xf7   : > { %2504 = vmatmul.mubr.f32.gmra.mrb[42].mxu0 %v11484_v15 }
  0xf8   : > { %2509 = vmatprep.mubr.f32.mxu0 %v10916_v0 }
  0xfb   : > { %2512 = vmatmul.mubr.f32.gmra.mrb[44].mxu0 %v11490_v23 }
  0xfc   : > { %2517 = vmatprep.mubr.f32.mxu0 %v10916_v0 }
  0xff   : > { %2520 = vmatmul.mubr.f32.gmra.mrb[46].mxu0 %v11496_v32 }
 0x100   : > { %2525 = vmatprep.mubr.f32.mxu0 %v10916_v0 }
 0x103   : > { %2528 = vmatmul.mubr.f32.gmra.mrb[48].mxu0 %v11502_v41 }
 0x104   : > { %2533 = vmatprep.mubr.f32.mxu0 %v10916_v0 }
 0x107   : > { %2536 = vmatmul.mubr.f32.gmra.mrb[50].mxu0 %v11508_v50 }
 0x108   : > { %2541 = vmatprep.mubr.f32.mxu0 %v10916_v0 }
 0x10b   : > { %2544 = vmatmul.mubr.f32.gmra.mrb[52].mxu0 %v11514_v59 }
 0x10c   : > { %2549 = vmatprep.mubr.f32.mxu0 %v10916_v0 }
 0x10f   : > { %2552 = vmatmul.mubr.f32.gmra.mrb[54].mxu0 %v11520_v26 }
 0x110   : > { %2557 = vmatprep.mubr.f32.mxu0 %v10916_v0 }
 0x113   : > { %2560 = vmatmul.mubr.f32.gmra.mrb[56].mxu0 %v11526_v2 }
 0x114   : > { %2565 = vmatprep.mubr.f32.mxu0 %v10916_v0 }
 0x117   : > { %2568 = vmatmul.mubr.f32.gmra.mrb[58].mxu0 %v11532_v17 }
 0x118   : > { %2573 = vmatprep.mubr.f32.mxu0 %v10916_v0 }
 0x11b   : > { %2576 = vmatmul.mubr.f32.gmra.mrb[60].mxu0 %v11541_v53 }
 0x11c   : > { %2581 = vmatprep.mubr.f32.mxu0 %v10916_v0 }
 0x11f   : > { %2584 = vmatmul.mubr.f32.gmra.mrb[62].mxu0 %v11551_v10 }
 0x120   : > { %2589 = vmatprep.mubr.f32.mxu0 %v10916_v0 }
 0x123   : > { %2592 = vmatmul.mubr.f32.gmra.mrb[64].mxu0 %v11562_v6 }
 0x124   : > { %2597 = vmatprep.mubr.f32.mxu0 %v10916_v0 }
 0x127   : > { %2600 = vmatmul.mubr.f32.gmra.mrb[66].mxu0 %v11573_v62 }
 0x128   : > { %2605 = vmatprep.mubr.f32.mxu0 %v10916_v0 }
 0x12b   : > { %2608 = vmatmul.mubr.f32.gmra.mrb[68].mxu0 %v11584_v16 }
 0x12c   : > { %2613 = vmatprep.mubr.f32.mxu0 %v10916_v0 }
 0x12f   : > { %2616 = vmatmul.mubr.f32.gmra.mrb[70].mxu0 %v11595_v7 }
 0x130   : > { %2621 = vmatprep.mubr.f32.mxu0 %v10916_v0 }
 0x133   : > { %2624 = vmatmul.mubr.f32.gmra.mrb[72].mxu0 %v11606_v56 }
 0x134   : > { %2629 = vmatprep.mubr.f32.mxu0 %v10916_v0 }
 0x137   : > { %2632 = vmatmul.mubr.f32.gmra.mrb[74].mxu0 %v11617_v47 }
 0x138   : > { %2637 = vmatprep.mubr.f32.mxu0 %v10916_v0 }
 0x13b   : > { %2640 = vmatmul.mubr.f32.gmra.mrb[76].mxu0 %v11628_v38 }
 0x13c   : > { %2645 = vmatprep.mubr.f32.mxu0 %v10916_v0 }
 0x13f   : > { %2648 = vmatmul.mubr.f32.gmra.mrb[78].mxu0 %v11639_v29 }
 0x140   : > { %2653 = vmatprep.mubr.f32.mxu0 %v10916_v0 }
 0x143   : > { %2656 = vmatmul.mubr.f32.gmra.mrb[80].mxu0 %v11650_v20 }
 0x144   : > { %2661 = vmatprep.mubr.f32.mxu0 %v10916_v0 }
 0x147   : > { %2664 = vmatmul.mubr.f32.gmra.mrb[82].mxu0 %v11661_v14 }
 0x148   : > { %2669 = vmatprep.mubr.f32.mxu0 %v10916_v0 }
 0x14b   : > { %2672 = vmatmul.mubr.f32.gmra.mrb[84].mxu0 %v11672_v3 }
 0x14c   : > { %2677 = vmatprep.mubr.f32.mxu0 %v10916_v0 }
 0x14f   : > { %2680 = vmatmul.mubr.f32.gmra.mrb[86].mxu0 %v11683_v63 }
 0x150   : > { %2685 = vmatprep.mubr.f32.mxu0 %v10916_v0 }
 0x153   : > { %2688 = vmatmul.mubr.f32.gmra.mrb[88].mxu0 %v11694_v60 }
 0x154   : > { %2693 = vmatprep.mubr.f32.mxu0 %v10916_v0 }
 0x157   : > { %2696 = vmatmul.mubr.f32.gmra.mrb[90].mxu0 %v11705_v57 }
 0x158   : > { %2701 = vmatprep.mubr.f32.mxu0 %v10916_v0 }
 0x15b   : > { %2704 = vmatmul.mubr.f32.gmra.mrb[92].mxu0 %v11716_v54 }
 0x15c   : > { %2709 = vmatprep.mubr.f32.mxu0 %v10916_v0 }
 0x15f   : > { %2712 = vmatmul.mubr.f32.gmra.mrb[94].mxu0 %v11727_v51 }
 0x160   : > { %2717 = vmatprep.mubr.f32.mxu0 %v10916_v0 }
 0x163   : > { %2720 = vmatmul.mubr.f32.gmra.mrb[96].mxu0 %v11738_v48 }
 0x164   : > { %2725 = vmatprep.mubr.f32.mxu0 %v10916_v0 }
 0x167   : > { %2728 = vmatmul.mubr.f32.gmra.mrb[98].mxu0 %v11749_v45 }
 0x168   : > { %2733 = vmatprep.mubr.f32.mxu0 %v10916_v0 }
 0x16b   : > { %2736 = vmatmul.mubr.f32.gmra.mrb[100].mxu0 %v11760_v42 }
 0x16c   : > { %2741 = vmatprep.mubr.f32.mxu0 %v10916_v0 }
 0x16f   : > { %2744 = vmatmul.mubr.f32.gmra.mrb[102].mxu0 %v11771_v39 }
 0x170   : > { %2749 = vmatprep.mubr.f32.mxu0 %v10916_v0 }
 0x173   : > { %2752 = vmatmul.mubr.f32.gmra.mrb[104].mxu0 %v11782_v36  ;;  %v11817_v36 = vand.u32 4294901760, %v943_v35 }
 0x174   : > { %2757 = vmatprep.mubr.f32.mxu0 %v10916_v0 }
 0x175   : > { %18015 = vst [vmem:[#allocation70_spill] sm:$0xff] %v11817_v36  ;;  %v11826_v24 = vsub.f32 %v943_v35, %v11817_v36  ;;  %v952_v35 = vsel %vm773_vm1, %v381_v18, 0  ;;  %v382_v36 = vld [vmem:[%s17200_s1 + $0x1e0] sm:$0xff] }
 0x177   : > { %2760 = vmatmul.mubr.f32.gmra.mrb[106].mxu0 %v11793_v33  ;;  %18016 = vst [vmem:[#allocation71_spill] sm:$0xff] %v11826_v24  ;;  %v11828_v33 = vand.u32 4294901760, %v946_v44 }
 0x178   : > { %2765 = vmatprep.mubr.f32.mxu0 %v10916_v0 }
 0x179   : > { %18017 = vst [vmem:[#allocation72_spill] sm:$0xff] %v11828_v33  ;;  %v11837_v21 = vsub.f32 %v946_v44, %v11828_v33  ;;  %v955_v44 = vsel %vm773_vm1, %v382_v36, 0  ;;  %v383_v33 = vld [vmem:[%s17200_s1 + $0x1e8] sm:$0xff] }
 0x17b   : > { %2768 = vmatmul.mubr.f32.gmra.mrb[108].mxu0 %v11804_v30  ;;  %18018 = vst [vmem:[#allocation73_spill] sm:$0xff] %v11837_v21  ;;  %v11839_v30 = vand.u32 4294901760, %v949_v11 }
 0x17c   : > { %2773 = vmatprep.mubr.f32.mxu0 %v10916_v0 }
 0x17d   : > { %18019 = vst [vmem:[#allocation74_spill] sm:$0xff] %v11839_v30  ;;  %v11848_v4 = vsub.f32 %v949_v11, %v11839_v30  ;;  %v958_v11 = vsel %vm773_vm1, %v383_v33, 0  ;;  %v384_v30 = vld [vmem:[%s17200_s1 + $0x1f0] sm:$0xff] }
 0x17f   : > { %2776 = vmatmul.mubr.f32.gmra.mrb[110].mxu0 %v11815_v27  ;;  %18020 = vst [vmem:[#allocation75_spill] sm:$0xff] %v11848_v4  ;;  %v11850_v27 = vand.u32 4294901760, %v952_v35 }
 0x180   : > { %2781 = vmatprep.mubr.f32.mxu0 %v10916_v0 }
 0x181   : > { %18021 = vst [vmem:[#allocation76_spill] sm:$0xff] %v11850_v27  ;;  %v11859_v18 = vsub.f32 %v952_v35, %v11850_v27  ;;  %v961_v35 = vsel %vm773_vm1, %v384_v30, 0  ;;  %v385_v27 = vld [vmem:[%s17200_s1 + $0x1f8] sm:$0xff] }
 0x183   : > { %2784 = vmatmul.mubr.f32.gmra.mrb[112].mxu0 %v11826_v24  ;;  %18022 = vst [vmem:[#allocation77_spill] sm:$0xff] %v11859_v18  ;;  %v11861_v24 = vand.u32 4294901760, %v955_v44 }
 0x184   : > { %2789 = vmatprep.mubr.f32.mxu0 %v10916_v0 }
 0x185   : > { %18023 = vst [vmem:[#allocation78_spill] sm:$0xff] %v11861_v24  ;;  %v11870_v36 = vsub.f32 %v955_v44, %v11861_v24  ;;  %v964_v44 = vsel %vm773_vm1, %v385_v27, 0  ;;  %v17358_v27 = vand.u32 4294901760, %v11354_v9 }
 0x186   : > { %v11891_v30 = vand.u32 4294901760, %v964_v44 }
 0x187   : > { %2792 = vmatmul.mubr.f32.gmra.mrb[114].mxu0 %v11837_v21  ;;  %18024 = vst [vmem:[#allocation79_spill] sm:$0xff] %v11870_v36  ;;  %v11872_v21 = vand.u32 4294901760, %v958_v11 }
 0x188   : > { %2797 = vmatprep.mubr.f32.mxu0 %v10916_v0  ;;  %18029 = vst [vmem:[#allocation84_spill] sm:$0xff] %v11891_v30 }
 0x189   : > { %18025 = vst [vmem:[#allocation80_spill] sm:$0xff] %v11872_v21  ;;  %v11881_v33 = vsub.f32 %v958_v11, %v11872_v21  ;;  %v11896_v11 = vsub.f32 %v964_v44, %v11891_v30  ;;  %v18033_v44 = vld [vmem:[#allocation4_spill] sm:$0xff]  ;;  %v17405_v30 = vand.u32 4294901760, %v11370_v13 }
 0x18b   : > { %2800 = vmatmul.mubr.f32.gmra.mrb[116].mxu0 %v11848_v4  ;;  %18026 = vst [vmem:[#allocation81_spill] sm:$0xff] %v11881_v33  ;;  %v11883_v4 = vand.u32 4294901760, %v961_v35  ;;  %18030 = vst [vmem:[#allocation85_spill] sm:$0xff] %v11896_v11 }
 0x18c   : > { %2805 = vmatprep.mubr.f32.mxu0 %v10916_v0 }
 0x18d   : > { %18027 = vst [vmem:[#allocation82_spill] sm:$0xff] %v11883_v4  ;;  %v11889_v24 = vsub.f32 %v961_v35, %v11883_v4  ;;  %v17407_v35 = vand.u32 4294901760, %v11361_v12  ;;  %v18031_v4 = vld [vmem:[#allocation5_spill] sm:$0xff] }
 0x18e   : > { %v18032_v21 = vand.u32 4294901760, %v18031_v4  ;;  %v17361_v4 = vand.u32 4294901760, %v11388_v22 }
 0x18f   : > { %2808 = vmatmul.mubr.f32.gmra.mrb[118].mxu0 %v11859_v18  ;;  %18028 = vst [vmem:[#allocation83_spill] sm:$0xff] %v11889_v24 }
 0x190   : > { %2813 = vmatprep.mubr.f32.mxu0 %v10916_v0 }
 0x193   : > { %2816 = vmatmul.mubr.f32.gmra.mrb[120].mxu0 %v11870_v36 }
 0x194   : > { %2821 = vmatprep.mubr.f32.mxu0 %v10916_v0 }
 0x197   : > { %2824 = vmatmul.mubr.f32.gmra.mrb[122].mxu0 %v11881_v33 }
 0x198   : > { %2829 = vmatprep.mubr.f32.mxu0 %v10916_v0 }
 0x19b   : > { %2832 = vmatmul.mubr.f32.gmra.mrb[124].mxu0 %v11889_v24 }
 0x19c   : > { %2837 = vmatprep.mubr.f32.mxu0 %v10916_v0 }
 0x19f   : > { %2840 = vmatmul.mubr.f32.gmra.mrb[126].mxu0 %v11896_v11 }
 0x1a0   : > { %2912 = vmatprep.mubr.f32.mxu0 %v10916_v0 }
 0x1a3   : > { %2916 = vmatmul.mubr.f32.vlgmr.msra.gmra.mrb[0].mxu0 %v17358_v27  ;;  %v17359_v27 = vand.u32 4294901760, %v11376_v19 }
 0x1a4   : > { %2921 = vmatprep.mubr.f32.mxu0 %v10916_v0  ;;  %3496 = vmatpush1.msra.mxu0 %v18032_v21  ;;  %v17360_v21 = vand.u32 4294901760, %v11382_v8 }
 0x1a5   : > { %4009 = vmatprep.subr.mxu0 %v18033_v44  ;;  %v17362_v44 = vand.u32 4294901760, %v11394_v25 }
 0x1a7   : > { %2925 = vmatmul.mubr.f32.gmra.mrb[2].mxu0 %v17407_v35 }
 0x1a8   : > { %2930 = vmatprep.mubr.f32.mxu0 %v10916_v0 }
 0x1ab   : > { %2934 = vmatmul.mubr.f32.gmra.mrb[4].mxu0 %v17405_v30 }
 0x1ac   : > { %2939 = vmatprep.mubr.f32.mxu0 %v10916_v0 }
 0x1af   : > { %2943 = vmatmul.mubr.f32.gmra.mrb[6].mxu0 %v17359_v27  ;;  %v17363_v27 = vand.u32 4294901760, %v11400_v28 }
 0x1b0   : > { %2948 = vmatprep.mubr.f32.mxu0 %v10916_v0 }
 0x1b3   : > { %2952 = vmatmul.mubr.f32.gmra.mrb[8].mxu0 %v17360_v21  ;;  %v17364_v21 = vand.u32 4294901760, %v11406_v31 }
 0x1b4   : > { %2957 = vmatprep.mubr.f32.mxu0 %v10916_v0 }
 0x1b7   : > { %2961 = vmatmul.mubr.f32.gmra.mrb[10].mxu0 %v17361_v4  ;;  %v17365_v4 = vand.u32 4294901760, %v11412_v34 }
 0x1b8   : > { %2966 = vmatprep.mubr.f32.mxu0 %v10916_v0 }
 0x1bb   : > { %2970 = vmatmul.mubr.f32.gmra.mrb[12].mxu0 %v17362_v44  ;;  %v17366_v44 = vand.u32 4294901760, %v11418_v37 }
 0x1bc   : > { %2975 = vmatprep.mubr.f32.mxu0 %v10916_v0 }
 0x1bf   : > { %2979 = vmatmul.mubr.f32.gmra.mrb[14].mxu0 %v17363_v27  ;;  %v17367_v27 = vand.u32 4294901760, %v11424_v40 }
 0x1c0   : > { %2984 = vmatprep.mubr.f32.mxu0 %v10916_v0 }
 0x1c3   : > { %2988 = vmatmul.mubr.f32.gmra.mrb[16].mxu0 %v17364_v21  ;;  %v17368_v21 = vand.u32 4294901760, %v11430_v43 }
 0x1c4   : > { %2993 = vmatprep.mubr.f32.mxu0 %v10916_v0 }
 0x1c7   : > { %2997 = vmatmul.mubr.f32.gmra.mrb[18].mxu0 %v17365_v4  ;;  %v17369_v4 = vand.u32 4294901760, %v11436_v46 }
 0x1c8   : > { %3002 = vmatprep.mubr.f32.mxu0 %v10916_v0 }
 0x1cb   : > { %3006 = vmatmul.mubr.f32.gmra.mrb[20].mxu0 %v17366_v44  ;;  %v17370_v44 = vand.u32 4294901760, %v11442_v49 }
 0x1cc   : > { %3011 = vmatprep.mubr.f32.mxu0 %v10916_v0 }
 0x1cf   : > { %3015 = vmatmul.mubr.f32.gmra.mrb[22].mxu0 %v17367_v27  ;;  %v17371_v27 = vand.u32 4294901760, %v11448_v52 }
 0x1d0   : > { %3020 = vmatprep.mubr.f32.mxu0 %v10916_v0 }
 0x1d3   : > { %3024 = vmatmul.mubr.f32.gmra.mrb[24].mxu0 %v17368_v21  ;;  %v17372_v21 = vand.u32 4294901760, %v11454_v55 }
 0x1d4   : > { %3029 = vmatprep.mubr.f32.mxu0 %v10916_v0 }
 0x1d7   : > { %3033 = vmatmul.mubr.f32.gmra.mrb[26].mxu0 %v17369_v4  ;;  %v17373_v4 = vand.u32 4294901760, %v11460_v58 }
 0x1d8   : > { %3038 = vmatprep.mubr.f32.mxu0 %v10916_v0 }
 0x1db   : > { %3042 = vmatmul.mubr.f32.gmra.mrb[28].mxu0 %v17370_v44  ;;  %v17374_v44 = vand.u32 4294901760, %v11466_v61 }
 0x1dc   : > { %3047 = vmatprep.mubr.f32.mxu0 %v10916_v0 }
 0x1df   : > { %3051 = vmatmul.mubr.f32.gmra.mrb[30].mxu0 %v17371_v27  ;;  %v17375_v27 = vand.u32 4294901760, %v11472_v1 }
 0x1e0   : > { %3056 = vmatprep.mubr.f32.mxu0 %v10916_v0 }
 0x1e3   : > { %3060 = vmatmul.mubr.f32.gmra.mrb[32].mxu0 %v17372_v21  ;;  %v17376_v21 = vand.u32 4294901760, %v11478_v5 }
 0x1e4   : > { %3065 = vmatprep.mubr.f32.mxu0 %v10916_v0 }
 0x1e7   : > { %3069 = vmatmul.mubr.f32.gmra.mrb[34].mxu0 %v17373_v4  ;;  %v17377_v4 = vand.u32 4294901760, %v11484_v15 }
 0x1e8   : > { %3074 = vmatprep.mubr.f32.mxu0 %v10916_v0 }
 0x1eb   : > { %3078 = vmatmul.mubr.f32.gmra.mrb[36].mxu0 %v17374_v44  ;;  %v17378_v44 = vand.u32 4294901760, %v11490_v23 }
 0x1ec   : > { %3083 = vmatprep.mubr.f32.mxu0 %v10916_v0 }
 0x1ef   : > { %3087 = vmatmul.mubr.f32.gmra.mrb[38].mxu0 %v17375_v27  ;;  %v17379_v27 = vand.u32 4294901760, %v11496_v32 }
 0x1f0   : > { %3092 = vmatprep.mubr.f32.mxu0 %v10916_v0 }
 0x1f3   : > { %3096 = vmatmul.mubr.f32.gmra.mrb[40].mxu0 %v17376_v21  ;;  %v17380_v21 = vand.u32 4294901760, %v11502_v41 }
 0x1f4   : > { %3101 = vmatprep.mubr.f32.mxu0 %v10916_v0 }
 0x1f7   : > { %3105 = vmatmul.mubr.f32.gmra.mrb[42].mxu0 %v17377_v4  ;;  %v17381_v4 = vand.u32 4294901760, %v11508_v50 }
 0x1f8   : > { %3110 = vmatprep.mubr.f32.mxu0 %v10916_v0 }
 0x1fb   : > { %3114 = vmatmul.mubr.f32.gmra.mrb[44].mxu0 %v17378_v44  ;;  %v17382_v44 = vand.u32 4294901760, %v11514_v59 }
 0x1fc   : > { %3119 = vmatprep.mubr.f32.mxu0 %v10916_v0 }
 0x1ff   : > { %3123 = vmatmul.mubr.f32.gmra.mrb[46].mxu0 %v17379_v27  ;;  %v17383_v27 = vand.u32 4294901760, %v11520_v26 }
 0x200   : > { %3128 = vmatprep.mubr.f32.mxu0 %v10916_v0 }
 0x203   : > { %3132 = vmatmul.mubr.f32.gmra.mrb[48].mxu0 %v17380_v21  ;;  %v17384_v21 = vand.u32 4294901760, %v11526_v2 }
 0x204   : > { %3137 = vmatprep.mubr.f32.mxu0 %v10916_v0 }
 0x207   : > { %3141 = vmatmul.mubr.f32.gmra.mrb[50].mxu0 %v17381_v4  ;;  %v17385_v4 = vand.u32 4294901760, %v11532_v17 }
 0x208   : > { %3146 = vmatprep.mubr.f32.mxu0 %v10916_v0 }
 0x20b   : > { %3150 = vmatmul.mubr.f32.gmra.mrb[52].mxu0 %v17382_v44  ;;  %v17386_v44 = vand.u32 4294901760, %v11541_v53 }
 0x20c   : > { %3155 = vmatprep.mubr.f32.mxu0 %v10916_v0 }
 0x20f   : > { %3159 = vmatmul.mubr.f32.gmra.mrb[54].mxu0 %v17383_v27  ;;  %v17387_v27 = vand.u32 4294901760, %v11551_v10 }
 0x210   : > { %3164 = vmatprep.mubr.f32.mxu0 %v10916_v0 }
 0x213   : > { %3168 = vmatmul.mubr.f32.gmra.mrb[56].mxu0 %v17384_v21  ;;  %v17388_v21 = vand.u32 4294901760, %v11562_v6 }
 0x214   : > { %3173 = vmatprep.mubr.f32.mxu0 %v10916_v0 }
 0x217   : > { %3177 = vmatmul.mubr.f32.gmra.mrb[58].mxu0 %v17385_v4  ;;  %v17389_v4 = vand.u32 4294901760, %v11573_v62 }
 0x218   : > { %3182 = vmatprep.mubr.f32.mxu0 %v10916_v0 }
 0x21b   : > { %3186 = vmatmul.mubr.f32.gmra.mrb[60].mxu0 %v17386_v44  ;;  %v17390_v44 = vand.u32 4294901760, %v11584_v16 }
 0x21c   : > { %3191 = vmatprep.mubr.f32.mxu0 %v10916_v0 }
 0x21f   : > { %3195 = vmatmul.mubr.f32.gmra.mrb[62].mxu0 %v17387_v27  ;;  %v17391_v27 = vand.u32 4294901760, %v11595_v7 }
 0x220   : > { %3200 = vmatprep.mubr.f32.mxu0 %v10916_v0 }
 0x223   : > { %3204 = vmatmul.mubr.f32.gmra.mrb[64].mxu0 %v17388_v21  ;;  %v17392_v21 = vand.u32 4294901760, %v11606_v56 }
 0x224   : > { %3209 = vmatprep.mubr.f32.mxu0 %v10916_v0 }
 0x227   : > { %3213 = vmatmul.mubr.f32.gmra.mrb[66].mxu0 %v17389_v4  ;;  %v17393_v4 = vand.u32 4294901760, %v11617_v47 }
 0x228   : > { %3218 = vmatprep.mubr.f32.mxu0 %v10916_v0 }
 0x22b   : > { %3222 = vmatmul.mubr.f32.gmra.mrb[68].mxu0 %v17390_v44  ;;  %v17394_v44 = vand.u32 4294901760, %v11628_v38 }
 0x22c   : > { %3227 = vmatprep.mubr.f32.mxu0 %v10916_v0 }
 0x22f   : > { %3231 = vmatmul.mubr.f32.gmra.mrb[70].mxu0 %v17391_v27  ;;  %v17395_v27 = vand.u32 4294901760, %v11639_v29 }
 0x230   : > { %3236 = vmatprep.mubr.f32.mxu0 %v10916_v0 }
 0x233   : > { %3240 = vmatmul.mubr.f32.gmra.mrb[72].mxu0 %v17392_v21  ;;  %v17396_v21 = vand.u32 4294901760, %v11650_v20 }
 0x234   : > { %3245 = vmatprep.mubr.f32.mxu0 %v10916_v0 }
 0x237   : > { %3249 = vmatmul.mubr.f32.gmra.mrb[74].mxu0 %v17393_v4  ;;  %v17397_v4 = vand.u32 4294901760, %v11661_v14 }
 0x238   : > { %3254 = vmatprep.mubr.f32.mxu0 %v10916_v0 }
 0x23b   : > { %3258 = vmatmul.mubr.f32.gmra.mrb[76].mxu0 %v17394_v44  ;;  %v17398_v44 = vand.u32 4294901760, %v11672_v3 }
 0x23c   : > { %3263 = vmatprep.mubr.f32.mxu0 %v10916_v0 }
 0x23f   : > { %3267 = vmatmul.mubr.f32.gmra.mrb[78].mxu0 %v17395_v27  ;;  %v17399_v27 = vand.u32 4294901760, %v11683_v63 }
 0x240   : > { %3272 = vmatprep.mubr.f32.mxu0 %v10916_v0 }
 0x243   : > { %3276 = vmatmul.mubr.f32.gmra.mrb[80].mxu0 %v17396_v21  ;;  %v17400_v21 = vand.u32 4294901760, %v11694_v60 }
 0x244   : > { %3281 = vmatprep.mubr.f32.mxu0 %v10916_v0 }
 0x247   : > { %3285 = vmatmul.mubr.f32.gmra.mrb[82].mxu0 %v17397_v4  ;;  %v17401_v4 = vand.u32 4294901760, %v11705_v57 }
 0x248   : > { %3290 = vmatprep.mubr.f32.mxu0 %v10916_v0 }
 0x24b   : > { %3294 = vmatmul.mubr.f32.gmra.mrb[84].mxu0 %v17398_v44  ;;  %v17402_v44 = vand.u32 4294901760, %v11716_v54 }
 0x24c   : > { %3299 = vmatprep.mubr.f32.mxu0 %v10916_v0 }
 0x24f   : > { %3303 = vmatmul.mubr.f32.gmra.mrb[86].mxu0 %v17399_v27  ;;  %v17403_v27 = vand.u32 4294901760, %v11727_v51 }
 0x250   : > { %3308 = vmatprep.mubr.f32.mxu0 %v10916_v0 }
 0x253   : > { %3312 = vmatmul.mubr.f32.gmra.mrb[88].mxu0 %v17400_v21  ;;  %v17404_v21 = vand.u32 4294901760, %v11738_v48 }
 0x254   : > { %3317 = vmatprep.mubr.f32.mxu0 %v10916_v0 }
 0x257   : > { %3321 = vmatmul.mubr.f32.gmra.mrb[90].mxu0 %v17401_v4  ;;  %v17406_v4 = vand.u32 4294901760, %v11749_v45  ;;  %v18051_v45 = vld [vmem:[#allocation12_spill] sm:$0xff] }
 0x258   : > { %3326 = vmatprep.mubr.f32.mxu0 %v10916_v0 }
 0x25b   : > { %3330 = vmatmul.mubr.f32.gmra.mrb[92].mxu0 %v17402_v44  ;;  %v17408_v44 = vand.u32 4294901760, %v11760_v42 }
 0x25c   : > { %3335 = vmatprep.mubr.f32.mxu0 %v10916_v0 }
 0x25f   : > { %3339 = vmatmul.mubr.f32.gmra.mrb[94].mxu0 %v17403_v27  ;;  %v17411_v27 = vand.u32 4294901760, %v11771_v39 }
 0x260   : > { %3344 = vmatprep.mubr.f32.mxu0 %v10916_v0 }
 0x263   : > { %3348 = vmatmul.mubr.f32.gmra.mrb[96].mxu0 %v17404_v21  ;;  %v18034_v21 = vld [vmem:[#allocation63_spill] sm:$0xff] }
 0x264   : > { %3353 = vmatprep.mubr.f32.mxu0 %v10916_v0  ;;  %v17414_v30 = vand.u32 4294901760, %v18034_v21 }
 0x267   : > { %3357 = vmatmul.mubr.f32.gmra.mrb[98].mxu0 %v17406_v4  ;;  %v18035_v4 = vld [vmem:[#allocation65_spill] sm:$0xff] }
 0x268   : > { %3362 = vmatprep.mubr.f32.mxu0 %v10916_v0  ;;  %v17416_v35 = vand.u32 4294901760, %v18035_v4 }
 0x26b   : > { %3366 = vmatmul.mubr.f32.gmra.mrb[100].mxu0 %v17408_v44  ;;  %v18036_v44 = vld [vmem:[#allocation67_spill] sm:$0xff] }
 0x26c   : > { %3371 = vmatprep.mubr.f32.mxu0 %v10916_v0  ;;  %v17418_v42 = vand.u32 4294901760, %v18036_v44 }
 0x26f   : > { %3375 = vmatmul.mubr.f32.gmra.mrb[102].mxu0 %v17411_v27  ;;  %v18037_v27 = vld [vmem:[#allocation69_spill] sm:$0xff] }
 0x270   : > { %3380 = vmatprep.mubr.f32.mxu0 %v10916_v0  ;;  %v17420_v39 = vand.u32 4294901760, %v18037_v27 }
 0x273   : > { %3384 = vmatmul.mubr.f32.gmra.mrb[104].mxu0 %v17414_v30  ;;  %v18038_v30 = vld [vmem:[#allocation71_spill] sm:$0xff] }
 0x274   : > { %3389 = vmatprep.mubr.f32.mxu0 %v10916_v0  ;;  %v17421_v21 = vand.u32 4294901760, %v18038_v30  ;;  %v18049_v30 = vld [vmem:[#allocation6_spill] sm:$0xff] }
 0x275   : > { %v18050_v27 = vand.u32 4294901760, %v18049_v30 }
 0x277   : > { %3393 = vmatmul.mubr.f32.gmra.mrb[106].mxu0 %v17416_v35  ;;  %v18039_v35 = vld [vmem:[#allocation73_spill] sm:$0xff] }
 0x278   : > { %3398 = vmatprep.mubr.f32.mxu0 %v10916_v0  ;;  %v17422_v4 = vand.u32 4294901760, %v18039_v35 }
 0x27b   : > { %3402 = vmatmul.mubr.f32.gmra.mrb[108].mxu0 %v17418_v42  ;;  %v18040_v42 = vld [vmem:[#allocation75_spill] sm:$0xff] }
 0x27c   : > { %3407 = vmatprep.mubr.f32.mxu0 %v10916_v0  ;;  %v17423_v44 = vand.u32 4294901760, %v18040_v42 }
 0x27f   : > { %3411 = vmatmul.mubr.f32.gmra.mrb[110].mxu0 %v17420_v39  ;;  %v17424_v39 = vand.u32 4294901760, %v11859_v18  ;;  %v18047_v18 = vld [vmem:[#allocation11_spill] sm:$0xff] }
 0x280   : > { %3416 = vmatprep.mubr.f32.mxu0 %v10916_v0 }
 0x283   : > { %3420 = vmatmul.mubr.f32.gmra.mrb[112].mxu0 %v17421_v21  ;;  %v17425_v21 = vand.u32 4294901760, %v11870_v36 }
 0x284   : > { %3425 = vmatprep.mubr.f32.mxu0 %v10916_v0 }
 0x287   : > { %3429 = vmatmul.mubr.f32.gmra.mrb[114].mxu0 %v17422_v4  ;;  %v17426_v4 = vand.u32 4294901760, %v11881_v33  ;;  %v18043_v33 = vld [vmem:[#allocation8_spill] sm:$0xff] }
 0x288   : > { %3434 = vmatprep.mubr.f32.mxu0 %v10916_v0 }
 0x28b   : > { %3438 = vmatmul.mubr.f32.gmra.mrb[116].mxu0 %v17423_v44  ;;  %v17429_v44 = vand.u32 4294901760, %v11889_v24  ;;  %v18045_v24 = vld [vmem:[#allocation10_spill] sm:$0xff] }
 0x28c   : > { %3443 = vmatprep.mubr.f32.mxu0 %v10916_v0 }
 0x28f   : > { %3447 = vmatmul.mubr.f32.gmra.mrb[118].mxu0 %v17424_v39  ;;  %v17432_v39 = vand.u32 4294901760, %v11896_v11 }
 0x290   : > { %3452 = vmatprep.mubr.f32.mxu0 %v10916_v0 }
 0x293   : > { %3456 = vmatmul.mubr.f32.gmra.mrb[120].mxu0 %v17425_v21  ;;  %v18041_v21 = vld [vmem:[#allocation7_spill] sm:$0xff] }
 0x294   : > { %3461 = vmatprep.mubr.f32.mxu0 %v10916_v0 }
 0x297   : > { %3465 = vmatmul.mubr.f32.gmra.mrb[122].mxu0 %v17426_v4  ;;  %v18042_v4 = vld [vmem:[#allocation3_spill] sm:$0xff] }
 0x298   : > { %3470 = vmatprep.mubr.f32.mxu0 %v10916_v0 }
 0x29b   : > { %3474 = vmatmul.mubr.f32.gmra.mrb[124].mxu0 %v17429_v44  ;;  %v18044_v44 = vld [vmem:[#allocation9_spill] sm:$0xff] }
 0x29c   : > { %3479 = vmatprep.mubr.f32.mxu0 %v10916_v0 }
 0x29f   : > { %3483 = vmatmul.mubr.f32.gmra.mrb[126].mxu0 %v17432_v39  ;;  %v18046_v39 = vand.u32 4294901760, %v11354_v9 }
 0x2a0   : > { %3559 = vmatprep.mubr.f32.mxu0 %v10916_v0 }
 0x2a1   : > { %v1041_v11 = vsub.f32 %v11354_v9, %v18046_v39  ;;  %v18052_v9 = vand.u32 4294901760, %v11370_v13 }
 0x2a3   : > { %3561 = vmatmul.mubr.f32.vlgmr.msra.gmra.mrb[0].mxu0 %v18041_v21  ;;  %v1042_v36 = vand.u32 4294901760, %v1041_v11  ;;  %v1063_v39 = vsub.f32 %v11370_v13, %v18052_v9  ;;  %v18056_v13 = vand.u32 4294901760, %v11382_v8  ;;  %v18057_v9 = vld [vmem:[#allocation15_spill] sm:$0xff] }
 0x2a4   : > { %3566 = vmatprep.mubr.f32.mxu0 %v10916_v0  ;;  %4011 = vmatpush1.msra.mxu0 %v18042_v4  ;;  %v18048_v4 = vand.u32 4294901760, %v11361_v12 }
 0x2a5   : > { %1043 = vmatmul.mubr.f32.vlgmr.msra.gmra.mrb[0].mxu1 %v1042_v36  ;;  %v18053_v36 = vld [vmem:[#allocation13_spill] sm:$0xff] }
 0x2a6   : > { %v1052_v42 = vsub.f32 %v11361_v12, %v18048_v4  ;;  %1048 = vmatprep.mubr.f32.mxu1 %v10916_v0  ;;  %10094 = vmatpush1.msra.mxu1 %v18050_v27  ;;  %v1064_v12 = vand.u32 4294901760, %v1063_v39  ;;  %v18055_v27 = vld [vmem:[#allocation14_spill] sm:$0xff] }
 0x2a7   : > { %3568 = vmatmul.mubr.f32.gmra.mrb[2].mxu0 %v18043_v33 }
 0x2a8   : > { %3573 = vmatprep.mubr.f32.mxu0 %v10916_v0  ;;  %v1053_v35 = vand.u32 4294901760, %v1052_v42  ;;  %v18054_v42 = vand.u32 4294901760, %v11376_v19 }
 0x2aa   : > { %1054 = vmatmul.mubr.f32.gmra.mrb[2].mxu1 %v1053_v35  ;;  %v1074_v30 = vsub.f32 %v11376_v19, %v18054_v42  ;;  %v1085_v35 = vsub.f32 %v11382_v8, %v18056_v13  ;;  %v18058_v19 = vand.u32 4294901760, %v11388_v22  ;;  %v18059_v42 = vld [vmem:[#allocation16_spill] sm:$0xff]  ;;  %v18060_v8 = vand.u32 4294901760, %v11394_v25  ;;  %v18061_v13 = vld [vmem:[#allocation17_spill] sm:$0xff] }
 0x2ab   : > { %3575 = vmatmul.mubr.f32.gmra.mrb[4].mxu0 %v18044_v44  ;;  %1059 = vmatprep.mubr.f32.mxu1 %v10916_v0 }
 0x2ac   : > { %3580 = vmatprep.mubr.f32.mxu0 %v10916_v0  ;;  %v1075_v11 = vand.u32 4294901760, %v1074_v30  ;;  %v1086_v4 = vand.u32 4294901760, %v1085_v35  ;;  %v1096_v39 = vsub.f32 %v11388_v22, %v18058_v19  ;;  %v1107_v30 = vsub.f32 %v11394_v25, %v18060_v8  ;;  %v18063_v19 = vld [vmem:[#allocation18_spill] sm:$0xff]  ;;  %v18065_v8 = vld [vmem:[#allocation19_spill] sm:$0xff] }
 0x2ad   : > { %v18062_v22 = vand.u32 4294901760, %v11400_v28  ;;  %v18064_v25 = vand.u32 4294901760, %v11406_v31 }
 0x2ae   : > { %1065 = vmatmul.mubr.f32.gmra.mrb[4].mxu1 %v1064_v12  ;;  %v1097_v12 = vand.u32 4294901760, %v1096_v39 }
 0x2af   : > { %3582 = vmatmul.mubr.f32.gmra.mrb[6].mxu0 %v18045_v24  ;;  %1070 = vmatprep.mubr.f32.mxu1 %v10916_v0  ;;  %v1118_v35 = vsub.f32 %v11400_v28, %v18062_v22  ;;  %v1129_v39 = vsub.f32 %v11406_v31, %v18064_v25  ;;  %v18066_v28 = vand.u32 4294901760, %v11412_v34  ;;  %v18067_v22 = vld [vmem:[#allocation20_spill] sm:$0xff]  ;;  %v18068_v31 = vand.u32 4294901760, %v11418_v37  ;;  %v18069_v25 = vld [vmem:[#allocation21_spill] sm:$0xff] }
 0x2b0   : > { %3587 = vmatprep.mubr.f32.mxu0 %v10916_v0 }
 0x2b2   : > { %1076 = vmatmul.mubr.f32.gmra.mrb[6].mxu1 %v1075_v11  ;;  %v1108_v11 = vand.u32 4294901760, %v1107_v30  ;;  %v1140_v30 = vsub.f32 %v11412_v34, %v18066_v28  ;;  %v18070_v34 = vand.u32 4294901760, %v11424_v40  ;;  %v18071_v28 = vld [vmem:[#allocation22_spill] sm:$0xff] }
 0x2b3   : > { %3589 = vmatmul.mubr.f32.gmra.mrb[8].mxu0 %v18047_v18  ;;  %1081 = vmatprep.mubr.f32.mxu1 %v10916_v0 }
 0x2b4   : > { %3594 = vmatprep.mubr.f32.mxu0 %v10916_v0 }
 0x2b6   : > { %1087 = vmatmul.mubr.f32.gmra.mrb[8].mxu1 %v1086_v4  ;;  %v1119_v4 = vand.u32 4294901760, %v1118_v35  ;;  %v1151_v35 = vsub.f32 %v11418_v37, %v18068_v31  ;;  %v18072_v37 = vand.u32 4294901760, %v11430_v43  ;;  %v18073_v31 = vld [vmem:[#allocation23_spill] sm:$0xff] }
 0x2b7   : > { %3596 = vmatmul.mubr.f32.gmra.mrb[10].mxu0 %v18051_v45  ;;  %1092 = vmatprep.mubr.f32.mxu1 %v10916_v0 }
 0x2b8   : > { %3601 = vmatprep.mubr.f32.mxu0 %v10916_v0 }
 0x2ba   : > { %1098 = vmatmul.mubr.f32.gmra.mrb[10].mxu1 %v1097_v12  ;;  %v1130_v12 = vand.u32 4294901760, %v1129_v39  ;;  %v1162_v39 = vsub.f32 %v11424_v40, %v18070_v34  ;;  %v18074_v40 = vand.u32 4294901760, %v11436_v46  ;;  %v18075_v34 = vld [vmem:[#allocation24_spill] sm:$0xff] }
 0x2bb   : > { %3603 = vmatmul.mubr.f32.gmra.mrb[12].mxu0 %v18053_v36  ;;  %1103 = vmatprep.mubr.f32.mxu1 %v10916_v0 }
 0x2bc   : > { %3608 = vmatprep.mubr.f32.mxu0 %v10916_v0 }
 0x2be   : > { %1109 = vmatmul.mubr.f32.gmra.mrb[12].mxu1 %v1108_v11  ;;  %v1141_v11 = vand.u32 4294901760, %v1140_v30  ;;  %v1173_v30 = vsub.f32 %v11430_v43, %v18072_v37  ;;  %v18076_v43 = vand.u32 4294901760, %v11442_v49  ;;  %v18077_v37 = vld [vmem:[#allocation25_spill] sm:$0xff] }
 0x2bf   : > { %3610 = vmatmul.mubr.f32.gmra.mrb[14].mxu0 %v18055_v27  ;;  %1114 = vmatprep.mubr.f32.mxu1 %v10916_v0 }
 0x2c0   : > { %3615 = vmatprep.mubr.f32.mxu0 %v10916_v0 }
 0x2c2   : > { %1120 = vmatmul.mubr.f32.gmra.mrb[14].mxu1 %v1119_v4  ;;  %v1152_v4 = vand.u32 4294901760, %v1151_v35  ;;  %v1184_v35 = vsub.f32 %v11436_v46, %v18074_v40  ;;  %v18078_v46 = vand.u32 4294901760, %v11448_v52  ;;  %v18079_v40 = vld [vmem:[#allocation26_spill] sm:$0xff] }
 0x2c3   : > { %3617 = vmatmul.mubr.f32.gmra.mrb[16].mxu0 %v18057_v9  ;;  %1125 = vmatprep.mubr.f32.mxu1 %v10916_v0 }
 0x2c4   : > { %3622 = vmatprep.mubr.f32.mxu0 %v10916_v0 }
 0x2c6   : > { %1131 = vmatmul.mubr.f32.gmra.mrb[16].mxu1 %v1130_v12  ;;  %v1163_v12 = vand.u32 4294901760, %v1162_v39  ;;  %v1195_v39 = vsub.f32 %v11442_v49, %v18076_v43  ;;  %v18080_v49 = vand.u32 4294901760, %v11454_v55  ;;  %v18081_v43 = vld [vmem:[#allocation27_spill] sm:$0xff] }
 0x2c7   : > { %3624 = vmatmul.mubr.f32.gmra.mrb[18].mxu0 %v18059_v42  ;;  %1136 = vmatprep.mubr.f32.mxu1 %v10916_v0 }
 0x2c8   : > { %3629 = vmatprep.mubr.f32.mxu0 %v10916_v0 }
 0x2ca   : > { %1142 = vmatmul.mubr.f32.gmra.mrb[18].mxu1 %v1141_v11  ;;  %v1174_v11 = vand.u32 4294901760, %v1173_v30  ;;  %v1206_v30 = vsub.f32 %v11448_v52, %v18078_v46  ;;  %v18082_v52 = vand.u32 4294901760, %v11460_v58  ;;  %v18083_v46 = vld [vmem:[#allocation28_spill] sm:$0xff] }
 0x2cb   : > { %3631 = vmatmul.mubr.f32.gmra.mrb[20].mxu0 %v18061_v13  ;;  %1147 = vmatprep.mubr.f32.mxu1 %v10916_v0 }
 0x2cc   : > { %3636 = vmatprep.mubr.f32.mxu0 %v10916_v0 }
 0x2ce   : > { %1153 = vmatmul.mubr.f32.gmra.mrb[20].mxu1 %v1152_v4  ;;  %v1185_v4 = vand.u32 4294901760, %v1184_v35  ;;  %v1217_v35 = vsub.f32 %v11454_v55, %v18080_v49  ;;  %v18084_v55 = vand.u32 4294901760, %v11466_v61  ;;  %v18085_v49 = vld [vmem:[#allocation29_spill] sm:$0xff] }
 0x2cf   : > { %3638 = vmatmul.mubr.f32.gmra.mrb[22].mxu0 %v18063_v19  ;;  %1158 = vmatprep.mubr.f32.mxu1 %v10916_v0 }
 0x2d0   : > { %3643 = vmatprep.mubr.f32.mxu0 %v10916_v0 }
 0x2d2   : > { %1164 = vmatmul.mubr.f32.gmra.mrb[22].mxu1 %v1163_v12  ;;  %v1196_v12 = vand.u32 4294901760, %v1195_v39  ;;  %v1228_v39 = vsub.f32 %v11460_v58, %v18082_v52  ;;  %v18086_v58 = vand.u32 4294901760, %v11472_v1  ;;  %v18087_v52 = vld [vmem:[#allocation30_spill] sm:$0xff] }
 0x2d3   : > { %3645 = vmatmul.mubr.f32.gmra.mrb[24].mxu0 %v18065_v8  ;;  %1169 = vmatprep.mubr.f32.mxu1 %v10916_v0 }
 0x2d4   : > { %3650 = vmatprep.mubr.f32.mxu0 %v10916_v0 }
 0x2d6   : > { %1175 = vmatmul.mubr.f32.gmra.mrb[24].mxu1 %v1174_v11  ;;  %v1207_v11 = vand.u32 4294901760, %v1206_v30  ;;  %v1239_v30 = vsub.f32 %v11466_v61, %v18084_v55  ;;  %v18088_v61 = vand.u32 4294901760, %v11478_v5  ;;  %v18089_v55 = vld [vmem:[#allocation31_spill] sm:$0xff] }
 0x2d7   : > { %3652 = vmatmul.mubr.f32.gmra.mrb[26].mxu0 %v18067_v22  ;;  %1180 = vmatprep.mubr.f32.mxu1 %v10916_v0 }
 0x2d8   : > { %3657 = vmatprep.mubr.f32.mxu0 %v10916_v0 }
 0x2da   : > { %1186 = vmatmul.mubr.f32.gmra.mrb[26].mxu1 %v1185_v4  ;;  %v1218_v4 = vand.u32 4294901760, %v1217_v35  ;;  %v1250_v35 = vsub.f32 %v11472_v1, %v18086_v58  ;;  %v18090_v1 = vand.u32 4294901760, %v11484_v15  ;;  %v18091_v58 = vld [vmem:[#allocation32_spill] sm:$0xff] }
 0x2db   : > { %3659 = vmatmul.mubr.f32.gmra.mrb[28].mxu0 %v18069_v25  ;;  %1191 = vmatprep.mubr.f32.mxu1 %v10916_v0 }
 0x2dc   : > { %3664 = vmatprep.mubr.f32.mxu0 %v10916_v0 }
 0x2de   : > { %1197 = vmatmul.mubr.f32.gmra.mrb[28].mxu1 %v1196_v12  ;;  %v1229_v12 = vand.u32 4294901760, %v1228_v39  ;;  %v1261_v39 = vsub.f32 %v11478_v5, %v18088_v61  ;;  %v18092_v5 = vand.u32 4294901760, %v11490_v23  ;;  %v18093_v61 = vld [vmem:[#allocation33_spill] sm:$0xff] }
 0x2df   : > { %3666 = vmatmul.mubr.f32.gmra.mrb[30].mxu0 %v18071_v28  ;;  %1202 = vmatprep.mubr.f32.mxu1 %v10916_v0 }
 0x2e0   : > { %3671 = vmatprep.mubr.f32.mxu0 %v10916_v0 }
 0x2e2   : > { %1208 = vmatmul.mubr.f32.gmra.mrb[30].mxu1 %v1207_v11  ;;  %v1240_v11 = vand.u32 4294901760, %v1239_v30  ;;  %v1272_v30 = vsub.f32 %v11484_v15, %v18090_v1  ;;  %v18094_v15 = vand.u32 4294901760, %v11496_v32  ;;  %v18095_v1 = vld [vmem:[#allocation35_spill] sm:$0xff] }
 0x2e3   : > { %3673 = vmatmul.mubr.f32.gmra.mrb[32].mxu0 %v18073_v31  ;;  %1213 = vmatprep.mubr.f32.mxu1 %v10916_v0 }
 0x2e4   : > { %3678 = vmatprep.mubr.f32.mxu0 %v10916_v0 }
 0x2e6   : > { %1219 = vmatmul.mubr.f32.gmra.mrb[32].mxu1 %v1218_v4  ;;  %v1251_v4 = vand.u32 4294901760, %v1250_v35  ;;  %v1283_v35 = vsub.f32 %v11490_v23, %v18092_v5  ;;  %v18096_v23 = vand.u32 4294901760, %v11502_v41  ;;  %v18097_v5 = vld [vmem:[#allocation37_spill] sm:$0xff] }
 0x2e7   : > { %3680 = vmatmul.mubr.f32.gmra.mrb[34].mxu0 %v18075_v34  ;;  %1224 = vmatprep.mubr.f32.mxu1 %v10916_v0 }
 0x2e8   : > { %3685 = vmatprep.mubr.f32.mxu0 %v10916_v0 }
 0x2ea   : > { %1230 = vmatmul.mubr.f32.gmra.mrb[34].mxu1 %v1229_v12  ;;  %v1262_v12 = vand.u32 4294901760, %v1261_v39  ;;  %v1294_v39 = vsub.f32 %v11496_v32, %v18094_v15  ;;  %v18098_v32 = vand.u32 4294901760, %v11508_v50  ;;  %v18099_v15 = vld [vmem:[#allocation39_spill] sm:$0xff] }
 0x2eb   : > { %3687 = vmatmul.mubr.f32.gmra.mrb[36].mxu0 %v18077_v37  ;;  %1235 = vmatprep.mubr.f32.mxu1 %v10916_v0 }
 0x2ec   : > { %3692 = vmatprep.mubr.f32.mxu0 %v10916_v0 }
 0x2ee   : > { %1241 = vmatmul.mubr.f32.gmra.mrb[36].mxu1 %v1240_v11  ;;  %v1273_v11 = vand.u32 4294901760, %v1272_v30  ;;  %v1305_v30 = vsub.f32 %v11502_v41, %v18096_v23  ;;  %v18100_v41 = vand.u32 4294901760, %v11514_v59  ;;  %v18101_v23 = vld [vmem:[#allocation40_spill] sm:$0xff] }
 0x2ef   : > { %3694 = vmatmul.mubr.f32.gmra.mrb[38].mxu0 %v18079_v40  ;;  %1246 = vmatprep.mubr.f32.mxu1 %v10916_v0 }
 0x2f0   : > { %3699 = vmatprep.mubr.f32.mxu0 %v10916_v0 }
 0x2f2   : > { %1252 = vmatmul.mubr.f32.gmra.mrb[38].mxu1 %v1251_v4  ;;  %v1284_v4 = vand.u32 4294901760, %v1283_v35  ;;  %v1316_v35 = vsub.f32 %v11508_v50, %v18098_v32  ;;  %v18102_v50 = vand.u32 4294901760, %v11520_v26  ;;  %v18103_v32 = vld [vmem:[#allocation42_spill] sm:$0xff] }
 0x2f3   : > { %3701 = vmatmul.mubr.f32.gmra.mrb[40].mxu0 %v18081_v43  ;;  %1257 = vmatprep.mubr.f32.mxu1 %v10916_v0 }
 0x2f4   : > { %3706 = vmatprep.mubr.f32.mxu0 %v10916_v0 }
 0x2f6   : > { %1263 = vmatmul.mubr.f32.gmra.mrb[40].mxu1 %v1262_v12  ;;  %v1295_v12 = vand.u32 4294901760, %v1294_v39  ;;  %v1327_v39 = vsub.f32 %v11514_v59, %v18100_v41  ;;  %v18104_v59 = vand.u32 4294901760, %v11526_v2  ;;  %v18105_v41 = vld [vmem:[#allocation34_spill] sm:$0xff] }
 0x2f7   : > { %3708 = vmatmul.mubr.f32.gmra.mrb[42].mxu0 %v18083_v46  ;;  %1268 = vmatprep.mubr.f32.mxu1 %v10916_v0 }
 0x2f8   : > { %3713 = vmatprep.mubr.f32.mxu0 %v10916_v0 }
 0x2fa   : > { %1274 = vmatmul.mubr.f32.gmra.mrb[42].mxu1 %v1273_v11  ;;  %v1306_v11 = vand.u32 4294901760, %v1305_v30  ;;  %v1338_v30 = vsub.f32 %v11520_v26, %v18102_v50  ;;  %v18106_v26 = vand.u32 4294901760, %v11532_v17  ;;  %v18107_v50 = vld [vmem:[#allocation36_spill] sm:$0xff] }
 0x2fb   : > { %3715 = vmatmul.mubr.f32.gmra.mrb[44].mxu0 %v18085_v49  ;;  %1279 = vmatprep.mubr.f32.mxu1 %v10916_v0 }
 0x2fc   : > { %3720 = vmatprep.mubr.f32.mxu0 %v10916_v0 }
 0x2fe   : > { %1285 = vmatmul.mubr.f32.gmra.mrb[44].mxu1 %v1284_v4  ;;  %v1317_v4 = vand.u32 4294901760, %v1316_v35  ;;  %v1349_v35 = vsub.f32 %v11526_v2, %v18104_v59  ;;  %v18108_v2 = vand.u32 4294901760, %v11541_v53  ;;  %v18109_v59 = vld [vmem:[#allocation38_spill] sm:$0xff] }
 0x2ff   : > { %3722 = vmatmul.mubr.f32.gmra.mrb[46].mxu0 %v18087_v52  ;;  %1290 = vmatprep.mubr.f32.mxu1 %v10916_v0 }
 0x300   : > { %3727 = vmatprep.mubr.f32.mxu0 %v10916_v0 }
 0x302   : > { %1296 = vmatmul.mubr.f32.gmra.mrb[46].mxu1 %v1295_v12  ;;  %v1328_v12 = vand.u32 4294901760, %v1327_v39  ;;  %v1360_v39 = vsub.f32 %v11532_v17, %v18106_v26  ;;  %v18110_v17 = vand.u32 4294901760, %v11551_v10  ;;  %v18111_v26 = vld [vmem:[#allocation41_spill] sm:$0xff] }
 0x303   : > { %3729 = vmatmul.mubr.f32.gmra.mrb[48].mxu0 %v18089_v55  ;;  %1301 = vmatprep.mubr.f32.mxu1 %v10916_v0 }
 0x304   : > { %3734 = vmatprep.mubr.f32.mxu0 %v10916_v0 }
 0x306   : > { %1307 = vmatmul.mubr.f32.gmra.mrb[48].mxu1 %v1306_v11  ;;  %v1339_v11 = vand.u32 4294901760, %v1338_v30  ;;  %v1371_v30 = vsub.f32 %v11541_v53, %v18108_v2  ;;  %v18112_v53 = vld [vmem:[#allocation43_spill] sm:$0xff] }
 0x307   : > { %3736 = vmatmul.mubr.f32.gmra.mrb[50].mxu0 %v18091_v58  ;;  %1312 = vmatprep.mubr.f32.mxu1 %v10916_v0  ;;  %v18116_v2 = vld [vmem:[#allocation47_spill] sm:$0xff] }
 0x308   : > { %3741 = vmatprep.mubr.f32.mxu0 %v10916_v0 }
 0x30a   : > { %1318 = vmatmul.mubr.f32.gmra.mrb[50].mxu1 %v1317_v4  ;;  %v1350_v4 = vand.u32 4294901760, %v1349_v35  ;;  %v1382_v35 = vsub.f32 %v11551_v10, %v18110_v17  ;;  %v18114_v10 = vld [vmem:[#allocation45_spill] sm:$0xff]  ;;  %v10917_v17 = vmov 0  }
 0x30b   : > { %3743 = vmatmul.mubr.f32.gmra.mrb[52].mxu0 %v18093_v61  ;;  %1323 = vmatprep.mubr.f32.mxu1 %v10916_v0 }
 0x30c   : > { %3748 = vmatprep.mubr.f32.mxu0 %v10916_v0  ;;  %10890 = vset.pattern.permute.xlu1 %v10917_v17 }
 0x30d   : > { %10889 = vset.pattern.permute.xlu0 %v10917_v17  ;;  %v18119_v17 = vld [vmem:[#allocation50_spill] sm:$0xff] }
 0x30e   : > { %1329 = vmatmul.mubr.f32.gmra.mrb[52].mxu1 %v1328_v12  ;;  %v1361_v12 = vand.u32 4294901760, %v1360_v39  ;;  %v18113_v39 = vld [vmem:[#allocation44_spill] sm:$0xff] }
 0x30f   : > { %3750 = vmatmul.mubr.f32.gmra.mrb[54].mxu0 %v18095_v1  ;;  %1334 = vmatprep.mubr.f32.mxu1 %v10916_v0 }
 0x310   : > { %3755 = vmatprep.mubr.f32.mxu0 %v10916_v0 }
 0x312   : > { %1340 = vmatmul.mubr.f32.gmra.mrb[54].mxu1 %v1339_v11  ;;  %v1372_v11 = vand.u32 4294901760, %v1371_v30  ;;  %v403_v30 = vld [vmem:[%s17201_s2 + $0x80] sm:$0xff] }
 0x313   : > { %3757 = vmatmul.mubr.f32.gmra.mrb[56].mxu0 %v18097_v5  ;;  %1345 = vmatprep.mubr.f32.mxu1 %v10916_v0 }
 0x314   : > { %3762 = vmatprep.mubr.f32.mxu0 %v10916_v0  ;;  %533 = vperm.xlu0 %10889, %v403_v30   ;;  %v405_v30 = vld [vmem:[%s17201_s2 + $0x90] sm:$0xff] }
 0x316   : > { %1351 = vmatmul.mubr.f32.gmra.mrb[56].mxu1 %v1350_v4  ;;  %v1383_v4 = vand.u32 4294901760, %v1382_v35  ;;  %v18117_v35 = vld [vmem:[#allocation48_spill] sm:$0xff] }
 0x317   : > { %3764 = vmatmul.mubr.f32.gmra.mrb[58].mxu0 %v18099_v15  ;;  %1356 = vmatprep.mubr.f32.mxu1 %v10916_v0  ;;  %v18131_v15 = vand.u32 4294901760, %v11573_v62 }
 0x318   : > { %3769 = vmatprep.mubr.f32.mxu0 %v10916_v0 }
 0x31a   : > { %1362 = vmatmul.mubr.f32.gmra.mrb[58].mxu1 %v1361_v12  ;;  %v18115_v12 = vld [vmem:[#allocation46_spill] sm:$0xff] }
 0x31b   : > { %3771 = vmatmul.mubr.f32.gmra.mrb[60].mxu0 %v18101_v23  ;;  %1367 = vmatprep.mubr.f32.mxu1 %v10916_v0  ;;  %v18118_v23 = vld [vmem:[#allocation49_spill] sm:$0xff] }
 0x31c   : > { %3776 = vmatprep.mubr.f32.mxu0 %v10916_v0 }
 0x31e   : > { %1373 = vmatmul.mubr.f32.gmra.mrb[60].mxu1 %v1372_v11  ;;  %v387_v11 = vld [vmem:[%s17201_s2] sm:$0xff] }
 0x31f   : > { %3778 = vmatmul.mubr.f32.gmra.mrb[62].mxu0 %v18103_v32  ;;  %1378 = vmatprep.mubr.f32.mxu1 %v10916_v0  ;;  %v388_v32 = vld [vmem:[%s17201_s2 + $0x8] sm:$0xff] }
 0x320   : > { %3783 = vmatprep.mubr.f32.mxu0 %v10916_v0  ;;  %453 = vperm.xlu1 %10890, %v387_v11   ;;  %v406_v11 = vld [vmem:[%s17201_s2 + $0x98] sm:$0xff] }
 0x322   : > { %1384 = vmatmul.mubr.f32.gmra.mrb[62].mxu1 %v1383_v4  ;;  %v404_v4 = vld [vmem:[%s17201_s2 + $0x88] sm:$0xff] }
 0x323   : > { %3785 = vmatmul.mubr.f32.gmra.mrb[64].mxu0 %v18105_v41  ;;  %1389 = vmatprep.mubr.f32.mxu1 %v10916_v0 }
 0x324   : > { %3790 = vmatprep.mubr.f32.mxu0 %v10916_v0  ;;  %458 = vperm.xlu1 %10890, %v388_v32   ;;  %v389_v32 = vld [vmem:[%s17201_s2 + $0x10] sm:$0xff] }
 0x325   : > { %538 = vperm.xlu0 %10889, %v404_v4   ;;  %v390_v4 = vld [vmem:[%s17201_s2 + $0x18] sm:$0xff] }
 0x327   : > { %3792 = vmatmul.mubr.f32.gmra.mrb[66].mxu0 %v18107_v50 }
 0x328   : > { %3797 = vmatprep.mubr.f32.mxu0 %v10916_v0  ;;  %548 = vperm.xlu1 %10890, %v406_v11   ;;  %v408_v11 = vld [vmem:[%s17201_s2 + $0xa8] sm:$0xff] }
 0x329   : > { %543 = vperm.xlu0 %10889, %v405_v30   ;;  %v407_v30 = vld [vmem:[%s17201_s2 + $0xa0] sm:$0xff] }
 0x32b   : > { %3799 = vmatmul.mubr.f32.gmra.mrb[68].mxu0 %v18109_v59 }
 0x32c   : > { %3804 = vmatprep.mubr.f32.mxu0 %v10916_v0  ;;  %468 = vperm.xlu1 %10890, %v390_v4   ;;  %v392_v4 = vld [vmem:[%s17201_s2 + $0x28] sm:$0xff] }
 0x32d   : > { %463 = vperm.xlu0 %10889, %v389_v32   ;;  %v391_v32 = vld [vmem:[%s17201_s2 + $0x20] sm:$0xff] }
 0x32f   : > { %3806 = vmatmul.mubr.f32.gmra.mrb[70].mxu0 %v18111_v26 }
 0x330   : > { %3811 = vmatprep.mubr.f32.mxu0 %v10916_v0  ;;  %558 = vperm.xlu1 %10890, %v408_v11   ;;  %v410_v11 = vld [vmem:[%s17201_s2 + $0xb8] sm:$0xff] }
 0x331   : > { %553 = vperm.xlu0 %10889, %v407_v30   ;;  %v409_v30 = vld [vmem:[%s17201_s2 + $0xb0] sm:$0xff] }
 0x333   : > { %3813 = vmatmul.mubr.f32.gmra.mrb[72].mxu0 %v18112_v53 }
 0x334   : > { %3818 = vmatprep.mubr.f32.mxu0 %v10916_v0  ;;  %478 = vperm.xlu1 %10890, %v392_v4   ;;  %v394_v4 = vld [vmem:[%s17201_s2 + $0x38] sm:$0xff] }
 0x335   : > { %473 = vperm.xlu0 %10889, %v391_v32   ;;  %v393_v32 = vld [vmem:[%s17201_s2 + $0x30] sm:$0xff] }
 0x337   : > { %3820 = vmatmul.mubr.f32.gmra.mrb[74].mxu0 %v18113_v39 }
 0x338   : > { %3825 = vmatprep.mubr.f32.mxu0 %v10916_v0  ;;  %568 = vperm.xlu1 %10890, %v410_v11   ;;  %v412_v11 = vld [vmem:[%s17201_s2 + $0xc8] sm:$0xff] }
 0x339   : > { %563 = vperm.xlu0 %10889, %v409_v30   ;;  %v411_v30 = vld [vmem:[%s17201_s2 + $0xc0] sm:$0xff] }
 0x33b   : > { %3827 = vmatmul.mubr.f32.gmra.mrb[76].mxu0 %v18114_v10 }
 0x33c   : > { %3832 = vmatprep.mubr.f32.mxu0 %v10916_v0  ;;  %488 = vperm.xlu1 %10890, %v394_v4   ;;  %v396_v4 = vld [vmem:[%s17201_s2 + $0x48] sm:$0xff] }
 0x33d   : > { %483 = vperm.xlu0 %10889, %v393_v32   ;;  %v395_v32 = vld [vmem:[%s17201_s2 + $0x40] sm:$0xff] }
 0x33f   : > { %3834 = vmatmul.mubr.f32.gmra.mrb[78].mxu0 %v18115_v12 }
 0x340   : > { %3839 = vmatprep.mubr.f32.mxu0 %v10916_v0  ;;  %578 = vperm.xlu1 %10890, %v412_v11   ;;  %v414_v11 = vld [vmem:[%s17201_s2 + $0xd8] sm:$0xff] }
 0x341   : > { %573 = vperm.xlu0 %10889, %v411_v30   ;;  %v413_v30 = vld [vmem:[%s17201_s2 + $0xd0] sm:$0xff] }
 0x343   : > { %3841 = vmatmul.mubr.f32.gmra.mrb[80].mxu0 %v18116_v2 }
 0x344   : > { %3846 = vmatprep.mubr.f32.mxu0 %v10916_v0  ;;  %498 = vperm.xlu1 %10890, %v396_v4   ;;  %v398_v4 = vld [vmem:[%s17201_s2 + $0x58] sm:$0xff] }
 0x345   : > { %493 = vperm.xlu0 %10889, %v395_v32   ;;  %v397_v32 = vld [vmem:[%s17201_s2 + $0x50] sm:$0xff] }
 0x347   : > { %3848 = vmatmul.mubr.f32.gmra.mrb[82].mxu0 %v18117_v35 }
 0x348   : > { %3853 = vmatprep.mubr.f32.mxu0 %v10916_v0  ;;  %588 = vperm.xlu1 %10890, %v414_v11   ;;  %v416_v11 = vld [vmem:[%s17201_s2 + $0xe8] sm:$0xff] }
 0x349   : > { %583 = vperm.xlu0 %10889, %v413_v30   ;;  %v415_v30 = vld [vmem:[%s17201_s2 + $0xe0] sm:$0xff] }
 0x34b   : > { %3855 = vmatmul.mubr.f32.gmra.mrb[84].mxu0 %v18118_v23  ;;  %v18120_v23 = vld [vmem:[#allocation51_spill] sm:$0xff] }
 0x34c   : > { %3860 = vmatprep.mubr.f32.mxu0 %v10916_v0  ;;  %508 = vperm.xlu1 %10890, %v398_v4   ;;  %v399_v4 = vld [vmem:[%s17201_s2 + $0x60] sm:$0xff] }
 0x34d   : > { %503 = vperm.xlu0 %10889, %v397_v32   ;;  %v18130_v32 = vld [vmem:[#allocation64_spill] sm:$0xff] }
 0x34f   : > { %3862 = vmatmul.mubr.f32.gmra.mrb[86].mxu0 %v18119_v17  ;;  %v18121_v17 = vld [vmem:[#allocation52_spill] sm:$0xff] }
 0x350   : > { %3867 = vmatprep.mubr.f32.mxu0 %v10916_v0  ;;  %598 = vperm.xlu1 %10890, %v416_v11   ;;  %v18134_v11 = vld [vmem:[#allocation68_spill] sm:$0xff] }
 0x351   : > { %593 = vperm.xlu0 %10889, %v415_v30   ;;  %v418_v30 = vld [vmem:[%s17201_s2 + $0xf8] sm:$0xff] }
 0x353   : > { %3869 = vmatmul.mubr.f32.gmra.mrb[88].mxu0 %v18120_v23  ;;  %v18122_v23 = vld [vmem:[#allocation53_spill] sm:$0xff] }
 0x354   : > { %3874 = vmatprep.mubr.f32.mxu0 %v10916_v0 }
 0x355   : > { %513 = vperm.xlu0 %10889, %v399_v4   ;;  %v401_v4 = vld [vmem:[%s17201_s2 + $0x70] sm:$0xff] }
 0x357   : > { %3876 = vmatmul.mubr.f32.gmra.mrb[90].mxu0 %v18121_v17  ;;  %v18123_v17 = vld [vmem:[#allocation54_spill] sm:$0xff] }
 0x358   : > { %3881 = vmatprep.mubr.f32.mxu0 %v10916_v0 }
 0x35b   : > { %3883 = vmatmul.mubr.f32.gmra.mrb[92].mxu0 %v18122_v23  ;;  %v18124_v23 = vld [vmem:[#allocation55_spill] sm:$0xff] }
 0x35c   : > { %3888 = vmatprep.mubr.f32.mxu0 %v10916_v0 }
 0x35f   : > { %3890 = vmatmul.mubr.f32.gmra.mrb[94].mxu0 %v18123_v17  ;;  %v18125_v17 = vld [vmem:[#allocation56_spill] sm:$0xff] }
 0x360   : > { %3895 = vmatprep.mubr.f32.mxu0 %v10916_v0 }
 0x363   : > { %3897 = vmatmul.mubr.f32.gmra.mrb[96].mxu0 %v18124_v23  ;;  %v18126_v23 = vld [vmem:[#allocation58_spill] sm:$0xff] }
 0x364   : > { %3902 = vmatprep.mubr.f32.mxu0 %v10916_v0 }
 0x367   : > { %3904 = vmatmul.mubr.f32.gmra.mrb[98].mxu0 %v18125_v17  ;;  %v18127_v17 = vld [vmem:[#allocation60_spill] sm:$0xff] }
 0x368   : > { %3909 = vmatprep.mubr.f32.mxu0 %v10916_v0 }
 0x36b   : > { %3911 = vmatmul.mubr.f32.gmra.mrb[100].mxu0 %v18126_v23  ;;  %v18128_v23 = vld [vmem:[#allocation62_spill] sm:$0xff] }
 0x36c   : > { %3916 = vmatprep.mubr.f32.mxu0 %v10916_v0 }
 0x36f   : > { %3918 = vmatmul.mubr.f32.gmra.mrb[102].mxu0 %v18127_v17  ;;  %v18129_v17 = vand.u32 4294901760, %v11562_v6 }
 0x370   : > { %3923 = vmatprep.mubr.f32.mxu0 %v10916_v0 }
 0x371   : > { %v1393_v35 = vsub.f32 %v11562_v6, %v18129_v17  ;;  %v1404_v6 = vsub.f32 %v11573_v62, %v18131_v15  ;;  %v417_v17 = vld [vmem:[%s17201_s2 + $0xf0] sm:$0xff]  ;;  %v18133_v62 = vand.u32 4294901760, %v11584_v16 }
 0x372   : > { %603 = vperm.xlu0 %10889, %v417_v17  }
 0x373   : > { %3925 = vmatmul.mubr.f32.gmra.mrb[104].mxu0 %v18128_v23  ;;  %v1394_v2 = vand.u32 4294901760, %v1393_v35  ;;  %v400_v23 = vld [vmem:[%s17201_s2 + $0x68] sm:$0xff]  ;;  %v1405_v35 = vand.u32 4294901760, %v1404_v6  ;;  %v1415_v15 = vsub.f32 %v11584_v16, %v18133_v62  ;;  %v402_v6 = vld [vmem:[%s17201_s2 + $0x78] sm:$0xff]  ;;  %v18135_v16 = vand.u32 4294901760, %v11595_v7 }
 0x374   : > { %3930 = vmatprep.mubr.f32.mxu0 %v10916_v0  ;;  %518 = vperm.xlu1 %10890, %v400_v23   ;;  %v18137_v62 = vand.u32 4294901760, %v11606_v56 }
 0x375   : > { %1395 = vmatmul.mubr.f32.gmra.mrb[64].mxu1 %v1394_v2  ;;  %v18132_v2 = vld [vmem:[#allocation66_spill] sm:$0xff]  ;;  %v1416_v23 = vand.u32 4294901760, %v1415_v15 }
 0x376   : > { %1400 = vmatprep.mubr.f32.mxu1 %v10916_v0  ;;  %523 = vperm.xlu0 %10889, %v401_v4   ;;  %v1437_v15 = vsub.f32 %v11606_v56, %v18137_v62  ;;  %v18141_v56 = vand.u32 4294901760, %v11628_v38 }
 0x377   : > { %3932 = vmatmul.mubr.f32.gmra.mrb[106].mxu0 %v18130_v32 }
 0x378   : > { %3937 = vmatprep.mubr.f32.mxu0 %v10916_v0  ;;  %608 = vperm.xlu1 %10890, %v418_v30   ;;  %v18136_v30 = vld [vmem:[#allocation70_spill] sm:$0xff] }
 0x379   : > { %1406 = vmatmul.mubr.f32.gmra.mrb[66].mxu1 %v1405_v35  ;;  %v1426_v35 = vsub.f32 %v11595_v7, %v18135_v16  ;;  %v18138_v7 = vld [vmem:[#allocation72_spill] sm:$0xff]  ;;  %v18139_v16 = vand.u32 4294901760, %v11617_v47 }
 0x37a   : > { %1411 = vmatprep.mubr.f32.mxu1 %v10916_v0 }
 0x37b   : > { %3939 = vmatmul.mubr.f32.gmra.mrb[108].mxu0 %v18132_v2  ;;  %v1427_v17 = vand.u32 4294901760, %v1426_v35  ;;  %v18140_v35 = vld [vmem:[#allocation74_spill] sm:$0xff] }
 0x37c   : > { %3944 = vmatprep.mubr.f32.mxu0 %v10916_v0  ;;  %528 = vperm.xlu1 %10890, %v402_v6   ;;  %v1448_v6 = vsub.f32 %v11617_v47, %v18139_v16  ;;  %v18143_v47 = vand.u32 4294901760, %v11639_v29 }
 0x37d   : > { %1417 = vmatmul.mubr.f32.gmra.mrb[68].mxu1 %v1416_v23  ;;  %v1438_v23 = vand.u32 4294901760, %v1437_v15  ;;  %v18142_v15 = vld [vmem:[#allocation76_spill] sm:$0xff] }
 0x37e   : > { %1422 = vmatprep.mubr.f32.mxu1 %v10916_v0  ;;  %v1449_v4 = vand.u32 4294901760, %v1448_v6  ;;  %v18144_v6 = vld [vmem:[#allocation78_spill] sm:$0xff] }
 0x37f   : > { %3946 = vmatmul.mubr.f32.gmra.mrb[110].mxu0 %v18134_v11 }
 0x380   : > { %3951 = vmatprep.mubr.f32.mxu0 %v10916_v0 }
 0x381   : > { %1428 = vmatmul.mubr.f32.gmra.mrb[70].mxu1 %v1427_v17  ;;  %v1459_v17 = vsub.f32 %v11628_v38, %v18141_v56  ;;  %v18145_v38 = vand.u32 4294901760, %v11650_v20 }
 0x382   : > { %1433 = vmatprep.mubr.f32.mxu1 %v10916_v0 }
 0x383   : > { %3953 = vmatmul.mubr.f32.gmra.mrb[112].mxu0 %v18136_v30  ;;  %v1460_v62 = vand.u32 4294901760, %v1459_v17  ;;  %v18146_v17 = vld [vmem:[#allocation80_spill] sm:$0xff] }
 0x384   : > { %3958 = vmatprep.mubr.f32.mxu0 %v10916_v0 }
 0x385   : > { %1439 = vmatmul.mubr.f32.gmra.mrb[72].mxu1 %v1438_v23  ;;  %v1470_v23 = vsub.f32 %v11639_v29, %v18143_v47  ;;  %v18147_v29 = vand.u32 4294901760, %v11661_v14 }
 0x386   : > { %1444 = vmatprep.mubr.f32.mxu1 %v10916_v0 }
 0x387   : > { %3960 = vmatmul.mubr.f32.gmra.mrb[114].mxu0 %v18138_v7  ;;  %v1471_v16 = vand.u32 4294901760, %v1470_v23  ;;  %v18148_v23 = vld [vmem:[#allocation82_spill] sm:$0xff] }
 0x388   : > { %3965 = vmatprep.mubr.f32.mxu0 %v10916_v0 }
 0x389   : > { %1450 = vmatmul.mubr.f32.gmra.mrb[74].mxu1 %v1449_v4  ;;  %v1481_v4 = vsub.f32 %v11650_v20, %v18145_v38  ;;  %v18149_v20 = vand.u32 4294901760, %v11672_v3 }
 0x38a   : > { %1455 = vmatprep.mubr.f32.mxu1 %v10916_v0 }
 0x38b   : > { %3967 = vmatmul.mubr.f32.gmra.mrb[116].mxu0 %v18140_v35  ;;  %v1482_v56 = vand.u32 4294901760, %v1481_v4  ;;  %v18150_v4 = vld [vmem:[#allocation84_spill] sm:$0xff] }
 0x38c   : > { %3972 = vmatprep.mubr.f32.mxu0 %v10916_v0 }
 0x38d   : > { %1461 = vmatmul.mubr.f32.gmra.mrb[76].mxu1 %v1460_v62  ;;  %v1492_v62 = vsub.f32 %v11661_v14, %v18147_v29  ;;  %v18151_v14 = vand.u32 4294901760, %v11683_v63 }
 0x38e   : > { %1466 = vmatprep.mubr.f32.mxu1 %v10916_v0 }
 0x38f   : > { %3974 = vmatmul.mubr.f32.gmra.mrb[118].mxu0 %v18142_v15  ;;  %v1493_v47 = vand.u32 4294901760, %v1492_v62 }
 0x390   : > { %3979 = vmatprep.mubr.f32.mxu0 %v10916_v0 }
 0x391   : > { %1472 = vmatmul.mubr.f32.gmra.mrb[78].mxu1 %v1471_v16  ;;  %v1503_v16 = vsub.f32 %v11672_v3, %v18149_v20  ;;  %v18152_v3 = vand.u32 4294901760, %v11694_v60 }
 0x392   : > { %1477 = vmatprep.mubr.f32.mxu1 %v10916_v0 }
 0x393   : > { %3981 = vmatmul.mubr.f32.gmra.mrb[120].mxu0 %v18144_v6  ;;  %v1504_v38 = vand.u32 4294901760, %v1503_v16  ;;  %v1525_v62 = vsub.f32 %v11694_v60, %v18152_v3  ;;  %v18154_v60 = vand.u32 4294901760, %v11716_v54 }
 0x394   : > { %3986 = vmatprep.mubr.f32.mxu0 %v10916_v0 }
 0x395   : > { %1483 = vmatmul.mubr.f32.gmra.mrb[80].mxu1 %v1482_v56  ;;  %v1514_v56 = vsub.f32 %v11683_v63, %v18151_v14  ;;  %v18153_v63 = vand.u32 4294901760, %v11705_v57  ;;  %v1547_v16 = vsub.f32 %v11716_v54, %v18154_v60  ;;  %v18156_v54 = vand.u32 4294901760, %v11738_v48 }
 0x396   : > { %1488 = vmatprep.mubr.f32.mxu1 %v10916_v0 }
 0x397   : > { %3988 = vmatmul.mubr.f32.gmra.mrb[122].mxu0 %v18146_v17  ;;  %v1515_v29 = vand.u32 4294901760, %v1514_v56  ;;  %v1536_v20 = vsub.f32 %v11705_v57, %v18153_v63  ;;  %v18155_v57 = vand.u32 4294901760, %v11727_v51  ;;  %v1569_v14 = vsub.f32 %v11738_v48, %v18156_v54  ;;  %v18159_v48 = vld [vmem:[#allocation59_spill] sm:$0xff]  ;;  %v18161_v63 = vld [vmem:[#allocation61_spill] sm:$0xff] }
 0x398   : > { %3993 = vmatprep.mubr.f32.mxu0 %v10916_v0  ;;  %v18160_v3 = vand.u32 4294901760, %v18159_v48 }
 0x399   : > { %1494 = vmatmul.mubr.f32.gmra.mrb[82].mxu1 %v1493_v47  ;;  %v1526_v47 = vand.u32 4294901760, %v1525_v62 }
 0x39a   : > { %1499 = vmatprep.mubr.f32.mxu1 %v10916_v0  ;;  %v1591_v62 = vsub.f32 %v18159_v48, %v18160_v3 }
 0x39b   : > { %3995 = vmatmul.mubr.f32.gmra.mrb[124].mxu0 %v18148_v23 }
 0x39c   : > { %4000 = vmatprep.mubr.f32.mxu0 %v10916_v0 }
 0x39d   : > { %1505 = vmatmul.mubr.f32.gmra.mrb[84].mxu1 %v1504_v38  ;;  %v1558_v38 = vsub.f32 %v11727_v51, %v18155_v57  ;;  %v18157_v51 = vld [vmem:[#allocation57_spill] sm:$0xff] }
 0x39e   : > { %1510 = vmatprep.mubr.f32.mxu1 %v10916_v0  ;;  %v18158_v56 = vand.u32 4294901760, %v18157_v51 }
 0x39f   : > { %4002 = vmatmul.mubr.f32.gmra.mrb[126].mxu0 %v18150_v4 }
 0x3a0   : > { %4074 = vmatprep.mubr.f32.mxu0 %v10916_v0 }
 0x3a1   : > { %1516 = vmatmul.mubr.f32.gmra.mrb[86].mxu1 %v1515_v29  ;;  %v1580_v29 = vsub.f32 %v18157_v51, %v18158_v56 }
 0x3a2   : > { %1521 = vmatprep.mubr.f32.mxu1 %v10916_v0 }
 0x3a3   : > { %4076 = vmatmul.mubr.f32.vlgmr.msra.gmra.mrb[0].mxu0 %v18041_v21  ;;  %v1537_v21 = vand.u32 4294901760, %v1536_v20  ;;  %v18162_v20 = vand.u32 4294901760, %v18161_v63 }
 0x3a4   : > { %4081 = vmatprep.mubr.f32.mxu0 %v10916_v0 }
 0x3a5   : > { %1527 = vmatmul.mubr.f32.gmra.mrb[88].mxu1 %v1526_v47  ;;  %v12605_v47 = vpop.f32.mrb[0].mxu1 }
 0x3a6   : > { %1532 = vmatprep.mubr.f32.mxu1 %v10916_v0 }
 0x3a7   : > { %4083 = vmatmul.mubr.f32.gmra.mrb[2].mxu0 %v18043_v33  ;;  %v1548_v33 = vand.u32 4294901760, %v1547_v16 }
 0x3a8   : > { %4088 = vmatprep.mubr.f32.mxu0 %v10916_v0 }
 0x3a9   : > { %1538 = vmatmul.mubr.f32.gmra.mrb[90].mxu1 %v1537_v21  ;;  %v1602_v21 = vsub.f32 %v18161_v63, %v18162_v20 }
 0x3aa   : > { %1543 = vmatprep.mubr.f32.mxu1 %v10916_v0 }
 0x3ab   : > { %4090 = vmatmul.mubr.f32.gmra.mrb[4].mxu0 %v18044_v44  ;;  %v1559_v44 = vand.u32 4294901760, %v1558_v38  ;;  %v1603_v60 = vand.u32 4294901760, %v1602_v21 }
 0x3ac   : > { %4095 = vmatprep.mubr.f32.mxu0 %v10916_v0 }
 0x3ad   : > { %1549 = vmatmul.mubr.f32.gmra.mrb[92].mxu1 %v1548_v33 }
 0x3ae   : > { %1554 = vmatprep.mubr.f32.mxu1 %v10916_v0 }
 0x3af   : > { %4097 = vmatmul.mubr.f32.gmra.mrb[6].mxu0 %v18045_v24  ;;  %v1570_v24 = vand.u32 4294901760, %v1569_v14 }
 0x3b0   : > { %4102 = vmatprep.mubr.f32.mxu0 %v10916_v0 }
 0x3b1   : > { %1560 = vmatmul.mubr.f32.gmra.mrb[94].mxu1 %v1559_v44 }
 0x3b2   : > { %1565 = vmatprep.mubr.f32.mxu1 %v10916_v0 }
 0x3b3   : > { %4104 = vmatmul.mubr.f32.gmra.mrb[8].mxu0 %v18047_v18  ;;  %v1581_v18 = vand.u32 4294901760, %v1580_v29 }
 0x3b4   : > { %4109 = vmatprep.mubr.f32.mxu0 %v10916_v0 }
 0x3b5   : > { %1571 = vmatmul.mubr.f32.gmra.mrb[96].mxu1 %v1570_v24  ;;  %v18165_v24 = vld [vmem:[#allocation65_spill] sm:$0xff] }
 0x3b6   : > { %1576 = vmatprep.mubr.f32.mxu1 %v10916_v0  ;;  %v18166_v51 = vand.u32 4294901760, %v18165_v24 }
 0x3b7   : > { %4111 = vmatmul.mubr.f32.gmra.mrb[10].mxu0 %v18051_v45  ;;  %v1592_v45 = vand.u32 4294901760, %v1591_v62  ;;  %v18167_v62 = vld [vmem:[#allocation67_spill] sm:$0xff] }
 0x3b8   : > { %4116 = vmatprep.mubr.f32.mxu0 %v10916_v0  ;;  %v1624_v56 = vsub.f32 %v18165_v24, %v18166_v51 }
 0x3b9   : > { %1582 = vmatmul.mubr.f32.gmra.mrb[98].mxu1 %v1581_v18 }
 0x3ba   : > { %1587 = vmatprep.mubr.f32.mxu1 %v10916_v0  ;;  %v1625_v48 = vand.u32 4294901760, %v1624_v56 }
 0x3bb   : > { %4118 = vmatmul.mubr.f32.gmra.mrb[12].mxu0 %v18053_v36  ;;  %v12612_v36 = vpop.f32.mrb[1].mxu1 }
 0x3bc   : > { %4123 = vmatprep.mubr.f32.mxu0 %v10916_v0  ;;  %v12615_v16 = vpop.f32.mrb[2].mxu1 }
 0x3bd   : > { %1593 = vmatmul.mubr.f32.gmra.mrb[100].mxu1 %v1592_v45  ;;  %v12621_v38 = vpop.f32.mrb[3].mxu1  ;;  %v18168_v45 = vand.u32 4294901760, %v18167_v62 }
 0x3be   : > { %1598 = vmatprep.mubr.f32.mxu1 %v10916_v0  ;;  %v12624_v44 = vpop.f32.mrb[4].mxu1 }
 0x3bf   : > { %4125 = vmatmul.mubr.f32.gmra.mrb[14].mxu0 %v18055_v27  ;;  %v18163_v27 = vld [vmem:[#allocation63_spill] sm:$0xff]  ;;  %v12626_v14 = vpop.f32.mrb[5].mxu1  ;;  %v1635_v63 = vsub.f32 %v18167_v62, %v18168_v45 }
 0x3c0   : > { %4130 = vmatprep.mubr.f32.mxu0 %v10916_v0  ;;  %v18164_v33 = vand.u32 4294901760, %v18163_v27  ;;  %v18172_v62 = vld [vmem:[#allocation71_spill] sm:$0xff] }
 0x3c1   : > { %1604 = vmatmul.mubr.f32.gmra.mrb[102].mxu1 %v1603_v60  ;;  %v1636_v60 = vand.u32 4294901760, %v1635_v63  ;;  %v18173_v45 = vand.u32 4294901760, %v18172_v62 }
 0x3c2   : > { %v1613_v57 = vsub.f32 %v18163_v27, %v18164_v33  ;;  %1609 = vmatprep.mubr.f32.mxu1 %v10916_v0  ;;  %v18169_v33 = vld [vmem:[#allocation69_spill] sm:$0xff] }
 0x3c3   : > { %4132 = vmatmul.mubr.f32.gmra.mrb[16].mxu0 %v18057_v9  ;;  %v12629_v9 = vpop.f32.mrb[6].mxu1  ;;  %v1657_v63 = vsub.f32 %v18172_v62, %v18173_v45 }
 0x3c4   : > { %4137 = vmatprep.mubr.f32.mxu0 %v10916_v0  ;;  %v1614_v54 = vand.u32 4294901760, %v1613_v57  ;;  %v12635_v29 = vpop.f32.mrb[7].mxu1  ;;  %v18170_v57 = vand.u32 4294901760, %v18169_v33 }
 0x3c5   : > { %v12638_v18 = vpop.f32.mrb[8].mxu1 }
 0x3c6   : > { %1615 = vmatmul.mubr.f32.gmra.mrb[104].mxu1 %v1614_v54  ;;  %v12640_v3 = vpop.f32.mrb[9].mxu1  ;;  %v1646_v54 = vsub.f32 %v18169_v33, %v18170_v57  ;;  %v1658_v57 = vand.u32 4294901760, %v1657_v63 }
 0x3c7   : > { %4139 = vmatmul.mubr.f32.gmra.mrb[18].mxu0 %v18059_v42  ;;  %1620 = vmatprep.mubr.f32.mxu1 %v10916_v0  ;;  %v12643_v42 = vpop.f32.mrb[10].mxu1 }
 0x3c8   : > { %4144 = vmatprep.mubr.f32.mxu0 %v10916_v0  ;;  %v12649_v20 = vpop.f32.mrb[11].mxu1  ;;  %v1647_v56 = vand.u32 4294901760, %v1646_v54 }
 0x3c9   : > { %v12652_v21 = vpop.f32.mrb[12].mxu1 }
 0x3ca   : > { %1626 = vmatmul.mubr.f32.gmra.mrb[106].mxu1 %v1625_v48  ;;  %v12654_v27 = vpop.f32.mrb[13].mxu1 }
 0x3cb   : > { %4146 = vmatmul.mubr.f32.gmra.mrb[20].mxu0 %v18061_v13  ;;  %1631 = vmatprep.mubr.f32.mxu1 %v10916_v0  ;;  %v12657_v13 = vpop.f32.mrb[14].mxu1 }
 0x3cc   : > { %4151 = vmatprep.mubr.f32.mxu0 %v10916_v0  ;;  %v12663_v24 = vpop.f32.mrb[15].mxu1 }
 0x3cd   : > { %v12666_v51 = vpop.f32.mrb[16].mxu1 }
 0x3ce   : > { %1637 = vmatmul.mubr.f32.gmra.mrb[108].mxu1 %v1636_v60  ;;  %v12668_v48 = vpop.f32.mrb[17].mxu1 }
 0x3cf   : > { %4153 = vmatmul.mubr.f32.gmra.mrb[22].mxu0 %v18063_v19  ;;  %1642 = vmatprep.mubr.f32.mxu1 %v10916_v0  ;;  %v12671_v19 = vpop.f32.mrb[18].mxu1 }
 0x3d0   : > { %4158 = vmatprep.mubr.f32.mxu0 %v10916_v0  ;;  %18171 = vst [vmem:[#allocation5_spill] sm:$0xff] %v12671_v19  ;;  %v12677_v60 = vpop.f32.mrb[19].mxu1 }
 0x3d1   : > { %18174 = vst [vmem:[#allocation4_spill] sm:$0xff] %v12677_v60  ;;  %v12680_v33 = vpop.f32.mrb[20].mxu1 }
 0x3d2   : > { %1648 = vmatmul.mubr.f32.gmra.mrb[110].mxu1 %v1647_v56  ;;  %18175 = vst [vmem:[#allocation7_spill] sm:$0xff] %v12680_v33  ;;  %v12682_v54 = vpop.f32.mrb[21].mxu1  ;;  %v18177_v56 = vld [vmem:[#allocation73_spill] sm:$0xff] }
 0x3d3   : > { %4160 = vmatmul.mubr.f32.gmra.mrb[24].mxu0 %v18065_v8  ;;  %1653 = vmatprep.mubr.f32.mxu1 %v10916_v0  ;;  %v12685_v8 = vpop.f32.mrb[22].mxu1  ;;  %v18178_v19 = vand.u32 4294901760, %v18177_v56 }
 0x3d4   : > { %4165 = vmatprep.mubr.f32.mxu0 %v10916_v0  ;;  %18176 = vst [vmem:[#allocation3_spill] sm:$0xff] %v12685_v8  ;;  %v12691_v45 = vpop.f32.mrb[23].mxu1 }
 0x3d5   : > { %v1668_v62 = vsub.f32 %v18177_v56, %v18178_v19  ;;  %18179 = vst [vmem:[#allocation8_spill] sm:$0xff] %v12691_v45  ;;  %v12694_v60 = vpop.f32.mrb[24].mxu1 }
 0x3d6   : > { %1659 = vmatmul.mubr.f32.gmra.mrb[112].mxu1 %v1658_v57  ;;  %18180 = vst [vmem:[#allocation9_spill] sm:$0xff] %v12694_v60  ;;  %v12696_v33 = vpop.f32.mrb[25].mxu1  ;;  %v18182_v57 = vld [vmem:[#allocation75_spill] sm:$0xff] }
 0x3d7   : > { %4167 = vmatmul.mubr.f32.gmra.mrb[26].mxu0 %v18067_v22  ;;  %1664 = vmatprep.mubr.f32.mxu1 %v10916_v0  ;;  %v1669_v63 = vand.u32 4294901760, %v1668_v62  ;;  %v12699_v22 = vpop.f32.mrb[26].mxu1  ;;  %v18183_v8 = vand.u32 4294901760, %v18182_v57 }
 0x3d8   : > { %4172 = vmatprep.mubr.f32.mxu0 %v10916_v0  ;;  %18181 = vst [vmem:[#allocation10_spill] sm:$0xff] %v12699_v22  ;;  %v12705_v56 = vpop.f32.mrb[27].mxu1 }
 0x3d9   : > { %v1679_v19 = vsub.f32 %v18182_v57, %v18183_v8  ;;  %18184 = vst [vmem:[#allocation11_spill] sm:$0xff] %v12705_v56  ;;  %v12708_v45 = vpop.f32.mrb[28].mxu1 }
 0x3da   : > { %1670 = vmatmul.mubr.f32.gmra.mrb[114].mxu1 %v1669_v63  ;;  %18185 = vst [vmem:[#allocation6_spill] sm:$0xff] %v12708_v45  ;;  %v12710_v60 = vpop.f32.mrb[29].mxu1  ;;  %v18187_v63 = vld [vmem:[#allocation77_spill] sm:$0xff] }
 0x3db   : > { %4174 = vmatmul.mubr.f32.gmra.mrb[28].mxu0 %v18069_v25  ;;  %1675 = vmatprep.mubr.f32.mxu1 %v10916_v0  ;;  %v1680_v62 = vand.u32 4294901760, %v1679_v19  ;;  %v12713_v25 = vpop.f32.mrb[30].mxu1  ;;  %v18188_v22 = vand.u32 4294901760, %v18187_v63 }
 0x3dc   : > { %4179 = vmatprep.mubr.f32.mxu0 %v10916_v0  ;;  %18186 = vst [vmem:[#allocation12_spill] sm:$0xff] %v12713_v25  ;;  %v12719_v57 = vpop.f32.mrb[31].mxu1 }
 0x3dd   : > { %v1690_v8 = vsub.f32 %v18187_v63, %v18188_v22  ;;  %18189 = vst [vmem:[#allocation13_spill] sm:$0xff] %v12719_v57  ;;  %v12722_v56 = vpop.f32.mrb[32].mxu1 }
 0x3de   : > { %1681 = vmatmul.mubr.f32.gmra.mrb[116].mxu1 %v1680_v62  ;;  %18190 = vst [vmem:[#allocation14_spill] sm:$0xff] %v12722_v56  ;;  %v12724_v45 = vpop.f32.mrb[33].mxu1  ;;  %v18192_v62 = vld [vmem:[#allocation79_spill] sm:$0xff] }
 0x3df   : > { %4181 = vmatmul.mubr.f32.gmra.mrb[30].mxu0 %v18071_v28  ;;  %1686 = vmatprep.mubr.f32.mxu1 %v10916_v0  ;;  %v1691_v19 = vand.u32 4294901760, %v1690_v8  ;;  %v12727_v28 = vpop.f32.mrb[34].mxu1  ;;  %v18193_v25 = vand.u32 4294901760, %v18192_v62 }
 0x3e0   : > { %4186 = vmatprep.mubr.f32.mxu0 %v10916_v0  ;;  %18191 = vst [vmem:[#allocation15_spill] sm:$0xff] %v12727_v28  ;;  %v12733_v63 = vpop.f32.mrb[35].mxu1 }
 0x3e1   : > { %v1701_v22 = vsub.f32 %v18192_v62, %v18193_v25  ;;  %18194 = vst [vmem:[#allocation16_spill] sm:$0xff] %v12733_v63  ;;  %v12736_v57 = vpop.f32.mrb[36].mxu1 }
 0x3e2   : > { %1692 = vmatmul.mubr.f32.gmra.mrb[118].mxu1 %v1691_v19  ;;  %18195 = vst [vmem:[#allocation17_spill] sm:$0xff] %v12736_v57  ;;  %v12738_v56 = vpop.f32.mrb[37].mxu1  ;;  %v18197_v19 = vld [vmem:[#allocation81_spill] sm:$0xff] }
 0x3e3   : > { %4188 = vmatmul.mubr.f32.gmra.mrb[32].mxu0 %v18073_v31  ;;  %1697 = vmatprep.mubr.f32.mxu1 %v10916_v0  ;;  %v1702_v8 = vand.u32 4294901760, %v1701_v22  ;;  %v12741_v31 = vpop.f32.mrb[38].mxu1  ;;  %v18198_v28 = vand.u32 4294901760, %v18197_v19 }
 0x3e4   : > { %4193 = vmatprep.mubr.f32.mxu0 %v10916_v0  ;;  %18196 = vst [vmem:[#allocation18_spill] sm:$0xff] %v12741_v31  ;;  %v12747_v62 = vpop.f32.mrb[39].mxu1 }
 0x3e5   : > { %v1712_v25 = vsub.f32 %v18197_v19, %v18198_v28  ;;  %18199 = vst [vmem:[#allocation19_spill] sm:$0xff] %v12747_v62  ;;  %v12750_v63 = vpop.f32.mrb[40].mxu1 }
 0x3e6   : > { %1703 = vmatmul.mubr.f32.gmra.mrb[120].mxu1 %v1702_v8  ;;  %18200 = vst [vmem:[#allocation20_spill] sm:$0xff] %v12750_v63  ;;  %v12752_v57 = vpop.f32.mrb[41].mxu1  ;;  %v18202_v8 = vld [vmem:[#allocation83_spill] sm:$0xff] }
 0x3e7   : > { %4195 = vmatmul.mubr.f32.gmra.mrb[34].mxu0 %v18075_v34  ;;  %1708 = vmatprep.mubr.f32.mxu1 %v10916_v0  ;;  %v1713_v22 = vand.u32 4294901760, %v1712_v25  ;;  %v12755_v34 = vpop.f32.mrb[42].mxu1  ;;  %v18203_v31 = vand.u32 4294901760, %v18202_v8 }
 0x3e8   : > { %4200 = vmatprep.mubr.f32.mxu0 %v10916_v0  ;;  %18201 = vst [vmem:[#allocation21_spill] sm:$0xff] %v12755_v34  ;;  %v12761_v19 = vpop.f32.mrb[43].mxu1 }
 0x3e9   : > { %v1723_v28 = vsub.f32 %v18202_v8, %v18203_v31  ;;  %18204 = vst [vmem:[#allocation22_spill] sm:$0xff] %v12761_v19  ;;  %v12764_v62 = vpop.f32.mrb[44].mxu1 }
 0x3ea   : > { %1714 = vmatmul.mubr.f32.gmra.mrb[122].mxu1 %v1713_v22  ;;  %18205 = vst [vmem:[#allocation23_spill] sm:$0xff] %v12764_v62  ;;  %v12766_v63 = vpop.f32.mrb[45].mxu1  ;;  %v18206_v22 = vld [vmem:[#allocation85_spill] sm:$0xff] }
 0x3eb   : > { %4202 = vmatmul.mubr.f32.gmra.mrb[36].mxu0 %v18077_v37  ;;  %1719 = vmatprep.mubr.f32.mxu1 %v10916_v0  ;;  %v1724_v25 = vand.u32 4294901760, %v1723_v28  ;;  %v12769_v37 = vpop.f32.mrb[46].mxu1  ;;  %v18207_v34 = vand.u32 4294901760, %v18206_v22 }
 0x3ec   : > { %4207 = vmatprep.mubr.f32.mxu0 %v10916_v0  ;;  %v12775_v8 = vpop.f32.mrb[47].mxu1 }
 0x3ed   : > { %v1734_v31 = vsub.f32 %v18206_v22, %v18207_v34  ;;  %v12778_v19 = vpop.f32.mrb[48].mxu1 }
 0x3ee   : > { %1725 = vmatmul.mubr.f32.gmra.mrb[124].mxu1 %v1724_v25  ;;  %18208 = vst [vmem:[#allocation24_spill] sm:$0xff] %v12778_v19  ;;  %v12780_v62 = vpop.f32.mrb[49].mxu1 }
 0x3ef   : > { %4209 = vmatmul.mubr.f32.gmra.mrb[38].mxu0 %v18079_v40  ;;  %1730 = vmatprep.mubr.f32.mxu1 %v10916_v0  ;;  %v1735_v28 = vand.u32 4294901760, %v1734_v31  ;;  %18209 = vst [vmem:[#allocation25_spill] sm:$0xff] %v12780_v62  ;;  %v12783_v40 = vpop.f32.mrb[50].mxu1 }
 0x3f0   : > { %4214 = vmatprep.mubr.f32.mxu0 %v10916_v0  ;;  %18210 = vst [vmem:[#allocation26_spill] sm:$0xff] %v12783_v40  ;;  %v12786_v25 = vpop.f32.mrb[51].mxu1 }
 0x3f1   : > { %18211 = vst [vmem:[#allocation27_spill] sm:$0xff] %v12786_v25  ;;  %v12789_v34 = vpop.f32.mrb[52].mxu1 }
 0x3f2   : > { %1736 = vmatmul.mubr.f32.gmra.mrb[126].mxu1 %v1735_v28  ;;  %18212 = vst [vmem:[#allocation28_spill] sm:$0xff] %v12789_v34 }
 0x3f3   : > { %4216 = vmatmul.mubr.f32.gmra.mrb[40].mxu0 %v18081_v43  ;;  %2040 = vmatprep.mubr.f32.mxu1 %v10916_v0  ;;  %v12795_v43 = vpop.f32.mrb[53].mxu1 }
 0x3f4   : > { %4221 = vmatprep.mubr.f32.mxu0 %v10916_v0  ;;  %18213 = vst [vmem:[#allocation29_spill] sm:$0xff] %v12795_v43  ;;  %v12797_v22 = vpop.f32.mrb[54].mxu1 }
 0x3f5   : > { %18214 = vst [vmem:[#allocation30_spill] sm:$0xff] %v12797_v22  ;;  %v12800_v31 = vpop.f32.mrb[55].mxu1 }
 0x3f6   : > { %2042 = vmatmul.mubr.f32.vlgmr.msra.gmra.mrb[64].mxu1 %v18105_v41  ;;  %18215 = vst [vmem:[#allocation31_spill] sm:$0xff] %v12800_v31  ;;  %v12804_v28 = vpop.f32.mrb[56].mxu1 }
 0x3f7   : > { %4223 = vmatmul.mubr.f32.gmra.mrb[42].mxu0 %v18083_v46  ;;  %2047 = vmatprep.mubr.f32.mxu1 %v10916_v0  ;;  %18216 = vst [vmem:[#allocation32_spill] sm:$0xff] %v12804_v28  ;;  %v12807_v46 = vpop.f32.mrb[57].mxu1 }
 0x3f8   : > { %4228 = vmatprep.mubr.f32.mxu0 %v10916_v0  ;;  %18217 = vst [vmem:[#allocation33_spill] sm:$0xff] %v12807_v46  ;;  %v12809_v34 = vpop.f32.mrb[58].mxu1 }
 0x3f9   : > { %18218 = vst [vmem:[#allocation35_spill] sm:$0xff] %v12809_v34  ;;  %v12812_v43 = vpop.f32.mrb[59].mxu1 }
 0x3fa   : > { %2049 = vmatmul.mubr.f32.gmra.mrb[66].mxu1 %v18107_v50  ;;  %18219 = vst [vmem:[#allocation37_spill] sm:$0xff] %v12812_v43 }
 0x3fb   : > { %4230 = vmatmul.mubr.f32.gmra.mrb[44].mxu0 %v18085_v49  ;;  %2054 = vmatprep.mubr.f32.mxu1 %v10916_v0  ;;  %v12816_v49 = vpop.f32.mrb[60].mxu1 }
 0x3fc   : > { %4235 = vmatprep.mubr.f32.mxu0 %v10916_v0  ;;  %18220 = vst [vmem:[#allocation34_spill] sm:$0xff] %v12816_v49  ;;  %v12819_v31 = vpop.f32.mrb[61].mxu1 }
 0x3fd   : > { %18221 = vst [vmem:[#allocation36_spill] sm:$0xff] %v12819_v31  ;;  %v12821_v28 = vpop.f32.mrb[62].mxu1 }
 0x3fe   : > { %2056 = vmatmul.mubr.f32.gmra.mrb[68].mxu1 %v18109_v59  ;;  %18222 = vst [vmem:[#allocation38_spill] sm:$0xff] %v12821_v28  ;;  %v12824_v46 = vpop.f32.mrb[63].mxu1 }
 0x3ff   : > { %4237 = vmatmul.mubr.f32.gmra.mrb[46].mxu0 %v18087_v52  ;;  %2061 = vmatprep.mubr.f32.mxu1 %v10916_v0  ;;  %18223 = vst [vmem:[#allocation41_spill] sm:$0xff] %v12824_v46  ;;  %v18224_v52 = vld [vmem:[#allocation39_spill] sm:$0xff] }
 0x400   : > { %4242 = vmatprep.mubr.f32.mxu0 %v10916_v0 }
 0x402   : > { %2063 = vmatmul.mubr.f32.gmra.mrb[70].mxu1 %v18111_v26 }
 0x403   : > { %4244 = vmatmul.mubr.f32.gmra.mrb[48].mxu0 %v18089_v55  ;;  %2068 = vmatprep.mubr.f32.mxu1 %v10916_v0  ;;  %v18225_v55 = vld [vmem:[#allocation47_spill] sm:$0xff] }
 0x404   : > { %4249 = vmatprep.mubr.f32.mxu0 %v10916_v0 }
 0x406   : > { %2070 = vmatmul.mubr.f32.gmra.mrb[72].mxu1 %v18112_v53 }
 0x407   : > { %4251 = vmatmul.mubr.f32.gmra.mrb[50].mxu0 %v18091_v58  ;;  %2075 = vmatprep.mubr.f32.mxu1 %v10916_v0  ;;  %v18226_v58 = vld [vmem:[#allocation40_spill] sm:$0xff] }
 0x408   : > { %4256 = vmatprep.mubr.f32.mxu0 %v10916_v0 }
 0x40a   : > { %2077 = vmatmul.mubr.f32.gmra.mrb[74].mxu1 %v18113_v39 }
 0x40b   : > { %4258 = vmatmul.mubr.f32.gmra.mrb[52].mxu0 %v18093_v61  ;;  %2082 = vmatprep.mubr.f32.mxu1 %v10916_v0  ;;  %v18227_v61 = vld [vmem:[#allocation48_spill] sm:$0xff] }
 0x40c   : > { %4263 = vmatprep.mubr.f32.mxu0 %v10916_v0 }
 0x40e   : > { %2084 = vmatmul.mubr.f32.gmra.mrb[76].mxu1 %v18114_v10 }
 0x40f   : > { %4265 = vmatmul.mubr.f32.gmra.mrb[54].mxu0 %v18095_v1  ;;  %2089 = vmatprep.mubr.f32.mxu1 %v10916_v0  ;;  %v18228_v1 = vld [vmem:[#allocation42_spill] sm:$0xff] }
 0x410   : > { %4270 = vmatprep.mubr.f32.mxu0 %v10916_v0 }
 0x412   : > { %2091 = vmatmul.mubr.f32.gmra.mrb[78].mxu1 %v18115_v12 }
 0x413   : > { %4272 = vmatmul.mubr.f32.gmra.mrb[56].mxu0 %v18097_v5  ;;  %2096 = vmatprep.mubr.f32.mxu1 %v10916_v0  ;;  %v18229_v5 = vld [vmem:[#allocation49_spill] sm:$0xff] }
 0x414   : > { %4277 = vmatprep.mubr.f32.mxu0 %v10916_v0 }
 0x416   : > { %2098 = vmatmul.mubr.f32.gmra.mrb[80].mxu1 %v18225_v55 }
 0x417   : > { %4279 = vmatmul.mubr.f32.gmra.mrb[58].mxu0 %v18224_v52  ;;  %2103 = vmatprep.mubr.f32.mxu1 %v10916_v0  ;;  %v18230_v52 = vld [vmem:[#allocation50_spill] sm:$0xff] }
 0x418   : > { %4284 = vmatprep.mubr.f32.mxu0 %v10916_v0 }
 0x41a   : > { %2105 = vmatmul.mubr.f32.gmra.mrb[82].mxu1 %v18227_v61 }
 0x41b   : > { %4286 = vmatmul.mubr.f32.gmra.mrb[60].mxu0 %v18226_v58  ;;  %2110 = vmatprep.mubr.f32.mxu1 %v10916_v0  ;;  %v18231_v58 = vld [vmem:[#allocation51_spill] sm:$0xff] }
 0x41c   : > { %4291 = vmatprep.mubr.f32.mxu0 %v10916_v0 }
 0x41e   : > { %2112 = vmatmul.mubr.f32.gmra.mrb[84].mxu1 %v18229_v5 }
 0x41f   : > { %4293 = vmatmul.mubr.f32.gmra.mrb[62].mxu0 %v18228_v1  ;;  %2117 = vmatprep.mubr.f32.mxu1 %v10916_v0  ;;  %v18232_v1 = vld [vmem:[#allocation52_spill] sm:$0xff] }
 0x420   : > { %4298 = vmatprep.mubr.f32.mxu0 %v10916_v0 }
 0x422   : > { %2119 = vmatmul.mubr.f32.gmra.mrb[86].mxu1 %v18230_v52 }
 0x423   : > { %4300 = vmatmul.mubr.f32.gmra.mrb[64].mxu0 %v18105_v41  ;;  %2124 = vmatprep.mubr.f32.mxu1 %v10916_v0  ;;  %v18233_v41 = vld [vmem:[#allocation53_spill] sm:$0xff] }
 0x424   : > { %4305 = vmatprep.mubr.f32.mxu0 %v10916_v0 }
 0x426   : > { %2126 = vmatmul.mubr.f32.gmra.mrb[88].mxu1 %v18231_v58 }
 0x427   : > { %4307 = vmatmul.mubr.f32.gmra.mrb[66].mxu0 %v18107_v50  ;;  %2131 = vmatprep.mubr.f32.mxu1 %v10916_v0  ;;  %v18234_v50 = vld [vmem:[#allocation54_spill] sm:$0xff] }
 0x428   : > { %4312 = vmatprep.mubr.f32.mxu0 %v10916_v0 }
 0x42a   : > { %2133 = vmatmul.mubr.f32.gmra.mrb[90].mxu1 %v18232_v1 }
 0x42b   : > { %4314 = vmatmul.mubr.f32.gmra.mrb[68].mxu0 %v18109_v59  ;;  %2138 = vmatprep.mubr.f32.mxu1 %v10916_v0  ;;  %v18235_v59 = vld [vmem:[#allocation55_spill] sm:$0xff] }
 0x42c   : > { %4319 = vmatprep.mubr.f32.mxu0 %v10916_v0 }
 0x42e   : > { %2140 = vmatmul.mubr.f32.gmra.mrb[92].mxu1 %v18233_v41 }
 0x42f   : > { %4321 = vmatmul.mubr.f32.gmra.mrb[70].mxu0 %v18111_v26  ;;  %2145 = vmatprep.mubr.f32.mxu1 %v10916_v0  ;;  %v18236_v26 = vld [vmem:[#allocation56_spill] sm:$0xff] }
 0x430   : > { %4326 = vmatprep.mubr.f32.mxu0 %v10916_v0 }
 0x432   : > { %2147 = vmatmul.mubr.f32.gmra.mrb[94].mxu1 %v18234_v50 }
 0x433   : > { %4328 = vmatmul.mubr.f32.gmra.mrb[72].mxu0 %v18112_v53  ;;  %2152 = vmatprep.mubr.f32.mxu1 %v10916_v0  ;;  %v18237_v53 = vld [vmem:[#allocation58_spill] sm:$0xff] }
 0x434   : > { %4333 = vmatprep.mubr.f32.mxu0 %v10916_v0 }
 0x436   : > { %2154 = vmatmul.mubr.f32.gmra.mrb[96].mxu1 %v18235_v59 }
 0x437   : > { %4335 = vmatmul.mubr.f32.gmra.mrb[74].mxu0 %v18113_v39  ;;  %2159 = vmatprep.mubr.f32.mxu1 %v10916_v0  ;;  %v18238_v39 = vld [vmem:[#allocation60_spill] sm:$0xff] }
 0x438   : > { %4340 = vmatprep.mubr.f32.mxu0 %v10916_v0 }
 0x43a   : > { %2161 = vmatmul.mubr.f32.gmra.mrb[98].mxu1 %v18236_v26 }
 0x43b   : > { %4342 = vmatmul.mubr.f32.gmra.mrb[76].mxu0 %v18114_v10  ;;  %2166 = vmatprep.mubr.f32.mxu1 %v10916_v0  ;;  %v18239_v10 = vld [vmem:[#allocation62_spill] sm:$0xff] }
 0x43c   : > { %4347 = vmatprep.mubr.f32.mxu0 %v10916_v0 }
 0x43e   : > { %2168 = vmatmul.mubr.f32.gmra.mrb[100].mxu1 %v18237_v53 }
 0x43f   : > { %4349 = vmatmul.mubr.f32.gmra.mrb[78].mxu0 %v18115_v12  ;;  %2173 = vmatprep.mubr.f32.mxu1 %v10916_v0  ;;  %v12903_v12 = vpop.permute.xlu0 %533 }
 0x440   : > { %4354 = vmatprep.mubr.f32.mxu0 %v10916_v0 }
 0x442   : > { %2175 = vmatmul.mubr.f32.gmra.mrb[102].mxu1 %v18238_v39 }
 0x443   : > { %4356 = vmatmul.mubr.f32.gmra.mrb[80].mxu0 %v18225_v55  ;;  %2180 = vmatprep.mubr.f32.mxu1 %v10916_v0  ;;  %v454_v55 = vpop.permute.xlu1 %453 }
 0x444   : > { %4361 = vmatprep.mubr.f32.mxu0 %v10916_v0 }
 0x446   : > { %2182 = vmatmul.mubr.f32.gmra.mrb[104].mxu1 %v18239_v10 }
 0x447   : > { %4363 = vmatmul.mubr.f32.gmra.mrb[82].mxu0 %v18227_v61  ;;  %2187 = vmatprep.mubr.f32.mxu1 %v10916_v0  ;;  %v12911_v61 = vpop.permute.xlu0 %538 }
 0x448   : > { %4368 = vmatprep.mubr.f32.mxu0 %v10916_v0 }
 0x44a   : > { %2189 = vmatmul.mubr.f32.gmra.mrb[106].mxu1 %v18130_v32 }
 0x44b   : > { %4370 = vmatmul.mubr.f32.gmra.mrb[84].mxu0 %v18229_v5  ;;  %2194 = vmatprep.mubr.f32.mxu1 %v10916_v0  ;;  %v459_v5 = vpop.permute.xlu1 %458 }
 0x44c   : > { %4375 = vmatprep.mubr.f32.mxu0 %v10916_v0  ;;  %v1056_v34 = vadd.f32 %v12615_v16, %v459_v5 }
 0x44e   : > { %2196 = vmatmul.mubr.f32.gmra.mrb[108].mxu1 %v18132_v2 }
 0x44f   : > { %4377 = vmatmul.mubr.f32.gmra.mrb[86].mxu0 %v18230_v52  ;;  %2201 = vmatprep.mubr.f32.mxu1 %v10916_v0  ;;  %v12919_v52 = vpop.permute.xlu0 %543 }
 0x450   : > { %4382 = vmatprep.mubr.f32.mxu0 %v10916_v0 }
 0x452   : > { %2203 = vmatmul.mubr.f32.gmra.mrb[110].mxu1 %v18134_v11 }
 0x453   : > { %4384 = vmatmul.mubr.f32.gmra.mrb[88].mxu0 %v18231_v58  ;;  %2208 = vmatprep.mubr.f32.mxu1 %v10916_v0  ;;  %v12925_v58 = vpop.permute.xlu1 %548 }
 0x454   : > { %4389 = vmatprep.mubr.f32.mxu0 %v10916_v0 }
 0x456   : > { %2210 = vmatmul.mubr.f32.gmra.mrb[112].mxu1 %v18136_v30 }
 0x457   : > { %4391 = vmatmul.mubr.f32.gmra.mrb[90].mxu0 %v18232_v1  ;;  %2215 = vmatprep.mubr.f32.mxu1 %v10916_v0  ;;  %v464_v1 = vpop.permute.xlu0 %463 }
 0x458   : > { %4396 = vmatprep.mubr.f32.mxu0 %v10916_v0 }
 0x45a   : > { %2217 = vmatmul.mubr.f32.gmra.mrb[114].mxu1 %v18138_v7 }
 0x45b   : > { %4398 = vmatmul.mubr.f32.gmra.mrb[92].mxu0 %v18233_v41  ;;  %2222 = vmatprep.mubr.f32.mxu1 %v10916_v0  ;;  %v469_v41 = vpop.permute.xlu1 %468 }
 0x45c   : > { %4403 = vmatprep.mubr.f32.mxu0 %v10916_v0 }
 0x45e   : > { %2224 = vmatmul.mubr.f32.gmra.mrb[116].mxu1 %v18140_v35 }
 0x45f   : > { %4405 = vmatmul.mubr.f32.gmra.mrb[94].mxu0 %v18234_v50  ;;  %2229 = vmatprep.mubr.f32.mxu1 %v10916_v0  ;;  %v12935_v50 = vpop.permute.xlu0 %553 }
 0x460   : > { %4410 = vmatprep.mubr.f32.mxu0 %v10916_v0 }
 0x462   : > { %2231 = vmatmul.mubr.f32.gmra.mrb[118].mxu1 %v18142_v15 }
 0x463   : > { %4412 = vmatmul.mubr.f32.gmra.mrb[96].mxu0 %v18235_v59  ;;  %2236 = vmatprep.mubr.f32.mxu1 %v10916_v0  ;;  %v12941_v59 = vpop.permute.xlu1 %558  ;;  %v474_v46 = vpop.permute.xlu0 %473 }
 0x464   : > { %4417 = vmatprep.mubr.f32.mxu0 %v10916_v0 }
 0x466   : > { %2238 = vmatmul.mubr.f32.gmra.mrb[120].mxu1 %v18144_v6 }
 0x467   : > { %4419 = vmatmul.mubr.f32.gmra.mrb[98].mxu0 %v18236_v26  ;;  %2243 = vmatprep.mubr.f32.mxu1 %v10916_v0  ;;  %v12949_v26 = vpop.permute.xlu1 %478  ;;  %v12954_v28 = vpop.permute.xlu0 %563 }
 0x468   : > { %4424 = vmatprep.mubr.f32.mxu0 %v10916_v0 }
 0x46a   : > { %2245 = vmatmul.mubr.f32.gmra.mrb[122].mxu1 %v18146_v17 }
 0x46b   : > { %4426 = vmatmul.mubr.f32.gmra.mrb[100].mxu0 %v18237_v53  ;;  %2250 = vmatprep.mubr.f32.mxu1 %v10916_v0  ;;  %v1045_v53 = vadd.f32 %v12605_v47, %v454_v55  ;;  %v12960_v22 = vpop.permute.xlu1 %568  ;;  %v1058_v47 = vadd.f32 %v12621_v38, %v459_v5  ;;  %v12964_v40 = vpop.permute.xlu0 %483 }
 0x46c   : > { %4431 = vmatprep.mubr.f32.mxu0 %v10916_v0 }
 0x46e   : > { %2252 = vmatmul.mubr.f32.gmra.mrb[124].mxu1 %v18148_v23 }
 0x46f   : > { %4433 = vmatmul.mubr.f32.gmra.mrb[102].mxu0 %v18238_v39  ;;  %2257 = vmatprep.mubr.f32.mxu1 %v10916_v0  ;;  %v1047_v39 = vadd.f32 %v12612_v36, %v454_v55 }
 0x470   : > { %4438 = vmatprep.mubr.f32.mxu0 %v10916_v0 }
 0x472   : > { %2259 = vmatmul.mubr.f32.gmra.mrb[126].mxu1 %v18150_v4 }
 0x473   : > { %4440 = vmatmul.mubr.f32.gmra.mrb[104].mxu0 %v18239_v10 }
 0x474   : > { %4445 = vmatprep.mubr.f32.mxu0 %v10916_v0 }
 0x476   : > { %v4077_v31 = vpop.f32.mrb[0].mxu0 }
 0x477   : > { %v10096_v49 = vadd.f32 %v4077_v31, %v1045_v53  ;;  %v4079_v43 = vpop.f32.mrb[1].mxu0  ;;  %4447 = vmatmul.mubr.f32.gmra.mrb[106].mxu0 %v18130_v32  ;;  %v1067_v32 = vadd.f32 %v12624_v44, %v464_v1 }
 0x478   : > { %v10098_v10 = vadd.f32 %v4079_v43, %v1047_v39  ;;  %4452 = vmatprep.mubr.f32.mxu0 %v10916_v0  ;;  %v1069_v43 = vadd.f32 %v12626_v14, %v464_v1  ;;  %v12970_v39 = vpop.permute.xlu1 %488  ;;  %v1080_v14 = vadd.f32 %v12635_v29, %v469_v41 }
 0x479   : > { %v4523_v25 = vmax.f32 %v10096_v49, 0.0 }
 0x47a   : > { %v4524_v62 = vmax.f32 %v10098_v10, 0.0  ;;  %v4084_v19 = vpop.f32.mrb[2].mxu0 }
 0x47b   : > { %v10100_v36 = vadd.f32 %v4084_v19, %v1056_v34  ;;  %v4086_v55 = vpop.f32.mrb[3].mxu0  ;;  %4454 = vmatmul.mubr.f32.gmra.mrb[108].mxu0 %v18132_v2  ;;  %v1078_v2 = vadd.f32 %v12629_v9, %v469_v41  ;;  %v12974_v19 = vpop.permute.xlu0 %573  ;;  %v12992_v41 = vadd.f32 %v12640_v3, %v474_v46 }
 0x47c   : > { %v10102_v31 = vadd.f32 %v4086_v55, %v1058_v47  ;;  %4459 = vmatprep.mubr.f32.mxu0 %v10916_v0  ;;  %v4715_v16 = vadd.f32 %v4524_v62, %v4523_v25  ;;  %v12984_v9 = vpop.permute.xlu1 %578 }
 0x47d   : > { %v4525_v53 = vmax.f32 %v10100_v36, 0.0 }
 0x47e   : > { %v4526_v38 = vmax.f32 %v10102_v31, 0.0  ;;  %v4091_v49 = vpop.f32.mrb[4].mxu0  ;;  %4716 = vadd.xlane.f32.xlu0 %v4715_v16  ;;  %v1100_v16 = vadd.f32 %v12643_v42, %v12949_v26 }
 0x47f   : > { %v10104_v5 = vadd.f32 %v4091_v49, %v1067_v32  ;;  %v4093_v10 = vpop.f32.mrb[5].mxu0  ;;  %4461 = vmatmul.mubr.f32.gmra.mrb[110].mxu0 %v18134_v11  ;;  %v12982_v11 = vadd.f32 %v12638_v18, %v474_v46  ;;  %v494_v18 = vpop.permute.xlu0 %493 }
 0x480   : > { %v10106_v44 = vadd.f32 %v4093_v10, %v1069_v43  ;;  %4466 = vmatprep.mubr.f32.mxu0 %v10916_v0  ;;  %v4718_v62 = vadd.f32 %v4526_v38, %v4525_v53  ;;  %v1102_v38 = vadd.f32 %v12649_v20, %v12949_v26  ;;  %v1113_v20 = vadd.f32 %v12654_v27, %v12964_v40 }
 0x481   : > { %v4527_v25 = vmax.f32 %v10104_v5, 0.0  ;;  %v499_v5 = vpop.permute.xlu1 %498  ;;  %v1124_v27 = vadd.f32 %v12663_v24, %v12970_v39 }
 0x482   : > { %v4528_v34 = vmax.f32 %v10106_v44, 0.0  ;;  %v4098_v1 = vpop.f32.mrb[6].mxu0  ;;  %4719 = vadd.xlane.f32.xlu0 %v4718_v62 }
 0x483   : > { %v12978_v47 = vadd.f32 %v4098_v1, %v1078_v2  ;;  %v4100_v36 = vpop.f32.mrb[7].mxu0  ;;  %4468 = vmatmul.mubr.f32.gmra.mrb[112].mxu0 %v18136_v30  ;;  %v13136_v42 = vpop.permute.xlu0 %583 }
 0x484   : > { %v12986_v55 = vadd.f32 %v4100_v36, %v1080_v14  ;;  %4473 = vmatprep.mubr.f32.mxu0 %v10916_v0  ;;  %v12989_v29 = vadd.f32 %v4528_v34, %v4527_v25 }
 0x485   : > { %v4529_v30 = vmax.f32 %v12978_v47, 0.0 }
 0x486   : > { %v4530_v3 = vmax.f32 %v12986_v55, 0.0  ;;  %v4105_v46 = vpop.f32.mrb[8].mxu0  ;;  %4722 = vadd.xlane.f32.xlu1 %v12989_v29 }
 0x487   : > { %v10112_v32 = vadd.f32 %v4105_v46, %v12982_v11  ;;  %v4107_v31 = vpop.f32.mrb[9].mxu0  ;;  %4475 = vmatmul.mubr.f32.gmra.mrb[114].mxu0 %v18138_v7  ;;  %v1111_v7 = vadd.f32 %v12652_v21, %v12964_v40  ;;  %v13144_v21 = vpop.permute.xlu1 %588 }
 0x488   : > { %v10114_v43 = vadd.f32 %v4107_v31, %v12992_v41  ;;  %4480 = vmatprep.mubr.f32.mxu0 %v10916_v0  ;;  %v4724_v53 = vadd.f32 %v4530_v3, %v4529_v30  ;;  %v504_v29 = vpop.permute.xlu0 %503  ;;  %v1135_v31 = vadd.f32 %v12668_v48, %v494_v18 }
 0x489   : > { %v4531_v49 = vmax.f32 %v10112_v32, 0.0 }
 0x48a   : > { %v4532_v10 = vmax.f32 %v10114_v43, 0.0  ;;  %v4112_v2 = vpop.f32.mrb[10].mxu0  ;;  %4725 = vadd.xlane.f32.xlu0 %v4724_v53 }
 0x48b   : > { %v10116_v44 = vadd.f32 %v4112_v2, %v1100_v16  ;;  %v4114_v62 = vpop.f32.mrb[11].mxu0  ;;  %4482 = vmatmul.mubr.f32.gmra.mrb[116].mxu0 %v18140_v35  ;;  %v1122_v35 = vadd.f32 %v12657_v13, %v12970_v39  ;;  %v509_v43 = vpop.permute.xlu1 %508 }
 0x48c   : > { %v10118_v14 = vadd.f32 %v4114_v62, %v1102_v38  ;;  %4487 = vmatprep.mubr.f32.mxu0 %v10916_v0  ;;  %v4727_v25 = vadd.f32 %v4532_v10, %v4531_v49  ;;  %v18240_v49 = vld [vmem:[#allocation5_spill] sm:$0xff] }
 0x48d   : > { %v4533_v26 = vmax.f32 %v10116_v44, 0.0  ;;  %v1144_v10 = vadd.f32 %v18240_v49, %v499_v5  ;;  %v18241_v44 = vld [vmem:[#allocation4_spill] sm:$0xff] }
 0x48e   : > { %v4534_v34 = vmax.f32 %v10118_v14, 0.0  ;;  %v4119_v1 = vpop.f32.mrb[12].mxu0  ;;  %4728 = vadd.xlane.f32.xlu1 %v4727_v25  ;;  %v1146_v62 = vadd.f32 %v18241_v44, %v499_v5 }
 0x48f   : > { %v10120_v47 = vadd.f32 %v4119_v1, %v1111_v7  ;;  %v4121_v36 = vpop.f32.mrb[13].mxu0  ;;  %4489 = vmatmul.mubr.f32.gmra.mrb[118].mxu0 %v18142_v15  ;;  %v1133_v15 = vadd.f32 %v12666_v51, %v494_v18 }
 0x490   : > { %v10122_v11 = vadd.f32 %v4121_v36, %v1113_v20  ;;  %4494 = vmatprep.mubr.f32.mxu0 %v10916_v0  ;;  %v4730_v55 = vadd.f32 %v4534_v34, %v4533_v26  ;;  %v18242_v20 = vld [vmem:[#allocation7_spill] sm:$0xff]  ;;  %v13161_v26 = vpop.permute.xlu1 %598 }
 0x491   : > { %v4535_v40 = vmax.f32 %v10120_v47, 0.0  ;;  %v1157_v47 = vadd.f32 %v12682_v54, %v504_v29 }
 0x492   : > { %v4536_v41 = vmax.f32 %v10122_v11, 0.0  ;;  %v4126_v30 = vpop.f32.mrb[14].mxu0  ;;  %4731 = vadd.xlane.f32.xlu0 %v4730_v55 }
 0x493   : > { %v10124_v3 = vadd.f32 %v4126_v30, %v1122_v35  ;;  %v4128_v46 = vpop.f32.mrb[15].mxu0  ;;  %4496 = vmatmul.mubr.f32.gmra.mrb[120].mxu0 %v18144_v6  ;;  %v13155_v6 = vpop.permute.xlu0 %593  ;;  %v18243_v30 = vld [vmem:[#allocation3_spill] sm:$0xff] }
 0x494   : > { %v10126_v13 = vadd.f32 %v4128_v46, %v1124_v27  ;;  %4501 = vmatprep.mubr.f32.mxu0 %v10916_v0  ;;  %v4733_v32 = vadd.f32 %v4536_v41, %v4535_v40  ;;  %v519_v46 = vpop.permute.xlu1 %518 }
 0x495   : > { %v4537_v16 = vmax.f32 %v10124_v3, 0.0  ;;  %v1166_v3 = vadd.f32 %v18243_v30, %v509_v43 }
 0x496   : > { %v4538_v24 = vmax.f32 %v10126_v13, 0.0  ;;  %v4133_v39 = vpop.f32.mrb[16].mxu0  ;;  %4734 = vadd.xlane.f32.xlu1 %v4733_v32  ;;  %v18244_v13 = vld [vmem:[#allocation8_spill] sm:$0xff] }
 0x497   : > { %v10128_v53 = vadd.f32 %v4133_v39, %v1133_v15  ;;  %v4135_v38 = vpop.f32.mrb[17].mxu0  ;;  %4503 = vmatmul.mubr.f32.gmra.mrb[122].mxu0 %v18146_v17  ;;  %v1155_v17 = vadd.f32 %v18242_v20, %v504_v29  ;;  %v514_v5 = vpop.permute.xlu0 %513  ;;  %v1168_v54 = vadd.f32 %v18244_v13, %v509_v43 }
 0x498   : > { %v10130_v51 = vadd.f32 %v4135_v38, %v1135_v31  ;;  %4508 = vmatprep.mubr.f32.mxu0 %v10916_v0  ;;  %v4736_v2 = vadd.f32 %v4538_v24, %v4537_v16  ;;  %v13172_v44 = vpop.permute.xlu1 %608 }
 0x499   : > { %v4539_v48 = vmax.f32 %v10128_v53, 0.0  ;;  %v18245_v53 = vld [vmem:[#allocation9_spill] sm:$0xff] }
 0x49a   : > { %v4540_v18 = vmax.f32 %v10130_v51, 0.0  ;;  %v4140_v7 = vpop.f32.mrb[18].mxu0  ;;  %4737 = vadd.xlane.f32.xlu0 %v4736_v2 }
 0x49b   : > { %v10132_v14 = vadd.f32 %v4140_v7, %v1144_v10  ;;  %v4142_v25 = vpop.f32.mrb[19].mxu0  ;;  %4510 = vmatmul.mubr.f32.gmra.mrb[124].mxu0 %v18148_v23  ;;  %v13168_v31 = vpop.permute.xlu0 %603  ;;  %v1179_v10 = vadd.f32 %v12696_v33, %v514_v5 }
 0x49c   : > { %v10134_v34 = vadd.f32 %v4142_v25, %v1146_v62  ;;  %4515 = vmatprep.mubr.f32.mxu0 %v10916_v0  ;;  %v4739_v1 = vadd.f32 %v4540_v18, %v4539_v48  ;;  %v18246_v18 = vld [vmem:[#allocation10_spill] sm:$0xff] }
 0x49d   : > { %v4541_v36 = vmax.f32 %v10132_v14, 0.0  ;;  %v1188_v7 = vadd.f32 %v18246_v18, %v519_v46 }
 0x49e   : > { %v4542_v35 = vmax.f32 %v10134_v34, 0.0  ;;  %v4147_v11 = vpop.f32.mrb[20].mxu0  ;;  %4740 = vadd.xlane.f32.xlu1 %v4739_v1 }
 0x49f   : > { %v10136_v55 = vadd.f32 %v4147_v11, %v1155_v17  ;;  %v4149_v27 = vpop.f32.mrb[21].mxu0  ;;  %4517 = vmatmul.mubr.f32.gmra.mrb[126].mxu0 %v18150_v4  ;;  %v1177_v4 = vadd.f32 %v18245_v53, %v514_v5  ;;  %v524_v14 = vpop.permute.xlu0 %523  ;;  %v18247_v17 = vld [vmem:[#allocation11_spill] sm:$0xff]  ;;  %v18248_v5 = vld [vmem:[#allocation6_spill] sm:$0xff] }
 0x4a0   : > { %v10138_v23 = vadd.f32 %v4149_v27, %v1157_v47  ;;  %v4742_v40 = vadd.f32 %v4542_v35, %v4541_v36  ;;  %v1190_v34 = vadd.f32 %v18247_v17, %v519_v46  ;;  %v1199_v11 = vadd.f32 %v18248_v5, %v524_v14 }
 0x4a1   : > { %v4543_v41 = vmax.f32 %v10136_v55, 0.0  ;;  %v529_v55 = vpop.permute.xlu1 %528 }
 0x4a2   : > { %v4544_v15 = vmax.f32 %v10138_v23, 0.0  ;;  %v4154_v0 = vpop.f32.mrb[22].mxu0  ;;  %4743 = vadd.xlane.f32.xlu0 %v4742_v40  ;;  %v1201_v40 = vadd.f32 %v12710_v60, %v524_v14  ;;  %v18251_v60 = vld [vmem:[#allocation14_spill] sm:$0xff]  ;;  %v18252_v14 = vld [vmem:[#allocation15_spill] sm:$0xff] }
 0x4a3   : > { %v10140_v29 = vadd.f32 %v4154_v0, %v1166_v3  ;;  %v4156_v32 = vpop.f32.mrb[23].mxu0  ;;  %v18249_v0 = vld [vmem:[#allocation12_spill] sm:$0xff] }
 0x4a4   : > { %v10142_v16 = vadd.f32 %v4156_v32, %v1168_v54  ;;  %v4745_v24 = vadd.f32 %v4544_v15, %v4543_v41  ;;  %v1210_v13 = vadd.f32 %v18249_v0, %v529_v55  ;;  %v18250_v54 = vld [vmem:[#allocation13_spill] sm:$0xff] }
 0x4a5   : > { %v4545_v39 = vmax.f32 %v10140_v29, 0.0  ;;  %v1212_v29 = vadd.f32 %v18250_v54, %v529_v55 }
 0x4a6   : > { %v4546_v38 = vmax.f32 %v10142_v16, 0.0  ;;  %v4161_v49 = vpop.f32.mrb[24].mxu0  ;;  %4746 = vadd.xlane.f32.xlu1 %v4745_v24 }
 0x4a7   : > { %v10144_v51 = vadd.f32 %v4161_v49, %v1177_v4  ;;  %v4163_v2 = vpop.f32.mrb[25].mxu0  ;;  %v1221_v49 = vadd.f32 %v18251_v60, %v12903_v12  ;;  %v1267_v60 = vadd.f32 %v12752_v57, %v12935_v50  ;;  %v18260_v57 = vld [vmem:[#allocation23_spill] sm:$0xff] }
 0x4a8   : > { %v10146_v62 = vadd.f32 %v4163_v2, %v1179_v10  ;;  %v4748_v43 = vadd.f32 %v4546_v38, %v4545_v39  ;;  %v1223_v2 = vadd.f32 %v12724_v45, %v12903_v12  ;;  %v18254_v45 = vld [vmem:[#allocation17_spill] sm:$0xff] }
 0x4a9   : > { %v4547_v48 = vmax.f32 %v10144_v51, 0.0  ;;  %v1243_v12 = vadd.f32 %v18254_v45, %v12919_v52 }
 0x4aa   : > { %v4548_v25 = vmax.f32 %v10146_v62, 0.0  ;;  %v4168_v20 = vpop.f32.mrb[26].mxu0  ;;  %4749 = vadd.xlane.f32.xlu0 %v4748_v43 }
 0x4ab   : > { %v10148_v1 = vadd.f32 %v4168_v20, %v1188_v7  ;;  %v4170_v47 = vpop.f32.mrb[27].mxu0 }
 0x4ac   : > { %v10150_v36 = vadd.f32 %v4170_v47, %v1190_v34  ;;  %v4751_v35 = vadd.f32 %v4548_v25, %v4547_v48  ;;  %v1232_v25 = vadd.f32 %v18252_v14, %v12911_v61  ;;  %v18253_v34 = vld [vmem:[#allocation16_spill] sm:$0xff]  ;;  %v18259_v14 = vld [vmem:[#allocation22_spill] sm:$0xff] }
 0x4ad   : > { %v4549_v33 = vmax.f32 %v10148_v1, 0.0  ;;  %v1234_v1 = vadd.f32 %v18253_v34, %v12911_v61  ;;  %v18255_v61 = vld [vmem:[#allocation18_spill] sm:$0xff] }
 0x4ae   : > { %v4550_v27 = vmax.f32 %v10150_v36, 0.0  ;;  %v4175_v23 = vpop.f32.mrb[28].mxu0  ;;  %4752 = vadd.xlane.f32.xlu1 %v4751_v35 }
 0x4af   : > { %v10152_v41 = vadd.f32 %v4175_v23, %v1199_v11  ;;  %v4177_v30 = vpop.f32.mrb[29].mxu0 }
 0x4b0   : > { %v10154_v3 = vadd.f32 %v4177_v30, %v1201_v40  ;;  %v4754_v15 = vadd.f32 %v4550_v27, %v4549_v33  ;;  %v1245_v27 = vadd.f32 %v12738_v56, %v12919_v52  ;;  %v18257_v56 = vld [vmem:[#allocation20_spill] sm:$0xff] }
 0x4b1   : > { %v4551_v46 = vmax.f32 %v10152_v41, 0.0  ;;  %v1265_v52 = vadd.f32 %v18257_v56, %v12935_v50  ;;  %v1287_v50 = vadd.f32 %v18260_v57, %v12954_v28  ;;  %v18268_v57 = vld [vmem:[#allocation31_spill] sm:$0xff] }
 0x4b2   : > { %v4552_v32 = vmax.f32 %v10154_v3, 0.0  ;;  %v4182_v16 = vpop.f32.mrb[30].mxu0  ;;  %4755 = vadd.xlane.f32.xlu0 %v4754_v15  ;;  %v1254_v15 = vadd.f32 %v18255_v61, %v12925_v58 }
 0x4b3   : > { %v10156_v24 = vadd.f32 %v4182_v16, %v1210_v13  ;;  %v4184_v39 = vpop.f32.mrb[31].mxu0 }
 0x4b4   : > { %v10158_v53 = vadd.f32 %v4184_v39, %v1212_v29  ;;  %v13180_v4 = vadd.f32 %v4552_v32, %v4551_v46  ;;  %v18256_v46 = vld [vmem:[#allocation19_spill] sm:$0xff] }
 0x4b5   : > { %v4553_v38 = vmax.f32 %v10156_v24, 0.0  ;;  %v1256_v54 = vadd.f32 %v18256_v46, %v12925_v58  ;;  %v18258_v58 = vld [vmem:[#allocation21_spill] sm:$0xff] }
 0x4b6   : > { %v4554_v10 = vmax.f32 %v10158_v53, 0.0  ;;  %v4189_v51 = vpop.f32.mrb[32].mxu0  ;;  %v18262_v46 = vld [vmem:[#allocation25_spill] sm:$0xff] }
 0x4b7   : > { %v10160_v62 = vadd.f32 %v4189_v51, %v1221_v49  ;;  %v4191_v43 = vpop.f32.mrb[33].mxu0 }
 0x4b8   : > { %v10162_v48 = vadd.f32 %v4191_v43, %v1223_v2  ;;  %v13186_v18 = vadd.f32 %v4554_v10, %v4553_v38  ;;  %v1276_v43 = vadd.f32 %v18258_v58, %v12941_v59 }
 0x4b9   : > { %v4555_v7 = vmax.f32 %v10160_v62, 0.0 }
 0x4ba   : > { %v4556_v20 = vmax.f32 %v10162_v48, 0.0  ;;  %v4196_v17 = vpop.f32.mrb[34].mxu0 }
 0x4bb   : > { %v10164_v47 = vadd.f32 %v4196_v17, %v1232_v25  ;;  %v4198_v36 = vpop.f32.mrb[35].mxu0  ;;  %v1278_v25 = vadd.f32 %v18259_v14, %v12941_v59  ;;  %v1298_v59 = vadd.f32 %v12769_v37, %v12960_v22  ;;  %v1311_v37 = vadd.f32 %v18262_v46, %v12974_v19 }
 0x4bc   : > { %v10166_v35 = vadd.f32 %v4198_v36, %v1234_v1  ;;  %v4763_v33 = vadd.f32 %v4556_v20, %v4555_v7 }
 0x4bd   : > { %v4557_v5 = vmax.f32 %v10164_v47, 0.0 }
 0x4be   : > { %v4558_v11 = vmax.f32 %v10166_v35, 0.0  ;;  %v4203_v55 = vpop.f32.mrb[36].mxu0  ;;  %4764 = vadd.xlane.f32.xlu0 %v4763_v33  ;;  %v1289_v33 = vadd.f32 %v12766_v63, %v12954_v28  ;;  %v18261_v63 = vld [vmem:[#allocation24_spill] sm:$0xff] }
 0x4bf   : > { %v10168_v23 = vadd.f32 %v4203_v55, %v1243_v12  ;;  %v4205_v40 = vpop.f32.mrb[37].mxu0  ;;  %v1309_v28 = vadd.f32 %v18261_v63, %v12974_v19  ;;  %v18265_v19 = vld [vmem:[#allocation28_spill] sm:$0xff] }
 0x4c0   : > { %v10170_v41 = vadd.f32 %v4205_v40, %v1245_v27  ;;  %v4766_v30 = vadd.f32 %v4558_v11, %v4557_v5  ;;  %v1300_v40 = vadd.f32 %v12775_v8, %v12960_v22  ;;  %v18263_v8 = vld [vmem:[#allocation26_spill] sm:$0xff] }
 0x4c1   : > { %v4559_v3 = vmax.f32 %v10168_v23, 0.0  ;;  %v1320_v22 = vadd.f32 %v18263_v8, %v12984_v9 }
 0x4c2   : > { %v4560_v0 = vmax.f32 %v10170_v41, 0.0  ;;  %v4210_v13 = vpop.f32.mrb[38].mxu0  ;;  %4767 = vadd.xlane.f32.xlu1 %v4766_v30 }
 0x4c3   : > { %v10172_v29 = vadd.f32 %v4210_v13, %v1254_v15  ;;  %v4212_v32 = vpop.f32.mrb[39].mxu0 }
 0x4c4   : > { %v10174_v16 = vadd.f32 %v4212_v32, %v1256_v54  ;;  %v4769_v24 = vadd.f32 %v4560_v0, %v4559_v3 }
 0x4c5   : > { %v4561_v39 = vmax.f32 %v10172_v29, 0.0 }
 0x4c6   : > { %v4562_v53 = vmax.f32 %v10174_v16, 0.0  ;;  %v4217_v38 = vpop.f32.mrb[40].mxu0  ;;  %4770 = vadd.xlane.f32.xlu1 %v4769_v24 }
 0x4c7   : > { %v10176_v49 = vadd.f32 %v4217_v38, %v1265_v52  ;;  %v4219_v10 = vpop.f32.mrb[41].mxu0  ;;  %v18264_v52 = vld [vmem:[#allocation27_spill] sm:$0xff] }
 0x4c8   : > { %v10178_v51 = vadd.f32 %v4219_v10, %v1267_v60  ;;  %v4772_v2 = vadd.f32 %v4562_v53, %v4561_v39  ;;  %v1322_v53 = vadd.f32 %v18264_v52, %v12984_v9  ;;  %v18267_v9 = vld [vmem:[#allocation30_spill] sm:$0xff] }
 0x4c9   : > { %v4563_v62 = vmax.f32 %v10176_v49, 0.0 }
 0x4ca   : > { %v4564_v48 = vmax.f32 %v10178_v51, 0.0  ;;  %v4224_v7 = vpop.f32.mrb[42].mxu0  ;;  %4773 = vadd.xlane.f32.xlu0 %v4772_v2  ;;  %v1331_v2 = vadd.f32 %v18265_v19, %v13136_v42 }
 0x4cb   : > { %v10180_v20 = vadd.f32 %v4224_v7, %v1276_v43  ;;  %v4226_v17 = vpop.f32.mrb[43].mxu0  ;;  %v18266_v43 = vld [vmem:[#allocation29_spill] sm:$0xff] }
 0x4cc   : > { %v10182_v34 = vadd.f32 %v4226_v17, %v1278_v25  ;;  %v4775_v1 = vadd.f32 %v4564_v48, %v4563_v62  ;;  %v1333_v48 = vadd.f32 %v18266_v43, %v13136_v42  ;;  %v18269_v42 = vld [vmem:[#allocation32_spill] sm:$0xff] }
 0x4cd   : > { %v4565_v47 = vmax.f32 %v10180_v20, 0.0 }
 0x4ce   : > { %v4566_v36 = vmax.f32 %v10182_v34, 0.0  ;;  %v4231_v35 = vpop.f32.mrb[44].mxu0  ;;  %4776 = vadd.xlane.f32.xlu1 %v4775_v1  ;;  %v1342_v34 = vadd.f32 %v18267_v9, %v13144_v21 }
 0x4cf   : > { %v10184_v5 = vadd.f32 %v4231_v35, %v1287_v50  ;;  %v4233_v45 = vpop.f32.mrb[45].mxu0  ;;  %v1344_v50 = vadd.f32 %v18268_v57, %v13144_v21  ;;  %v18271_v21 = vld [vmem:[#allocation35_spill] sm:$0xff] }
 0x4d0   : > { %v10186_v12 = vadd.f32 %v4233_v45, %v1289_v33  ;;  %v4778_v11 = vadd.f32 %v4566_v36, %v4565_v47 }
 0x4d1   : > { %v4567_v55 = vmax.f32 %v10184_v5, 0.0 }
 0x4d2   : > { %v4568_v27 = vmax.f32 %v10186_v12, 0.0  ;;  %v4238_v23 = vpop.f32.mrb[46].mxu0  ;;  %4779 = vadd.xlane.f32.xlu0 %v4778_v11  ;;  %v1353_v12 = vadd.f32 %v18269_v42, %v13155_v6 }
 0x4d3   : > { %v10188_v41 = vadd.f32 %v4238_v23, %v1298_v59  ;;  %v4240_v30 = vpop.f32.mrb[47].mxu0  ;;  %v18270_v59 = vld [vmem:[#allocation33_spill] sm:$0xff] }
 0x4d4   : > { %v10190_v3 = vadd.f32 %v4240_v30, %v1300_v40  ;;  %v4781_v61 = vadd.f32 %v4568_v27, %v4567_v55  ;;  %v1355_v27 = vadd.f32 %v18270_v59, %v13155_v6 }
 0x4d5   : > { %v4569_v15 = vmax.f32 %v10188_v41, 0.0 }
 0x4d6   : > { %v4570_v0 = vmax.f32 %v10190_v3, 0.0  ;;  %v4245_v13 = vpop.f32.mrb[48].mxu0  ;;  %4782 = vadd.xlane.f32.xlu1 %v4781_v61  ;;  %v1364_v61 = vadd.f32 %v18271_v21, %v13161_v26 }
 0x4d7   : > { %v10192_v54 = vadd.f32 %v4245_v13, %v1309_v28  ;;  %v4247_v29 = vpop.f32.mrb[49].mxu0  ;;  %v18272_v28 = vld [vmem:[#allocation37_spill] sm:$0xff]  ;;  %v13240_v13 = vpop.f32.mrb[64].mxu1 }
 0x4d8   : > { %v10194_v32 = vadd.f32 %v4247_v29, %v1311_v37  ;;  %v4784_v16 = vadd.f32 %v4570_v0, %v4569_v15  ;;  %v1366_v0 = vadd.f32 %v18272_v28, %v13161_v26  ;;  %v18274_v26 = vld [vmem:[#allocation36_spill] sm:$0xff] }
 0x4d9   : > { %v4571_v24 = vmax.f32 %v10192_v54, 0.0  ;;  %v13242_v54 = vpop.f32.mrb[65].mxu1  ;;  %v1377_v52 = vadd.f32 %v18274_v26, %v13168_v31 }
 0x4da   : > { %v4572_v39 = vmax.f32 %v10194_v32, 0.0  ;;  %v4252_v56 = vpop.f32.mrb[50].mxu0  ;;  %4785 = vadd.xlane.f32.xlu0 %v4784_v16  ;;  %v13244_v32 = vpop.f32.mrb[66].mxu1 }
 0x4db   : > { %v10196_v38 = vadd.f32 %v4252_v56, %v1320_v22  ;;  %v4254_v60 = vpop.f32.mrb[51].mxu0  ;;  %v13248_v22 = vpop.f32.mrb[67].mxu1 }
 0x4dc   : > { %v10198_v49 = vadd.f32 %v4254_v60, %v1322_v53  ;;  %v4787_v10 = vadd.f32 %v4572_v39, %v4571_v24  ;;  %v18273_v24 = vld [vmem:[#allocation34_spill] sm:$0xff]  ;;  %v13252_v53 = vpop.f32.mrb[68].mxu1 }
 0x4dd   : > { %v4573_v51 = vmax.f32 %v10196_v38, 0.0  ;;  %v1375_v8 = vadd.f32 %v18273_v24, %v13168_v31  ;;  %18275 = vst [vmem:[#allocation43_spill] sm:$0xff] %v13252_v53  ;;  %v18280_v31 = vld [vmem:[#allocation41_spill] sm:$0xff]  ;;  %v435_v24 = vld [vmem:[%s17201_s2 + $0x180] sm:$0xff] }
 0x4de   : > { %v4574_v62 = vmax.f32 %v10198_v49, 0.0  ;;  %v4259_v58 = vpop.f32.mrb[52].mxu0  ;;  %4788 = vadd.xlane.f32.xlu1 %v4787_v10  ;;  %v13254_v49 = vpop.f32.mrb[69].mxu1 }
 0x4df   : > { %v10200_v7 = vadd.f32 %v4259_v58, %v1331_v2  ;;  %v4261_v14 = vpop.f32.mrb[53].mxu0  ;;  %18276 = vst [vmem:[#allocation44_spill] sm:$0xff] %v13254_v49  ;;  %v13256_v19 = vpop.f32.mrb[70].mxu1  ;;  %v431_v49 = vld [vmem:[%s17201_s2 + $0x160] sm:$0xff] }
 0x4e0   : > { %v10202_v25 = vadd.f32 %v4261_v14, %v1333_v48  ;;  %v4790_v20 = vadd.f32 %v4574_v62, %v4573_v51  ;;  %18277 = vst [vmem:[#allocation45_spill] sm:$0xff] %v13256_v19  ;;  %v18278_v62 = vld [vmem:[#allocation38_spill] sm:$0xff]  ;;  %v13260_v43 = vpop.f32.mrb[71].mxu1  ;;  %v1388_v14 = vadd.f32 %v18280_v31, %v13172_v44 }
 0x4e1   : > { %v4575_v17 = vmax.f32 %v10200_v7, 0.0  ;;  %v1386_v58 = vadd.f32 %v18278_v62, %v13172_v44  ;;  %18279 = vst [vmem:[#allocation46_spill] sm:$0xff] %v13260_v43  ;;  %v4652_v62 = vld [vmem:[#allocation2 + $0x8] sm:$0xff] }
 0x4e2   : > { %v4576_v1 = vmax.f32 %v10202_v25, 0.0  ;;  %v4266_v47 = vpop.f32.mrb[54].mxu0  ;;  %4791 = vadd.xlane.f32.xlu0 %v4790_v20  ;;  %v13264_v25 = vpop.f32.mrb[72].mxu1 }
 0x4e3   : > { %v10204_v36 = vadd.f32 %v4266_v47, %v1342_v34  ;;  %v4268_v35 = vpop.f32.mrb[55].mxu0  ;;  %18281 = vst [vmem:[#allocation64_spill] sm:$0xff] %v13264_v25  ;;  %v13266_v9 = vpop.f32.mrb[73].mxu1 }
 0x4e4   : > { %v10206_v33 = vadd.f32 %v4268_v35, %v1344_v50  ;;  %v4793_v5 = vadd.f32 %v4576_v1, %v4575_v17  ;;  %18282 = vst [vmem:[#allocation66_spill] sm:$0xff] %v13266_v9  ;;  %v13268_v47 = vpop.f32.mrb[74].mxu1 }
 0x4e5   : > { %v4577_v45 = vmax.f32 %v10204_v36, 0.0  ;;  %18283 = vst [vmem:[#allocation68_spill] sm:$0xff] %v13268_v47  ;;  %v13270_v50 = vpop.f32.mrb[75].mxu1 }
 0x4e6   : > { %v4578_v11 = vmax.f32 %v10206_v33, 0.0  ;;  %v4273_v55 = vpop.f32.mrb[56].mxu0  ;;  %4794 = vadd.xlane.f32.xlu1 %v4793_v5  ;;  %18284 = vst [vmem:[#allocation70_spill] sm:$0xff] %v13270_v50  ;;  %v13274_v33 = vpop.f32.mrb[76].mxu1 }
 0x4e7   : > { %v10208_v23 = vadd.f32 %v4273_v55, %v1353_v12  ;;  %v4275_v40 = vpop.f32.mrb[57].mxu0  ;;  %18285 = vst [vmem:[#allocation72_spill] sm:$0xff] %v13274_v33  ;;  %v13278_v5 = vpop.f32.mrb[77].mxu1 }
 0x4e8   : > { %v10210_v41 = vadd.f32 %v4275_v40, %v1355_v27  ;;  %v4796_v30 = vadd.f32 %v4578_v11, %v4577_v45  ;;  %18286 = vst [vmem:[#allocation74_spill] sm:$0xff] %v13278_v5  ;;  %v13280_v42 = vpop.f32.mrb[78].mxu1 }
 0x4e9   : > { %v4579_v3 = vmax.f32 %v10208_v23, 0.0  ;;  %18287 = vst [vmem:[#allocation76_spill] sm:$0xff] %v13280_v42  ;;  %v13282_v12 = vpop.f32.mrb[79].mxu1 }
 0x4ea   : > { %v4580_v15 = vmax.f32 %v10210_v41, 0.0  ;;  %v4280_v63 = vpop.f32.mrb[58].mxu0  ;;  %4797 = vadd.xlane.f32.xlu0 %v4796_v30  ;;  %18288 = vst [vmem:[#allocation78_spill] sm:$0xff] %v13282_v12  ;;  %v13287_v55 = vpop.f32.mrb[80].mxu1 }
 0x4eb   : > { %v10212_v46 = vadd.f32 %v4280_v63, %v1364_v61  ;;  %v4282_v37 = vpop.f32.mrb[59].mxu0  ;;  %18289 = vst [vmem:[#allocation80_spill] sm:$0xff] %v13287_v55  ;;  %v13291_v27 = vpop.f32.mrb[81].mxu1 }
 0x4ec   : > { %v10214_v6 = vadd.f32 %v4282_v37, %v1366_v0  ;;  %v4799_v29 = vadd.f32 %v4580_v15, %v4579_v3  ;;  %18290 = vst [vmem:[#allocation82_spill] sm:$0xff] %v13291_v27 }
 0x4ed   : > { %v4581_v16 = vmax.f32 %v10212_v46, 0.0  ;;  %v13293_v23 = vpop.f32.mrb[82].mxu1 }
 0x4ee   : > { %v4582_v39 = vmax.f32 %v10214_v6, 0.0  ;;  %v4287_v56 = vpop.f32.mrb[60].mxu0  ;;  %4800 = vadd.xlane.f32.xlu1 %v4799_v29  ;;  %18291 = vst [vmem:[#allocation84_spill] sm:$0xff] %v13293_v23  ;;  %v13295_v40 = vpop.f32.mrb[83].mxu1  ;;  %v428_v23 = vld [vmem:[%s17201_s2 + $0x148] sm:$0xff] }
 0x4ef   : > { %v10216_v38 = vadd.f32 %v4287_v56, %v1375_v8  ;;  %v4289_v60 = vpop.f32.mrb[61].mxu0  ;;  %18292 = vst [vmem:[#allocation57_spill] sm:$0xff] %v13295_v40 }
 0x4f0   : > { %v10218_v10 = vadd.f32 %v4289_v60, %v1377_v52  ;;  %v4802_v51 = vadd.f32 %v4582_v39, %v4581_v16  ;;  %v4651_v39 = vld [vmem:[#allocation2] sm:$0xff] }
 0x4f1   : > { %v4583_v2 = vmax.f32 %v10216_v38, 0.0  ;;  %v13300_v30 = vpop.f32.mrb[84].mxu1 }
 0x4f2   : > { %v4584_v48 = vmax.f32 %v10218_v10, 0.0  ;;  %v4294_v7 = vpop.f32.mrb[62].mxu0  ;;  %4803 = vadd.xlane.f32.xlu0 %v4802_v51  ;;  %18294 = vst [vmem:[#allocation61_spill] sm:$0xff] %v13300_v30  ;;  %v419_v51 = vld [vmem:[%s17201_s2 + $0x100] sm:$0xff]  ;;  %v4657_v30 = vld [vmem:[#allocation2 + $0x30] sm:$0xff] }
 0x4f3   : > { %v10220_v20 = vadd.f32 %v4294_v7, %v1386_v58  ;;  %v4296_v17 = vpop.f32.mrb[63].mxu0 }
 0x4f4   : > { %v10222_v34 = vadd.f32 %v4296_v17, %v1388_v14  ;;  %v4805_v1 = vadd.f32 %v4584_v48, %v4583_v2  ;;  %v420_v14 = vld [vmem:[%s17201_s2 + $0x108] sm:$0xff] }
 0x4f5   : > { %v4585_v57 = vmax.f32 %v10220_v20, 0.0  ;;  %v4653_v20 = vld [vmem:[#allocation2 + $0x10] sm:$0xff]  ;;  %v436_v17 = vld [vmem:[%s17201_s2 + $0x188] sm:$0xff] }
 0x4f6   : > { %v4586_v36 = vmax.f32 %v10222_v34, 0.0  ;;  %v13272_v35 = vpop.f32.mrb[64].mxu0  ;;  %4806 = vadd.xlane.f32.xlu1 %v4805_v1 }
 0x4f7   : > { %v13276_v44 = vpop.f32.mrb[65].mxu0 }
 0x4f8   : > { %v4808_v45 = vadd.f32 %v4586_v36, %v4585_v57 }
 0x4fa   : > { %v13284_v11 = vpop.f32.mrb[66].mxu0  ;;  %4758 = vadd.xlane.f32.xlu1 %v13180_v4  ;;  %4809 = vadd.xlane.f32.xlu0 %v4808_v45  ;;  %v13304_v4 = vpop.f32.mrb[85].mxu1 }
 0x4fb   : > { %v13289_v59 = vpop.f32.mrb[67].mxu0  ;;  %18296 = vst [vmem:[#allocation65_spill] sm:$0xff] %v13304_v4  ;;  %v13306_v21 = vpop.f32.mrb[86].mxu1 }
 0x4fc   : > { %18297 = vst [vmem:[#allocation67_spill] sm:$0xff] %v13306_v21  ;;  %v13308_v61 = vpop.f32.mrb[87].mxu1 }
 0x4fd   : > { %18298 = vst [vmem:[#allocation69_spill] sm:$0xff] %v13308_v61  ;;  %v13312_v63 = vpop.f32.mrb[88].mxu1 }
 0x4fe   : > { %v13297_v41 = vpop.f32.mrb[68].mxu0  ;;  %4761 = vadd.xlane.f32.xlu0 %v13186_v18  ;;  %18300 = vst [vmem:[#allocation73_spill] sm:$0xff] %v13312_v63  ;;  %v13316_v0 = vpop.f32.mrb[89].mxu1  ;;  %v440_v63 = vld [vmem:[%s17201_s2 + $0x1a8] sm:$0xff] }
 0x4ff   : > { %18293 = vst [vmem:[#allocation59_spill] sm:$0xff] %v13297_v41  ;;  %v13302_v3 = vpop.f32.mrb[69].mxu0  ;;  %18302 = vst [vmem:[#allocation77_spill] sm:$0xff] %v13316_v0  ;;  %v13318_v46 = vpop.f32.mrb[90].mxu1 }
 0x500   : > { %18295 = vst [vmem:[#allocation63_spill] sm:$0xff] %v13302_v3  ;;  %18303 = vst [vmem:[#allocation79_spill] sm:$0xff] %v13318_v46  ;;  %v13320_v18 = vpop.f32.mrb[91].mxu1 }
 0x501   : > { %18304 = vst [vmem:[#allocation81_spill] sm:$0xff] %v13320_v18  ;;  %v13324_v6 = vpop.f32.mrb[92].mxu1  ;;  %v4656_v18 = vld [vmem:[#allocation2 + $0x28] sm:$0xff] }
 0x502   : > { %v13310_v15 = vpop.f32.mrb[70].mxu0  ;;  %18306 = vst [vmem:[#allocation85_spill] sm:$0xff] %v13324_v6  ;;  %v13328_v16 = vpop.f32.mrb[93].mxu1  ;;  %v421_v6 = vld [vmem:[%s17201_s2 + $0x110] sm:$0xff] }
 0x503   : > { %18299 = vst [vmem:[#allocation71_spill] sm:$0xff] %v13310_v15  ;;  %v13314_v28 = vpop.f32.mrb[71].mxu0  ;;  %18308 = vst [vmem:[#allocation47_spill] sm:$0xff] %v13328_v16  ;;  %v4655_v16 = vld [vmem:[#allocation2 + $0x20] sm:$0xff] }
 0x504   : > { %18301 = vst [vmem:[#allocation75_spill] sm:$0xff] %v13314_v28 }
 0x505   : > { %v13333_v8 = vpop.f32.mrb[94].mxu1 }
 0x506   : > { %v13322_v37 = vpop.f32.mrb[72].mxu0  ;;  %18309 = vst [vmem:[#allocation40_spill] sm:$0xff] %v13333_v8  ;;  %v13335_v56 = vpop.f32.mrb[95].mxu1 }
 0x507   : > { %18305 = vst [vmem:[#allocation83_spill] sm:$0xff] %v13322_v37  ;;  %v13326_v29 = vpop.f32.mrb[73].mxu0  ;;  %18310 = vst [vmem:[#allocation48_spill] sm:$0xff] %v13335_v56 }
 0x508   : > { %18307 = vst [vmem:[#allocation39_spill] sm:$0xff] %v13326_v29 }
 0x509   : > { %v13339_v52 = vpop.f32.mrb[96].mxu1 }
 0x50a   : > { %v13337_v26 = vpop.f32.mrb[74].mxu0  ;;  %v13346_v2 = vpop.f32.mrb[97].mxu1 }
 0x50b   : > { %18311 = vst [vmem:[#allocation42_spill] sm:$0xff] %v13337_v26  ;;  %v13341_v38 = vpop.f32.mrb[75].mxu0  ;;  %693 = vperm.xlu1 %10890, %v435_v24   ;;  %v4717_v60 = vpop.xlane.xlu0 %4716  ;;  %v438_v24 = vld [vmem:[%s17201_s2 + $0x198] sm:$0xff] }
 0x50c   : > { %18312 = vst [vmem:[#allocation49_spill] sm:$0xff] %v13341_v38  ;;  %v4907_v10 = vadd.f32 %v4717_v60, %v4651_v39  ;;  %v4654_v60 = vld [vmem:[#allocation2 + $0x18] sm:$0xff] }
 0x50d   : > { %v13362_v1 = vpop.f32.mrb[98].mxu1 }
 0x50e   : > { %4972 = vst.msk [vmem:[#allocation2] sm:$0xff] %vm257_vm2, %v4907_v10  ;;  %v13349_v58 = vpop.f32.mrb[76].mxu0  ;;  %v13369_v39 = vpop.f32.mrb[99].mxu1  ;;  %v437_v10 = vld [vmem:[%s17201_s2 + $0x190] sm:$0xff] }
 0x50f   : > { %18313 = vst [vmem:[#allocation50_spill] sm:$0xff] %v13349_v58  ;;  %v13351_v48 = vpop.f32.mrb[77].mxu0  ;;  %613 = vperm.xlu1 %10890, %v419_v51   ;;  %v4720_v7 = vpop.xlane.xlu0 %4719 }
 0x510   : > { %18314 = vst [vmem:[#allocation51_spill] sm:$0xff] %v13351_v48  ;;  %v4908_v31 = vadd.f32 %v4720_v7, %v4652_v62  ;;  %v4661_v48 = vld [vmem:[#allocation2 + $0x50] sm:$0xff] }
 0x511   : > { %v13374_v51 = vpop.f32.mrb[100].mxu1 }
 0x512   : > { %4973 = vst.msk [vmem:[#allocation2 + $0x8] sm:$0xff] %vm257_vm2, %v4908_v31  ;;  %v13360_v34 = vpop.f32.mrb[78].mxu0  ;;  %18317 = vst [vmem:[#allocation54_spill] sm:$0xff] %v13374_v51  ;;  %v13379_v7 = vpop.f32.mrb[101].mxu1 }
 0x513   : > { %18315 = vst [vmem:[#allocation52_spill] sm:$0xff] %v13360_v34  ;;  %v13364_v57 = vpop.f32.mrb[79].mxu0  ;;  %618 = vperm.xlu1 %10890, %v420_v14   ;;  %v4723_v36 = vpop.xlane.xlu1 %4722  ;;  %18319 = vst [vmem:[#allocation56_spill] sm:$0xff] %v13379_v7 }
 0x514   : > { %18316 = vst [vmem:[#allocation53_spill] sm:$0xff] %v13364_v57  ;;  %v4909_v45 = vadd.f32 %v4723_v36, %v4653_v20  ;;  %698 = vperm.xlu0 %10889, %v436_v17   ;;  %v422_v17 = vld [vmem:[%s17201_s2 + $0x118] sm:$0xff] }
 0x515   : > { %v13386_v36 = vpop.f32.mrb[102].mxu1 }
 0x516   : > { %4974 = vst.msk [vmem:[#allocation2 + $0x10] sm:$0xff] %vm257_vm2, %v4909_v45  ;;  %v13377_v62 = vpop.f32.mrb[80].mxu0  ;;  %18321 = vst [vmem:[#allocation60_spill] sm:$0xff] %v13386_v36  ;;  %v5168_v45 = vld [vmem:[%s17202_s3 + $0x8] sm:$0xff]  ;;  %v13394_v56 = vpop.f32.mrb[103].mxu1 }
 0x517   : > { %18318 = vst [vmem:[#allocation55_spill] sm:$0xff] %v13377_v62  ;;  %v13381_v31 = vpop.f32.mrb[81].mxu0  ;;  %708 = vperm.xlu1 %10890, %v438_v24   ;;  %v4726_v14 = vpop.xlane.xlu0 %4725  ;;  %18322 = vst [vmem:[#allocation62_spill] sm:$0xff] %v13394_v56  ;;  %v13396_v24 = vand.u32 4294901760, %v5168_v45  ;;  %v4676_v36 = vld [vmem:[#allocation2 + $0xc8] sm:$0xff] }
 0x518   : > { %18320 = vst [vmem:[#allocation58_spill] sm:$0xff] %v13381_v31  ;;  %v4910_v20 = vadd.f32 %v4726_v14, %v4654_v60  ;;  %703 = vperm.xlu0 %10889, %v437_v10   ;;  %v4659_v31 = vld [vmem:[#allocation2 + $0x40] sm:$0xff] }
 0x519   : > { %18323 = vst [vmem:[#allocation5_spill] sm:$0xff] %v13396_v24  ;;  %v13404_v8 = vsub.f32 %v5168_v45, %v13396_v24  ;;  %v13416_v4 = vpop.f32.mrb[104].mxu1  ;;  %v424_v24 = vld [vmem:[%s17201_s2 + $0x128] sm:$0xff] }
 0x51a   : > { %4975 = vst.msk [vmem:[#allocation2 + $0x18] sm:$0xff] %vm257_vm2, %v4910_v20  ;;  %v13399_v60 = vpop.f32.mrb[82].mxu0  ;;  %v439_v20 = vld [vmem:[%s17201_s2 + $0x1a0] sm:$0xff]  ;;  %18328 = vst [vmem:[#allocation9_spill] sm:$0xff] %v13416_v4 }
 0x51b   : > { %18324 = vst [vmem:[#allocation4_spill] sm:$0xff] %v13399_v60  ;;  %v13401_v10 = vpop.f32.mrb[83].mxu0  ;;  %628 = vperm.xlu1 %10890, %v422_v17   ;;  %v4729_v14 = vpop.xlane.xlu1 %4728  ;;  %18326 = vst [vmem:[#allocation3_spill] sm:$0xff] %v13404_v8  ;;  %v17447_v46 = vand.u32 4294901760, %v13404_v8  ;;  %v4660_v60 = vld [vmem:[#allocation2 + $0x48] sm:$0xff] }
 0x51c   : > { %18325 = vst [vmem:[#allocation7_spill] sm:$0xff] %v13401_v10  ;;  %v4911_v0 = vadd.f32 %v4729_v14, %v4655_v16  ;;  %623 = vperm.xlu0 %10889, %v421_v6  }
 0x51d   : > { %v5346_v16 = vsub.f32 %v13404_v8, %v17447_v46  ;;  %v442_v46 = vld [vmem:[%s17201_s2 + $0x1b8] sm:$0xff]  ;;  %v5040_v8 = vld [vmem:[#allocation2 + $0x8] sm:$0xff] }
 0x51e   : > { %4976 = vst.msk [vmem:[#allocation2 + $0x20] sm:$0xff] %vm257_vm2, %v4911_v0  ;;  %v13414_v17 = vpop.f32.mrb[84].mxu0  ;;  %v423_v0 = vld [vmem:[%s17201_s2 + $0x120] sm:$0xff] }
 0x51f   : > { %18327 = vst [vmem:[#allocation8_spill] sm:$0xff] %v13414_v17  ;;  %v13418_v45 = vpop.f32.mrb[85].mxu0  ;;  %718 = vperm.xlu1 %10890, %v440_v63   ;;  %v4732_v6 = vpop.xlane.xlu0 %4731 }
 0x520   : > { %18329 = vst [vmem:[#allocation10_spill] sm:$0xff] %v13418_v45  ;;  %v4912_v14 = vadd.f32 %v4732_v6, %v4656_v18  ;;  %713 = vperm.xlu0 %10889, %v439_v20   ;;  %v13429_v17 = vpop.f32.mrb[105].mxu1  ;;  %v5347_v45 = vand.u32 4294901760, %v5346_v16  ;;  %v4658_v16 = vld [vmem:[#allocation2 + $0x38] sm:$0xff] }
 0x521   : > { %18330 = vst [vmem:[#allocation11_spill] sm:$0xff] %v13429_v17  ;;  %v13434_v61 = vpop.f32.mrb[106].mxu1  ;;  %v5042_v10 = vld [vmem:[#allocation2 + $0x18] sm:$0xff] }
 0x522   : > { %4977 = vst.msk [vmem:[#allocation2 + $0x28] sm:$0xff] %vm257_vm2, %v4912_v14  ;;  %v13432_v63 = vpop.f32.mrb[86].mxu0  ;;  %18332 = vst [vmem:[#allocation12_spill] sm:$0xff] %v13434_v61  ;;  %5348 = vmatprep.mubr.f32.mxu1 %v5347_v45  ;;  %v13441_v21 = vpop.f32.mrb[107].mxu1  ;;  %v441_v14 = vld [vmem:[%s17201_s2 + $0x1b0] sm:$0xff] }
 0x523   : > { %18331 = vst [vmem:[#allocation6_spill] sm:$0xff] %v13432_v63  ;;  %v13436_v18 = vpop.f32.mrb[87].mxu0  ;;  %638 = vperm.xlu1 %10890, %v424_v24   ;;  %v4735_v20 = vpop.xlane.xlu1 %4734  ;;  %18334 = vst [vmem:[#allocation14_spill] sm:$0xff] %v13441_v21  ;;  %v5039_v24 = vld [vmem:[#allocation2] sm:$0xff]  ;;  %v426_v63 = vld [vmem:[%s17201_s2 + $0x138] sm:$0xff] }
 0x524   : > { %18333 = vst [vmem:[#allocation13_spill] sm:$0xff] %v13436_v18  ;;  %v4913_v6 = vadd.f32 %v4735_v20, %v4657_v30  ;;  %633 = vperm.xlu0 %10889, %v423_v0   ;;  %v13451_v0 = vmul.f32 0.00390625, %v5040_v8  ;;  %v13459_v62 = vmul.f32 0.00390625, %v5039_v24 }
 0x526   : > { %4978 = vst.msk [vmem:[#allocation2 + $0x30] sm:$0xff] %vm257_vm2, %v4913_v6  ;;  %v13447_v18 = vpop.f32.mrb[88].mxu0  ;;  %v425_v6 = vld [vmem:[%s17201_s2 + $0x130] sm:$0xff]  ;;  %v18346_v58 = vand.u32 4294901760, %v13451_v0  ;;  %v18358_v29 = vand.u32 4294901760, %v13451_v0 }
 0x527   : > { %18335 = vst [vmem:[#allocation15_spill] sm:$0xff] %v13447_v18  ;;  %v13449_v45 = vpop.f32.mrb[89].mxu0  ;;  %728 = vperm.xlu1 %10890, %v442_v46   ;;  %v4738_v30 = vpop.xlane.xlu0 %4737 }
 0x528   : > { %18336 = vst [vmem:[#allocation16_spill] sm:$0xff] %v13449_v45  ;;  %v4914_v20 = vadd.f32 %v4738_v30, %v4658_v16  ;;  %723 = vperm.xlu0 %10889, %v441_v14   ;;  %v13461_v18 = vpop.f32.mrb[108].mxu1  ;;  %v5167_v45 = vld [vmem:[%s17202_s3] sm:$0xff]  ;;  %v5248_v30 = vand.u32 4294901760, %v13459_v62  ;;  %v13498_v57 = vsub.f32 %v13451_v0, %v18346_v58  ;;  %v5172_v58 = vld [vmem:[%s17202_s3 + $0x28] sm:$0xff] }
 0x529   : > { %18337 = vst [vmem:[#allocation17_spill] sm:$0xff] %v13461_v18  ;;  %v13466_v8 = vpop.f32.mrb[109].mxu1  ;;  %v13488_v27 = vand.u32 4294901760, %v5167_v45  ;;  %v446_v18 = vld [vmem:[%s17201_s2 + $0x1d8] sm:$0xff] }
 0x52a   : > { %4979 = vst.msk [vmem:[#allocation2 + $0x38] sm:$0xff] %vm257_vm2, %v4914_v20  ;;  %v13464_v46 = vpop.f32.mrb[90].mxu0  ;;  %18339 = vst [vmem:[#allocation19_spill] sm:$0xff] %v13466_v8  ;;  %v444_v20 = vld [vmem:[%s17201_s2 + $0x1c8] sm:$0xff]  ;;  %v13506_v5 = vsub.f32 %v13459_v62, %v5248_v30 }
 0x52b   : > { %18338 = vst [vmem:[#allocation18_spill] sm:$0xff] %v13464_v46  ;;  %v13468_v16 = vpop.f32.mrb[91].mxu0  ;;  %648 = vperm.xlu1 %10890, %v426_v63   ;;  %v4741_v14 = vpop.xlane.xlu1 %4740  ;;  %v443_v63 = vld [vmem:[%s17201_s2 + $0x1c0] sm:$0xff]  ;;  %18344 = vst [vmem:[#allocation24_spill] sm:$0xff] %v13488_v27 }
 0x52c   : > { %18340 = vst [vmem:[#allocation20_spill] sm:$0xff] %v13468_v16  ;;  %v4915_v24 = vadd.f32 %v4741_v14, %v4659_v31  ;;  %643 = vperm.xlu0 %10889, %v425_v6   ;;  %v13477_v46 = vpop.f32.mrb[110].mxu1  ;;  %v5041_v6 = vld [vmem:[#allocation2 + $0x10] sm:$0xff]  ;;  %v5044_v14 = vld [vmem:[#allocation2 + $0x28] sm:$0xff]  ;;  %18347 = vst [vmem:[#allocation26_spill] sm:$0xff] %v13498_v57 }
 0x52d   : > { %18341 = vst [vmem:[#allocation21_spill] sm:$0xff] %v13477_v46  ;;  %v13483_v16 = vpop.f32.mrb[111].mxu1  ;;  %v5045_v34 = vld [vmem:[#allocation2 + $0x30] sm:$0xff]  ;;  %18348 = vst [vmem:[#allocation27_spill] sm:$0xff] %v13506_v5  ;;  %v13508_v33 = vmul.f32 0.00390625, %v5041_v6  ;;  %v13510_v12 = vmul.f32 0.00390625, %v5044_v14 }
 0x52e   : > { %18342 = vst [vmem:[#allocation22_spill] sm:$0xff] %v13483_v16  ;;  %4980 = vst.msk [vmem:[#allocation2 + $0x40] sm:$0xff] %vm257_vm2, %v4915_v24  ;;  %v13486_v31 = vpop.f32.mrb[92].mxu0  ;;  %v13500_v24 = vmul.f32 0.00390625, %v5042_v10 }
 0x52f   : > { %18343 = vst [vmem:[#allocation23_spill] sm:$0xff] %v13486_v31  ;;  %v13490_v55 = vpop.f32.mrb[93].mxu0  ;;  %738 = vperm.xlu1 %10890, %v444_v20   ;;  %v4744_v40 = vpop.xlane.xlu0 %4743  ;;  %v5043_v20 = vld [vmem:[#allocation2 + $0x20] sm:$0xff]  ;;  %v18365_v26 = vand.u32 4294901760, %v13508_v33 }
 0x530   : > { %18345 = vst [vmem:[#allocation25_spill] sm:$0xff] %v13490_v55  ;;  %v4916_v31 = vadd.f32 %v4744_v40, %v4660_v60  ;;  %733 = vperm.xlu0 %10889, %v443_v63   ;;  %v427_v55 = vld [vmem:[%s17201_s2 + $0x140] sm:$0xff]  ;;  %v13518_v60 = vpop.f32.mrb[112].mxu1  ;;  %v13526_v63 = vsub.f32 %v5167_v45, %v13488_v27  ;;  %v4662_v27 = vld [vmem:[#allocation2 + $0x58] sm:$0xff] }
 0x531   : > { %v5046_v42 = vld [vmem:[#allocation2 + $0x38] sm:$0xff]  ;;  %v5171_v40 = vld [vmem:[%s17202_s3 + $0x20] sm:$0xff]  ;;  %18349 = vst [vmem:[#allocation28_spill] sm:$0xff] %v13518_v60  ;;  %v13528_v6 = vpop.f32.mrb[113].mxu1 }
 0x532   : > { %4981 = vst.msk [vmem:[#allocation2 + $0x48] sm:$0xff] %vm257_vm2, %v4916_v31  ;;  %v13521_v10 = vpop.f32.mrb[94].mxu0  ;;  %v13523_v62 = vmul.f32 0.00390625, %v5046_v42  ;;  %18351 = vst [vmem:[#allocation30_spill] sm:$0xff] %v13526_v63  ;;  %v13536_v31 = vmul.f32 0.00390625, %v5043_v20  ;;  %v5176_v20 = vld [vmem:[%s17202_s3 + $0x48] sm:$0xff] }
 0x533   : > { %18350 = vst [vmem:[#allocation29_spill] sm:$0xff] %v13521_v10  ;;  %18352 = vst [vmem:[#allocation31_spill] sm:$0xff] %v13528_v6  ;;  %v13530_v14 = vpop.f32.mrb[95].mxu0  ;;  %658 = vperm.xlu1 %10890, %v428_v23   ;;  %v4747_v8 = vpop.xlane.xlu1 %4746  ;;  %v13538_v10 = vmul.f32 0.00390625, %v5045_v34  ;;  %v445_v23 = vld [vmem:[%s17201_s2 + $0x1d0] sm:$0xff]  ;;  %v13547_v6 = vand.u32 4294901760, %v5171_v40 }
 0x534   : > { %18353 = vst [vmem:[#allocation32_spill] sm:$0xff] %v13530_v14  ;;  %v4917_v45 = vadd.f32 %v4747_v8, %v4661_v48  ;;  %653 = vperm.xlu0 %10889, %v427_v55   ;;  %v13545_v14 = vand.u32 4294901760, %v5172_v58  ;;  %v13552_v34 = vpop.f32.mrb[114].mxu1  ;;  %v5175_v42 = vld [vmem:[%s17202_s3 + $0x40] sm:$0xff]  ;;  %v13582_v0 = vand.u32 4294901760, %v5176_v20  ;;  %v18373_v47 = vand.u32 4294901760, %v13526_v63 }
 0x535   : > { %18355 = vst [vmem:[#allocation35_spill] sm:$0xff] %v13547_v6  ;;  %18356 = vst [vmem:[#allocation37_spill] sm:$0xff] %v13552_v34  ;;  %v5047_v8 = vld [vmem:[#allocation2 + $0x40] sm:$0xff]  ;;  %v13560_v16 = vpop.f32.mrb[115].mxu1  ;;  %v13567_v34 = vpack.c.bf16 %v18358_v29, %v5248_v30  ;;  %v13591_v48 = vand.u32 4294901760, %v5175_v42  ;;  %v429_v29 = vld [vmem:[%s17201_s2 + $0x150] sm:$0xff]  ;;  %v13612_v9 = vsub.f32 %v5171_v40, %v13547_v6 }
 0x536   : > { %18354 = vst [vmem:[#allocation33_spill] sm:$0xff] %v13545_v14  ;;  %18357 = vst [vmem:[#allocation34_spill] sm:$0xff] %v13560_v16  ;;  %v13563_v46 = vpop.f32.mrb[96].mxu0  ;;  %v13569_v60 = vmul.f32 0.00390625, %v5047_v8  ;;  %v18360_v16 = vand.u32 4294901760, %v13500_v24  ;;  %v430_v8 = vld [vmem:[%s17201_s2 + $0x158] sm:$0xff]  ;;  %v13589_v55 = vsub.f32 %v5172_v58, %v13545_v14  ;;  %v13625_v17 = vsub.f32 %v13526_v63, %v18373_v47 }
 0x537   : > { %4982 = vst.msk [vmem:[#allocation2 + $0x50] sm:$0xff] %vm257_vm2, %v4917_v45  ;;  %18359 = vst [vmem:[#allocation36_spill] sm:$0xff] %v13567_v34  ;;  %v13573_v37 = vpop.f32.mrb[97].mxu0  ;;  %748 = vperm.xlu1 %10890, %v446_v18   ;;  %v4750_v38 = vpop.xlane.xlu0 %4749  ;;  %v18369_v58 = vand.u32 4294901760, %v13523_v62  ;;  %v18379_v4 = vand.u32 4294901760, %v13538_v10  ;;  %v13647_v63 = vsub.f32 %v5176_v20, %v13582_v0  ;;  %v13660_v20 = vsub.f32 %v5175_v42, %v13591_v48 }
 0x538   : > { %v13578_v45 = vsub.f32 %v13500_v24, %v18360_v16  ;;  %18362 = vst [vmem:[#allocation41_spill] sm:$0xff] %v13582_v0  ;;  %v4918_v30 = vadd.f32 %v4750_v38, %v4662_v27  ;;  %743 = vperm.xlu0 %10889, %v445_v23   ;;  %18363 = vst [vmem:[#allocation86_spill] sm:$0xff] %v13589_v55  ;;  %v4663_v16 = vld [vmem:[#allocation2 + $0x60] sm:$0xff]  ;;  %v13599_v27 = vsub.f32 %v13508_v33, %v18365_v26  ;;  %v13614_v25 = vpop.f32.mrb[116].mxu1 }
 0x539   : > { %18364 = vst [vmem:[#allocation87_spill] sm:$0xff] %v13591_v48  ;;  %v18367_v38 = vand.u32 4294901760, %v13510_v12  ;;  %v13609_v18 = vsub.f32 %v13523_v62, %v18369_v58  ;;  %v5048_v14 = vld [vmem:[#allocation2 + $0x48] sm:$0xff]  ;;  %18371 = vst [vmem:[#allocation91_spill] sm:$0xff] %v13612_v9  ;;  %v18375_v58 = vand.u32 4294901760, %v13506_v5  ;;  %v13632_v6 = vpop.f32.mrb[117].mxu1  ;;  %v13644_v47 = vsub.f32 %v13538_v10, %v18379_v4 }
 0x53a   : > { %18361 = vst [vmem:[#allocation38_spill] sm:$0xff] %v13578_v45  ;;  %18366 = vst [vmem:[#allocation88_spill] sm:$0xff] %v13599_v27  ;;  %v13617_v26 = vpop.f32.mrb[98].mxu0  ;;  %v13619_v50 = vmul.f32 0.00390625, %v5048_v14  ;;  %v18377_v14 = vand.u32 4294901760, %v13536_v31  ;;  %v5179_v0 = vld [vmem:[%s17202_s3 + $0x60] sm:$0xff] }
 0x53b   : > { %v13604_v23 = vsub.f32 %v13510_v12, %v18367_v38  ;;  %18370 = vst [vmem:[#allocation90_spill] sm:$0xff] %v13609_v18  ;;  %18372 = vst [vmem:[#allocation92_spill] sm:$0xff] %v13614_v25  ;;  %v13630_v40 = vsub.f32 %v13506_v5, %v18375_v58  ;;  %v13634_v25 = vpop.f32.mrb[99].mxu0  ;;  %668 = vperm.xlu1 %10890, %v430_v8   ;;  %v5180_v58 = vld [vmem:[%s17202_s3 + $0x68] sm:$0xff]  ;;  %v447_v8 = vld [vmem:[%s17201_s2 + $0x1e0] sm:$0xff]  ;;  %v18384_v4 = vand.u32 4294901760, %v13498_v57 }
 0x53c   : > { %4983 = vst.msk [vmem:[#allocation2 + $0x58] sm:$0xff] %vm257_vm2, %v4918_v30  ;;  %18374 = vst [vmem:[#allocation93_spill] sm:$0xff] %v13625_v17  ;;  %v4753_v30 = vpop.xlane.xlu1 %4752  ;;  %v13639_v38 = vsub.f32 %v13536_v31, %v18377_v14  ;;  %663 = vperm.xlu0 %10889, %v429_v29   ;;  %v448_v14 = vld [vmem:[%s17201_s2 + $0x1e8] sm:$0xff]  ;;  %v13668_v29 = vpop.f32.mrb[118].mxu1  ;;  %v18387_v41 = vand.u32 4294901760, %v13569_v60  ;;  %v13699_v61 = vand.u32 4294901760, %v5180_v58 }
 0x53d   : > { %18368 = vst [vmem:[#allocation89_spill] sm:$0xff] %v13604_v23  ;;  %18376 = vst [vmem:[#allocation94_spill] sm:$0xff] %v13632_v6  ;;  %v4919_v6 = vadd.f32 %v4753_v30, %v4663_v16  ;;  %v5184_v16 = vld [vmem:[%s17202_s3 + $0x88] sm:$0xff]  ;;  %v13676_v42 = vsub.f32 %v13498_v57, %v18384_v4  ;;  %v13679_v48 = vpop.f32.mrb[119].mxu1  ;;  %v18389_v4 = vand.u32 4294901760, %v13619_v50  ;;  %v13705_v53 = vand.u32 4294901760, %v5179_v0 }
 0x53e   : > { %18378 = vst [vmem:[#allocation95_spill] sm:$0xff] %v13639_v38  ;;  %18380 = vst [vmem:[#allocation96_spill] sm:$0xff] %v13644_v47  ;;  %v4664_v30 = vld [vmem:[#allocation2 + $0x68] sm:$0xff]  ;;  %v13686_v3 = vpop.f32.mrb[100].mxu0  ;;  %v13691_v28 = vsub.f32 %v13569_v60, %v18387_v41  ;;  %v13707_v41 = vand.u32 4294901760, %v5184_v16  ;;  %v13727_v19 = vpop.f32.mrb[120].mxu1 }
 0x53f   : > { %18381 = vst [vmem:[#allocation97_spill] sm:$0xff] %v13647_v63  ;;  %18382 = vst [vmem:[#allocation98_spill] sm:$0xff] %v13660_v20  ;;  %v13696_v21 = vsub.f32 %v13619_v50, %v18389_v4  ;;  %v13701_v15 = vpop.f32.mrb[101].mxu0  ;;  %758 = vperm.xlu1 %10890, %v448_v14   ;;  %v432_v4 = vld [vmem:[%s17201_s2 + $0x168] sm:$0xff] }
 0x540   : > { %18383 = vst [vmem:[#allocation99_spill] sm:$0xff] %v13668_v29  ;;  %18385 = vst [vmem:[#allocation100_spill] sm:$0xff] %v13679_v48  ;;  %v5601_v48 = vand.u32 4294901760, %v13599_v27  ;;  %v5608_v29 = vand.u32 4294901760, %v13578_v45  ;;  %753 = vperm.xlu0 %10889, %v447_v8   ;;  %v5596_v8 = vand.u32 4294901760, %v13676_v42  ;;  %v13739_v42 = vsub.f32 %v5180_v58, %v13699_v61 }
 0x541   : > { %4984 = vst.msk [vmem:[#allocation2 + $0x60] sm:$0xff] %vm257_vm2, %v4919_v6  ;;  %18386 = vst [vmem:[#allocation101_spill] sm:$0xff] %v13686_v3  ;;  %v4756_v6 = vpop.xlane.xlu0 %4755  ;;  %v13747_v3 = vpop.f32.mrb[121].mxu1  ;;  %v13762_v17 = vsub.f32 %v5184_v16, %v13707_v41 }
 0x542   : > { %18388 = vst [vmem:[#allocation102_spill] sm:$0xff] %v13691_v28  ;;  %18390 = vst [vmem:[#allocation103_spill] sm:$0xff] %v13696_v21  ;;  %v4920_v43 = vadd.f32 %v4756_v6, %v4664_v30  ;;  %v5589_v30 = vand.u32 4294901760, %v13630_v40  ;;  %v18395_v6 = vand.u32 4294901760, %v13589_v55  ;;  %v13730_v14 = vpop.f32.mrb[102].mxu0  ;;  %v5615_v40 = vand.u32 4294901760, %v13639_v38 }
 0x543   : > { %18391 = vst [vmem:[#allocation104_spill] sm:$0xff] %v13699_v61  ;;  %18392 = vst [vmem:[#allocation105_spill] sm:$0xff] %v13701_v15  ;;  %v18399_v15 = vand.u32 4294901760, %v13612_v9  ;;  %678 = vperm.xlu1 %10890, %v432_v4   ;;  %v5609_v58 = vsub.f32 %v13578_v45, %v5608_v29  ;;  %v13759_v61 = vsub.f32 %v5179_v0, %v13705_v53  ;;  %v5050_v4 = vld [vmem:[#allocation2 + $0x58] sm:$0xff]  ;;  %v5049_v45 = vld [vmem:[#allocation2 + $0x50] sm:$0xff] }
 0x544   : > { %18393 = vst [vmem:[#allocation106_spill] sm:$0xff] %v13705_v53  ;;  %18394 = vst [vmem:[#allocation107_spill] sm:$0xff] %v13707_v41  ;;  %v13725_v7 = vsub.f32 %v13589_v55, %v18395_v6  ;;  %v5183_v6 = vld [vmem:[%s17202_s3 + $0x80] sm:$0xff]  ;;  %v18403_v55 = vand.u32 4294901760, %v13506_v5  ;;  %v13767_v5 = vpop.f32.mrb[122].mxu1  ;;  %673 = vperm.xlu0 %10889, %v431_v49   ;;  %v5602_v0 = vsub.f32 %v13599_v27, %v5601_v48  ;;  %v18416_v49 = vand.u32 4294901760, %v13604_v23 }
 0x545   : > { %18397 = vst [vmem:[#allocation109_spill] sm:$0xff] %v13727_v19  ;;  %4985 = vst.msk [vmem:[#allocation2 + $0x68] sm:$0xff] %vm257_vm2, %v4920_v43  ;;  %v13735_v51 = vsub.f32 %v13612_v9, %v18399_v15  ;;  %v5188_v43 = vld [vmem:[%s17202_s3 + $0xa8] sm:$0xff]  ;;  %v18404_v15 = vand.u32 4294901760, %v13498_v57  ;;  %v13755_v19 = vpop.f32.mrb[103].mxu0  ;;  %v13769_v57 = vpack.c.bf16 %v5608_v29, %v5601_v48  ;;  %v13785_v29 = vpop.f32.mrb[123].mxu1 }
 0x546   : > { %18396 = vst [vmem:[#allocation108_spill] sm:$0xff] %v13725_v7  ;;  %18398 = vst [vmem:[#allocation110_spill] sm:$0xff] %v13730_v14  ;;  %v449_v48 = vld [vmem:[%s17201_s2 + $0x1f0] sm:$0xff]  ;;  %v18418_v53 = vand.u32 4294901760, %v13508_v33  ;;  %v13818_v27 = vmul.f32 0.00390625, %v5050_v4  ;;  %v5603_v33 = vand.u32 4294901760, %v5602_v0 }
 0x547   : > { %18400 = vst [vmem:[#allocation111_spill] sm:$0xff] %v13735_v51  ;;  %18401 = vst [vmem:[#allocation112_spill] sm:$0xff] %v13739_v42  ;;  %v13753_v9 = vpack.c.bf16 %v18404_v15, %v18403_v55  ;;  %v450_v55 = vld [vmem:[%s17201_s2 + $0x1f8] sm:$0xff]  ;;  %v18411_v15 = vand.u32 4294901760, %v13647_v63  ;;  %v18428_v7 = vand.u32 4294901760, %v13536_v31  ;;  %v18435_v31 = vand.u32 4294901760, %v13739_v42 }
 0x548   : > { %18402 = vst [vmem:[#allocation113_spill] sm:$0xff] %v13747_v3  ;;  %18406 = vst [vmem:[#allocation115_spill] sm:$0xff] %v13755_v19  ;;  %v5187_v3 = vld [vmem:[%s17202_s3 + $0xa0] sm:$0xff]  ;;  %768 = vperm.xlu1 %10890, %v450_v55   ;;  %763 = vperm.xlu0 %10889, %v449_v48   ;;  %v433_v19 = vld [vmem:[%s17201_s2 + $0x170] sm:$0xff]  ;;  %v18429_v48 = vand.u32 4294901760, %v13510_v12 }
 0x549   : > { %18405 = vst [vmem:[#allocation114_spill] sm:$0xff] %v13753_v9  ;;  %18407 = vst [vmem:[#allocation116_spill] sm:$0xff] %v13759_v61  ;;  %v13778_v16 = vsub.f32 %v13647_v63, %v18411_v15  ;;  %v18413_v9 = vand.u32 4294901760, %v13660_v20  ;;  %v18419_v15 = vand.u32 4294901760, %v13500_v24  ;;  %v13814_v24 = vand.u32 4294901760, %v5187_v3 }
 0x54a   : > { %18408 = vst [vmem:[#allocation117_spill] sm:$0xff] %v13762_v17  ;;  %18409 = vst [vmem:[#allocation118_spill] sm:$0xff] %v13767_v5  ;;  %v5610_v5 = vand.u32 4294901760, %v5609_v58  ;;  %v4667_v58 = vld [vmem:[#allocation2 + $0x80] sm:$0xff]  ;;  %v13839_v51 = vpack.c.bf16 %v18429_v48, %v18428_v7  ;;  %v13859_v12 = vsub.f32 %v13739_v42, %v18435_v31 }
 0x54b   : > { %18410 = vst [vmem:[#allocation119_spill] sm:$0xff] %v13769_v57  ;;  %18412 = vst [vmem:[#allocation120_spill] sm:$0xff] %v13778_v16  ;;  %v13783_v41 = vsub.f32 %v13660_v20, %v18413_v9  ;;  %v13789_v57 = vpack.c.bf16 %v18416_v49, %v5615_v40  ;;  %v13798_v63 = vpack.c.bf16 %v18419_v15, %v18418_v53  ;;  %v13801_v9 = vand.u32 4294901760, %v5183_v6  ;;  %v5192_v49 = vld [vmem:[%s17202_s3 + $0xc8] sm:$0xff]  ;;  %v13849_v53 = vpop.f32.mrb[124].mxu1  ;;  %v4765_v48 = vpop.xlane.xlu0 %4764 }
 0x54c   : > { %18415 = vst [vmem:[#allocation122_spill] sm:$0xff] %v13785_v29  ;;  %v13803_v20 = vand.u32 4294901760, %v5188_v43  ;;  %v13810_v29 = vpack.c.bf16 %v5596_v8, %v5589_v30  ;;  %18425 = vst [vmem:[#allocation129_spill] sm:$0xff] %v13814_v24  ;;  %v5191_v30 = vld [vmem:[%s17202_s3 + $0xc0] sm:$0xff]  ;;  %v434_v8 = vld [vmem:[%s17201_s2 + $0x178] sm:$0xff]  ;;  %v13830_v4 = vand.u32 4294901760, %v5192_v49  ;;  %v13854_v16 = vsub.f32 %v13639_v38, %v5615_v40  ;;  %683 = vperm.xlu0 %10889, %v433_v19  }
 0x54d   : > { %18414 = vst [vmem:[#allocation121_spill] sm:$0xff] %v13783_v41  ;;  %18417 = vst [vmem:[#allocation123_spill] sm:$0xff] %v13789_v57  ;;  %v13808_v57 = vpop.f32.mrb[104].mxu0  ;;  %v13844_v0 = vsub.f32 %v5183_v6, %v13801_v9  ;;  %v13862_v7 = vsub.f32 %v5187_v3, %v13814_v24  ;;  %v13866_v6 = vpop.f32.mrb[125].mxu1  ;;  %688 = vperm.xlu1 %10890, %v434_v8   ;;  %v13871_v40 = vpack.c.bf16 %v5610_v5, %v5603_v33 }
 0x54e   : > { %18420 = vst [vmem:[#allocation124_spill] sm:$0xff] %v13798_v63  ;;  %18421 = vst [vmem:[#allocation125_spill] sm:$0xff] %v13801_v9  ;;  %v13816_v15 = vpop.f32.mrb[105].mxu0  ;;  %v13847_v55 = vsub.f32 %v5188_v43, %v13803_v20  ;;  %v18442_v9 = vand.u32 4294901760, %v13759_v61  ;;  %v18444_v3 = vand.u32 4294901760, %v13762_v17  ;;  %v4923_v24 = vadd.f32 %v4765_v48, %v4667_v58  ;;  %v13893_v33 = vpop.f32.mrb[126].mxu1 }
 0x54f   : > { %18422 = vst [vmem:[#allocation126_spill] sm:$0xff] %v13803_v20  ;;  %18423 = vst [vmem:[#allocation127_spill] sm:$0xff] %v13808_v57  ;;  %v13851_v41 = vpop.f32.mrb[106].mxu0  ;;  %v18446_v38 = vand.u32 4294901760, %v13604_v23  ;;  %v13888_v5 = vsub.f32 %v5192_v49, %v13830_v4  ;;  %v13899_v48 = vpop.f32.mrb[127].mxu1  ;;  %v5617_v20 = vand.u32 4294901760, %v13854_v16 }
 0x550   : > { %18424 = vst [vmem:[#allocation128_spill] sm:$0xff] %v13810_v29  ;;  %18426 = vst [vmem:[#allocation130_spill] sm:$0xff] %v13816_v15  ;;  %v13841_v29 = vmul.f32 0.00390625, %v5049_v45  ;;  %v13864_v45 = vand.u32 4294901760, %v5191_v30  ;;  %v13868_v43 = vpop.f32.mrb[107].mxu0  ;;  %v13876_v31 = vsub.f32 %v13759_v61, %v18442_v9  ;;  %v13881_v42 = vsub.f32 %v13762_v17, %v18444_v3  ;;  %v5196_v9 = vld [vmem:[%s17202_s3 + $0xe8] sm:$0xff]  ;;  %v4768_v58 = vpop.xlane.xlu1 %4767 }
 0x551   : > { %18427 = vst [vmem:[#allocation131_spill] sm:$0xff] %v13830_v4  ;;  %18430 = vst [vmem:[#allocation132_spill] sm:$0xff] %v13839_v51  ;;  %v5623_v8 = vsub.f32 %v13604_v23, %v18446_v38  ;;  %v4668_v61 = vld [vmem:[#allocation2 + $0x88] sm:$0xff]  ;;  %v13902_v49 = vpop.f32.mrb[108].mxu0  ;;  %v18453_v38 = vand.u32 4294901760, %v13818_v27  ;;  %v13919_v16 = vand.u32 4294901760, %v5196_v9 }
 0x552   : > { %18431 = vst [vmem:[#allocation133_spill] sm:$0xff] %v13844_v0  ;;  %18432 = vst [vmem:[#allocation134_spill] sm:$0xff] %v13847_v55  ;;  %v13908_v3 = vsub.f32 %v5191_v30, %v13864_v45  ;;  %v13910_v19 = vpop.f32.mrb[109].mxu0  ;;  %v5195_v17 = vld [vmem:[%s17202_s3 + $0xe0] sm:$0xff]  ;;  %v4924_v30 = vadd.f32 %v4768_v58, %v4668_v61  ;;  %v18462_v58 = vand.u32 4294901760, %v13847_v55 }
 0x553   : > { %18433 = vst [vmem:[#allocation135_spill] sm:$0xff] %v13849_v53  ;;  %18434 = vst [vmem:[#allocation136_spill] sm:$0xff] %v13851_v41  ;;  %v13915_v23 = vsub.f32 %v13818_v27, %v18453_v38  ;;  %v5624_v4 = vand.u32 4294901760, %v5623_v8  ;;  %v5200_v38 = vld [vmem:[%s17202_s3 + $0x108] sm:$0xff]  ;;  %v18460_v8 = vand.u32 4294901760, %v13844_v0 }
 0x554   : > { %18436 = vst [vmem:[#allocation137_spill] sm:$0xff] %v13859_v12  ;;  %18437 = vst [vmem:[#allocation138_spill] sm:$0xff] %v13862_v7  ;;  %v18465_v12 = vand.u32 4294901760, %v13862_v7 }
 0x555   : > { %18438 = vst [vmem:[#allocation139_spill] sm:$0xff] %v13864_v45  ;;  %18439 = vst [vmem:[#allocation140_spill] sm:$0xff] %v13866_v6  ;;  %v18456_v45 = vand.u32 4294901760, %v13609_v18  ;;  %v18457_v6 = vand.u32 4294901760, %v13841_v29  ;;  %v13982_v15 = vpack.c.bf16 %v5624_v4, %v5617_v20  ;;  %v18479_v20 = vand.u32 4294901760, %v13908_v3 }
 0x556   : > { %18440 = vst [vmem:[#allocation141_spill] sm:$0xff] %v13868_v43  ;;  %18441 = vst [vmem:[#allocation142_spill] sm:$0xff] %v13871_v40  ;;  %v4675_v43 = vld [vmem:[#allocation2 + $0xc0] sm:$0xff] }
 0x557   : > { %18443 = vst [vmem:[#allocation143_spill] sm:$0xff] %v13876_v31  ;;  %18445 = vst [vmem:[#allocation144_spill] sm:$0xff] %v13881_v42  ;;  %v5637_v53 = vsub.f32 %v13609_v18, %v18456_v45  ;;  %v18459_v42 = vand.u32 4294901760, %v13644_v47  ;;  %v13942_v45 = vsub.f32 %v13844_v0, %v18460_v8  ;;  %v13950_v31 = vpop.f32.mrb[110].mxu0  ;;  %v13959_v8 = vand.u32 4294901760, %v5195_v17 }
 0x558   : > { %18447 = vst [vmem:[#allocation145_spill] sm:$0xff] %v13888_v5  ;;  %18448 = vst [vmem:[#allocation146_spill] sm:$0xff] %v13893_v33  ;;  %v13934_v33 = vsub.f32 %v13841_v29, %v18457_v6  ;;  %v13961_v0 = vpop.f32.mrb[111].mxu0  ;;  %v13996_v4 = vsub.f32 %v13908_v3, %v18479_v20  ;;  %v18483_v6 = vand.u32 4294901760, %v13569_v60  ;;  %v4671_v60 = vld [vmem:[#allocation2 + $0xa0] sm:$0xff] }
 0x559   : > { %18449 = vst [vmem:[#allocation147_spill] sm:$0xff] %v13899_v48  ;;  %4988 = vst.msk [vmem:[#allocation2 + $0x80] sm:$0xff] %vm257_vm2, %v4923_v24  ;;  %v4669_v24 = vld [vmem:[#allocation2 + $0x90] sm:$0xff]  ;;  %v5630_v61 = vsub.f32 %v13644_v47, %v18459_v42  ;;  %v13947_v48 = vsub.f32 %v13847_v55, %v18462_v58  ;;  %v13956_v42 = vsub.f32 %v13862_v7, %v18465_v12  ;;  %v13967_v55 = vand.u32 4294901760, %v5200_v38 }
 0x55a   : > { %18450 = vst [vmem:[#allocation148_spill] sm:$0xff] %v13902_v49  ;;  %18451 = vst [vmem:[#allocation149_spill] sm:$0xff] %v13908_v3  ;;  %v4771_v49 = vpop.xlane.xlu1 %4770  ;;  %v18471_v12 = vand.u32 4294901760, %v13538_v10  ;;  %v5638_v40 = vand.u32 4294901760, %v5637_v53  ;;  %v13987_v10 = vpop.f32.mrb[112].mxu0  ;;  %v5052_v53 = vld [vmem:[#allocation2 + $0x68] sm:$0xff] }
 0x55b   : > { %18452 = vst [vmem:[#allocation150_spill] sm:$0xff] %v13910_v19  ;;  %18454 = vst [vmem:[#allocation151_spill] sm:$0xff] %v13915_v23  ;;  %v18472_v19 = vand.u32 4294901760, %v13523_v62  ;;  %v5631_v57 = vand.u32 4294901760, %v5630_v61  ;;  %v5051_v62 = vld [vmem:[#allocation2 + $0x60] sm:$0xff]  ;;  %v13999_v61 = vsub.f32 %v5195_v17, %v13959_v8  ;;  %v14017_v3 = vsub.f32 %v5200_v38, %v13967_v55 }
 0x55c   : > { %18455 = vst [vmem:[#allocation152_spill] sm:$0xff] %v13919_v16  ;;  %18458 = vst [vmem:[#allocation153_spill] sm:$0xff] %v13934_v33 }
 0x55d   : > { %18461 = vst [vmem:[#allocation154_spill] sm:$0xff] %v13942_v45  ;;  %18463 = vst [vmem:[#allocation155_spill] sm:$0xff] %v13947_v48  ;;  %v13975_v7 = vpack.c.bf16 %v18472_v19, %v18471_v12  ;;  %v18478_v19 = vand.u32 4294901760, %v13691_v28  ;;  %v14004_v12 = vpop.f32.mrb[113].mxu0  ;;  %v14019_v48 = vpack.c.bf16 %v5638_v40, %v5631_v57  ;;  %v18493_v45 = vand.u32 4294901760, %v13818_v27  ;;  %v5203_v27 = vld [vmem:[%s17202_s3 + $0x120] sm:$0xff] }
 0x55e   : > { %4989 = vst.msk [vmem:[#allocation2 + $0x88] sm:$0xff] %vm257_vm2, %v4924_v30  ;;  %18464 = vst [vmem:[#allocation156_spill] sm:$0xff] %v13950_v31  ;;  %v13965_v30 = vsub.f32 %v5196_v9, %v13919_v16  ;;  %v4925_v31 = vadd.f32 %v4771_v49, %v4669_v24  ;;  %v4670_v9 = vld [vmem:[#allocation2 + $0x98] sm:$0xff]  ;;  %v4774_v49 = vpop.xlane.xlu0 %4773  ;;  %v14030_v38 = vpop.f32.mrb[114].mxu0 }
 0x55f   : > { %18466 = vst [vmem:[#allocation157_spill] sm:$0xff] %v13956_v42  ;;  %18467 = vst [vmem:[#allocation158_spill] sm:$0xff] %v13959_v8  ;;  %v4926_v8 = vadd.f32 %v4774_v49, %v4670_v9  ;;  %v14034_v49 = vpop.f32.mrb[115].mxu0 }
 0x560   : > { %18468 = vst [vmem:[#allocation159_spill] sm:$0xff] %v13961_v0  ;;  %18469 = vst [vmem:[#allocation160_spill] sm:$0xff] %v13965_v30  ;;  %v18474_v0 = vand.u32 4294901760, %v13888_v5  ;;  %v5055_v16 = vld [vmem:[#allocation2 + $0x80] sm:$0xff] }
 0x561   : > { %18470 = vst [vmem:[#allocation161_spill] sm:$0xff] %v13967_v55  ;;  %18473 = vst [vmem:[#allocation162_spill] sm:$0xff] %v13975_v7  ;;  %v5119_v42 = vmul.f32 0.00390625, %v5055_v16 }
 0x562   : > { %v13980_v58 = vsub.f32 %v13888_v5, %v18474_v0  ;;  %18476 = vst [vmem:[#allocation164_spill] sm:$0xff] %v13982_v15  ;;  %4990 = vst.msk [vmem:[#allocation2 + $0x90] sm:$0xff] %vm257_vm2, %v4925_v31  ;;  %v5644_v0 = vsub.f32 %v13691_v28, %v18478_v19  ;;  %v5199_v31 = vld [vmem:[%s17202_s3 + $0x100] sm:$0xff]  ;;  %v18484_v19 = vand.u32 4294901760, %v13619_v50  ;;  %v18486_v5 = vand.u32 4294901760, %v13696_v21 }
 0x563   : > { %18477 = vst [vmem:[#allocation165_spill] sm:$0xff] %v13987_v10  ;;  %18480 = vst [vmem:[#allocation166_spill] sm:$0xff] %v13996_v4  ;;  %v14022_v50 = vmul.f32 0.00390625, %v5051_v62  ;;  %v4777_v62 = vpop.xlane.xlu1 %4776  ;;  %v5296_v40 = vand.u32 4294901760, %v5119_v42  ;;  %v18501_v10 = vand.u32 4294901760, %v13999_v61 }
 0x564   : > { %18475 = vst [vmem:[#allocation163_spill] sm:$0xff] %v13980_v58  ;;  %18481 = vst [vmem:[#allocation167_spill] sm:$0xff] %v13999_v61  ;;  %v14010_v24 = vpack.c.bf16 %v18484_v19, %v18483_v6  ;;  %v5651_v20 = vsub.f32 %v13696_v21, %v18486_v5  ;;  %v14024_v6 = vmul.f32 0.00390625, %v5052_v53  ;;  %v14027_v5 = vand.u32 4294901760, %v5199_v31 }
 0x565   : > { %18482 = vst [vmem:[#allocation168_spill] sm:$0xff] %v14004_v12  ;;  %18487 = vst [vmem:[#allocation170_spill] sm:$0xff] %v14017_v3  ;;  %v5056_v12 = vld [vmem:[#allocation2 + $0x88] sm:$0xff]  ;;  %v5645_v16 = vand.u32 4294901760, %v5644_v0  ;;  %v18492_v53 = vand.u32 4294901760, %v13841_v29  ;;  %v4927_v57 = vadd.f32 %v4777_v62, %v4671_v60  ;;  %v18497_v0 = vand.u32 4294901760, %v13934_v33 }
 0x566   : > { %18485 = vst [vmem:[#allocation169_spill] sm:$0xff] %v14010_v24  ;;  %18488 = vst [vmem:[#allocation171_spill] sm:$0xff] %v14019_v48  ;;  %v5120_v9 = vmul.f32 0.00390625, %v5056_v12  ;;  %v5652_v17 = vand.u32 4294901760, %v5651_v20  ;;  %v5204_v12 = vld [vmem:[%s17202_s3 + $0x128] sm:$0xff]  ;;  %v14063_v60 = vsub.f32 %v5199_v31, %v14027_v5  ;;  %v14066_v62 = vpop.f32.mrb[116].mxu0 }
 0x567   : > { %18489 = vst [vmem:[#allocation172_spill] sm:$0xff] %v14027_v5  ;;  %4991 = vst.msk [vmem:[#allocation2 + $0x98] sm:$0xff] %vm257_vm2, %v4926_v8  ;;  %v14040_v19 = vpack.c.bf16 %v18493_v45, %v18492_v53  ;;  %v18495_v8 = vand.u32 4294901760, %v13965_v30  ;;  %v4672_v45 = vld [vmem:[#allocation2 + $0xa8] sm:$0xff]  ;;  %v14073_v53 = vsub.f32 %v13999_v61, %v18501_v10  ;;  %v18509_v61 = vand.u32 4294901760, %v13915_v23 }
 0x568   : > { %18490 = vst [vmem:[#allocation173_spill] sm:$0xff] %v14030_v38  ;;  %18491 = vst [vmem:[#allocation174_spill] sm:$0xff] %v14034_v49  ;;  %v5299_v4 = vand.u32 4294901760, %v5120_v9  ;;  %v14077_v49 = vpop.f32.mrb[117].mxu0  ;;  %v14081_v31 = vpack.c.bf16 %v5652_v17, %v5645_v16  ;;  %v14097_v17 = vsub.f32 %v5119_v42, %v5296_v40  ;;  %v5208_v42 = vld [vmem:[%s17202_s3 + $0x148] sm:$0xff] }
 0x569   : > { %18494 = vst [vmem:[#allocation175_spill] sm:$0xff] %v14040_v19  ;;  %v14045_v55 = vsub.f32 %v13965_v30, %v18495_v8  ;;  %v5057_v20 = vld [vmem:[#allocation2 + $0x90] sm:$0xff]  ;;  %v14060_v30 = vsub.f32 %v13934_v33, %v18497_v0  ;;  %18498 = vst [vmem:[#allocation177_spill] sm:$0xff] %v14063_v60  ;;  %v14075_v8 = vand.u32 4294901760, %v5204_v12  ;;  %v4780_v0 = vpop.xlane.xlu0 %4779 }
 0x56a   : > { %4992 = vst.msk [vmem:[#allocation2 + $0xa0] sm:$0xff] %vm257_vm2, %v4927_v57  ;;  %18499 = vst [vmem:[#allocation178_spill] sm:$0xff] %v14066_v62  ;;  %v14068_v29 = vpack.c.bf16 %v5299_v4, %v5296_v40  ;;  %v5121_v58 = vmul.f32 0.00390625, %v5057_v20  ;;  %v14079_v38 = vsub.f32 %v5120_v9, %v5299_v4  ;;  %v18506_v57 = vand.u32 4294901760, %v14017_v3  ;;  %v4673_v9 = vld [vmem:[#allocation2 + $0xb0] sm:$0xff]  ;;  %v14115_v40 = vpop.f32.mrb[118].mxu0 }
 0x56b   : > { %18496 = vst [vmem:[#allocation176_spill] sm:$0xff] %v14045_v55  ;;  %18502 = vst [vmem:[#allocation180_spill] sm:$0xff] %v14073_v53  ;;  %v14088_v20 = vand.u32 4294901760, %v5203_v27  ;;  %v4928_v62 = vadd.f32 %v4780_v0, %v4672_v45  ;;  %v18512_v0 = vand.u32 4294901760, %v14024_v6  ;;  %v4783_v55 = vpop.xlane.xlu1 %4782 }
 0x56c   : > { %18500 = vst [vmem:[#allocation179_spill] sm:$0xff] %v14068_v29  ;;  %18503 = vst [vmem:[#allocation181_spill] sm:$0xff] %v14075_v8  ;;  %v14086_v5 = vsub.f32 %v14017_v3, %v18506_v57  ;;  %9710 = vmatprep.subr.bf16.mxu1 %v14068_v29  ;;  %v5302_v10 = vand.u32 4294901760, %v5121_v58  ;;  %v18510_v57 = vand.u32 4294901760, %v14022_v50  ;;  %v14120_v29 = vsub.f32 %v5204_v12, %v14075_v8  ;;  %v4674_v12 = vld [vmem:[#allocation2 + $0xb8] sm:$0xff] }
 0x56d   : > { %18504 = vst [vmem:[#allocation182_spill] sm:$0xff] %v14077_v49  ;;  %18505 = vst [vmem:[#allocation183_spill] sm:$0xff] %v14081_v31  ;;  %v14094_v49 = vsub.f32 %v13915_v23, %v18509_v61  ;;  %9712 = vmatpush3.bf16.msra.mxu1 %v13567_v34  ;;  %v14108_v3 = vsub.f32 %v14024_v6, %v18512_v0  ;;  %v14122_v0 = vpop.f32.mrb[119].mxu0 }
 0x56e   : > { %18507 = vst [vmem:[#allocation184_spill] sm:$0xff] %v14086_v5  ;;  %18508 = vst [vmem:[#allocation185_spill] sm:$0xff] %v14088_v20  ;;  %v5058_v16 = vld [vmem:[#allocation2 + $0x98] sm:$0xff]  ;;  %v14103_v45 = vsub.f32 %v14022_v50, %v18510_v57  ;;  %v14124_v61 = vsub.f32 %v5121_v58, %v5302_v10  ;;  %v14132_v57 = vand.u32 4294901760, %v5208_v42  ;;  %v5216_v5 = vld [vmem:[%s17202_s3 + $0x188] sm:$0xff] }
 0x56f   : > { %18513 = vst [vmem:[#allocation187_spill] sm:$0xff] %v14108_v3  ;;  %4993 = vst.msk [vmem:[#allocation2 + $0xa8] sm:$0xff] %vm257_vm2, %v4928_v62  ;;  %v5122_v4 = vmul.f32 0.00390625, %v5058_v16  ;;  %v14129_v62 = vsub.f32 %v5203_v27, %v14088_v20  ;;  %v4929_v16 = vadd.f32 %v4783_v55, %v4673_v9  ;;  %v5666_v34 = vand.u32 4294901760, %v14094_v49  ;;  %v14144_v55 = vpop.f32.mrb[120].mxu0  ;;  %v5207_v20 = vld [vmem:[%s17202_s3 + $0x140] sm:$0xff] }
 0x570   : > { %18511 = vst [vmem:[#allocation186_spill] sm:$0xff] %v14103_v45  ;;  %18514 = vst [vmem:[#allocation188_spill] sm:$0xff] %v14115_v40  ;;  %v5671_v58 = vand.u32 4294901760, %v14103_v45 }
 0x571   : > { %18515 = vst [vmem:[#allocation189_spill] sm:$0xff] %v14120_v29  ;;  %18516 = vst [vmem:[#allocation190_spill] sm:$0xff] %v14122_v0  ;;  %v5305_v40 = vand.u32 4294901760, %v5122_v4  ;;  %v5059_v8 = vld [vmem:[#allocation2 + $0xa0] sm:$0xff]  ;;  %v18520_v0 = vand.u32 4294901760, %v14063_v60 }
 0x572   : > { %18517 = vst [vmem:[#allocation191_spill] sm:$0xff] %v14124_v61  ;;  %18518 = vst [vmem:[#allocation192_spill] sm:$0xff] %v14129_v62  ;;  %v5123_v48 = vmul.f32 0.00390625, %v5059_v8  ;;  %v5211_v8 = vld [vmem:[%s17202_s3 + $0x160] sm:$0xff] }
 0x573   : > { %18519 = vst [vmem:[#allocation193_spill] sm:$0xff] %v14132_v57  ;;  %v14139_v31 = vsub.f32 %v14063_v60, %v18520_v0  ;;  %4994 = vst.msk [vmem:[#allocation2 + $0xb0] sm:$0xff] %vm257_vm2, %v4929_v16  ;;  %v14146_v49 = vpack.c.bf16 %v5305_v40, %v5302_v10  ;;  %v14148_v9 = vsub.f32 %v5122_v4, %v5305_v40  ;;  %v14154_v0 = vpop.f32.mrb[121].mxu0  ;;  %v4786_v60 = vpop.xlane.xlu0 %4785  ;;  %v5678_v16 = vand.u32 4294901760, %v14108_v3  ;;  %v5212_v10 = vld [vmem:[%s17202_s3 + $0x168] sm:$0xff] }
 0x574   : > { %18521 = vst [vmem:[#allocation194_spill] sm:$0xff] %v14144_v55  ;;  %18524 = vst [vmem:[#allocation197_spill] sm:$0xff] %v14154_v0  ;;  %v18525_v4 = vand.u32 4294901760, %v14097_v17  ;;  %v18526_v40 = vand.u32 4294901760, %v14079_v38  ;;  %v4930_v0 = vadd.f32 %v4786_v60, %v4674_v12  ;;  %v5308_v27 = vand.u32 4294901760, %v5123_v48 }
 0x575   : > { %18522 = vst [vmem:[#allocation195_spill] sm:$0xff] %v14146_v49  ;;  %18523 = vst [vmem:[#allocation196_spill] sm:$0xff] %v14148_v9  ;;  %9714 = vmatprep.subr.bf16.mxu1 %v14146_v49  ;;  %v14182_v60 = vand.u32 4294901760, %v5207_v20  ;;  %v18530_v12 = vand.u32 4294901760, %v13644_v47  ;;  %v18534_v49 = vand.u32 4294901760, %v13696_v21  ;;  %v14201_v14 = vand.u32 4294901760, %v5211_v8 }
 0x576   : > { %v14169_v53 = vpack.c.bf16 %v18526_v40, %v18525_v4  ;;  %9716 = vmatpush3.bf16.msra.mxu1 %v13798_v63  ;;  %v5060_v41 = vld [vmem:[#allocation2 + $0xa8] sm:$0xff]  ;;  %v14180_v4 = vsub.f32 %v5208_v42, %v14132_v57  ;;  %v18531_v40 = vand.u32 4294901760, %v13609_v18  ;;  %4995 = vst.msk [vmem:[#allocation2 + $0xb8] sm:$0xff] %vm257_vm2, %v4930_v0  ;;  %v14197_v63 = vpop.f32.mrb[122].mxu0  ;;  %v14199_v57 = vand.u32 4294901760, %v5212_v10 }
 0x577   : > { %18529 = vst [vmem:[#allocation200_spill] sm:$0xff] %v14182_v60  ;;  %18536 = vst [vmem:[#allocation203_spill] sm:$0xff] %v14197_v63  ;;  %v5124_v42 = vmul.f32 0.00390625, %v5060_v41  ;;  %v14214_v0 = vsub.f32 %v5123_v48, %v5308_v27  ;;  %v14216_v41 = vand.u32 4294901760, %v5216_v5  ;;  %v18546_v21 = vand.u32 4294901760, %v13915_v23 }
 0x578   : > { %18527 = vst [vmem:[#allocation198_spill] sm:$0xff] %v14169_v53  ;;  %18528 = vst [vmem:[#allocation199_spill] sm:$0xff] %v14180_v4  ;;  %v14188_v55 = vpack.c.bf16 %v18531_v40, %v18530_v12  ;;  %v18533_v53 = vand.u32 4294901760, %v13691_v28  ;;  %v5215_v12 = vld [vmem:[%s17202_s3 + $0x180] sm:$0xff]  ;;  %v18539_v40 = vand.u32 4294901760, %v14124_v61  ;;  %v14224_v18 = vpack.c.bf16 %v5678_v16, %v5671_v58 }
 0x579   : > { %18537 = vst [vmem:[#allocation204_spill] sm:$0xff] %v14199_v57  ;;  %18538 = vst [vmem:[#allocation205_spill] sm:$0xff] %v14201_v14  ;;  %v5311_v56 = vand.u32 4294901760, %v5124_v42  ;;  %v18552_v48 = vand.u32 4294901760, %v14060_v30  ;;  %v14237_v23 = vsub.f32 %v14103_v45, %v5671_v58 }
 0x57a   : > { %18532 = vst [vmem:[#allocation201_spill] sm:$0xff] %v14188_v55  ;;  %v14194_v15 = vpack.c.bf16 %v18534_v49, %v18533_v53  ;;  %v18540_v55 = vand.u32 4294901760, %v14148_v9  ;;  %v14212_v53 = vpop.f32.mrb[123].mxu0  ;;  %v4789_v49 = vpop.xlane.xlu1 %4788  ;;  %18543 = vst [vmem:[#allocation208_spill] sm:$0xff] %v14214_v0 }
 0x57b   : > { %18542 = vst [vmem:[#allocation207_spill] sm:$0xff] %v14212_v53  ;;  %18544 = vst [vmem:[#allocation209_spill] sm:$0xff] %v14216_v41  ;;  %v4931_v63 = vadd.f32 %v4789_v49, %v4675_v43  ;;  %v14234_v53 = vpack.c.bf16 %v5666_v34, %v18552_v48  ;;  %v14243_v43 = vand.u32 4294901760, %v5215_v12  ;;  %v14250_v34 = vsub.f32 %v5124_v42, %v5311_v56  ;;  %v5220_v42 = vld [vmem:[%s17202_s3 + $0x1a8] sm:$0xff] }
 0x57c   : > { %18535 = vst [vmem:[#allocation202_spill] sm:$0xff] %v14194_v15  ;;  %v14210_v28 = vpack.c.bf16 %v18540_v55, %v18539_v40  ;;  %v18545_v15 = vand.u32 4294901760, %v13934_v33  ;;  %18548 = vst [vmem:[#allocation211_spill] sm:$0xff] %v14224_v18  ;;  %v18549_v55 = vand.u32 4294901760, %v14022_v50  ;;  %v18550_v40 = vand.u32 4294901760, %v14024_v6  ;;  %v5061_v33 = vld [vmem:[#allocation2 + $0xb0] sm:$0xff] }
 0x57d   : > { %18554 = vst [vmem:[#allocation214_spill] sm:$0xff] %v14243_v43  ;;  %4996 = vst.msk [vmem:[#allocation2 + $0xc0] sm:$0xff] %vm257_vm2, %v4931_v63  ;;  %v14246_v50 = vpop.f32.mrb[124].mxu0  ;;  %v14248_v6 = vpack.c.bf16 %v5311_v56, %v5308_v27  ;;  %v5125_v30 = vmul.f32 0.00390625, %v5061_v33  ;;  %v14253_v49 = vsub.f32 %v5212_v10, %v14199_v57  ;;  %v14264_v63 = vsub.f32 %v5211_v8, %v14201_v14  ;;  %v4677_v8 = vld [vmem:[#allocation2 + $0xd0] sm:$0xff]  ;;  %v4678_v14 = vld [vmem:[#allocation2 + $0xd8] sm:$0xff] }
 0x57e   : > { %18541 = vst [vmem:[#allocation206_spill] sm:$0xff] %v14210_v28  ;;  %v14222_v47 = vpack.c.bf16 %v18546_v21, %v18545_v15  ;;  %v14230_v28 = vpack.c.bf16 %v18550_v40, %v18549_v55  ;;  %v14241_v15 = vsub.f32 %v5207_v20, %v14182_v60  ;;  %18556 = vst [vmem:[#allocation216_spill] sm:$0xff] %v14250_v34  ;;  %v14255_v58 = vpop.f32.mrb[125].mxu0  ;;  %v4792_v55 = vpop.xlane.xlu0 %4791  ;;  %v18558_v40 = vand.u32 4294901760, %v14120_v29  ;;  %v5062_v21 = vld [vmem:[#allocation2 + $0xb8] sm:$0xff]  ;;  %v5223_v60 = vld [vmem:[%s17202_s3 + $0x1c0] sm:$0xff] }
 0x57f   : > { %18555 = vst [vmem:[#allocation215_spill] sm:$0xff] %v14248_v6  ;;  %18557 = vst [vmem:[#allocation217_spill] sm:$0xff] %v14253_v49  ;;  %v14267_v56 = vsub.f32 %v5216_v5, %v14216_v41  ;;  %v4932_v33 = vadd.f32 %v4792_v55, %v4676_v36  ;;  %9718 = vmatprep.subr.bf16.mxu1 %v14248_v6  ;;  %v5314_v27 = vand.u32 4294901760, %v5125_v30  ;;  %v14284_v10 = vpop.f32.mrb[126].mxu0  ;;  %v5126_v18 = vmul.f32 0.00390625, %v5062_v21 }
 0x580   : > { %18547 = vst [vmem:[#allocation210_spill] sm:$0xff] %v14222_v47  ;;  %18551 = vst [vmem:[#allocation212_spill] sm:$0xff] %v14230_v28  ;;  %v14261_v48 = vsub.f32 %v14120_v29, %v18558_v40  ;;  %9720 = vmatpush3.bf16.msra.mxu1 %v13839_v51  ;;  %v5679_v5 = vsub.f32 %v14108_v3, %v5678_v16  ;;  %v14281_v20 = vsub.f32 %v5215_v12, %v14243_v43  ;;  %v14298_v12 = vpop.f32.mrb[127].mxu0  ;;  %v4795_v51 = vpop.xlane.xlu1 %4794 }
 0x581   : > { %18553 = vst [vmem:[#allocation213_spill] sm:$0xff] %v14241_v15  ;;  %18559 = vst [vmem:[#allocation218_spill] sm:$0xff] %v14264_v63  ;;  %v18562_v40 = vand.u32 4294901760, %v14129_v62  ;;  %v18563_v16 = vand.u32 4294901760, %v14214_v0  ;;  %v18564_v36 = vand.u32 4294901760, %v14250_v34  ;;  %v14304_v43 = vand.u32 4294901760, %v5220_v42 }
 0x582   : > { %18560 = vst [vmem:[#allocation219_spill] sm:$0xff] %v14267_v56  ;;  %18561 = vst [vmem:[#allocation220_spill] sm:$0xff] %v14281_v20  ;;  %v5673_v29 = vand.u32 4294901760, %v14237_v23  ;;  %v18568_v21 = vand.u32 4294901760, %v14241_v15 }
 0x583   : > { %4997 = vst.msk [vmem:[#allocation2 + $0xc8] sm:$0xff] %vm257_vm2, %v4932_v33  ;;  %v14289_v47 = vsub.f32 %v14129_v62, %v18562_v40  ;;  %v14296_v55 = vpack.c.bf16 %v18564_v36, %v18563_v16  ;;  %v14300_v33 = vsub.f32 %v5125_v30, %v5314_v27  ;;  %18566 = vst [vmem:[#allocation222_spill] sm:$0xff] %v14304_v43  ;;  %v5317_v62 = vand.u32 4294901760, %v5126_v18 }
 0x584   : > { %v4933_v40 = vadd.f32 %v4795_v51, %v4677_v8  ;;  %v5063_v36 = vld [vmem:[#allocation2 + $0xc0] sm:$0xff]  ;;  %v5680_v16 = vand.u32 4294901760, %v5679_v5  ;;  %v14316_v6 = vsub.f32 %v14241_v15, %v18568_v21  ;;  %v18571_v5 = vand.u32 4294901760, %v14253_v49  ;;  %v5224_v21 = vld [vmem:[%s17202_s3 + $0x1c8] sm:$0xff]  ;;  %v4798_v51 = vpop.xlane.xlu0 %4797 }
 0x585   : > { %18565 = vst [vmem:[#allocation221_spill] sm:$0xff] %v14296_v55  ;;  %v18567_v55 = vand.u32 4294901760, %v14180_v4  ;;  %v14320_v23 = vpack.c.bf16 %v5317_v62, %v5314_v27  ;;  %v14322_v8 = vsub.f32 %v5126_v18, %v5317_v62  ;;  %v5127_v41 = vmul.f32 0.00390625, %v5063_v36 }
 0x586   : > { %4998 = vst.msk [vmem:[#allocation2 + $0xd0] sm:$0xff] %vm257_vm2, %v4933_v40  ;;  %v14327_v57 = vsub.f32 %v14253_v49, %v18571_v5  ;;  %v18573_v18 = vand.u32 4294901760, %v14264_v63  ;;  %v18575_v40 = vand.u32 4294901760, %v14267_v56  ;;  %v14347_v5 = vsub.f32 %v5220_v42, %v14304_v43 }
 0x587   : > { %v14311_v30 = vsub.f32 %v14180_v4, %v18567_v55  ;;  %18569 = vst [vmem:[#allocation223_spill] sm:$0xff] %v14320_v23  ;;  %18570 = vst [vmem:[#allocation224_spill] sm:$0xff] %v14322_v8  ;;  %v5219_v55 = vld [vmem:[%s17202_s3 + $0x1a0] sm:$0xff]  ;;  %v4934_v49 = vadd.f32 %v4798_v51, %v4678_v14  ;;  %9722 = vmatprep.subr.bf16.mxu1 %v14320_v23  ;;  %v5320_v15 = vand.u32 4294901760, %v5127_v41  ;;  %v14362_v51 = vand.u32 4294901760, %v5224_v21  ;;  %v4801_v23 = vpop.xlane.xlu1 %4800 }
 0x588   : > { %18572 = vst [vmem:[#allocation225_spill] sm:$0xff] %v14327_v57  ;;  %v14339_v62 = vsub.f32 %v14264_v63, %v18573_v18  ;;  %v14344_v36 = vsub.f32 %v14267_v56, %v18575_v40  ;;  %18577 = vst [vmem:[#allocation228_spill] sm:$0xff] %v14347_v5  ;;  %9724 = vmatpush3.bf16.msra.mxu1 %v13975_v7  ;;  %v4679_v18 = vld [vmem:[#allocation2 + $0xe0] sm:$0xff]  ;;  %v18578_v40 = vand.u32 4294901760, %v14281_v20  ;;  %v14360_v14 = vand.u32 4294901760, %v5219_v55 }
 0x589   : > { %18581 = vst [vmem:[#allocation231_spill] sm:$0xff] %v14362_v51  ;;  %4999 = vst.msk [vmem:[#allocation2 + $0xd8] sm:$0xff] %vm257_vm2, %v4934_v49  ;;  %v14365_v56 = vpack.c.bf16 %v5680_v16, %v5673_v29  ;;  %v18582_v7 = vand.u32 4294901760, %v14300_v33  ;;  %v14377_v43 = vsub.f32 %v5127_v41, %v5320_v15  ;;  %v4935_v16 = vadd.f32 %v4801_v23, %v4679_v18  ;;  %v4804_v41 = vpop.xlane.xlu0 %4803 }
 0x58a   : > { %18574 = vst [vmem:[#allocation226_spill] sm:$0xff] %v14339_v62  ;;  %18576 = vst [vmem:[#allocation227_spill] sm:$0xff] %v14344_v36  ;;  %v5064_v63 = vld [vmem:[#allocation2 + $0xc8] sm:$0xff]  ;;  %v14358_v42 = vsub.f32 %v14281_v20, %v18578_v40  ;;  %v18583_v40 = vand.u32 4294901760, %v14322_v8  ;;  %v14389_v49 = vsub.f32 %v5219_v55, %v14360_v14  ;;  %v14392_v29 = vsub.f32 %v5224_v21, %v14362_v51 }
 0x58b   : > { %18580 = vst [vmem:[#allocation230_spill] sm:$0xff] %v14360_v14  ;;  %v5128_v4 = vmul.f32 0.00390625, %v5064_v63  ;;  %18585 = vst [vmem:[#allocation233_spill] sm:$0xff] %v14377_v43  ;;  %v14394_v23 = vand.u32 4294901760, %v5223_v60  ;;  %v18591_v63 = vand.u32 4294901760, %v14079_v38  ;;  %v18592_v55 = vand.u32 4294901760, %v14097_v17 }
 0x58c   : > { %18579 = vst [vmem:[#allocation229_spill] sm:$0xff] %v14358_v42  ;;  %v14375_v20 = vpack.c.bf16 %v18583_v40, %v18582_v7  ;;  %v5228_v7 = vld [vmem:[%s17202_s3 + $0x1e8] sm:$0xff]  ;;  %18586 = vst [vmem:[#allocation234_spill] sm:$0xff] %v14389_v49  ;;  %v18593_v21 = vand.u32 4294901760, %v14148_v9  ;;  %v18595_v62 = vand.u32 4294901760, %v14124_v61  ;;  %v4665_v49 = vld [vmem:[#allocation2 + $0x70] sm:$0xff] }
 0x58d   : > { %v5323_v27 = vand.u32 4294901760, %v5128_v4  ;;  %v4680_v40 = vld [vmem:[#allocation2 + $0xe8] sm:$0xff]  ;;  %18587 = vst [vmem:[#allocation235_spill] sm:$0xff] %v14392_v29  ;;  %18588 = vst [vmem:[#allocation236_spill] sm:$0xff] %v14394_v23  ;;  %v5707_v36 = vsub.f32 %v14079_v38, %v18591_v63  ;;  %v5700_v14 = vsub.f32 %v14097_v17, %v18592_v55  ;;  %v4681_v55 = vld [vmem:[#allocation2 + $0xf0] sm:$0xff]  ;;  %v18605_v57 = vand.u32 4294901760, %v14322_v8 }
 0x58e   : > { %18584 = vst [vmem:[#allocation232_spill] sm:$0xff] %v14375_v20  ;;  %v5065_v20 = vld [vmem:[#allocation2 + $0xd0] sm:$0xff]  ;;  %5000 = vst.msk [vmem:[#allocation2 + $0xe0] sm:$0xff] %vm257_vm2, %v4935_v16  ;;  %v5721_v51 = vsub.f32 %v14148_v9, %v18593_v21  ;;  %v5714_v21 = vsub.f32 %v14124_v61, %v18595_v62  ;;  %v18596_v16 = vand.u32 4294901760, %v14347_v5  ;;  %v14435_v62 = vld [vmem:[%s17202_s3 + $0x1e0] sm:$0xff]  ;;  %v18599_v61 = vand.u32 4294901760, %v14377_v43 }
 0x58f   : > { %v14397_v18 = vpack.c.bf16 %v5323_v27, %v5320_v15  ;;  %v14399_v3 = vsub.f32 %v5128_v4, %v5323_v27  ;;  %v5129_v45 = vmul.f32 0.00390625, %v5065_v20  ;;  %v14411_v15 = vand.u32 4294901760, %v5228_v7 }
 0x590   : > { %v4936_v4 = vadd.f32 %v4804_v41, %v4680_v40  ;;  %v5066_v42 = vld [vmem:[#allocation2 + $0xd8] sm:$0xff]  ;;  %v14424_v40 = vsub.f32 %v14347_v5, %v18596_v16  ;;  %v5708_v9 = vand.u32 4294901760, %v5707_v36  ;;  %v4807_v5 = vpop.xlane.xlu1 %4806  ;;  %v5701_v29 = vand.u32 4294901760, %v5700_v14 }
 0x591   : > { %18589 = vst [vmem:[#allocation237_spill] sm:$0xff] %v14397_v18  ;;  %18590 = vst [vmem:[#allocation238_spill] sm:$0xff] %v14399_v3  ;;  %9726 = vmatprep.subr.bf16.mxu1 %v14397_v18  ;;  %v5326_v20 = vand.u32 4294901760, %v5129_v45  ;;  %v5762_v27 = vand.u32 4294901760, %v14399_v3  ;;  %v5130_v63 = vmul.f32 0.00390625, %v5066_v42  ;;  %v5722_v18 = vand.u32 4294901760, %v5721_v51 }
 0x592   : > { %18594 = vst [vmem:[#allocation239_spill] sm:$0xff] %v14411_v15  ;;  %9728 = vmatpush3.bf16.msra.mxu1 %v14010_v24  ;;  %18597 = vst [vmem:[#allocation240_spill] sm:$0xff] %v14424_v40  ;;  %v14430_v24 = vsub.f32 %v5223_v60, %v14394_v23  ;;  %v14447_v60 = vsub.f32 %v5228_v7, %v14411_v15  ;;  %v4937_v42 = vadd.f32 %v4807_v5, %v4681_v55  ;;  %v4810_v15 = vpop.xlane.xlu0 %4809 }
 0x593   : > { %5001 = vst.msk [vmem:[#allocation2 + $0xe8] sm:$0xff] %vm257_vm2, %v4936_v4  ;;  %v14439_v16 = vpack.c.bf16 %v5762_v27, %v18599_v61  ;;  %v14441_v41 = vsub.f32 %v5129_v45, %v5326_v20  ;;  %v18602_v4 = vand.u32 4294901760, %v14250_v34  ;;  %v5329_v23 = vand.u32 4294901760, %v5130_v63  ;;  %v4682_v61 = vld [vmem:[#allocation2 + $0xf8] sm:$0xff] }
 0x594   : > { %18598 = vst [vmem:[#allocation241_spill] sm:$0xff] %v14430_v24  ;;  %18603 = vst [vmem:[#allocation244_spill] sm:$0xff] %v14447_v60  ;;  %v5715_v40 = vand.u32 4294901760, %v5714_v21  ;;  %v18604_v45 = vand.u32 4294901760, %v14214_v0  ;;  %v14458_v7 = vand.u32 4294901760, %v14435_v62  ;;  %v14465_v24 = vpack.c.bf16 %v5708_v9, %v5701_v29  ;;  %v4759_v21 = vpop.xlane.xlu1 %4758  ;;  %v4666_v9 = vld [vmem:[#allocation2 + $0x78] sm:$0xff] }
 0x595   : > { %18600 = vst [vmem:[#allocation242_spill] sm:$0xff] %v14439_v16  ;;  %18601 = vst [vmem:[#allocation243_spill] sm:$0xff] %v14441_v41  ;;  %v5735_v36 = vsub.f32 %v14250_v34, %v18602_v4  ;;  %v5067_v16 = vld [vmem:[#allocation2 + $0xe0] sm:$0xff]  ;;  %v5749_v4 = vsub.f32 %v14322_v8, %v18605_v57  ;;  %v14461_v5 = vpack.c.bf16 %v5329_v23, %v5326_v20  ;;  %v5769_v8 = vand.u32 4294901760, %v14441_v41 }
 0x596   : > { %v5728_v51 = vsub.f32 %v14214_v0, %v18604_v45  ;;  %18606 = vst [vmem:[#allocation245_spill] sm:$0xff] %v14458_v7  ;;  %5002 = vst.msk [vmem:[#allocation2 + $0xf0] sm:$0xff] %vm257_vm2, %v4937_v42  ;;  %v14463_v14 = vsub.f32 %v5130_v63, %v5329_v23  ;;  %v5131_v55 = vmul.f32 0.00390625, %v5067_v16  ;;  %v14467_v34 = vpack.c.bf16 %v5722_v18, %v5715_v40 }
 0x597   : > { %18607 = vst [vmem:[#allocation246_spill] sm:$0xff] %v14461_v5  ;;  %v5736_v45 = vand.u32 4294901760, %v5735_v36  ;;  %v18609_v0 = vand.u32 4294901760, %v14300_v33  ;;  %v4921_v60 = vadd.f32 %v4759_v21, %v4665_v49  ;;  %v4938_v42 = vadd.f32 %v4810_v15, %v4682_v61  ;;  %9730 = vmatprep.subr.bf16.mxu1 %v14461_v5  ;;  %v4762_v21 = vpop.xlane.xlu0 %4761 }
 0x598   : > { %18608 = vst [vmem:[#allocation247_spill] sm:$0xff] %v14463_v14  ;;  %v5332_v23 = vand.u32 4294901760, %v5131_v55  ;;  %v5776_v20 = vand.u32 4294901760, %v14463_v14  ;;  %9732 = vmatpush3.bf16.msra.mxu1 %v14040_v19  ;;  %v5729_v18 = vand.u32 4294901760, %v5728_v51  ;;  %v5750_v63 = vand.u32 4294901760, %v5749_v4  ;;  %v694_v61 = vpop.permute.xlu1 %693 }
 0x599   : > { %v5742_v57 = vsub.f32 %v14300_v33, %v18609_v0  ;;  %v5763_v40 = vsub.f32 %v14399_v3, %v5762_v27  ;;  %4986 = vst.msk [vmem:[#allocation2 + $0x70] sm:$0xff] %vm257_vm2, %v4921_v60  ;;  %5003 = vst.msk [vmem:[#allocation2 + $0xf8] sm:$0xff] %vm257_vm2, %v4938_v42  ;;  %v18612_v27 = vand.u32 4294901760, %v14377_v43  ;;  %v5770_v60 = vsub.f32 %v14441_v41, %v5769_v8 }
 0x59a   : > { %v5068_v29 = vld [vmem:[#allocation2 + $0xe8] sm:$0xff]  ;;  %v14481_v15 = vsub.f32 %v5131_v55, %v5332_v23  ;;  %v5777_v16 = vsub.f32 %v14463_v14, %v5776_v20  ;;  %v14484_v36 = vpack.c.bf16 %v5776_v20, %v5769_v8  ;;  %v14486_v51 = vpack.c.bf16 %v5736_v45, %v5729_v18 }
 0x59b   : > { %v5132_v49 = vmul.f32 0.00390625, %v5068_v29  ;;  %v5743_v4 = vand.u32 4294901760, %v5742_v57  ;;  %v5756_v0 = vsub.f32 %v14377_v43, %v18612_v27  ;;  %v10287_v42 = vadd.f32 %v13339_v52, %v694_v61  ;;  %v18692_v43 = vld [vmem:[#allocation171_spill] sm:$0xff] }
 0x59c   : > { %18610 = vst [vmem:[#allocation248_spill] sm:$0xff] %v14481_v15  ;;  %18611 = vst [vmem:[#allocation249_spill] sm:$0xff] %v14484_v36  ;;  %v10289_v55 = vadd.f32 %v13346_v2, %v694_v61  ;;  %v4922_v29 = vadd.f32 %v4762_v21, %v4666_v9  ;;  %v5764_v36 = vand.u32 4294901760, %v5763_v40  ;;  %v5778_v14 = vand.u32 4294901760, %v5777_v16  ;;  %v614_v2 = vpop.permute.xlu1 %613 }
 0x59d   : > { %v5335_v19 = vand.u32 4294901760, %v5132_v49  ;;  %v5069_v5 = vld [vmem:[#allocation2 + $0xf0] sm:$0xff]  ;;  %v14494_v20 = vpack.c.bf16 %v5750_v63, %v5743_v4  ;;  %v5783_v45 = vand.u32 4294901760, %v14481_v15  ;;  %v10288_v57 = vadd.f32 %v10287_v42, %v13563_v46 }
 0x59e   : > { %v10290_v18 = vadd.f32 %v10289_v55, %v13573_v37  ;;  %4987 = vst.msk [vmem:[#allocation2 + $0x78] sm:$0xff] %vm257_vm2, %v4922_v29  ;;  %v5133_v9 = vmul.f32 0.00390625, %v5069_v5  ;;  %v5757_v61 = vand.u32 4294901760, %v5756_v0  ;;  %v5771_v21 = vand.u32 4294901760, %v5770_v60  ;;  %v699_v55 = vpop.permute.xlu0 %698 }
 0x59f   : > { %v14500_v8 = vpack.c.bf16 %v5335_v19, %v5332_v23  ;;  %v14502_v52 = vsub.f32 %v5132_v49, %v5335_v19  ;;  %v14505_v63 = vsub.f32 %v14481_v15, %v5783_v45  ;;  %v4619_v40 = vmax.f32 %v10288_v57, 0.0  ;;  %v18628_v57 = vld [vmem:[#allocation44_spill] sm:$0xff] }
 0x5a0   : > { %v4620_v16 = vmax.f32 %v10290_v18, 0.0  ;;  %v10223_v4 = vadd.f32 %v13240_v13, %v614_v2  ;;  %v10225_v46 = vadd.f32 %v13242_v54, %v614_v2  ;;  %v5070_v37 = vld [vmem:[#allocation2 + $0xf8] sm:$0xff]  ;;  %v5338_v19 = vand.u32 4294901760, %v5133_v9  ;;  %v5053_v23 = vld [vmem:[#allocation2 + $0x70] sm:$0xff]  ;;  %v619_v42 = vpop.permute.xlu1 %618 }
 0x5a1   : > { %18613 = vst [vmem:[#allocation250_spill] sm:$0xff] %v14500_v8  ;;  %18614 = vst [vmem:[#allocation251_spill] sm:$0xff] %v14502_v52  ;;  %9734 = vmatprep.subr.bf16.mxu1 %v14500_v8  ;;  %v14511_v49 = vpack.c.bf16 %v5764_v36, %v5757_v61  ;;  %v5790_v5 = vand.u32 4294901760, %v14502_v52  ;;  %v5134_v60 = vmul.f32 0.00390625, %v5070_v37  ;;  %v14518_v54 = vpack.c.bf16 %v5778_v14, %v5771_v21 }
 0x5a2   : > { %9736 = vmatpush3.bf16.msra.mxu1 %v14230_v28  ;;  %v10224_v27 = vadd.f32 %v10223_v4, %v13272_v35  ;;  %v10226_v13 = vadd.f32 %v10225_v46, %v13276_v44  ;;  %v5117_v29 = vmul.f32 0.00390625, %v5053_v23  ;;  %v14521_v18 = vadd.f32 %v4620_v16, %v4619_v40  ;;  %v18632_v28 = vld [vmem:[#allocation63_spill] sm:$0xff] }
 0x5a3   : > { %v14523_v36 = vpack.c.bf16 %v5790_v5, %v5783_v45  ;;  %v10227_v2 = vadd.f32 %v13244_v32, %v619_v42  ;;  %v10229_v61 = vadd.f32 %v13248_v22, %v619_v42  ;;  %v10291_v35 = vadd.f32 %v13362_v1, %v699_v55  ;;  %v704_v1 = vpop.permute.xlu0 %703 }
 0x5a4   : > { %v10293_v44 = vadd.f32 %v13369_v39, %v699_v55  ;;  %v4587_v4 = vmax.f32 %v10224_v27, 0.0  ;;  %v4588_v14 = vmax.f32 %v10226_v13, 0.0  ;;  %v5341_v21 = vand.u32 4294901760, %v5134_v60  ;;  %v709_v22 = vpop.permute.xlu1 %708 }
 0x5a5   : > { %18615 = vst [vmem:[#allocation252_spill] sm:$0xff] %v14523_v36  ;;  %v14529_v46 = vsub.f32 %v5133_v9, %v5338_v19  ;;  %v5054_v37 = vld [vmem:[#allocation2 + $0x78] sm:$0xff]  ;;  %v10228_v23 = vadd.f32 %v10227_v2, %v13284_v11  ;;  %v10230_v40 = vadd.f32 %v10229_v61, %v13289_v59  ;;  %v14534_v45 = vadd.f32 %v10291_v35, %v13617_v26  ;;  %v18617_v59 = vld [vmem:[#allocation60_spill] sm:$0xff] }
 0x5a6   : > { %v14537_v32 = vadd.f32 %v10293_v44, %v13634_v25  ;;  %v4811_v16 = vadd.f32 %v4588_v14, %v4587_v4  ;;  %v14539_v39 = vpack.c.bf16 %v5341_v21, %v5338_v19  ;;  %v5118_v27 = vmul.f32 0.00390625, %v5054_v37  ;;  %v18618_v26 = vld [vmem:[#allocation62_spill] sm:$0xff]  ;;  %v18620_v44 = vld [vmem:[#allocation56_spill] sm:$0xff]  ;;  %v18622_v37 = vld [vmem:[#allocation115_spill] sm:$0xff] }
 0x5a7   : > { %v5791_v9 = vsub.f32 %v14502_v52, %v5790_v5  ;;  %v4589_v13 = vmax.f32 %v10228_v23, 0.0  ;;  %v4590_v42 = vmax.f32 %v10230_v40, 0.0  ;;  %v14542_v55 = vsub.f32 %v5134_v60, %v5341_v21  ;;  %v18619_v35 = vld [vmem:[#allocation54_spill] sm:$0xff]  ;;  %v18623_v40 = vld [vmem:[#allocation101_spill] sm:$0xff]  ;;  %v18666_v52 = vld [vmem:[#allocation19_spill] sm:$0xff] }
 0x5a8   : > { %18616 = vst [vmem:[#allocation253_spill] sm:$0xff] %v14539_v39  ;;  %v5290_v11 = vand.u32 4294901760, %v5117_v29  ;;  %v10299_v2 = vadd.f32 %v18617_v59, %v709_v22  ;;  %v10301_v61 = vadd.f32 %v18618_v26, %v709_v22  ;;  %v10295_v25 = vadd.f32 %v18619_v35, %v704_v1  ;;  %4812 = vadd.xlane.f32.xlu0 %v4811_v16  ;;  %v18621_v60 = vld [vmem:[#allocation110_spill] sm:$0xff]  ;;  %v18624_v59 = vld [vmem:[#allocation105_spill] sm:$0xff]  ;;  %v629_v16 = vpop.permute.xlu1 %628  ;;  %v624_v26 = vpop.permute.xlu0 %623 }
 0x5a9   : > { %v10297_v0 = vadd.f32 %v18620_v44, %v704_v1  ;;  %9738 = vmatprep.subr.bf16.mxu1 %v14539_v39  ;;  %v4814_v5 = vadd.f32 %v4590_v42, %v4589_v13  ;;  %v5293_v14 = vand.u32 4294901760, %v5118_v27  ;;  %v18625_v35 = vld [vmem:[#allocation45_spill] sm:$0xff]  ;;  %v18626_v4 = vld [vmem:[#allocation46_spill] sm:$0xff]  ;;  %v18627_v13 = vld [vmem:[#allocation43_spill] sm:$0xff] }
 0x5aa   : > { %v14552_v21 = vadd.f32 %v10299_v2, %v18621_v60  ;;  %v14555_v23 = vadd.f32 %v10301_v61, %v18622_v37  ;;  %v14558_v22 = vadd.f32 %v10295_v25, %v18623_v40  ;;  %v10235_v44 = vadd.f32 %v18625_v35, %v629_v16  ;;  %v18631_v39 = vld [vmem:[#allocation59_spill] sm:$0xff]  ;;  %v18634_v60 = vld [vmem:[#allocation12_spill] sm:$0xff] }
 0x5ab   : > { %v14561_v1 = vadd.f32 %v10297_v0, %v18624_v59  ;;  %v10237_v19 = vadd.f32 %v18626_v4, %v629_v16  ;;  %v10231_v42 = vadd.f32 %v18627_v13, %v624_v26  ;;  %v10233_v2 = vadd.f32 %v18628_v57, %v624_v26  ;;  %v18629_v0 = vld [vmem:[#allocation71_spill] sm:$0xff]  ;;  %v18639_v16 = vld [vmem:[#allocation141_spill] sm:$0xff] }
 0x5ac   : > { %4815 = vadd.xlane.f32.xlu0 %v4814_v5  ;;  %v14569_v25 = vsub.f32 %v5117_v29, %v5290_v11  ;;  %v5792_v37 = vand.u32 4294901760, %v5791_v9  ;;  %v10236_v40 = vadd.f32 %v10235_v44, %v18629_v0  ;;  %v18630_v59 = vld [vmem:[#allocation75_spill] sm:$0xff]  ;;  %v14576_v13 = vpack.c.bf16 %v5293_v14, %v5290_v11  ;;  %v719_v26 = vpop.permute.xlu1 %718  ;;  %v714_v61 = vpop.permute.xlu0 %713  ;;  %v18635_v0 = vld [vmem:[#allocation14_spill] sm:$0xff] }
 0x5ad   : > { %v10238_v36 = vadd.f32 %v10237_v19, %v18630_v59  ;;  %v10232_v35 = vadd.f32 %v10231_v42, %v18631_v39  ;;  %v10234_v4 = vadd.f32 %v10233_v2, %v18632_v28  ;;  %v14578_v57 = vsub.f32 %v5118_v27, %v5293_v14  ;;  %v18636_v39 = vld [vmem:[#allocation9_spill] sm:$0xff]  ;;  %v18637_v42 = vld [vmem:[#allocation11_spill] sm:$0xff]  ;;  %v18638_v27 = vld [vmem:[#allocation136_spill] sm:$0xff] }
 0x5ae   : > { %18633 = vst [vmem:[#allocation60_spill] sm:$0xff] %v14576_v13  ;;  %v4593_v5 = vmax.f32 %v10236_v40, 0.0  ;;  %v10307_v44 = vadd.f32 %v18634_v60, %v719_v26  ;;  %v10309_v19 = vadd.f32 %v18635_v0, %v719_v26  ;;  %9740 = vmatpush3.bf16.msra.mxu1 %v14576_v13  ;;  %v10303_v28 = vadd.f32 %v18636_v39, %v714_v61  ;;  %v18641_v0 = vld [vmem:[#allocation127_spill] sm:$0xff]  ;;  %v18642_v39 = vld [vmem:[#allocation130_spill] sm:$0xff] }
 0x5af   : > { %v4594_v9 = vmax.f32 %v10238_v36, 0.0  ;;  %v10305_v2 = vadd.f32 %v18637_v42, %v714_v61  ;;  %v4591_v11 = vmax.f32 %v10232_v35, 0.0  ;;  %v4592_v59 = vmax.f32 %v10234_v4, 0.0  ;;  %9742 = vmatprep.subr.bf16.mxu1 %v14465_v24 }
 0x5b0   : > { %v14588_v14 = vadd.f32 %v10307_v44, %v18638_v27  ;;  %v14591_v40 = vadd.f32 %v10309_v19, %v18639_v16  ;;  %v18640_v60 = vand.u32 4294901760, %v14505_v63  ;;  %v14598_v29 = vadd.f32 %v10303_v28, %v18641_v0  ;;  %v639_v35 = vpop.permute.xlu1 %638  ;;  %v634_v4 = vpop.permute.xlu0 %633  ;;  %v18643_v16 = vld [vmem:[#allocation93_spill] sm:$0xff]  ;;  %v18656_v44 = vld [vmem:[#allocation39_spill] sm:$0xff] }
 0x5b1   : > { %v4820_v36 = vadd.f32 %v4594_v9, %v4593_v5  ;;  %v14601_v61 = vadd.f32 %v10305_v2, %v18642_v39  ;;  %v4817_v24 = vadd.f32 %v4592_v59, %v4591_v11  ;;  %v18644_v19 = vand.u32 4294901760, %v18643_v16  ;;  %v18645_v5 = vld [vmem:[#allocation68_spill] sm:$0xff]  ;;  %v18654_v27 = vld [vmem:[#allocation49_spill] sm:$0xff]  ;;  %v18655_v11 = vld [vmem:[#allocation83_spill] sm:$0xff] }
 0x5b2   : > { %v14595_v26 = vpack.c.bf16 %v5792_v37, %v18640_v60  ;;  %v10243_v63 = vadd.f32 %v18645_v5, %v639_v35  ;;  %v18646_v37 = vld [vmem:[#allocation70_spill] sm:$0xff]  ;;  %v18647_v28 = vand.u32 4294901760, %v14529_v46  ;;  %v18648_v59 = vld [vmem:[#allocation128_spill] sm:$0xff] }
 0x5b3   : > { %5354 = vmatmul.mubr.f32.vlgmr.msra.gmra.mrb[128].mxu1 %v18644_v19  ;;  %v10245_v9 = vadd.f32 %v18646_v37, %v639_v35  ;;  %4821 = vadd.xlane.f32.xlu0 %v4820_v36  ;;  %v18649_v60 = vld [vmem:[#allocation108_spill] sm:$0xff]  ;;  %v18652_v19 = vld [vmem:[#allocation66_spill] sm:$0xff]  ;;  %v18658_v36 = vld [vmem:[#allocation111_spill] sm:$0xff] }
 0x5b4   : > { %v14612_v2 = vsub.f32 %v14529_v46, %v18647_v28  ;;  %9744 = vmatpush3.bf16.msra.mxu1 %v18648_v59  ;;  %v18650_v0 = vand.u32 4294901760, %v18649_v60  ;;  %v18651_v39 = vld [vmem:[#allocation64_spill] sm:$0xff]  ;;  %v10241_v5 = vadd.f32 %v18652_v19, %v634_v4  ;;  %v18653_v37 = vld [vmem:[#allocation42_spill] sm:$0xff]  ;;  %4818 = vadd.xlane.f32.xlu1 %v4817_v24  ;;  %v724_v13 = vpop.permute.xlu0 %723 }
 0x5b5   : > { %v10239_v16 = vadd.f32 %v18651_v39, %v634_v4  ;;  %9746 = vmatprep.subr.bf16.mxu1 %v14467_v34  ;;  %v10244_v28 = vadd.f32 %v10243_v63, %v18653_v37  ;;  %v10246_v42 = vadd.f32 %v10245_v9, %v18654_v27  ;;  %v18657_v39 = vand.u32 4294901760, %v14542_v55  ;;  %v18660_v9 = vld [vmem:[#allocation21_spill] sm:$0xff]  ;;  %v18661_v27 = vld [vmem:[#allocation22_spill] sm:$0xff]  ;;  %v18663_v37 = vld [vmem:[#allocation120_spill] sm:$0xff] }
 0x5b6   : > { %5363 = vmatprep.mubr.f32.mxu1 %v18650_v0  ;;  %v10242_v60 = vadd.f32 %v10241_v5, %v18656_v44  ;;  %v729_v0 = vpop.permute.xlu1 %728  ;;  %v18659_v63 = vand.u32 4294901760, %v18658_v36  ;;  %v18662_v5 = vld [vmem:[#allocation142_spill] sm:$0xff]  ;;  %v18664_v8 = vand.u32 4294901760, %v18663_v37  ;;  %v10313_v19 = vadd.f32 %v18666_v52, %v724_v13 }
 0x5b7   : > { %v10240_v59 = vadd.f32 %v10239_v16, %v18655_v11  ;;  %v14631_v4 = vsub.f32 %v14542_v55, %v18657_v39  ;;  %v4597_v35 = vmax.f32 %v10244_v28, 0.0  ;;  %v4598_v34 = vmax.f32 %v10246_v42, 0.0  ;;  %v18665_v39 = vld [vmem:[#allocation17_spill] sm:$0xff]  ;;  %v18667_v42 = vld [vmem:[#allocation156_spill] sm:$0xff]  ;;  %v18668_v28 = vld [vmem:[#allocation159_spill] sm:$0xff] }
 0x5b8   : > { %5369 = vmatmul.mubr.f32.gmra.mrb[130].mxu1 %v18659_v63  ;;  %v10315_v24 = vadd.f32 %v18660_v9, %v729_v0  ;;  %v10317_v11 = vadd.f32 %v18661_v27, %v729_v0  ;;  %v4596_v44 = vmax.f32 %v10242_v60, 0.0  ;;  %v10311_v15 = vadd.f32 %v18665_v39, %v724_v13  ;;  %v18669_v60 = vld [vmem:[#allocation148_spill] sm:$0xff]  ;;  %v18670_v27 = vld [vmem:[#allocation150_spill] sm:$0xff]  ;;  %v644_v37 = vpop.permute.xlu0 %643  ;;  %v18671_v13 = vld [vmem:[#allocation121_spill] sm:$0xff] }
 0x5b9   : > { %v4595_v16 = vmax.f32 %v10240_v59, 0.0  ;;  %9748 = vmatpush3.bf16.msra.mxu1 %v18662_v5  ;;  %5378 = vmatprep.mubr.f32.mxu1 %v18664_v8  ;;  %v4826_v0 = vadd.f32 %v4598_v34, %v4597_v35  ;;  %v5799_v59 = vand.u32 4294901760, %v14612_v2  ;;  %v14655_v8 = vadd.f32 %v10313_v19, %v18670_v27  ;;  %v18673_v39 = vld [vmem:[#allocation76_spill] sm:$0xff] }
 0x5ba   : > { %9750 = vmatprep.subr.bf16.mxu1 %v14486_v51  ;;  %v14645_v36 = vadd.f32 %v10315_v24, %v18667_v42  ;;  %v14648_v63 = vadd.f32 %v10317_v11, %v18668_v28  ;;  %v14652_v9 = vadd.f32 %v10311_v15, %v18669_v60  ;;  %v649_v5 = vpop.permute.xlu1 %648  ;;  %v18672_v24 = vand.u32 4294901760, %v18671_v13  ;;  %v18674_v42 = vld [vmem:[#allocation78_spill] sm:$0xff]  ;;  %v18677_v28 = vld [vmem:[#allocation137_spill] sm:$0xff]  ;;  %v18679_v27 = vld [vmem:[#allocation72_spill] sm:$0xff] }
 0x5bb   : > { %v4823_v52 = vadd.f32 %v4596_v44, %v4595_v16  ;;  %v10251_v11 = vadd.f32 %v18673_v39, %v649_v5  ;;  %v10253_v35 = vadd.f32 %v18674_v42, %v649_v5  ;;  %4827 = vadd.xlane.f32.xlu0 %v4826_v0  ;;  %v5806_v2 = vand.u32 4294901760, %v14631_v4  ;;  %v18676_v44 = vld [vmem:[#allocation164_spill] sm:$0xff]  ;;  %v18680_v5 = vld [vmem:[#allocation74_spill] sm:$0xff]  ;;  %v18684_v51 = vld [vmem:[#allocation51_spill] sm:$0xff] }
 0x5bc   : > { %5384 = vmatmul.mubr.f32.gmra.mrb[132].mxu1 %v18672_v24  ;;  %v18675_v15 = vand.u32 4294901760, %v14569_v25  ;;  %v18678_v60 = vand.u32 4294901760, %v18677_v28  ;;  %v10247_v13 = vadd.f32 %v18679_v27, %v644_v37  ;;  %v10249_v0 = vadd.f32 %v18680_v5, %v644_v37  ;;  %v18681_v39 = vld [vmem:[#allocation52_spill] sm:$0xff]  ;;  %v18683_v16 = vld [vmem:[#allocation50_spill] sm:$0xff]  ;;  %v734_v41 = vpop.permute.xlu0 %733 }
 0x5bd   : > { %9752 = vmatpush3.bf16.msra.mxu1 %v18676_v44  ;;  %v10252_v42 = vadd.f32 %v10251_v11, %v18681_v39  ;;  %4824 = vadd.xlane.f32.xlu1 %v4823_v52  ;;  %v18685_v27 = vand.u32 4294901760, %v14578_v57  ;;  %v18686_v5 = vmax.f32 %v14534_v45, 0.0  ;;  %v18688_v52 = vld [vmem:[#allocation143_spill] sm:$0xff]  ;;  %v18695_v45 = vld [vmem:[#allocation28_spill] sm:$0xff] }
 0x5be   : > { %v14666_v19 = vsub.f32 %v14569_v25, %v18675_v15  ;;  %5393 = vmatprep.mubr.f32.mxu1 %v18678_v60  ;;  %9754 = vmatprep.subr.bf16.mxu1 %v14494_v20  ;;  %v18682_v15 = vld [vmem:[#allocation53_spill] sm:$0xff]  ;;  %v10248_v44 = vadd.f32 %v10247_v13, %v18683_v16  ;;  %v10250_v28 = vadd.f32 %v10249_v0, %v18684_v51  ;;  %v739_v60 = vpop.permute.xlu1 %738  ;;  %v18687_v20 = vmax.f32 %v14537_v32, 0.0  ;;  %v18691_v13 = vld [vmem:[#allocation34_spill] sm:$0xff] }
 0x5bf   : > { %v10254_v34 = vadd.f32 %v10253_v35, %v18682_v15  ;;  %v14685_v37 = vsub.f32 %v14578_v57, %v18685_v27  ;;  %v4601_v11 = vmax.f32 %v10252_v42, 0.0  ;;  %v18689_v39 = vand.u32 4294901760, %v18688_v52  ;;  %v18690_v16 = vld [vmem:[#allocation37_spill] sm:$0xff]  ;;  %v18693_v27 = vld [vmem:[#allocation144_spill] sm:$0xff]  ;;  %v18698_v52 = vld [vmem:[#allocation174_spill] sm:$0xff] }
 0x5c0   : > { %v14691_v24 = vadd.f32 %v18687_v20, %v18686_v5  ;;  %v10323_v51 = vadd.f32 %v18690_v16, %v739_v60  ;;  %v10325_v0 = vadd.f32 %v18691_v13, %v739_v60  ;;  %v4599_v15 = vmax.f32 %v10248_v44, 0.0  ;;  %v18696_v5 = vld [vmem:[#allocation31_spill] sm:$0xff]  ;;  %v18700_v16 = vld [vmem:[#allocation168_spill] sm:$0xff] }
 0x5c1   : > { %v4602_v35 = vmax.f32 %v10254_v34, 0.0  ;;  %5399 = vmatmul.mubr.f32.gmra.mrb[134].mxu1 %v18689_v39  ;;  %v4600_v4 = vmax.f32 %v10250_v28, 0.0  ;;  %v18694_v3 = vand.u32 4294901760, %v18693_v27  ;;  %v10319_v32 = vadd.f32 %v18695_v45, %v734_v41  ;;  %v18697_v34 = vld [vmem:[#allocation173_spill] sm:$0xff]  ;;  %v654_v27 = vpop.permute.xlu0 %653 }
 0x5c2   : > { %9756 = vmatpush3.bf16.msra.mxu1 %v18692_v43  ;;  %v10321_v20 = vadd.f32 %v18696_v5, %v734_v41  ;;  %v14704_v42 = vadd.f32 %v10323_v51, %v18697_v34  ;;  %v14707_v39 = vadd.f32 %v10325_v0, %v18698_v52  ;;  %v14709_v44 = vpack.c.bf16 %v5806_v2, %v5799_v59  ;;  %v18699_v28 = vld [vmem:[#allocation165_spill] sm:$0xff]  ;;  %v659_v13 = vpop.permute.xlu1 %658  ;;  %v18703_v0 = vld [vmem:[#allocation154_spill] sm:$0xff]  ;;  %v18705_v59 = vld [vmem:[#allocation84_spill] sm:$0xff] }
 0x5c3   : > { %5408 = vmatprep.mubr.f32.mxu1 %v18694_v3  ;;  %9758 = vmatprep.subr.bf16.mxu1 %v14511_v49  ;;  %v4832_v60 = vadd.f32 %v4602_v35, %v4601_v11  ;;  %v14712_v43 = vadd.f32 %v10319_v32, %v18699_v28  ;;  %v4829_v41 = vadd.f32 %v4600_v4, %v4599_v15  ;;  %v18701_v49 = vmax.f32 %v14552_v21, 0.0  ;;  %v18706_v11 = vld [vmem:[#allocation57_spill] sm:$0xff]  ;;  %v18707_v15 = vld [vmem:[#allocation183_spill] sm:$0xff]  ;;  %v18710_v52 = vld [vmem:[#allocation80_spill] sm:$0xff] }
 0x5c4   : > { %v14715_v3 = vadd.f32 %v10321_v20, %v18700_v16  ;;  %v18702_v51 = vmax.f32 %v14555_v23, 0.0  ;;  %v18704_v5 = vand.u32 4294901760, %v18703_v0  ;;  %v10259_v2 = vadd.f32 %v18705_v59, %v659_v13  ;;  %v18708_v23 = vld [vmem:[#allocation155_spill] sm:$0xff]  ;;  %v18711_v16 = vld [vmem:[#allocation82_spill] sm:$0xff] }
 0x5c5   : > { %v10261_v35 = vadd.f32 %v18706_v11, %v659_v13  ;;  %4833 = vadd.xlane.f32.xlu0 %v4832_v60  ;;  %v5687_v32 = vand.u32 4294901760, %v14666_v19  ;;  %v5694_v20 = vand.u32 4294901760, %v14685_v37  ;;  %v4637_v4 = vmax.f32 %v14704_v42, 0.0  ;;  %v18712_v19 = vld [vmem:[#allocation4_spill] sm:$0xff]  ;;  %v18713_v42 = vld [vmem:[#allocation7_spill] sm:$0xff]  ;;  %4830 = vadd.xlane.f32.xlu1 %v4829_v41 }
 0x5c6   : > { %v14721_v45 = vadd.f32 %v18702_v51, %v18701_v49  ;;  %5414 = vmatmul.mubr.f32.gmra.mrb[136].mxu1 %v18704_v5  ;;  %v4638_v21 = vmax.f32 %v14707_v39, 0.0  ;;  %v18709_v34 = vand.u32 4294901760, %v18708_v23  ;;  %v10255_v28 = vadd.f32 %v18710_v52, %v654_v27  ;;  %v18714_v39 = vld [vmem:[#allocation55_spill] sm:$0xff]  ;;  %v18715_v5 = vld [vmem:[#allocation58_spill] sm:$0xff]  ;;  %v749_v11 = vpop.permute.xlu1 %748 }
 0x5c7   : > { %9760 = vmatpush3.bf16.msra.mxu1 %v18707_v15  ;;  %v10257_v49 = vadd.f32 %v18711_v16, %v654_v27  ;;  %v4635_v13 = vmax.f32 %v14712_v43, 0.0  ;;  %v4636_v60 = vmax.f32 %v14715_v3, 0.0  ;;  %v10260_v37 = vadd.f32 %v10259_v2, %v18712_v19  ;;  %v744_v15 = vpop.permute.xlu0 %743 }
 0x5c8   : > { %5423 = vmatprep.mubr.f32.mxu1 %v18709_v34  ;;  %9762 = vmatprep.subr.bf16.mxu1 %v14518_v54  ;;  %v10262_v51 = vadd.f32 %v10261_v35, %v18713_v42  ;;  %v10256_v0 = vadd.f32 %v10255_v28, %v18714_v39  ;;  %v18716_v23 = vmax.f32 %v14558_v22, 0.0  ;;  %v18717_v27 = vmax.f32 %v14561_v1, 0.0  ;;  %v18720_v34 = vld [vmem:[#allocation157_spill] sm:$0xff]  ;;  %v18722_v28 = vld [vmem:[#allocation99_spill] sm:$0xff] }
 0x5c9   : > { %v10258_v59 = vadd.f32 %v10257_v49, %v18715_v5  ;;  %v18718_v3 = vmax.f32 %v14588_v14, 0.0  ;;  %v18719_v54 = vmax.f32 %v14591_v40, 0.0  ;;  %v4605_v35 = vmax.f32 %v10260_v37, 0.0  ;;  %v18723_v49 = vld [vmem:[#allocation100_spill] sm:$0xff]  ;;  %v18724_v1 = vld [vmem:[#allocation163_spill] sm:$0xff]  ;;  %v18727_v5 = vld [vmem:[#allocation94_spill] sm:$0xff] }
 0x5ca   : > { %v14747_v43 = vadd.f32 %v18717_v27, %v18716_v23  ;;  %v4606_v41 = vmax.f32 %v10262_v51, 0.0  ;;  %v18721_v52 = vand.u32 4294901760, %v18720_v34  ;;  %v10331_v16 = vadd.f32 %v18722_v28, %v749_v11  ;;  %v18726_v14 = vld [vmem:[#allocation92_spill] sm:$0xff]  ;;  %v18729_v27 = vld [vmem:[#allocation190_spill] sm:$0xff] }
 0x5cb   : > { %v14753_v2 = vadd.f32 %v18719_v54, %v18718_v3  ;;  %v10333_v19 = vadd.f32 %v18723_v49, %v749_v11  ;;  %v4603_v22 = vmax.f32 %v10256_v0, 0.0  ;;  %v4604_v42 = vmax.f32 %v10258_v59, 0.0  ;;  %9764 = vmatpush3.bf16.msra.mxu1 %v14234_v53  ;;  %v18728_v37 = vld [vmem:[#allocation188_spill] sm:$0xff]  ;;  %v18732_v53 = vld [vmem:[#allocation178_spill] sm:$0xff]  ;;  %v669_v49 = vpop.permute.xlu1 %668 }
 0x5cc   : > { %5429 = vmatmul.mubr.f32.gmra.mrb[138].mxu1 %v18721_v52  ;;  %v18725_v39 = vand.u32 4294901760, %v18724_v1  ;;  %v10327_v40 = vadd.f32 %v18726_v14, %v744_v15  ;;  %v10329_v23 = vadd.f32 %v18727_v5, %v744_v15  ;;  %9766 = vmatprep.subr.bf16.mxu1 %v14595_v26  ;;  %v10332_v51 = vadd.f32 %v10331_v16, %v18728_v37  ;;  %v18733_v52 = vld [vmem:[#allocation182_spill] sm:$0xff]  ;;  %v664_v1 = vpop.permute.xlu0 %663  ;;  %v18739_v14 = vld [vmem:[#allocation69_spill] sm:$0xff] }
 0x5cd   : > { %v10334_v3 = vadd.f32 %v10333_v19, %v18729_v27  ;;  %v4838_v54 = vadd.f32 %v4606_v41, %v4605_v35  ;;  %v18730_v11 = vmax.f32 %v14598_v29, 0.0  ;;  %v18731_v0 = vmax.f32 %v14601_v61, 0.0  ;;  %v18736_v41 = vld [vmem:[#allocation166_spill] sm:$0xff]  ;;  %v18738_v61 = vld [vmem:[#allocation67_spill] sm:$0xff]  ;;  %v18743_v27 = vld [vmem:[#allocation65_spill] sm:$0xff] }
 0x5ce   : > { %5438 = vmatprep.mubr.f32.mxu1 %v18725_v39  ;;  %v10328_v34 = vadd.f32 %v10327_v40, %v18732_v53  ;;  %v10330_v28 = vadd.f32 %v10329_v23, %v18733_v52  ;;  %v4835_v15 = vadd.f32 %v4604_v42, %v4603_v22  ;;  %v18734_v26 = vmax.f32 %v14645_v36, 0.0  ;;  %v18740_v22 = vld [vmem:[#allocation176_spill] sm:$0xff]  ;;  %v18745_v52 = vld [vmem:[#allocation13_spill] sm:$0xff] }
 0x5cf   : > { %v14771_v59 = vadd.f32 %v18731_v0, %v18730_v11  ;;  %v18735_v16 = vmax.f32 %v14648_v63, 0.0  ;;  %v4641_v35 = vmax.f32 %v10332_v51, 0.0  ;;  %v18737_v29 = vand.u32 4294901760, %v18736_v41  ;;  %4839 = vadd.xlane.f32.xlu0 %v4838_v54  ;;  %9768 = vmatpush3.bf16.msra.mxu1 %v14365_v56  ;;  %v18742_v63 = vld [vmem:[#allocation61_spill] sm:$0xff]  ;;  %v18744_v0 = vld [vmem:[#allocation6_spill] sm:$0xff] }
 0x5d0   : > { %v10267_v19 = vadd.f32 %v18738_v61, %v669_v49  ;;  %v10269_v5 = vadd.f32 %v18739_v14, %v669_v49  ;;  %v9771_v40 = vpack.c.bf16 %v5694_v20, %v5687_v32  ;;  %v4642_v23 = vmax.f32 %v10334_v3, 0.0  ;;  %9770 = vmatprep.subr.bf16.mxu1 %v14709_v44  ;;  %4836 = vadd.xlane.f32.xlu1 %v4835_v15  ;;  %v18748_v3 = vld [vmem:[#allocation8_spill] sm:$0xff] }
 0x5d1   : > { %v14779_v39 = vadd.f32 %v18735_v16, %v18734_v26  ;;  %5444 = vmatmul.mubr.f32.gmra.mrb[140].mxu1 %v18737_v29  ;;  %v4639_v37 = vmax.f32 %v10328_v34, 0.0  ;;  %v18741_v36 = vand.u32 4294901760, %v18740_v22  ;;  %v10263_v42 = vadd.f32 %v18742_v63, %v664_v1  ;;  %v18749_v34 = vld [vmem:[#allocation10_spill] sm:$0xff]  ;;  %v759_v16 = vpop.permute.xlu1 %758  ;;  %v18750_v61 = vld [vmem:[#allocation180_spill] sm:$0xff] }
 0x5d2   : > { %v10265_v51 = vadd.f32 %v18743_v27, %v664_v1  ;;  %v4640_v11 = vmax.f32 %v10330_v28, 0.0  ;;  %v10268_v53 = vadd.f32 %v10267_v19, %v18744_v0  ;;  %v10270_v49 = vadd.f32 %v10269_v5, %v18745_v52  ;;  %v754_v1 = vpop.permute.xlu0 %753  ;;  %v18759_v27 = vld [vmem:[#allocation203_spill] sm:$0xff] }
 0x5d3   : > { %5453 = vmatprep.mubr.f32.mxu1 %v18741_v36  ;;  %v18746_v32 = vmax.f32 %v14652_v9, 0.0  ;;  %v18747_v20 = vmax.f32 %v14655_v8, 0.0  ;;  %v10264_v54 = vadd.f32 %v10263_v42, %v18748_v3  ;;  %v14801_v28 = vadd.f32 %v4638_v21, %v4637_v4  ;;  %v18752_v9 = vld [vmem:[#allocation118_spill] sm:$0xff]  ;;  %9772 = vmatpush3.bf16.msra.mxu1 %v9771_v40  ;;  %v18754_v36 = vld [vmem:[#allocation184_spill] sm:$0xff]  ;;  %v18756_v42 = vld [vmem:[#allocation109_spill] sm:$0xff] }
 0x5d4   : > { %v10266_v26 = vadd.f32 %v10265_v51, %v18749_v34  ;;  %v14803_v44 = vadd.f32 %v4636_v60, %v4635_v13  ;;  %v4609_v41 = vmax.f32 %v10268_v53, 0.0  ;;  %v4610_v29 = vmax.f32 %v10270_v49, 0.0  ;;  %v18753_v8 = vld [vmem:[#allocation122_spill] sm:$0xff]  ;;  %v18757_v21 = vld [vmem:[#allocation113_spill] sm:$0xff]  ;;  %v18760_v0 = vld [vmem:[#allocation207_spill] sm:$0xff] }
 0x5d5   : > { %v14797_v56 = vadd.f32 %v18747_v20, %v18746_v32  ;;  %v18751_v15 = vand.u32 4294901760, %v18750_v61  ;;  %v10339_v19 = vadd.f32 %v18752_v9, %v759_v16  ;;  %v10341_v14 = vadd.f32 %v18753_v8, %v759_v16  ;;  %v18761_v32 = vld [vmem:[#allocation194_spill] sm:$0xff]  ;;  %v18762_v20 = vld [vmem:[#allocation197_spill] sm:$0xff] }
 0x5d6   : > { %v4607_v5 = vmax.f32 %v10264_v54, 0.0  ;;  %v4608_v22 = vmax.f32 %v10266_v26, 0.0  ;;  %v18755_v63 = vand.u32 4294901760, %v18754_v36  ;;  %v10335_v4 = vadd.f32 %v18756_v42, %v754_v1  ;;  %v679_v54 = vpop.permute.xlu1 %678  ;;  %v674_v34 = vpop.permute.xlu0 %673  ;;  %v18765_v9 = vld [vmem:[#allocation81_spill] sm:$0xff]  ;;  %v18771_v42 = vld [vmem:[#allocation15_spill] sm:$0xff] }
 0x5d7   : > { %5459 = vmatmul.mubr.f32.gmra.mrb[142].mxu1 %v18751_v15  ;;  %v10337_v13 = vadd.f32 %v18757_v21, %v754_v1  ;;  %v18758_v60 = vpack.c.bf16 %v14079_v38, %v14097_v17  ;;  %v10340_v51 = vadd.f32 %v10339_v19, %v18759_v27  ;;  %v10342_v53 = vadd.f32 %v10341_v14, %v18760_v0  ;;  %v18764_v17 = vld [vmem:[#allocation79_spill] sm:$0xff]  ;;  %v18767_v19 = vld [vmem:[#allocation73_spill] sm:$0xff]  ;;  %v18772_v21 = vld [vmem:[#allocation16_spill] sm:$0xff] }
 0x5d8   : > { %5468 = vmatprep.mubr.f32.mxu1 %v18755_v63  ;;  %v4844_v52 = vadd.f32 %v4610_v29, %v4609_v41  ;;  %v14818_v49 = vadd.f32 %v4642_v23, %v4641_v35  ;;  %v10336_v40 = vadd.f32 %v10335_v4, %v18761_v32  ;;  %v4841_v26 = vadd.f32 %v4608_v22, %v4607_v5  ;;  %v18768_v14 = vld [vmem:[#allocation77_spill] sm:$0xff]  ;;  %v18770_v22 = vld [vmem:[#allocation20_spill] sm:$0xff]  ;;  %v18774_v32 = vld [vmem:[#allocation146_spill] sm:$0xff] }
 0x5d9   : > { %9774 = vmatprep.subr.bf16.mxu1 %v18758_v60  ;;  %v10338_v3 = vadd.f32 %v10337_v13, %v18762_v20  ;;  %v14822_v16 = vadd.f32 %v4640_v11, %v4639_v37  ;;  %v4645_v1 = vmax.f32 %v10340_v51, 0.0  ;;  %v4646_v61 = vmax.f32 %v10342_v53, 0.0  ;;  %v18769_v11 = vld [vmem:[#allocation18_spill] sm:$0xff]  ;;  %v18775_v20 = vld [vmem:[#allocation147_spill] sm:$0xff] }
 0x5da   : > { %v18763_v38 = vand.u32 4294901760, %v14139_v31  ;;  %v10275_v15 = vadd.f32 %v18764_v17, %v679_v54  ;;  %v10277_v41 = vadd.f32 %v18765_v9, %v679_v54  ;;  %4845 = vadd.xlane.f32.xlu0 %v4844_v52  ;;  %v4643_v35 = vmax.f32 %v10336_v40, 0.0  ;;  %4842 = vadd.xlane.f32.xlu1 %v4841_v26  ;;  %v764_v60 = vpop.permute.xlu0 %763 }
 0x5db   : > { %v4644_v23 = vmax.f32 %v10338_v3, 0.0  ;;  %v18766_v29 = vand.u32 4294901760, %v14261_v48  ;;  %v10271_v8 = vadd.f32 %v18767_v19, %v674_v34  ;;  %v10273_v37 = vadd.f32 %v18768_v14, %v674_v34  ;;  %v769_v48 = vpop.permute.xlu1 %768 }
 0x5dc   : > { %5474 = vmatmul.mubr.f32.gmra.mrb[144].mxu1 %v18763_v38  ;;  %v10276_v5 = vadd.f32 %v10275_v15, %v18769_v11  ;;  %v10278_v31 = vadd.f32 %v10277_v41, %v18770_v22  ;;  %v14834_v36 = vadd.f32 %v4646_v61, %v4645_v1  ;;  %v9801_v63 = vpack.c.bf16 %v14542_v55, %v14529_v46  ;;  %v18777_v1 = vld [vmem:[#allocation135_spill] sm:$0xff]  ;;  %v18778_v38 = vld [vmem:[#allocation140_spill] sm:$0xff] }
 0x5dd   : > { %5483 = vmatprep.mubr.f32.mxu1 %v18766_v29  ;;  %v10272_v4 = vadd.f32 %v10271_v8, %v18771_v42  ;;  %v10274_v13 = vadd.f32 %v10273_v37, %v18772_v21  ;;  %v14840_v27 = vadd.f32 %v4644_v23, %v4643_v35  ;;  %v9803_v51 = vpack.c.bf16 %v14578_v57, %v14569_v25 }
 0x5de   : > { %v4613_v0 = vmax.f32 %v10276_v5, 0.0  ;;  %v4614_v53 = vmax.f32 %v10278_v31, 0.0  ;;  %v18773_v52 = vand.u32 4294901760, %v14289_v47  ;;  %v10347_v40 = vadd.f32 %v18774_v32, %v769_v48  ;;  %v684_v8 = vpop.permute.xlu0 %683  ;;  %v18784_v31 = vld [vmem:[#allocation40_spill] sm:$0xff]  ;;  %v18790_v32 = vld [vmem:[#allocation29_spill] sm:$0xff] }
 0x5df   : > { %v10349_v3 = vadd.f32 %v18775_v20, %v769_v48  ;;  %v4611_v54 = vmax.f32 %v10272_v4, 0.0  ;;  %v4612_v34 = vmax.f32 %v10274_v13, 0.0  ;;  %v18776_v26 = vand.u32 4294901760, %v14311_v30  ;;  %v689_v19 = vpop.permute.xlu1 %688  ;;  %v18785_v4 = vld [vmem:[#allocation48_spill] sm:$0xff]  ;;  %v18786_v13 = vld [vmem:[#allocation225_spill] sm:$0xff] }
 0x5e0   : > { %5489 = vmatmul.mubr.f32.gmra.mrb[146].mxu1 %v18773_v52  ;;  %v10343_v61 = vadd.f32 %v18777_v1, %v764_v60  ;;  %v10345_v17 = vadd.f32 %v18778_v38, %v764_v60  ;;  %v10348_v15 = vadd.f32 %v10347_v40, %v14284_v10  ;;  %v4850_v41 = vadd.f32 %v4614_v53, %v4613_v0  ;;  %v18788_v60 = vld [vmem:[#allocation85_spill] sm:$0xff]  ;;  %v18789_v53 = vld [vmem:[#allocation47_spill] sm:$0xff]  ;;  %v18791_v20 = vld [vmem:[#allocation32_spill] sm:$0xff] }
 0x5e1   : > { %5498 = vmatprep.mubr.f32.mxu1 %v18776_v26  ;;  %v10350_v9 = vadd.f32 %v10349_v3, %v14298_v12  ;;  %v18779_v47 = vand.u32 4294901760, %v14529_v46  ;;  %v18780_v35 = vand.u32 4294901760, %v14542_v55  ;;  %v4847_v14 = vadd.f32 %v4612_v34, %v4611_v54  ;;  %v18792_v3 = vld [vmem:[#allocation240_spill] sm:$0xff]  ;;  %v18793_v26 = vld [vmem:[#allocation23_spill] sm:$0xff] }
 0x5e2   : > { %v10344_v29 = vadd.f32 %v10343_v61, %v14246_v50  ;;  %v10346_v30 = vadd.f32 %v10345_v17, %v14255_v58  ;;  %v18781_v37 = vand.u32 4294901760, %v14569_v25  ;;  %v18782_v10 = vand.u32 4294901760, %v14578_v57  ;;  %4851 = vadd.xlane.f32.xlu0 %v4850_v41  ;;  %v18794_v61 = vld [vmem:[#allocation25_spill] sm:$0xff]  ;;  %v18795_v17 = vld [vmem:[#allocation234_spill] sm:$0xff]  ;;  %v18867_v46 = vld [vmem:[#allocation200_spill] sm:$0xff] }
 0x5e3   : > { %v14858_v23 = vpack.c.bf16 %v18780_v35, %v18779_v47  ;;  %v4649_v12 = vmax.f32 %v10348_v15, 0.0  ;;  %v4650_v5 = vmax.f32 %v10350_v9, 0.0  ;;  %v18783_v22 = vand.u32 4294901760, %v14316_v6  ;;  %4848 = vadd.xlane.f32.xlu1 %v4847_v14  ;;  %v18868_v55 = vld [vmem:[#allocation204_spill] sm:$0xff]  ;;  %v18870_v25 = vld [vmem:[#allocation209_spill] sm:$0xff]  ;;  %v18871_v57 = vld [vmem:[#allocation214_spill] sm:$0xff] }
 0x5e4   : > { %v14866_v11 = vpack.c.bf16 %v18782_v10, %v18781_v37  ;;  %v10283_v42 = vadd.f32 %v18784_v31, %v689_v19  ;;  %v10285_v50 = vadd.f32 %v18785_v4, %v689_v19  ;;  %v4647_v58 = vmax.f32 %v10344_v29, 0.0  ;;  %v18797_v29 = vld [vmem:[#allocation226_spill] sm:$0xff]  ;;  %v18799_v19 = vld [vmem:[#allocation241_spill] sm:$0xff]  ;;  %v18804_v4 = vld [vmem:[#allocation244_spill] sm:$0xff] }
 0x5e5   : > { %5504 = vmatmul.mubr.f32.gmra.mrb[148].mxu1 %v18783_v22  ;;  %v4648_v21 = vmax.f32 %v10346_v30, 0.0  ;;  %v18787_v48 = vand.u32 4294901760, %v18786_v13  ;;  %v10279_v0 = vadd.f32 %v18788_v60, %v684_v8  ;;  %v10281_v52 = vadd.f32 %v18789_v53, %v684_v8  ;;  %v18802_v22 = vld [vmem:[#allocation235_spill] sm:$0xff] }
 0x5e6   : > { %v10284_v40 = vadd.f32 %v10283_v42, %v18790_v32  ;;  %v10286_v6 = vadd.f32 %v10285_v50, %v18791_v20  ;;  %v5542_v54 = vand.u32 4294901760, %v18792_v3  ;;  %v4904_v34 = vadd.f32 %v4650_v5, %v4649_v12  ;;  %4860 = vadd.xlane.f32.xlu0 %v14521_v18  ;;  %v18800_v12 = vld [vmem:[#allocation227_spill] sm:$0xff] }
 0x5e7   : > { %5513 = vmatprep.mubr.f32.mxu1 %v18787_v48  ;;  %v10280_v1 = vadd.f32 %v10279_v0, %v18793_v26  ;;  %v10282_v38 = vadd.f32 %v10281_v52, %v18794_v61  ;;  %v18796_v15 = vand.u32 4294901760, %v18795_v17  ;;  %v4901_v41 = vadd.f32 %v4648_v21, %v4647_v58  ;;  %4863 = vadd.xlane.f32.xlu1 %v14691_v24  ;;  %v18805_v21 = vld [vmem:[#allocation229_spill] sm:$0xff]  ;;  %v18814_v3 = vld [vmem:[#allocation191_spill] sm:$0xff]  ;;  %v18822_v61 = vld [vmem:[#allocation208_spill] sm:$0xff] }
 0x5e8   : > { %v4617_v47 = vmax.f32 %v10284_v40, 0.0  ;;  %v4618_v35 = vmax.f32 %v10286_v6, 0.0  ;;  %v18798_v30 = vand.u32 4294901760, %v18797_v29  ;;  %v17647_v8 = vand.u32 4294901760, %v18799_v19  ;;  %v18810_v40 = vld [vmem:[#allocation27_spill] sm:$0xff]  ;;  %v18812_v6 = vld [vmem:[#allocation33_spill] sm:$0xff] }
 0x5e9   : > { %v5547_v9 = vsub.f32 %v18795_v17, %v18796_v15  ;;  %v14890_v14 = vsub.f32 %v14435_v62, %v14458_v7  ;;  %v4615_v37 = vmax.f32 %v10280_v1, 0.0  ;;  %v4616_v10 = vmax.f32 %v10282_v38, 0.0  ;;  %v18821_v1 = vld [vmem:[#allocation216_spill] sm:$0xff]  ;;  %v18824_v15 = vld [vmem:[#allocation87_spill] sm:$0xff] }
 0x5ea   : > { %5519 = vmatmul.mubr.f32.gmra.mrb[150].mxu1 %v18798_v30  ;;  %v18801_v5 = vand.u32 4294901760, %v18800_v12  ;;  %v18803_v31 = vand.u32 4294901760, %v18802_v22  ;;  %v17646_v50 = vand.u32 4294901760, %v18804_v4  ;;  %v4856_v18 = vadd.f32 %v4618_v35, %v4617_v47  ;;  %4869 = vadd.xlane.f32.xlu0 %v14721_v45  ;;  %v18829_v35 = vld [vmem:[#allocation224_spill] sm:$0xff]  ;;  %v18831_v30 = vld [vmem:[#allocation106_spill] sm:$0xff]  ;;  %v18835_v12 = vld [vmem:[#allocation107_spill] sm:$0xff] }
 0x5eb   : > { %v4853_v58 = vadd.f32 %v4616_v10, %v4615_v37  ;;  %v18806_v13 = vand.u32 4294901760, %v18805_v21  ;;  %v5548_v62 = vand.u32 4294901760, %v5547_v9  ;;  %v5562_v48 = vsub.f32 %v18799_v19, %v17647_v8  ;;  %4866 = vadd.xlane.f32.xlu1 %v14747_v43  ;;  %v18807_v43 = vld [vmem:[#allocation5_spill] sm:$0xff]  ;;  %v18826_v9 = vld [vmem:[#allocation95_spill] sm:$0xff]  ;;  %v18832_v37 = vld [vmem:[#allocation90_spill] sm:$0xff] }
 0x5ec   : > { %5528 = vmatprep.mubr.f32.mxu1 %v18801_v5  ;;  %v5556_v42 = vsub.f32 %v18802_v22, %v18803_v31  ;;  %v17645_v24 = vand.u32 4294901760, %v14890_v14  ;;  %v5571_v0 = vsub.f32 %v18804_v4, %v17646_v50  ;;  %v18823_v38 = vpack.c.bf16 %v18821_v1, %v18822_v61  ;;  %v18833_v10 = vld [vmem:[#allocation96_spill] sm:$0xff]  ;;  %v18837_v5 = vld [vmem:[#allocation233_spill] sm:$0xff]  ;;  %v18840_v21 = vld [vmem:[#allocation103_spill] sm:$0xff] }
 0x5ed   : > { %v5563_v53 = vand.u32 4294901760, %v5562_v48  ;;  %v18830_v29 = vpack.c.bf16 %v18829_v35, %v14300_v33  ;;  %v18841_v33 = vld [vmem:[#allocation102_spill] sm:$0xff]  ;;  %v18863_v1 = vld [vmem:[#allocation172_spill] sm:$0xff]  ;;  %v18864_v61 = vld [vmem:[#allocation181_spill] sm:$0xff] }
 0x5ee   : > { %5534 = vmatmul.mubr.f32.gmra.mrb[152].mxu1 %v18806_v13  ;;  %v5557_v60 = vand.u32 4294901760, %v5556_v42  ;;  %4875 = vadd.xlane.f32.xlu0 %v14753_v2  ;;  %v5577_v45 = vsub.f32 %v14890_v14, %v17645_v24  ;;  %v5572_v52 = vand.u32 4294901760, %v5571_v0  ;;  %v18808_v2 = vld [vmem:[#allocation24_spill] sm:$0xff]  ;;  %v18839_v42 = vld [vmem:[#allocation125_spill] sm:$0xff]  ;;  %v18842_v13 = vpack.c.bf16 %v18840_v21, %v18841_v33  ;;  %v18848_v0 = vld [vmem:[#allocation151_spill] sm:$0xff] }
 0x5ef   : > { %5543 = vmatprep.mubr.f32.mxu1 %v5542_v54  ;;  %4872 = vadd.xlane.f32.xlu1 %v14771_v59  ;;  %v18809_v59 = vld [vmem:[#allocation26_spill] sm:$0xff]  ;;  %v18818_v54 = vld [vmem:[#allocation88_spill] sm:$0xff]  ;;  %v4685_v24 = vld [vmem:[#allocation2 + $0x110] sm:$0xff] }
 0x5f0   : > { %v5578_v32 = vand.u32 4294901760, %v5577_v45  ;;  %v18811_v20 = vpack.c.bf16 %v18809_v59, %v18810_v40  ;;  %v18855_v40 = vld [vmem:[#allocation139_spill] sm:$0xff]  ;;  %v18875_v35 = vld [vmem:[#allocation236_spill] sm:$0xff]  ;;  %v18894_v50 = vld [vmem:[#allocation237_spill] sm:$0xff] }
 0x5f2   : > { %5549 = vmatmul.mubr.f32.gmra.mrb[154].mxu1 %v5548_v62  ;;  %4881 = vadd.xlane.f32.xlu0 %v14779_v39  ;;  %v18813_v39 = vld [vmem:[#allocation196_spill] sm:$0xff]  ;;  %v18845_v62 = vld [vmem:[#allocation243_spill] sm:$0xff] }
 0x5f3   : > { %5558 = vmatprep.mubr.f32.mxu1 %v5557_v60  ;;  %4878 = vadd.xlane.f32.xlu1 %v14797_v56  ;;  %v18815_v56 = vpack.c.bf16 %v18813_v39, %v18814_v3  ;;  %v18847_v60 = vld [vmem:[#allocation129_spill] sm:$0xff]  ;;  %v18857_v39 = vld [vmem:[#allocation186_spill] sm:$0xff] }
 0x5f6   : > { %5564 = vmatmul.mubr.f32.gmra.mrb[156].mxu1 %v5563_v53  ;;  %4887 = vadd.xlane.f32.xlu0 %v14801_v28  ;;  %v18816_v28 = vld [vmem:[#allocation35_spill] sm:$0xff]  ;;  %v18849_v53 = vld [vmem:[#allocation153_spill] sm:$0xff] }
 0x5f7   : > { %5573 = vmatprep.mubr.f32.mxu1 %v5572_v52  ;;  %4884 = vadd.xlane.f32.xlu1 %v14803_v44  ;;  %v18817_v44 = vld [vmem:[#allocation38_spill] sm:$0xff]  ;;  %v18850_v45 = vpack.c.bf16 %v18848_v0, %v18849_v53  ;;  %v18851_v52 = vld [vmem:[#allocation131_spill] sm:$0xff] }
 0x5f8   : > { %v18819_v26 = vpack.c.bf16 %v18817_v44, %v18818_v54  ;;  %v18860_v44 = vld [vmem:[#allocation158_spill] sm:$0xff]  ;;  %v18861_v54 = vld [vmem:[#allocation161_spill] sm:$0xff]  ;;  %v18885_v0 = vld [vmem:[#allocation215_spill] sm:$0xff] }
 0x5fa   : > { %5579 = vmatmul.mubr.f32.gmra.mrb[158].mxu1 %v5578_v32  ;;  %4893 = vadd.xlane.f32.xlu0 %v14818_v49  ;;  %v18820_v49 = vld [vmem:[#allocation41_spill] sm:$0xff]  ;;  %v18853_v32 = vld [vmem:[#allocation248_spill] sm:$0xff] }
 0x5fb   : > { %5809 = vmatprep.mubr.f32.mxu1 %v18807_v43  ;;  %4890 = vadd.xlane.f32.xlu1 %v14822_v16  ;;  %v18825_v16 = vld [vmem:[#allocation89_spill] sm:$0xff] }
 0x5fc   : > { %v18827_v47 = vpack.c.bf16 %v18825_v16, %v18826_v9  ;;  %v18866_v16 = vld [vmem:[#allocation193_spill] sm:$0xff]  ;;  %v18873_v9 = vld [vmem:[#allocation230_spill] sm:$0xff] }
 0x5fe   : > { %5811 = vmatmul.mubr.f32.vlgmr.msra.gmra.mrb[160].mxu1 %v18808_v2  ;;  %4899 = vadd.xlane.f32.xlu0 %v14834_v36  ;;  %v18828_v36 = vld [vmem:[#allocation104_spill] sm:$0xff] }
 0x5ff   : > { %9776 = vmatpush3.bf16.msra.mxu1 %v18811_v20  ;;  %5816 = vmatprep.mubr.f32.mxu1 %v18812_v6  ;;  %v18856_v20 = vld [vmem:[#allocation187_spill] sm:$0xff] }
 0x600   : > { %9778 = vmatprep.subr.bf16.mxu1 %v18815_v56  ;;  %4896 = vadd.xlane.f32.xlu1 %v14840_v27  ;;  %v18834_v27 = vpack.c.bf16 %v18832_v37, %v18833_v10  ;;  %v18858_v3 = vpack.c.bf16 %v18856_v20, %v18857_v39  ;;  %v18859_v56 = vld [vmem:[#allocation152_spill] sm:$0xff]  ;;  %v18877_v37 = vld [vmem:[#allocation3_spill] sm:$0xff]  ;;  %v18878_v10 = vld [vmem:[#allocation30_spill] sm:$0xff] }
 0x601   : > { %v18889_v20 = vld [vmem:[#allocation223_spill] sm:$0xff]  ;;  %v4686_v39 = vld [vmem:[#allocation2 + $0x118] sm:$0xff] }
 0x602   : > { %5818 = vmatmul.mubr.f32.gmra.mrb[162].mxu1 %v18816_v28  ;;  %4905 = vadd.xlane.f32.xlu0 %v4904_v34  ;;  %v18836_v34 = vld [vmem:[#allocation238_spill] sm:$0xff] }
 0x603   : > { %9780 = vmatpush3.bf16.msra.mxu1 %v18819_v26  ;;  %5823 = vmatprep.mubr.f32.mxu1 %v18820_v49  ;;  %v18838_v31 = vpack.c.bf16 %v18836_v34, %v18837_v5  ;;  %v18862_v26 = vld [vmem:[#allocation179_spill] sm:$0xff]  ;;  %v18879_v34 = vld [vmem:[#allocation36_spill] sm:$0xff]  ;;  %v18880_v5 = vld [vmem:[#allocation86_spill] sm:$0xff] }
 0x604   : > { %9782 = vmatprep.subr.bf16.mxu1 %v18823_v38  ;;  %4902 = vadd.xlane.f32.xlu1 %v4901_v41  ;;  %v18843_v41 = vld [vmem:[#allocation126_spill] sm:$0xff]  ;;  %v18865_v38 = vld [vmem:[#allocation185_spill] sm:$0xff] }
 0x606   : > { %5825 = vmatmul.mubr.f32.gmra.mrb[164].mxu1 %v18824_v15  ;;  %4857 = vadd.xlane.f32.xlu0 %v4856_v18  ;;  %v18844_v18 = vld [vmem:[#allocation247_spill] sm:$0xff] }
 0x607   : > { %9784 = vmatpush3.bf16.msra.mxu1 %v18827_v47  ;;  %5830 = vmatprep.mubr.f32.mxu1 %v18828_v36  ;;  %v18846_v48 = vpack.c.bf16 %v18844_v18, %v18845_v62  ;;  %v18874_v47 = vld [vmem:[#allocation231_spill] sm:$0xff]  ;;  %v4684_v18 = vld [vmem:[#allocation2 + $0x108] sm:$0xff]  ;;  %v4702_v36 = vld [vmem:[#allocation2 + $0x198] sm:$0xff] }
 0x608   : > { %9786 = vmatprep.subr.bf16.mxu1 %v18830_v29  ;;  %4854 = vadd.xlane.f32.xlu1 %v4853_v58  ;;  %v18852_v58 = vld [vmem:[#allocation251_spill] sm:$0xff]  ;;  %v18883_v62 = vld [vmem:[#allocation124_spill] sm:$0xff] }
 0x609   : > { %v18854_v59 = vpack.c.bf16 %v18852_v58, %v18853_v32  ;;  %v18876_v29 = vld [vmem:[#allocation239_spill] sm:$0xff]  ;;  %v18886_v58 = vld [vmem:[#allocation98_spill] sm:$0xff]  ;;  %v18887_v32 = vld [vmem:[#allocation132_spill] sm:$0xff] }
 0x60a   : > { %5832 = vmatmul.mubr.f32.gmra.mrb[166].mxu1 %v18831_v30 }
 0x60b   : > { %9788 = vmatpush3.bf16.msra.mxu1 %v18834_v27  ;;  %5837 = vmatprep.mubr.f32.mxu1 %v18835_v12  ;;  %v4683_v27 = vld [vmem:[#allocation2 + $0x100] sm:$0xff] }
 0x60c   : > { %9790 = vmatprep.subr.bf16.mxu1 %v18838_v31  ;;  %v18881_v31 = vld [vmem:[#allocation195_spill] sm:$0xff] }
 0x60e   : > { %5839 = vmatmul.mubr.f32.gmra.mrb[168].mxu1 %v18839_v42 }
 0x60f   : > { %9792 = vmatpush3.bf16.msra.mxu1 %v18842_v13  ;;  %5844 = vmatprep.mubr.f32.mxu1 %v18843_v41  ;;  %v18882_v13 = vld [vmem:[#allocation91_spill] sm:$0xff]  ;;  %v4693_v41 = vld [vmem:[#allocation2 + $0x150] sm:$0xff] }
 0x610   : > { %9794 = vmatprep.subr.bf16.mxu1 %v18846_v48  ;;  %v18884_v48 = vld [vmem:[#allocation97_spill] sm:$0xff] }
 0x612   : > { %5846 = vmatmul.mubr.f32.gmra.mrb[170].mxu1 %v18847_v60 }
 0x613   : > { %9796 = vmatpush3.bf16.msra.mxu1 %v18850_v45  ;;  %5851 = vmatprep.mubr.f32.mxu1 %v18851_v52 }
 0x614   : > { %9798 = vmatprep.subr.bf16.mxu1 %v18854_v59  ;;  %v18888_v59 = vld [vmem:[#allocation112_spill] sm:$0xff] }
 0x616   : > { %5853 = vmatmul.mubr.f32.gmra.mrb[172].mxu1 %v18855_v40 }
 0x617   : > { %9800 = vmatpush3.bf16.msra.mxu1 %v18858_v3  ;;  %5858 = vmatprep.mubr.f32.mxu1 %v18859_v56  ;;  %v18890_v3 = vld [vmem:[#allocation116_spill] sm:$0xff]  ;;  %v18911_v56 = vld [vmem:[#allocation253_spill] sm:$0xff] }
 0x618   : > { %9802 = vmatprep.subr.bf16.mxu1 %v9801_v63  ;;  %v18869_v63 = vld [vmem:[#allocation205_spill] sm:$0xff] }
 0x61a   : > { %5860 = vmatmul.mubr.f32.gmra.mrb[174].mxu1 %v18860_v44 }
 0x61b   : > { %9804 = vmatpush3.bf16.msra.mxu1 %v9803_v51  ;;  %5865 = vmatprep.mubr.f32.mxu1 %v18861_v54  ;;  %v18872_v51 = vld [vmem:[#allocation222_spill] sm:$0xff] }
 0x61c   : > { %9806 = vmatprep.subr.bf16.mxu1 %v18862_v26 }
 0x61e   : > { %5867 = vmatmul.mubr.f32.gmra.mrb[176].mxu1 %v18863_v1  ;;  %v18906_v1 = vld [vmem:[#allocation149_spill] sm:$0xff] }
 0x61f   : > { %5872 = vmatprep.mubr.f32.mxu1 %v18864_v61 }
 0x622   : > { %5874 = vmatmul.mubr.f32.gmra.mrb[178].mxu1 %v18865_v38 }
 0x623   : > { %5879 = vmatprep.mubr.f32.mxu1 %v18866_v16 }
 0x626   : > { %5881 = vmatmul.mubr.f32.gmra.mrb[180].mxu1 %v18867_v46 }
 0x627   : > { %5886 = vmatprep.mubr.f32.mxu1 %v18868_v55  ;;  %v18905_v55 = vld [vmem:[#allocation250_spill] sm:$0xff] }
 0x62a   : > { %5888 = vmatmul.mubr.f32.gmra.mrb[182].mxu1 %v18869_v63 }
 0x62b   : > { %5893 = vmatprep.mubr.f32.mxu1 %v18870_v25  ;;  %v18903_v25 = vld [vmem:[#allocation145_spill] sm:$0xff] }
 0x62e   : > { %5895 = vmatmul.mubr.f32.gmra.mrb[184].mxu1 %v18871_v57 }
 0x62f   : > { %5900 = vmatprep.mubr.f32.mxu1 %v18872_v51  ;;  %v18897_v51 = vld [vmem:[#allocation134_spill] sm:$0xff] }
 0x632   : > { %5902 = vmatmul.mubr.f32.gmra.mrb[186].mxu1 %v18873_v9  ;;  %v18896_v9 = vld [vmem:[#allocation169_spill] sm:$0xff] }
 0x633   : > { %5907 = vmatprep.mubr.f32.mxu1 %v18874_v47 }
 0x635   : > { %v4813_v21 = vpop.xlane.xlu0 %4812 }
 0x636   : > { %5909 = vmatmul.mubr.f32.gmra.mrb[188].mxu1 %v18875_v35  ;;  %v4939_v33 = vadd.f32 %v4813_v21, %v4683_v27  ;;  %v18891_v21 = vld [vmem:[#allocation162_spill] sm:$0xff] }
 0x637   : > { %5914 = vmatprep.mubr.f32.mxu1 %v18876_v29  ;;  %v18895_v29 = vld [vmem:[#allocation133_spill] sm:$0xff] }
 0x638   : > { %5004 = vst.msk [vmem:[#allocation2 + $0x100] sm:$0xff] %vm257_vm2, %v4939_v33  ;;  %v18892_v33 = vld [vmem:[#allocation117_spill] sm:$0xff] }
 0x639   : > { %v4816_v53 = vpop.xlane.xlu0 %4815 }
 0x63a   : > { %5916 = vmatmul.mubr.f32.gmra.mrb[190].mxu1 %v14458_v7  ;;  %v4940_v45 = vadd.f32 %v4816_v53, %v4684_v18 }
 0x63b   : > { %6051 = vmatprep.mubr.f32.mxu1 %v18877_v37 }
 0x63c   : > { %5005 = vst.msk [vmem:[#allocation2 + $0x108] sm:$0xff] %vm257_vm2, %v4940_v45 }
 0x63e   : > { %6054 = vmatmul.mubr.f32.vlgmr.msra.gmra.mrb[192].mxu1 %v18878_v10 }
 0x63f   : > { %9808 = vmatpush3.bf16.msra.mxu1 %v18879_v34  ;;  %6060 = vmatprep.mubr.f32.mxu1 %v18880_v5  ;;  %v5071_v27 = vld [vmem:[#allocation2 + $0x100] sm:$0xff] }
 0x640   : > { %9810 = vmatprep.subr.bf16.mxu1 %v18881_v31  ;;  %v4822_v18 = vpop.xlane.xlu0 %4821  ;;  %v15019_v53 = vmul.f32 0.00390625, %v5071_v27  ;;  %v18899_v27 = vld [vmem:[#allocation246_spill] sm:$0xff] }
 0x641   : > { %v4942_v8 = vadd.f32 %v4822_v18, %v4686_v39  ;;  %v4819_v45 = vpop.xlane.xlu1 %4818  ;;  %v4688_v39 = vld [vmem:[#allocation2 + $0x128] sm:$0xff] }
 0x642   : > { %6063 = vmatmul.mubr.f32.gmra.mrb[194].mxu1 %v18882_v13  ;;  %18893 = vst [vmem:[#allocation62_spill] sm:$0xff] %v15019_v53  ;;  %v17650_v7 = vand.u32 4294901760, %v15019_v53  ;;  %v4941_v35 = vadd.f32 %v4819_v45, %v4685_v24  ;;  %v18902_v45 = vld [vmem:[#allocation175_spill] sm:$0xff] }
 0x643   : > { %9812 = vmatpush3.bf16.msra.mxu1 %v18883_v62  ;;  %6069 = vmatprep.mubr.f32.mxu1 %v18884_v48  ;;  %5007 = vst.msk [vmem:[#allocation2 + $0x118] sm:$0xff] %vm257_vm2, %v4942_v8  ;;  %v5072_v47 = vld [vmem:[#allocation2 + $0x108] sm:$0xff]  ;;  %v18901_v8 = vld [vmem:[#allocation138_spill] sm:$0xff] }
 0x644   : > { %9814 = vmatprep.subr.bf16.mxu1 %v18885_v0  ;;  %v15027_v57 = vmul.f32 0.00390625, %v5072_v47  ;;  %5006 = vst.msk [vmem:[#allocation2 + $0x110] sm:$0xff] %vm257_vm2, %v4941_v35  ;;  %v15035_v24 = vsub.f32 %v15019_v53, %v17650_v7  ;;  %v4687_v47 = vld [vmem:[#allocation2 + $0x120] sm:$0xff] }
 0x646   : > { %6072 = vmatmul.mubr.f32.gmra.mrb[196].mxu1 %v18886_v58  ;;  %18898 = vst [vmem:[#allocation54_spill] sm:$0xff] %v15027_v57  ;;  %v17652_v18 = vand.u32 4294901760, %v15027_v57  ;;  %18900 = vst [vmem:[#allocation56_spill] sm:$0xff] %v15035_v24  ;;  %v17656_v7 = vand.u32 4294901760, %v15035_v24 }
 0x647   : > { %9816 = vmatpush3.bf16.msra.mxu1 %v18887_v32  ;;  %6078 = vmatprep.mubr.f32.mxu1 %v18888_v59 }
 0x648   : > { %9818 = vmatprep.subr.bf16.mxu1 %v18889_v20  ;;  %v4828_v63 = vpop.xlane.xlu0 %4827  ;;  %v15043_v35 = vsub.f32 %v15027_v57, %v17652_v18  ;;  %v18908_v18 = vld [vmem:[#allocation212_spill] sm:$0xff] }
 0x649   : > { %v4944_v46 = vadd.f32 %v4828_v63, %v4688_v39  ;;  %v18909_v57 = vld [vmem:[#allocation160_spill] sm:$0xff] }
 0x64a   : > { %6081 = vmatmul.mubr.f32.gmra.mrb[198].mxu1 %v18890_v3  ;;  %18904 = vst [vmem:[#allocation110_spill] sm:$0xff] %v15043_v35  ;;  %v4825_v16 = vpop.xlane.xlu1 %4824  ;;  %v5074_v38 = vld [vmem:[#allocation2 + $0x118] sm:$0xff]  ;;  %v17657_v53 = vand.u32 4294901760, %v15043_v35 }
 0x64b   : > { %9820 = vmatpush3.bf16.msra.mxu1 %v18891_v21  ;;  %6087 = vmatprep.mubr.f32.mxu1 %v18892_v33  ;;  %v4943_v54 = vadd.f32 %v4825_v16, %v4687_v47  ;;  %5009 = vst.msk [vmem:[#allocation2 + $0x128] sm:$0xff] %vm257_vm2, %v4944_v46  ;;  %v15052_v44 = vmul.f32 0.00390625, %v5074_v38  ;;  %v5073_v63 = vld [vmem:[#allocation2 + $0x110] sm:$0xff]  ;;  %v4690_v46 = vld [vmem:[#allocation2 + $0x138] sm:$0xff]  ;;  %v18913_v47 = vld [vmem:[#allocation167_spill] sm:$0xff] }
 0x64c   : > { %9822 = vmatprep.subr.bf16.mxu1 %v18894_v50  ;;  %v15060_v39 = vpack.c.bf16 %v17657_v53, %v17656_v7  ;;  %v15064_v16 = vmul.f32 0.00390625, %v5073_v63  ;;  %v18915_v7 = vld [vmem:[#allocation60_spill] sm:$0xff]  ;;  %v18916_v53 = vld [vmem:[#allocation170_spill] sm:$0xff] }
 0x64d   : > { %18907 = vst [vmem:[#allocation115_spill] sm:$0xff] %v15052_v44  ;;  %5008 = vst.msk [vmem:[#allocation2 + $0x120] sm:$0xff] %vm257_vm2, %v4943_v54  ;;  %v17660_v38 = vand.u32 4294901760, %v15052_v44  ;;  %v18917_v63 = vld [vmem:[#allocation198_spill] sm:$0xff]  ;;  %v18939_v50 = vld [vmem:[#allocation220_spill] sm:$0xff] }
 0x64e   : > { %6090 = vmatmul.mubr.f32.gmra.mrb[200].mxu1 %v18895_v29  ;;  %18910 = vst [vmem:[#allocation101_spill] sm:$0xff] %v15060_v39  ;;  %18912 = vst [vmem:[#allocation105_spill] sm:$0xff] %v15064_v16  ;;  %v17662_v61 = vand.u32 4294901760, %v15064_v16  ;;  %v4689_v39 = vld [vmem:[#allocation2 + $0x130] sm:$0xff] }
 0x64f   : > { %9824 = vmatpush3.bf16.msra.mxu1 %v18896_v9  ;;  %6096 = vmatprep.mubr.f32.mxu1 %v18897_v51  ;;  %v15072_v24 = vsub.f32 %v15052_v44, %v17660_v38  ;;  %v18919_v38 = vld [vmem:[#allocation177_spill] sm:$0xff] }
 0x650   : > { %9826 = vmatprep.subr.bf16.mxu1 %v18899_v27 }
 0x651   : > { %18914 = vst [vmem:[#allocation45_spill] sm:$0xff] %v15072_v24 }
 0x652   : > { %6099 = vmatmul.mubr.f32.gmra.mrb[202].mxu1 %v18901_v8  ;;  %v4834_v54 = vpop.xlane.xlu0 %4833  ;;  %v5076_v40 = vld [vmem:[#allocation2 + $0x128] sm:$0xff] }
 0x653   : > { %9828 = vmatpush3.bf16.msra.mxu1 %v18902_v45  ;;  %6105 = vmatprep.mubr.f32.mxu1 %v18903_v25  ;;  %v4946_v35 = vadd.f32 %v4834_v54, %v4690_v46 }
 0x654   : > { %9830 = vmatprep.subr.bf16.mxu1 %v18905_v55  ;;  %v5075_v46 = vld [vmem:[#allocation2 + $0x120] sm:$0xff] }
 0x655   : > { %5011 = vst.msk [vmem:[#allocation2 + $0x138] sm:$0xff] %vm257_vm2, %v4946_v35  ;;  %v18925_v35 = vld [vmem:[#allocation192_spill] sm:$0xff] }
 0x656   : > { %6108 = vmatmul.mubr.f32.gmra.mrb[204].mxu1 %v18906_v1 }
 0x657   : > { %9832 = vmatpush3.bf16.msra.mxu1 %v18908_v18  ;;  %6114 = vmatprep.mubr.f32.mxu1 %v18909_v57  ;;  %v4831_v18 = vpop.xlane.xlu1 %4830 }
 0x658   : > { %9834 = vmatprep.subr.bf16.mxu1 %v18911_v56  ;;  %v15080_v56 = vsub.f32 %v15064_v16, %v17662_v61  ;;  %v4945_v44 = vadd.f32 %v4831_v18, %v4689_v39  ;;  %v15092_v61 = vmul.f32 0.00390625, %v5075_v46  ;;  %v4692_v16 = vld [vmem:[#allocation2 + $0x148] sm:$0xff]  ;;  %v4691_v46 = vld [vmem:[#allocation2 + $0x140] sm:$0xff] }
 0x65a   : > { %6117 = vmatmul.mubr.f32.gmra.mrb[206].mxu1 %v18913_v47  ;;  %18918 = vst [vmem:[#allocation46_spill] sm:$0xff] %v15080_v56  ;;  %v17666_v52 = vand.u32 4294901760, %v15080_v56  ;;  %5010 = vst.msk [vmem:[#allocation2 + $0x130] sm:$0xff] %vm257_vm2, %v4945_v44  ;;  %v17671_v39 = vand.u32 4294901760, %v15092_v61  ;;  %v18927_v44 = vld [vmem:[#allocation199_spill] sm:$0xff]  ;;  %v18929_v56 = vld [vmem:[#allocation213_spill] sm:$0xff] }
 0x65b   : > { %9836 = vmatpush3.bf16.msra.mxu1 %v18915_v7  ;;  %6123 = vmatprep.mubr.f32.mxu1 %v18916_v53  ;;  %v15085_v7 = vmul.f32 0.00390625, %v5076_v40  ;;  %18922 = vst [vmem:[#allocation44_spill] sm:$0xff] %v15092_v61  ;;  %v18923_v40 = vand.u32 4294901760, %v15072_v24 }
 0x65c   : > { %9838 = vmatprep.subr.bf16.mxu1 %v18917_v63  ;;  %v18921_v63 = vld [vmem:[#allocation189_spill] sm:$0xff]  ;;  %v4840_v45 = vpop.xlane.xlu0 %4839  ;;  %v15112_v24 = vsub.f32 %v15092_v61, %v17671_v39 }
 0x65d   : > { %18920 = vst [vmem:[#allocation43_spill] sm:$0xff] %v15085_v7  ;;  %v17669_v55 = vand.u32 4294901760, %v15085_v7  ;;  %v15099_v18 = vpack.c.bf16 %v18923_v40, %v17666_v52  ;;  %v4948_v60 = vadd.f32 %v4840_v45, %v4692_v16  ;;  %v4837_v40 = vpop.xlane.xlu1 %4836  ;;  %v5078_v52 = vld [vmem:[#allocation2 + $0x138] sm:$0xff]  ;;  %v18931_v16 = vld [vmem:[#allocation217_spill] sm:$0xff] }
 0x65e   : > { %6126 = vmatmul.mubr.f32.gmra.mrb[208].mxu1 %v18919_v38  ;;  %18928 = vst [vmem:[#allocation59_spill] sm:$0xff] %v15112_v24  ;;  %v4947_v27 = vadd.f32 %v4837_v40, %v4691_v46  ;;  %v4694_v46 = vld [vmem:[#allocation2 + $0x158] sm:$0xff] }
 0x65f   : > { %6132 = vmatprep.mubr.f32.mxu1 %v18921_v63  ;;  %18924 = vst [vmem:[#allocation71_spill] sm:$0xff] %v15099_v18  ;;  %v15106_v54 = vsub.f32 %v15085_v7, %v17669_v55  ;;  %5013 = vst.msk [vmem:[#allocation2 + $0x148] sm:$0xff] %vm257_vm2, %v4948_v60  ;;  %v15117_v55 = vmul.f32 0.00390625, %v5078_v52  ;;  %v17675_v7 = vand.u32 4294901760, %v15112_v24  ;;  %v18935_v40 = vld [vmem:[#allocation218_spill] sm:$0xff] }
 0x660   : > { %5012 = vst.msk [vmem:[#allocation2 + $0x140] sm:$0xff] %vm257_vm2, %v4947_v27 }
 0x661   : > { %18926 = vst [vmem:[#allocation75_spill] sm:$0xff] %v15106_v54  ;;  %18930 = vst [vmem:[#allocation63_spill] sm:$0xff] %v15117_v55  ;;  %v5077_v39 = vld [vmem:[#allocation2 + $0x130] sm:$0xff]  ;;  %v17678_v18 = vand.u32 4294901760, %v15117_v55  ;;  %v18933_v60 = vand.u32 4294901760, %v15106_v54 }
 0x662   : > { %6135 = vmatmul.mubr.f32.gmra.mrb[210].mxu1 %v18925_v35  ;;  %v15124_v61 = vmul.f32 0.00390625, %v5077_v39  ;;  %v18937_v39 = vld [vmem:[#allocation219_spill] sm:$0xff] }
 0x663   : > { %6141 = vmatprep.mubr.f32.mxu1 %v18927_v44  ;;  %v15131_v52 = vpack.c.bf16 %v18933_v60, %v17675_v7  ;;  %v15138_v27 = vsub.f32 %v15117_v55, %v17678_v18 }
 0x664   : > { %18932 = vst [vmem:[#allocation12_spill] sm:$0xff] %v15124_v61  ;;  %v17680_v45 = vand.u32 4294901760, %v15124_v61 }
 0x665   : > { %18934 = vst [vmem:[#allocation14_spill] sm:$0xff] %v15131_v52  ;;  %18936 = vst [vmem:[#allocation9_spill] sm:$0xff] %v15138_v27  ;;  %v17685_v54 = vand.u32 4294901760, %v15138_v27 }
 0x666   : > { %6144 = vmatmul.mubr.f32.gmra.mrb[212].mxu1 %v18929_v56  ;;  %v15144_v60 = vsub.f32 %v15124_v61, %v17680_v45  ;;  %v5080_v52 = vld [vmem:[#allocation2 + $0x148] sm:$0xff]  ;;  %v4695_v61 = vld [vmem:[#allocation2 + $0x160] sm:$0xff] }
 0x667   : > { %6150 = vmatprep.mubr.f32.mxu1 %v18931_v16  ;;  %v4846_v9 = vpop.xlane.xlu0 %4845  ;;  %v4843_v42 = vpop.xlane.xlu1 %4842  ;;  %v15149_v18 = vmul.f32 0.00390625, %v5080_v52  ;;  %v5079_v45 = vld [vmem:[#allocation2 + $0x140] sm:$0xff]  ;;  %v4696_v52 = vld [vmem:[#allocation2 + $0x168] sm:$0xff] }
 0x668   : > { %v4950_v24 = vadd.f32 %v4846_v9, %v4694_v46  ;;  %18938 = vst [vmem:[#allocation11_spill] sm:$0xff] %v15144_v60  ;;  %v4949_v7 = vadd.f32 %v4843_v42, %v4693_v41  ;;  %v17684_v55 = vand.u32 4294901760, %v15144_v60  ;;  %v18941_v46 = vld [vmem:[#allocation228_spill] sm:$0xff]  ;;  %v15156_v42 = vmul.f32 0.00390625, %v5079_v45 }
 0x669   : > { %18940 = vst [vmem:[#allocation136_spill] sm:$0xff] %v15149_v18  ;;  %v17688_v41 = vand.u32 4294901760, %v15149_v18 }
 0x66a   : > { %6153 = vmatmul.mubr.f32.gmra.mrb[214].mxu1 %v18935_v40  ;;  %5015 = vst.msk [vmem:[#allocation2 + $0x158] sm:$0xff] %vm257_vm2, %v4950_v24  ;;  %5014 = vst.msk [vmem:[#allocation2 + $0x150] sm:$0xff] %vm257_vm2, %v4949_v7  ;;  %v15163_v24 = vpack.c.bf16 %v17685_v54, %v17684_v55  ;;  %v17690_v9 = vand.u32 4294901760, %v15156_v42 }
 0x66b   : > { %6159 = vmatprep.mubr.f32.mxu1 %v18937_v39  ;;  %18942 = vst [vmem:[#allocation141_spill] sm:$0xff] %v15156_v42  ;;  %v15170_v7 = vsub.f32 %v15149_v18, %v17688_v41  ;;  %v4700_v41 = vld [vmem:[#allocation2 + $0x188] sm:$0xff] }
 0x66c   : > { %18943 = vst [vmem:[#allocation127_spill] sm:$0xff] %v15163_v24  ;;  %v15176_v55 = vsub.f32 %v15156_v42, %v17690_v9  ;;  %v4699_v24 = vld [vmem:[#allocation2 + $0x180] sm:$0xff] }
 0x66d   : > { %18944 = vst [vmem:[#allocation130_spill] sm:$0xff] %v15170_v7 }
 0x66e   : > { %6162 = vmatmul.mubr.f32.gmra.mrb[216].mxu1 %v18939_v50  ;;  %18945 = vst [vmem:[#allocation93_spill] sm:$0xff] %v15176_v55 }
 0x66f   : > { %6168 = vmatprep.mubr.f32.mxu1 %v18941_v46  ;;  %v4852_v45 = vpop.xlane.xlu0 %4851 }
 0x670   : > { %v4849_v12 = vpop.xlane.xlu1 %4848  ;;  %v4952_v60 = vadd.f32 %v4852_v45, %v4696_v52  ;;  %v17692_v52 = vand.u32 4294901760, %v15176_v55 }
 0x671   : > { %v4951_v54 = vadd.f32 %v4849_v12, %v4695_v61  ;;  %v5082_v27 = vld [vmem:[#allocation2 + $0x158] sm:$0xff]  ;;  %v5081_v18 = vld [vmem:[#allocation2 + $0x150] sm:$0xff] }
 0x672   : > { %6171 = vmatmul.mubr.f32.gmra.mrb[218].mxu1 %v18795_v17  ;;  %5017 = vst.msk [vmem:[#allocation2 + $0x168] sm:$0xff] %vm257_vm2, %v4952_v60  ;;  %v15181_v30 = vmul.f32 0.00390625, %v5082_v27  ;;  %v15188_v61 = vmul.f32 0.00390625, %v5081_v18  ;;  %v18948_v27 = vand.u32 4294901760, %v15170_v7 }
 0x673   : > { %6177 = vmatprep.mubr.f32.mxu1 %v18802_v22  ;;  %5016 = vst.msk [vmem:[#allocation2 + $0x160] sm:$0xff] %vm257_vm2, %v4951_v54  ;;  %v4861_v12 = vpop.xlane.xlu0 %4860  ;;  %v4701_v54 = vld [vmem:[#allocation2 + $0x190] sm:$0xff] }
 0x674   : > { %18946 = vst [vmem:[#allocation68_spill] sm:$0xff] %v15181_v30  ;;  %18947 = vst [vmem:[#allocation70_spill] sm:$0xff] %v15188_v61  ;;  %v4864_v9 = vpop.xlane.xlu1 %4863  ;;  %v4955_v21 = vadd.f32 %v4861_v12, %v4699_v24  ;;  %v17695_v60 = vand.u32 4294901760, %v15181_v30  ;;  %v15195_v42 = vpack.c.bf16 %v18948_v27, %v17692_v52  ;;  %v17696_v45 = vand.u32 4294901760, %v15188_v61 }
 0x675   : > { %v4956_v20 = vadd.f32 %v4864_v9, %v4700_v41  ;;  %v18951_v24 = vand.u32 4294901760, %v18877_v37  ;;  %v18953_v37 = vand.u32 4294901760, %v18878_v10 }
 0x676   : > { %6180 = vmatmul.mubr.f32.gmra.mrb[220].mxu1 %v18799_v19  ;;  %18949 = vst [vmem:[#allocation128_spill] sm:$0xff] %v15195_v42  ;;  %5020 = vst.msk [vmem:[#allocation2 + $0x180] sm:$0xff] %vm257_vm2, %v4955_v21  ;;  %v15203_v18 = vsub.f32 %v15181_v30, %v17695_v60  ;;  %v15211_v9 = vsub.f32 %v15188_v61, %v17696_v45  ;;  %v4704_v42 = vld [vmem:[#allocation2 + $0x1a8] sm:$0xff] }
 0x677   : > { %6186 = vmatprep.mubr.f32.mxu1 %v18804_v4  ;;  %5021 = vst.msk [vmem:[#allocation2 + $0x188] sm:$0xff] %vm257_vm2, %v4956_v20  ;;  %v4870_v12 = vpop.xlane.xlu0 %4869 }
 0x678   : > { %18950 = vst [vmem:[#allocation108_spill] sm:$0xff] %v15203_v18  ;;  %18952 = vst [vmem:[#allocation64_spill] sm:$0xff] %v15211_v9  ;;  %v4867_v41 = vpop.xlane.xlu1 %4866  ;;  %v4958_v27 = vadd.f32 %v4870_v12, %v4702_v36  ;;  %v17702_v21 = vand.u32 4294901760, %v15203_v18  ;;  %v17703_v60 = vand.u32 4294901760, %v15211_v9  ;;  %v18955_v36 = vld [vmem:[#allocation114_spill] sm:$0xff] }
 0x679   : > { %v4957_v52 = vadd.f32 %v4867_v41, %v4701_v54  ;;  %v5084_v7 = vld [vmem:[#allocation2 + $0x168] sm:$0xff]  ;;  %v18956_v54 = vand.u32 4294901760, %v18880_v5  ;;  %v4710_v9 = vld [vmem:[#allocation2 + $0x1d8] sm:$0xff] }
 0x67a   : > { %6189 = vmatmul.mubr.f32.gmra.mrb[222].mxu1 %v14890_v14  ;;  %5023 = vst.msk [vmem:[#allocation2 + $0x198] sm:$0xff] %vm257_vm2, %v4958_v27  ;;  %v5083_v45 = vld [vmem:[#allocation2 + $0x160] sm:$0xff]  ;;  %v15220_v55 = vmul.f32 0.00390625, %v5084_v7  ;;  %v15232_v10 = vpack.c.bf16 %v17702_v21, %v17703_v60  ;;  %v18959_v27 = vld [vmem:[#allocation206_spill] sm:$0xff] }
 0x67b   : > { %6293 = vmatprep.mubr.f32.mxu1 %v18951_v24  ;;  %v4703_v24 = vld [vmem:[#allocation2 + $0x1a0] sm:$0xff]  ;;  %5022 = vst.msk [vmem:[#allocation2 + $0x190] sm:$0xff] %vm257_vm2, %v4957_v52  ;;  %v4876_v12 = vpop.xlane.xlu0 %4875  ;;  %v15226_v41 = vmul.f32 0.00390625, %v5083_v45  ;;  %v4706_v52 = vld [vmem:[#allocation2 + $0x1b8] sm:$0xff]  ;;  %v18960_v45 = vand.u32 4294901760, %v18882_v13 }
 0x67c   : > { %18954 = vst [vmem:[#allocation66_spill] sm:$0xff] %v15220_v55  ;;  %18958 = vst [vmem:[#allocation49_spill] sm:$0xff] %v15232_v10  ;;  %v4873_v7 = vpop.xlane.xlu1 %4872 }
 0x67d   : > { %18957 = vst [vmem:[#allocation42_spill] sm:$0xff] %v15226_v41  ;;  %v4959_v20 = vadd.f32 %v4873_v7, %v4703_v24  ;;  %v5087_v30 = vld [vmem:[#allocation2 + $0x180] sm:$0xff]  ;;  %v17705_v5 = vand.u32 4294901760, %v15226_v41  ;;  %v18963_v24 = vand.u32 4294901760, %v18884_v48  ;;  %v18965_v7 = vld [vmem:[#allocation221_spill] sm:$0xff] }
 0x67e   : > { %6297 = vmatmul.mubr.f32.vlgmr.msra.gmra.mrb[224].mxu1 %v18953_v37  ;;  %v4960_v37 = vadd.f32 %v4876_v12, %v4704_v42  ;;  %v5088_v18 = vld [vmem:[#allocation2 + $0x188] sm:$0xff]  ;;  %v15240_v21 = vmul.f32 0.00390625, %v5087_v30  ;;  %v18962_v12 = vld [vmem:[#allocation119_spill] sm:$0xff] }
 0x67f   : > { %9840 = vmatpush3.bf16.msra.mxu1 %v18955_v36  ;;  %6304 = vmatprep.mubr.f32.mxu1 %v18956_v54  ;;  %v17704_v36 = vand.u32 4294901760, %v15220_v55  ;;  %v4705_v54 = vld [vmem:[#allocation2 + $0x1b0] sm:$0xff]  ;;  %5024 = vst.msk [vmem:[#allocation2 + $0x1a0] sm:$0xff] %vm257_vm2, %v4959_v20  ;;  %v4882_v13 = vpop.xlane.xlu0 %4881  ;;  %v15256_v30 = vsub.f32 %v15226_v41, %v17705_v5  ;;  %v4707_v5 = vld [vmem:[#allocation2 + $0x1c0] sm:$0xff] }
 0x680   : > { %9842 = vmatprep.subr.bf16.mxu1 %v18959_v27  ;;  %5025 = vst.msk [vmem:[#allocation2 + $0x1a8] sm:$0xff] %vm257_vm2, %v4960_v37  ;;  %v15251_v27 = vmul.f32 0.00390625, %v5088_v18  ;;  %v4879_v37 = vpop.xlane.xlu1 %4878  ;;  %v17706_v60 = vand.u32 4294901760, %v15240_v21  ;;  %v18970_v18 = vld [vmem:[#allocation232_spill] sm:$0xff] }
 0x681   : > { %v15245_v42 = vsub.f32 %v15220_v55, %v17704_v36  ;;  %18964 = vst [vmem:[#allocation39_spill] sm:$0xff] %v15256_v30  ;;  %v4708_v36 = vld [vmem:[#allocation2 + $0x1c8] sm:$0xff]  ;;  %v5090_v48 = vld [vmem:[#allocation2 + $0x198] sm:$0xff] }
 0x682   : > { %6308 = vmatmul.mubr.f32.gmra.mrb[226].mxu1 %v18960_v45  ;;  %v4962_v45 = vadd.f32 %v4882_v13, %v4706_v52  ;;  %v17709_v20 = vand.u32 4294901760, %v15251_v27  ;;  %v15269_v52 = vsub.f32 %v15240_v21, %v17706_v60  ;;  %v5089_v13 = vld [vmem:[#allocation2 + $0x190] sm:$0xff] }
 0x683   : > { %18961 = vst [vmem:[#allocation83_spill] sm:$0xff] %v15245_v42  ;;  %9844 = vmatpush3.bf16.msra.mxu1 %v18962_v12  ;;  %6315 = vmatprep.mubr.f32.mxu1 %v18963_v24  ;;  %v4961_v12 = vadd.f32 %v4879_v37, %v4705_v54  ;;  %v18966_v24 = vand.u32 4294901760, %v18886_v58  ;;  %v15271_v54 = vmul.f32 0.00390625, %v5090_v48  ;;  %v18968_v37 = vand.u32 4294901760, %v18888_v59  ;;  %v4888_v58 = vpop.xlane.xlu0 %4887 }
 0x684   : > { %9846 = vmatprep.subr.bf16.mxu1 %v18965_v7  ;;  %5027 = vst.msk [vmem:[#allocation2 + $0x1b8] sm:$0xff] %vm257_vm2, %v4962_v45  ;;  %v18967_v7 = vld [vmem:[#allocation123_spill] sm:$0xff]  ;;  %v15280_v45 = vsub.f32 %v15251_v27, %v17709_v20  ;;  %v4885_v60 = vpop.xlane.xlu1 %4884  ;;  %v4964_v48 = vadd.f32 %v4888_v58, %v4708_v36  ;;  %v18971_v59 = vand.u32 4294901760, %v18890_v3  ;;  %v18973_v36 = vand.u32 4294901760, %v18892_v33  ;;  %v4712_v3 = vld [vmem:[#allocation2 + $0x1e8] sm:$0xff] }
 0x685   : > { %5026 = vst.msk [vmem:[#allocation2 + $0x1b0] sm:$0xff] %vm257_vm2, %v4961_v12  ;;  %v4963_v10 = vadd.f32 %v4885_v60, %v4707_v5  ;;  %v17710_v12 = vand.u32 4294901760, %v15271_v54  ;;  %v4709_v60 = vld [vmem:[#allocation2 + $0x1d0] sm:$0xff]  ;;  %v18977_v33 = vand.u32 4294901760, %v18895_v29 }
 0x686   : > { %6319 = vmatmul.mubr.f32.gmra.mrb[228].mxu1 %v18966_v24  ;;  %18969 = vst [vmem:[#allocation111_spill] sm:$0xff] %v15280_v45  ;;  %v15282_v24 = vmul.f32 0.00390625, %v5089_v13  ;;  %5029 = vst.msk [vmem:[#allocation2 + $0x1c8] sm:$0xff] %vm257_vm2, %v4964_v48  ;;  %v18972_v13 = vld [vmem:[#allocation201_spill] sm:$0xff]  ;;  %v8781_v55 = vpop.f32.mrb[128].mxu1 }
 0x687   : > { %9848 = vmatpush3.bf16.msra.mxu1 %v18967_v7  ;;  %6326 = vmatprep.mubr.f32.mxu1 %v18968_v37  ;;  %5028 = vst.msk [vmem:[#allocation2 + $0x1c0] sm:$0xff] %vm257_vm2, %v4963_v10  ;;  %v4894_v5 = vpop.xlane.xlu0 %4893 }
 0x688   : > { %9850 = vmatprep.subr.bf16.mxu1 %v18970_v18  ;;  %v17711_v7 = vand.u32 4294901760, %v15282_v24  ;;  %v18974_v18 = vld [vmem:[#allocation242_spill] sm:$0xff]  ;;  %v4966_v58 = vadd.f32 %v4894_v5, %v4710_v9  ;;  %v4891_v20 = vpop.xlane.xlu1 %4890  ;;  %v18979_v9 = vand.u32 4294901760, %v18897_v51  ;;  %v8782_v51 = vpop.f32.mrb[129].mxu1 }
 0x689   : > { %v4965_v10 = vadd.f32 %v4891_v20, %v4709_v60  ;;  %v18981_v20 = vand.u32 4294901760, %v18901_v8  ;;  %v5091_v8 = vld [vmem:[#allocation2 + $0x1a0] sm:$0xff] }
 0x68a   : > { %6330 = vmatmul.mubr.f32.gmra.mrb[230].mxu1 %v18971_v59  ;;  %v15300_v48 = vsub.f32 %v15282_v24, %v17711_v7  ;;  %v15305_v59 = vsub.f32 %v15271_v54, %v17710_v12  ;;  %5031 = vst.msk [vmem:[#allocation2 + $0x1d8] sm:$0xff] %vm257_vm2, %v4966_v58  ;;  %v4714_v7 = vld [vmem:[#allocation2 + $0x1f8] sm:$0xff] }
 0x68b   : > { %9852 = vmatpush3.bf16.msra.mxu1 %v18972_v13  ;;  %6337 = vmatprep.mubr.f32.mxu1 %v18973_v36  ;;  %v18978_v13 = vld [vmem:[#allocation202_spill] sm:$0xff]  ;;  %v4711_v36 = vld [vmem:[#allocation2 + $0x1e0] sm:$0xff]  ;;  %v4900_v5 = vpop.xlane.xlu0 %4899  ;;  %5030 = vst.msk [vmem:[#allocation2 + $0x1d0] sm:$0xff] %vm257_vm2, %v4965_v10  ;;  %v4713_v10 = vld [vmem:[#allocation2 + $0x1f0] sm:$0xff] }
 0x68c   : > { %9854 = vmatprep.subr.bf16.mxu1 %v18974_v18  ;;  %18975 = vst [vmem:[#allocation21_spill] sm:$0xff] %v15300_v48  ;;  %18976 = vst [vmem:[#allocation22_spill] sm:$0xff] %v15305_v59  ;;  %v18980_v18 = vld [vmem:[#allocation249_spill] sm:$0xff]  ;;  %v4968_v37 = vadd.f32 %v4900_v5, %v4712_v3  ;;  %v18982_v58 = vld [vmem:[#allocation210_spill] sm:$0xff] }
 0x68d   : > { %v4897_v12 = vpop.xlane.xlu1 %4896 }
 0x68e   : > { %6341 = vmatmul.mubr.f32.gmra.mrb[232].mxu1 %v18977_v33  ;;  %v4967_v60 = vadd.f32 %v4897_v12, %v4711_v36  ;;  %5033 = vst.msk [vmem:[#allocation2 + $0x1e8] sm:$0xff] %vm257_vm2, %v4968_v37  ;;  %v18983_v33 = vand.u32 4294901760, %v18903_v25  ;;  %v4698_v12 = vld [vmem:[#allocation2 + $0x178] sm:$0xff]  ;;  %v8784_v36 = vpop.f32.mrb[130].mxu1  ;;  %v18985_v37 = vand.u32 4294901760, %v18906_v1 }
 0x68f   : > { %9856 = vmatpush3.bf16.msra.mxu1 %v18978_v13  ;;  %6348 = vmatprep.mubr.f32.mxu1 %v18979_v9  ;;  %v4906_v3 = vpop.xlane.xlu0 %4905  ;;  %v15323_v13 = vadd.f32 %v8782_v51, %v8781_v55  ;;  %v18984_v9 = vld [vmem:[#allocation252_spill] sm:$0xff]  ;;  %v8785_v25 = vpop.f32.mrb[131].mxu1  ;;  %v18987_v55 = vand.u32 4294901760, %v18909_v57  ;;  %v4697_v51 = vld [vmem:[#allocation2 + $0x170] sm:$0xff]  ;;  %v18988_v57 = vand.u32 4294901760, %v18913_v47 }
 0x690   : > { %9858 = vmatprep.subr.bf16.mxu1 %v18980_v18  ;;  %5032 = vst.msk [vmem:[#allocation2 + $0x1e0] sm:$0xff] %vm257_vm2, %v4967_v60  ;;  %v4970_v5 = vadd.f32 %v4906_v3, %v4714_v7  ;;  %v15333_v7 = vadd.f32 %v8785_v25, %v8784_v36  ;;  %v15335_v3 = vmul.f32 0.00390625, %v5091_v8  ;;  %v5095_v8 = vld [vmem:[#allocation2 + $0x1c0] sm:$0xff]  ;;  %v5096_v25 = vld [vmem:[#allocation2 + $0x1c8] sm:$0xff] }
 0x691   : > { %v4903_v18 = vpop.xlane.xlu1 %4902 }
 0x692   : > { %6352 = vmatmul.mubr.f32.gmra.mrb[234].mxu1 %v18981_v20  ;;  %v4969_v20 = vadd.f32 %v4903_v18, %v4713_v10  ;;  %5035 = vst.msk [vmem:[#allocation2 + $0x1f8] sm:$0xff] %vm257_vm2, %v4970_v5  ;;  %v5093_v18 = vld [vmem:[#allocation2 + $0x1b0] sm:$0xff] }
 0x693   : > { %9860 = vmatpush3.bf16.msra.mxu1 %v18982_v58  ;;  %6359 = vmatprep.mubr.f32.mxu1 %v18983_v33  ;;  %v5092_v58 = vld [vmem:[#allocation2 + $0x1a8] sm:$0xff]  ;;  %v18986_v33 = vld [vmem:[#allocation211_spill] sm:$0xff]  ;;  %v4858_v60 = vpop.xlane.xlu0 %4857 }
 0x694   : > { %9862 = vmatprep.subr.bf16.mxu1 %v18984_v9  ;;  %5034 = vst.msk [vmem:[#allocation2 + $0x1f0] sm:$0xff] %vm257_vm2, %v4969_v20  ;;  %v4954_v1 = vadd.f32 %v4858_v60, %v4698_v12  ;;  %v8787_v9 = vpop.f32.mrb[132].mxu1  ;;  %v15339_v5 = vmul.f32 0.00390625, %v5092_v58  ;;  %v17713_v20 = vand.u32 4294901760, %v15335_v3  ;;  %v5098_v58 = vld [vmem:[#allocation2 + $0x1d8] sm:$0xff] }
 0x695   : > { %v4855_v10 = vpop.xlane.xlu1 %4854  ;;  %v8788_v36 = vpop.f32.mrb[133].mxu1  ;;  %v5100_v47 = vld [vmem:[#allocation2 + $0x1e8] sm:$0xff] }
 0x696   : > { %6363 = vmatmul.mubr.f32.gmra.mrb[236].mxu1 %v18985_v37  ;;  %v5094_v37 = vld [vmem:[#allocation2 + $0x1b8] sm:$0xff]  ;;  %5019 = vst.msk [vmem:[#allocation2 + $0x178] sm:$0xff] %vm257_vm2, %v4954_v1  ;;  %v15347_v12 = vadd.f32 %v8788_v36, %v8787_v9  ;;  %v15353_v1 = vmul.f32 0.00390625, %v5093_v18  ;;  %v8790_v9 = vpop.f32.mrb[134].mxu1  ;;  %v15360_v36 = vmul.f32 0.00390625, %v5095_v8  ;;  %v18998_v8 = vand.u32 4294901760, %v18921_v63 }
 0x697   : > { %9864 = vmatpush3.bf16.msra.mxu1 %v18986_v33  ;;  %6370 = vmatprep.mubr.f32.mxu1 %v18987_v55  ;;  %v4953_v33 = vadd.f32 %v4855_v10, %v4697_v51  ;;  %v5097_v55 = vld [vmem:[#allocation2 + $0x1d0] sm:$0xff]  ;;  %v5099_v60 = vld [vmem:[#allocation2 + $0x1e0] sm:$0xff]  ;;  %v15355_v10 = vmul.f32 0.00390625, %v5094_v37  ;;  %v8791_v18 = vpop.f32.mrb[135].mxu1  ;;  %v15368_v37 = vmul.f32 0.00390625, %v5098_v58 }
 0x698   : > { %9866 = vmatprep.subr.bf16.mxu1 %v14858_v23  ;;  %v18989_v23 = vand.u32 4294901760, %v18916_v53  ;;  %18990 = vst [vmem:[#allocation142_spill] sm:$0xff] %v15353_v1  ;;  %18992 = vst [vmem:[#allocation17_spill] sm:$0xff] %v15360_v36  ;;  %v15364_v29 = vmul.f32 0.00390625, %v5097_v55  ;;  %v15370_v51 = vmul.f32 0.00390625, %v5099_v60  ;;  %v15382_v55 = vsub.f32 %v15335_v3, %v17713_v20 }
 0x699   : > { %5018 = vst.msk [vmem:[#allocation2 + $0x170] sm:$0xff] %vm257_vm2, %v4953_v33  ;;  %18991 = vst [vmem:[#allocation120_spill] sm:$0xff] %v15355_v10  ;;  %v18994_v33 = vand.u32 4294901760, %v18919_v38  ;;  %v19003_v60 = vand.u32 4294901760, %v18925_v35 }
 0x69a   : > { %6374 = vmatmul.mubr.f32.gmra.mrb[238].mxu1 %v18988_v57  ;;  %v17716_v57 = vand.u32 4294901760, %v15339_v5  ;;  %18995 = vst [vmem:[#allocation156_spill] sm:$0xff] %v15368_v37  ;;  %18996 = vst [vmem:[#allocation159_spill] sm:$0xff] %v15370_v51  ;;  %v19015_v20 = vand.u32 4294901760, %v15364_v29 }
 0x69b   : > { %9868 = vmatpush3.bf16.msra.mxu1 %v14866_v11  ;;  %6381 = vmatprep.mubr.f32.mxu1 %v18989_v23  ;;  %v15362_v23 = vmul.f32 0.00390625, %v5096_v25  ;;  %v15372_v11 = vmul.f32 0.00390625, %v5100_v47  ;;  %v15377_v25 = vadd.f32 %v8791_v18, %v8790_v9  ;;  %18999 = vst [vmem:[#allocation150_spill] sm:$0xff] %v15382_v55  ;;  %v5101_v38 = vld [vmem:[#allocation2 + $0x1f0] sm:$0xff]  ;;  %v8793_v9 = vpop.f32.mrb[136].mxu1  ;;  %v19006_v47 = vand.u32 4294901760, %v15353_v1 }
 0x69c   : > { %9870 = vmatprep.subr.bf16.mxu1 %v18862_v26  ;;  %v5102_v26 = vld [vmem:[#allocation2 + $0x1f8] sm:$0xff]  ;;  %v15389_v53 = vmul.f32 0.00390625, %v5101_v38  ;;  %v15395_v18 = vsub.f32 %v15339_v5, %v17716_v57  ;;  %v8794_v38 = vpop.f32.mrb[137].mxu1  ;;  %v19005_v57 = vand.u32 4294901760, %v18927_v44 }
 0x69d   : > { %18993 = vst [vmem:[#allocation19_spill] sm:$0xff] %v15362_v23  ;;  %18997 = vst [vmem:[#allocation148_spill] sm:$0xff] %v15372_v11  ;;  %v5086_v58 = vld [vmem:[#allocation2 + $0x178] sm:$0xff]  ;;  %v15417_v63 = vsub.f32 %v15353_v1, %v19006_v47  ;;  %v19018_v1 = vand.u32 4294901760, %v15368_v37 }
 0x69e   : > { %6385 = vmatmul.mubr.f32.gmra.mrb[240].mxu1 %v18994_v33  ;;  %v15384_v33 = vmul.f32 0.00390625, %v5102_v26  ;;  %19001 = vst [vmem:[#allocation76_spill] sm:$0xff] %v15389_v53  ;;  %19002 = vst [vmem:[#allocation78_spill] sm:$0xff] %v15395_v18  ;;  %v15405_v61 = vmul.f32 0.00390625, %v5086_v58  ;;  %v19008_v58 = vand.u32 4294901760, %v15355_v10 }
 0x69f   : > { %6392 = vmatprep.mubr.f32.mxu1 %v18998_v8  ;;  %v15409_v8 = vadd.f32 %v8794_v38, %v8793_v9  ;;  %19007 = vst [vmem:[#allocation137_spill] sm:$0xff] %v15417_v63  ;;  %v8796_v9 = vpop.f32.mrb[138].mxu1  ;;  %v19011_v38 = vand.u32 4294901760, %v15360_v36 }
 0x6a0   : > { %19000 = vst [vmem:[#allocation121_spill] sm:$0xff] %v15384_v33  ;;  %19004 = vst [vmem:[#allocation164_spill] sm:$0xff] %v15405_v61  ;;  %v5085_v35 = vld [vmem:[#allocation2 + $0x170] sm:$0xff]  ;;  %v15422_v41 = vsub.f32 %v15355_v10, %v19008_v58  ;;  %v15440_v58 = vsub.f32 %v15364_v29, %v19015_v20  ;;  %v8797_v10 = vpop.f32.mrb[139].mxu1 }
 0x6a1   : > { %v15424_v44 = vmul.f32 0.00390625, %v5085_v35  ;;  %v15430_v26 = vsub.f32 %v15360_v36, %v19011_v38  ;;  %v15448_v38 = vsub.f32 %v15368_v37, %v19018_v1  ;;  %v19020_v36 = vand.u32 4294901760, %v15370_v51 }
 0x6a2   : > { %6396 = vmatmul.mubr.f32.gmra.mrb[242].mxu1 %v19003_v60  ;;  %19009 = vst [vmem:[#allocation72_spill] sm:$0xff] %v15422_v41  ;;  %v19013_v60 = vand.u32 4294901760, %v15362_v23  ;;  %19016 = vst [vmem:[#allocation50_spill] sm:$0xff] %v15440_v58  ;;  %v19025_v1 = vand.u32 4294901760, %v15389_v53 }
 0x6a3   : > { %6403 = vmatprep.mubr.f32.mxu1 %v19005_v57  ;;  %19010 = vst [vmem:[#allocation74_spill] sm:$0xff] %v15424_v44  ;;  %19012 = vst [vmem:[#allocation52_spill] sm:$0xff] %v15430_v26  ;;  %v19017_v57 = vand.u32 4294901760, %v18929_v56  ;;  %v17725_v35 = vand.u32 4294901760, %v15424_v44  ;;  %v19024_v56 = vand.u32 4294901760, %v18931_v16 }
 0x6a4   : > { %v15435_v47 = vsub.f32 %v15362_v23, %v19013_v60  ;;  %19019 = vst [vmem:[#allocation51_spill] sm:$0xff] %v15448_v38  ;;  %v15453_v60 = vsub.f32 %v15370_v51, %v19020_v36  ;;  %v19022_v23 = vand.u32 4294901760, %v15372_v11  ;;  %v15468_v37 = vsub.f32 %v15389_v53, %v19025_v1  ;;  %v8799_v53 = vpop.f32.mrb[140].mxu1 }
 0x6a5   : > { %v19027_v36 = vand.u32 4294901760, %v15384_v33  ;;  %v15480_v16 = vsub.f32 %v15424_v44, %v17725_v35  ;;  %v19032_v44 = vand.u32 4294901760, %v18935_v40  ;;  %v19039_v1 = vand.u32 4294901760, %v15305_v59  ;;  %v19107_v59 = vld [vmem:[#allocation231_spill] sm:$0xff] }
 0x6a6   : > { %19014 = vst [vmem:[#allocation53_spill] sm:$0xff] %v15435_v47  ;;  %6407 = vmatmul.mubr.f32.gmra.mrb[244].mxu1 %v19017_v57  ;;  %19021 = vst [vmem:[#allocation143_spill] sm:$0xff] %v15453_v60  ;;  %v15458_v20 = vsub.f32 %v15372_v11, %v19022_v23  ;;  %v15463_v57 = vadd.f32 %v8797_v10, %v8796_v9  ;;  %v19030_v10 = vand.u32 4294901760, %v15405_v61  ;;  %v8800_v11 = vpop.f32.mrb[141].mxu1 }
 0x6a7   : > { %6414 = vmatprep.mubr.f32.mxu1 %v19024_v56  ;;  %19026 = vst [vmem:[#allocation34_spill] sm:$0xff] %v15468_v37  ;;  %v15473_v51 = vsub.f32 %v15384_v33, %v19027_v36  ;;  %19029 = vst [vmem:[#allocation144_spill] sm:$0xff] %v15480_v16  ;;  %v19033_v33 = vand.u32 4294901760, %v18937_v39  ;;  %v15503_v23 = vadd.f32 %v8800_v11, %v8799_v53  ;;  %v19034_v53 = vand.u32 4294901760, %v15269_v52 }
 0x6a8   : > { %19023 = vst [vmem:[#allocation37_spill] sm:$0xff] %v15458_v20  ;;  %v15485_v9 = vsub.f32 %v15405_v61, %v19030_v10  ;;  %v19035_v36 = vand.u32 4294901760, %v15280_v45  ;;  %v19038_v10 = vand.u32 4294901760, %v15300_v48  ;;  %v19041_v39 = vand.u32 4294901760, %v15382_v55 }
 0x6a9   : > { %19028 = vst [vmem:[#allocation171_spill] sm:$0xff] %v15473_v51  ;;  %v19042_v11 = vand.u32 4294901760, %v15395_v18  ;;  %v19044_v45 = vand.u32 4294901760, %v15417_v63  ;;  %v19102_v63 = vld [vmem:[#allocation209_spill] sm:$0xff]  ;;  %v19104_v18 = vld [vmem:[#allocation222_spill] sm:$0xff] }
 0x6aa   : > { %19031 = vst [vmem:[#allocation28_spill] sm:$0xff] %v15485_v9  ;;  %6418 = vmatmul.mubr.f32.gmra.mrb[246].mxu1 %v19032_v44  ;;  %v15521_v40 = vpack.c.bf16 %v19035_v36, %v19034_v53  ;;  %v19037_v44 = vand.u32 4294901760, %v18939_v50  ;;  %v15529_v35 = vpack.c.bf16 %v19039_v1, %v19038_v10  ;;  %v19045_v36 = vand.u32 4294901760, %v15422_v41 }
 0x6ab   : > { %6425 = vmatprep.mubr.f32.mxu1 %v19033_v33  ;;  %v8802_v33 = vpop.f32.mrb[142].mxu1  ;;  %v15535_v61 = vpack.c.bf16 %v19042_v11, %v19041_v39  ;;  %v19047_v50 = vand.u32 4294901760, %v18941_v46  ;;  %v19048_v1 = vand.u32 4294901760, %v15430_v26  ;;  %v19049_v10 = vand.u32 4294901760, %v15435_v47  ;;  %v19100_v26 = vld [vmem:[#allocation204_spill] sm:$0xff] }
 0x6ac   : > { %19036 = vst [vmem:[#allocation31_spill] sm:$0xff] %v15521_v40  ;;  %v8803_v56 = vpop.f32.mrb[143].mxu1  ;;  %19040 = vst [vmem:[#allocation173_spill] sm:$0xff] %v15529_v35  ;;  %v15541_v53 = vpack.c.bf16 %v19045_v36, %v19044_v45  ;;  %v19051_v39 = vand.u32 4294901760, %v15440_v58  ;;  %v19052_v11 = vand.u32 4294901760, %v15448_v38  ;;  %v19054_v45 = vand.u32 4294901760, %v15453_v60 }
 0x6ad   : > { %19043 = vst [vmem:[#allocation174_spill] sm:$0xff] %v15535_v61  ;;  %v15551_v35 = vpack.c.bf16 %v19049_v10, %v19048_v1  ;;  %v19055_v36 = vand.u32 4294901760, %v15458_v20  ;;  %v19060_v1 = vand.u32 4294901760, %v15468_v37  ;;  %v19061_v10 = vand.u32 4294901760, %v15473_v51  ;;  %v19094_v38 = vld [vmem:[#allocation161_spill] sm:$0xff] }
 0x6ae   : > { %6429 = vmatmul.mubr.f32.gmra.mrb[248].mxu1 %v19037_v44  ;;  %19046 = vst [vmem:[#allocation165_spill] sm:$0xff] %v15541_v53  ;;  %v15545_v44 = vadd.f32 %v8803_v56, %v8802_v33  ;;  %v15557_v61 = vpack.c.bf16 %v19052_v11, %v19051_v39  ;;  %v19057_v56 = vand.u32 4294901760, %v15256_v30  ;;  %v19058_v33 = vand.u32 4294901760, %v15245_v42  ;;  %v19082_v53 = vld [vmem:[#allocation175_spill] sm:$0xff]  ;;  %v19098_v58 = vld [vmem:[#allocation193_spill] sm:$0xff] }
 0x6af   : > { %6436 = vmatprep.mubr.f32.mxu1 %v19047_v50  ;;  %19050 = vst [vmem:[#allocation168_spill] sm:$0xff] %v15551_v35  ;;  %v15563_v46 = vpack.c.bf16 %v19055_v36, %v19054_v45  ;;  %v15575_v35 = vpack.c.bf16 %v19061_v10, %v19060_v1  ;;  %v19063_v39 = vand.u32 4294901760, %v15480_v16  ;;  %v19064_v11 = vand.u32 4294901760, %v15485_v9  ;;  %v8805_v45 = vpop.f32.mrb[144].mxu1  ;;  %v19085_v16 = vld [vmem:[#allocation139_spill] sm:$0xff] }
 0x6b0   : > { %19053 = vst [vmem:[#allocation154_spill] sm:$0xff] %v15557_v61  ;;  %v15569_v50 = vpack.c.bf16 %v19058_v33, %v19057_v56  ;;  %v19066_v36 = vand.u32 4294901760, %v18795_v17  ;;  %v19067_v56 = vand.u32 4294901760, %v18802_v22  ;;  %v19068_v1 = vand.u32 4294901760, %v18799_v19 }
 0x6b1   : > { %19056 = vst [vmem:[#allocation84_spill] sm:$0xff] %v15563_v46  ;;  %19062 = vst [vmem:[#allocation183_spill] sm:$0xff] %v15575_v35  ;;  %v15581_v61 = vpack.c.bf16 %v19064_v11, %v19063_v39  ;;  %v8806_v46 = vpop.f32.mrb[145].mxu1  ;;  %v19069_v35 = vand.u32 4294901760, %v18804_v4  ;;  %v19070_v17 = vand.u32 4294901760, %v14890_v14  ;;  %v19090_v20 = vand.u32 4294901760, %v15240_v21 }
 0x6b2   : > { %19059 = vst [vmem:[#allocation57_spill] sm:$0xff] %v15569_v50  ;;  %6440 = vmatmul.mubr.f32.gmra.mrb[250].mxu1 %v19066_v36  ;;  %v15587_v33 = vadd.f32 %v8806_v46, %v8805_v45 }
 0x6b3   : > { %19065 = vst [vmem:[#allocation155_spill] sm:$0xff] %v15581_v61  ;;  %6447 = vmatprep.mubr.f32.mxu1 %v19067_v56  ;;  %v8808_v50 = vpop.f32.mrb[146].mxu1  ;;  %v19071_v56 = vld [vmem:[#allocation104_spill] sm:$0xff] }
 0x6b4   : > { %v8809_v10 = vpop.f32.mrb[147].mxu1 }
 0x6b5   : > { %v15593_v39 = vadd.f32 %v8809_v10, %v8808_v50 }
 0x6b6   : > { %6451 = vmatmul.mubr.f32.gmra.mrb[252].mxu1 %v19068_v1  ;;  %v19072_v1 = vld [vmem:[#allocation223_spill] sm:$0xff] }
 0x6b7   : > { %6458 = vmatprep.mubr.f32.mxu1 %v19069_v35 }
 0x6b8   : > { %v8811_v11 = vpop.f32.mrb[148].mxu1 }
 0x6b9   : > { %v8812_v36 = vpop.f32.mrb[149].mxu1 }
 0x6ba   : > { %6462 = vmatmul.mubr.f32.gmra.mrb[254].mxu1 %v19070_v17  ;;  %v15598_v22 = vadd.f32 %v8812_v36, %v8811_v11  ;;  %v19074_v17 = vld [vmem:[#allocation162_spill] sm:$0xff]  ;;  %v19075_v36 = vld [vmem:[#allocation107_spill] sm:$0xff] }
 0x6bb   : > { %6628 = vmatprep.mubr.f32.mxu1 %v18807_v43 }
 0x6bd   : > { %v8814_v46 = vpop.f32.mrb[150].mxu1 }
 0x6be   : > { %6630 = vmatmul.mubr.f32.vlgmr.msra.gmra.mrb[0].mxu1 %v18808_v2  ;;  %v8815_v19 = vpop.f32.mrb[151].mxu1 }
 0x6bf   : > { %9872 = vmatpush3.bf16.msra.mxu1 %v18879_v34  ;;  %6635 = vmatprep.mubr.f32.mxu1 %v18812_v6  ;;  %v15603_v4 = vadd.f32 %v8815_v19, %v8814_v46  ;;  %v19076_v46 = vld [vmem:[#allocation237_spill] sm:$0xff] }
 0x6c0   : > { %9874 = vmatprep.subr.bf16.mxu1 %v18881_v31 }
 0x6c1   : > { %v8817_v35 = vpop.f32.mrb[152].mxu1 }
 0x6c2   : > { %6637 = vmatmul.mubr.f32.gmra.mrb[2].mxu1 %v18816_v28  ;;  %v8818_v14 = vpop.f32.mrb[153].mxu1 }
 0x6c3   : > { %9876 = vmatpush3.bf16.msra.mxu1 %v18883_v62  ;;  %6642 = vmatprep.mubr.f32.mxu1 %v18820_v49  ;;  %v15609_v50 = vadd.f32 %v8818_v14, %v8817_v35  ;;  %v19073_v62 = vld [vmem:[#allocation106_spill] sm:$0xff]  ;;  %v19078_v14 = vld [vmem:[#allocation169_spill] sm:$0xff] }
 0x6c4   : > { %9878 = vmatprep.subr.bf16.mxu1 %v18885_v0 }
 0x6c5   : > { %v8820_v45 = vpop.f32.mrb[154].mxu1 }
 0x6c6   : > { %6644 = vmatmul.mubr.f32.gmra.mrb[4].mxu1 %v18824_v15  ;;  %v8821_v34 = vpop.f32.mrb[155].mxu1 }
 0x6c7   : > { %9880 = vmatpush3.bf16.msra.mxu1 %v18887_v32  ;;  %6649 = vmatprep.mubr.f32.mxu1 %v19071_v56  ;;  %v15615_v31 = vadd.f32 %v8821_v34, %v8820_v45  ;;  %v19077_v32 = vld [vmem:[#allocation125_spill] sm:$0xff]  ;;  %v19079_v45 = vld [vmem:[#allocation126_spill] sm:$0xff] }
 0x6c8   : > { %9882 = vmatprep.subr.bf16.mxu1 %v19072_v1  ;;  %v5231_v1 = vld [vmem:[%s17203_s4] sm:$0xff] }
 0x6c9   : > { %v8823_v10 = vpop.f32.mrb[156].mxu1  ;;  %v5356_v61 = vadd.f32 %v15323_v13, %v5231_v1  ;;  %v19086_v13 = vld [vmem:[#allocation212_spill] sm:$0xff] }
 0x6ca   : > { %6651 = vmatmul.mubr.f32.gmra.mrb[6].mxu1 %v19073_v62  ;;  %v8824_v11 = vpop.f32.mrb[157].mxu1  ;;  %v19087_v1 = vld [vmem:[#allocation152_spill] sm:$0xff] }
 0x6cb   : > { %9884 = vmatpush3.bf16.msra.mxu1 %v19074_v17  ;;  %6656 = vmatprep.mubr.f32.mxu1 %v19075_v36  ;;  %v15621_v0 = vadd.f32 %v8824_v11, %v8823_v10  ;;  %v19080_v17 = vld [vmem:[#allocation246_spill] sm:$0xff]  ;;  %v19081_v11 = vld [vmem:[#allocation129_spill] sm:$0xff] }
 0x6cc   : > { %9886 = vmatprep.subr.bf16.mxu1 %v19076_v46 }
 0x6cd   : > { %v8826_v19 = vpop.f32.mrb[158].mxu1 }
 0x6ce   : > { %6658 = vmatmul.mubr.f32.gmra.mrb[8].mxu1 %v19077_v32  ;;  %v8827_v35 = vpop.f32.mrb[159].mxu1 }
 0x6cf   : > { %9888 = vmatpush3.bf16.msra.mxu1 %v19078_v14  ;;  %6663 = vmatprep.mubr.f32.mxu1 %v19079_v45  ;;  %v15627_v34 = vadd.f32 %v8827_v35, %v8826_v19  ;;  %v19083_v14 = vld [vmem:[#allocation131_spill] sm:$0xff]  ;;  %v5232_v19 = vld [vmem:[%s17203_s4 + $0x8] sm:$0xff]  ;;  %v19084_v35 = vld [vmem:[#allocation250_spill] sm:$0xff] }
 0x6d0   : > { %9890 = vmatprep.subr.bf16.mxu1 %v19080_v17  ;;  %v5371_v37 = vadd.f32 %v15333_v7, %v5232_v19  ;;  %v19091_v7 = vand.u32 4294901760, %v15251_v27  ;;  %v19095_v27 = vld [vmem:[#allocation172_spill] sm:$0xff] }
 0x6d1   : > { %v8861_v10 = vpop.f32.mrb[160].mxu1 }
 0x6d2   : > { %6665 = vmatmul.mubr.f32.gmra.mrb[10].mxu1 %v19081_v11  ;;  %v8862_v46 = vpop.f32.mrb[161].mxu1  ;;  %v15658_v19 = vpack.c.bf16 %v19091_v7, %v19090_v20 }
 0x6d3   : > { %9892 = vmatpush3.bf16.msra.mxu1 %v19082_v53  ;;  %v8863_v40 = vadd.f32 %v8862_v46, %v8861_v10  ;;  %6670 = vmatprep.mubr.f32.mxu1 %v19083_v14  ;;  %v5233_v10 = vld [vmem:[%s17203_s4 + $0x10] sm:$0xff] }
 0x6d4   : > { %9894 = vmatprep.subr.bf16.mxu1 %v19084_v35  ;;  %v19088_v46 = vld [vmem:[#allocation253_spill] sm:$0xff]  ;;  %19092 = vst [vmem:[#allocation80_spill] sm:$0xff] %v15658_v19 }
 0x6d5   : > { %v15641_v9 = vadd.f32 %v8863_v40, %v5356_v61  ;;  %v8864_v17 = vpop.f32.mrb[162].mxu1  ;;  %v19089_v40 = vld [vmem:[#allocation158_spill] sm:$0xff] }
 0x6d6   : > { %6672 = vmatmul.mubr.f32.gmra.mrb[12].mxu1 %v19085_v16  ;;  %v8865_v51 = vpop.f32.mrb[163].mxu1 }
 0x6d7   : > { %9896 = vmatpush3.bf16.msra.mxu1 %v19086_v13  ;;  %v8866_v53 = vadd.f32 %v8865_v51, %v8864_v17  ;;  %6677 = vmatprep.mubr.f32.mxu1 %v19087_v1  ;;  %v5386_v17 = vadd.f32 %v15347_v12, %v5233_v10  ;;  %v19093_v13 = vld [vmem:[#allocation60_spill] sm:$0xff]  ;;  %v19096_v10 = vld [vmem:[#allocation181_spill] sm:$0xff] }
 0x6d8   : > { %9898 = vmatprep.subr.bf16.mxu1 %v19088_v46 }
 0x6d9   : > { %v15651_v35 = vadd.f32 %v8866_v53, %v5371_v37  ;;  %v8867_v61 = vpop.f32.mrb[164].mxu1  ;;  %v5234_v37 = vld [vmem:[%s17203_s4 + $0x18] sm:$0xff] }
 0x6da   : > { %6679 = vmatmul.mubr.f32.gmra.mrb[14].mxu1 %v19089_v40  ;;  %v8868_v51 = vpop.f32.mrb[165].mxu1  ;;  %v5401_v46 = vadd.f32 %v15377_v25, %v5234_v37  ;;  %v5236_v25 = vld [vmem:[%s17203_s4 + $0x28] sm:$0xff] }
 0x6db   : > { %9900 = vmatpush3.bf16.msra.mxu1 %v19093_v13  ;;  %v8869_v60 = vadd.f32 %v8868_v51, %v8867_v61  ;;  %6684 = vmatprep.mubr.f32.mxu1 %v19094_v38  ;;  %v5235_v61 = vld [vmem:[%s17203_s4 + $0x20] sm:$0xff]  ;;  %v19097_v13 = vld [vmem:[#allocation185_spill] sm:$0xff] }
 0x6dc   : > { %9902 = vmatprep.subr.bf16.mxu1 %v15658_v19 }
 0x6dd   : > { %v15667_v53 = vadd.f32 %v8869_v60, %v5386_v17  ;;  %v8870_v21 = vpop.f32.mrb[166].mxu1  ;;  %v5416_v17 = vadd.f32 %v15409_v8, %v5235_v61  ;;  %v5237_v8 = vld [vmem:[%s17203_s4 + $0x30] sm:$0xff] }
 0x6de   : > { %6686 = vmatmul.mubr.f32.gmra.mrb[16].mxu1 %v19095_v27  ;;  %v8871_v20 = vpop.f32.mrb[167].mxu1 }
 0x6df   : > { %v8872_v12 = vadd.f32 %v8871_v20, %v8870_v21  ;;  %6691 = vmatprep.mubr.f32.mxu1 %v19096_v10  ;;  %v19099_v20 = vld [vmem:[#allocation200_spill] sm:$0xff] }
 0x6e1   : > { %v15675_v7 = vadd.f32 %v8872_v12, %v5401_v46  ;;  %v8873_v51 = vpop.f32.mrb[168].mxu1  ;;  %v5431_v12 = vadd.f32 %v15463_v57, %v5236_v25  ;;  %v5238_v57 = vld [vmem:[%s17203_s4 + $0x38] sm:$0xff] }
 0x6e2   : > { %6693 = vmatmul.mubr.f32.gmra.mrb[18].mxu1 %v19097_v13  ;;  %v8874_v60 = vpop.f32.mrb[169].mxu1 }
 0x6e3   : > { %v8875_v19 = vadd.f32 %v8874_v60, %v8873_v51  ;;  %6698 = vmatprep.mubr.f32.mxu1 %v19098_v58  ;;  %v19101_v60 = vld [vmem:[#allocation205_spill] sm:$0xff] }
 0x6e5   : > { %v15683_v37 = vadd.f32 %v8875_v19, %v5416_v17  ;;  %v8876_v21 = vpop.f32.mrb[170].mxu1  ;;  %v5446_v17 = vadd.f32 %v15503_v23, %v5237_v8  ;;  %v5239_v23 = vld [vmem:[%s17203_s4 + $0x40] sm:$0xff] }
 0x6e6   : > { %6700 = vmatmul.mubr.f32.gmra.mrb[20].mxu1 %v19099_v20  ;;  %v8877_v46 = vpop.f32.mrb[171].mxu1 }
 0x6e7   : > { %v8878_v47 = vadd.f32 %v8877_v46, %v8876_v21  ;;  %6705 = vmatprep.mubr.f32.mxu1 %v19100_v26  ;;  %v19103_v46 = vld [vmem:[#allocation214_spill] sm:$0xff] }
 0x6e9   : > { %v15691_v61 = vadd.f32 %v8878_v47, %v5431_v12  ;;  %v8879_v51 = vpop.f32.mrb[172].mxu1  ;;  %v5461_v12 = vadd.f32 %v15545_v44, %v5238_v57  ;;  %v5240_v44 = vld [vmem:[%s17203_s4 + $0x48] sm:$0xff] }
 0x6ea   : > { %6707 = vmatmul.mubr.f32.gmra.mrb[22].mxu1 %v19101_v60  ;;  %v8880_v19 = vpop.f32.mrb[173].mxu1 }
 0x6eb   : > { %v8881_v41 = vadd.f32 %v8880_v19, %v8879_v51  ;;  %6712 = vmatprep.mubr.f32.mxu1 %v19102_v63  ;;  %v19106_v19 = vld [vmem:[#allocation230_spill] sm:$0xff] }
 0x6ed   : > { %v15699_v25 = vadd.f32 %v8881_v41, %v5446_v17  ;;  %v8882_v21 = vpop.f32.mrb[174].mxu1  ;;  %v5476_v17 = vadd.f32 %v15587_v33, %v5239_v23  ;;  %v5241_v33 = vld [vmem:[%s17203_s4 + $0x50] sm:$0xff] }
 0x6ee   : > { %6714 = vmatmul.mubr.f32.gmra.mrb[24].mxu1 %v19103_v46  ;;  %v8883_v47 = vpop.f32.mrb[175].mxu1 }
 0x6ef   : > { %v8884_v30 = vadd.f32 %v8883_v47, %v8882_v21  ;;  %6719 = vmatprep.mubr.f32.mxu1 %v19104_v18  ;;  %v19109_v47 = vld [vmem:[#allocation236_spill] sm:$0xff] }
 0x6f1   : > { %v15707_v8 = vadd.f32 %v8884_v30, %v5461_v12  ;;  %v8885_v51 = vpop.f32.mrb[176].mxu1  ;;  %v5491_v12 = vadd.f32 %v15593_v39, %v5240_v44  ;;  %v5242_v39 = vld [vmem:[%s17203_s4 + $0x58] sm:$0xff] }
 0x6f2   : > { %6721 = vmatmul.mubr.f32.gmra.mrb[26].mxu1 %v19106_v19  ;;  %v8886_v41 = vpop.f32.mrb[177].mxu1  ;;  %v19110_v19 = vld [vmem:[#allocation239_spill] sm:$0xff] }
 0x6f3   : > { %19105 = vst [vmem:[#allocation82_spill] sm:$0xff] %v15707_v8  ;;  %v8887_v55 = vadd.f32 %v8886_v41, %v8885_v51  ;;  %6726 = vmatprep.mubr.f32.mxu1 %v19107_v59  ;;  %v19112_v41 = vld [vmem:[#allocation245_spill] sm:$0xff] }
 0x6f5   : > { %v15715_v57 = vadd.f32 %v8887_v55, %v5476_v17  ;;  %v8888_v21 = vpop.f32.mrb[178].mxu1  ;;  %v5506_v17 = vadd.f32 %v15598_v22, %v5241_v33  ;;  %v19118_v22 = vand.u32 4294901760, %v15282_v24  ;;  %v19119_v33 = vand.u32 4294901760, %v15271_v54  ;;  %v19121_v24 = vld [vmem:[#allocation105_spill] sm:$0xff] }
 0x6f6   : > { %6728 = vmatmul.mubr.f32.gmra.mrb[28].mxu1 %v19109_v47  ;;  %v8889_v30 = vpop.f32.mrb[179].mxu1  ;;  %v19122_v54 = vand.u32 4294901760, %v19121_v24 }
 0x6f7   : > { %19108 = vst [vmem:[#allocation4_spill] sm:$0xff] %v15715_v57  ;;  %v8890_v8 = vadd.f32 %v8889_v30, %v8888_v21  ;;  %6733 = vmatprep.mubr.f32.mxu1 %v19110_v19  ;;  %v19113_v21 = vld [vmem:[#allocation62_spill] sm:$0xff] }
 0x6f8   : > { %v19114_v30 = vand.u32 4294901760, %v19113_v21  ;;  %v19115_v19 = vld [vmem:[#allocation54_spill] sm:$0xff] }
 0x6f9   : > { %v15723_v23 = vadd.f32 %v8890_v8, %v5491_v12  ;;  %v8891_v51 = vpop.f32.mrb[180].mxu1  ;;  %v19116_v8 = vand.u32 4294901760, %v19115_v19  ;;  %v5243_v19 = vld [vmem:[%s17203_s4 + $0x60] sm:$0xff] }
 0x6fa   : > { %6735 = vmatmul.mubr.f32.gmra.mrb[30].mxu1 %v19112_v41  ;;  %v8892_v55 = vpop.f32.mrb[181].mxu1 }
 0x6fb   : > { %19111 = vst [vmem:[#allocation7_spill] sm:$0xff] %v15723_v23  ;;  %v8893_v57 = vadd.f32 %v8892_v55, %v8891_v51  ;;  %6837 = vmatprep.mubr.f32.mxu1 %v18807_v43  ;;  %v15737_v12 = vpack.c.bf16 %v19116_v8, %v19114_v30  ;;  %v15744_v43 = vpack.c.bf16 %v19119_v33, %v19118_v22 }
 0x6fc   : > { %v5521_v55 = vadd.f32 %v15603_v4, %v5242_v39  ;;  %v5536_v22 = vadd.f32 %v15609_v50, %v5243_v19  ;;  %v19134_v19 = vld [vmem:[#allocation142_spill] sm:$0xff] }
 0x6fd   : > { %v15731_v44 = vadd.f32 %v8893_v57, %v5506_v17  ;;  %19117 = vst [vmem:[#allocation55_spill] sm:$0xff] %v15737_v12  ;;  %v8894_v23 = vpop.f32.mrb[182].mxu1  ;;  %19120 = vst [vmem:[#allocation58_spill] sm:$0xff] %v15744_v43  ;;  %v19123_v17 = vld [vmem:[#allocation115_spill] sm:$0xff] }
 0x6fe   : > { %6839 = vmatmul.mubr.f32.vlgmr.msra.gmra.mrb[32].mxu1 %v18808_v2  ;;  %v8895_v51 = vpop.f32.mrb[183].mxu1  ;;  %v19124_v21 = vand.u32 4294901760, %v19123_v17 }
 0x6ff   : > { %9904 = vmatpush3.bf16.msra.mxu1 %v15737_v12  ;;  %v8896_v57 = vadd.f32 %v8895_v51, %v8894_v23  ;;  %6844 = vmatprep.mubr.f32.mxu1 %v18812_v6  ;;  %v19126_v23 = vand.u32 4294901760, %v15335_v3  ;;  %v19127_v6 = vand.u32 4294901760, %v15339_v5  ;;  %v5244_v51 = vld [vmem:[%s17203_s4 + $0x68] sm:$0xff] }
 0x700   : > { %9906 = vmatprep.subr.bf16.mxu1 %v15744_v43  ;;  %v15759_v30 = vpack.c.bf16 %v19124_v21, %v19122_v54  ;;  %v19129_v3 = vld [vmem:[#allocation44_spill] sm:$0xff]  ;;  %v19135_v54 = vand.u32 4294901760, %v19134_v19 }
 0x701   : > { %v15753_v2 = vadd.f32 %v8896_v57, %v5521_v55  ;;  %v8897_v4 = vpop.f32.mrb[184].mxu1  ;;  %v15766_v39 = vpack.c.bf16 %v19127_v6, %v19126_v23  ;;  %v19130_v5 = vand.u32 4294901760, %v19129_v3  ;;  %v19131_v55 = vld [vmem:[#allocation43_spill] sm:$0xff]  ;;  %v5551_v23 = vadd.f32 %v15615_v31, %v5244_v51  ;;  %v19144_v51 = vld [vmem:[#allocation17_spill] sm:$0xff] }
 0x702   : > { %19125 = vst [vmem:[#allocation157_spill] sm:$0xff] %v15759_v30  ;;  %6846 = vmatmul.mubr.f32.gmra.mrb[34].mxu1 %v18816_v28  ;;  %v8898_v8 = vpop.f32.mrb[185].mxu1  ;;  %v19132_v57 = vand.u32 4294901760, %v19131_v55  ;;  %v19141_v3 = vld [vmem:[#allocation63_spill] sm:$0xff] }
 0x703   : > { %19128 = vst [vmem:[#allocation99_spill] sm:$0xff] %v15766_v39  ;;  %9908 = vmatpush3.bf16.msra.mxu1 %v15759_v30  ;;  %v8899_v33 = vadd.f32 %v8898_v8, %v8897_v4  ;;  %6851 = vmatprep.mubr.f32.mxu1 %v18820_v49  ;;  %v19136_v49 = vld [vmem:[#allocation120_spill] sm:$0xff]  ;;  %v5245_v8 = vld [vmem:[%s17203_s4 + $0x70] sm:$0xff] }
 0x704   : > { %9910 = vmatprep.subr.bf16.mxu1 %v15766_v39  ;;  %v15781_v24 = vpack.c.bf16 %v19132_v57, %v19130_v5  ;;  %v19137_v17 = vand.u32 4294901760, %v19136_v49  ;;  %v19142_v5 = vand.u32 4294901760, %v19141_v3  ;;  %v19145_v57 = vand.u32 4294901760, %v19144_v51 }
 0x705   : > { %v15775_v28 = vadd.f32 %v8899_v33, %v5536_v22  ;;  %v8900_v50 = vpop.f32.mrb[186].mxu1  ;;  %v19139_v22 = vld [vmem:[#allocation12_spill] sm:$0xff]  ;;  %v5566_v49 = vadd.f32 %v15621_v0, %v5245_v8  ;;  %v19154_v8 = vand.u32 4294901760, %v15364_v29 }
 0x706   : > { %19133 = vst [vmem:[#allocation100_spill] sm:$0xff] %v15781_v24  ;;  %6853 = vmatmul.mubr.f32.gmra.mrb[36].mxu1 %v18824_v15  ;;  %v15788_v21 = vpack.c.bf16 %v19137_v17, %v19135_v54  ;;  %v8901_v4 = vpop.f32.mrb[187].mxu1  ;;  %v19140_v33 = vand.u32 4294901760, %v19139_v22  ;;  %v19151_v22 = vld [vmem:[#allocation136_spill] sm:$0xff] }
 0x707   : > { %9912 = vmatpush3.bf16.msra.mxu1 %v15781_v24  ;;  %v8902_v6 = vadd.f32 %v8901_v4, %v8900_v50  ;;  %6858 = vmatprep.mubr.f32.mxu1 %v19071_v56  ;;  %v19146_v56 = vld [vmem:[#allocation19_spill] sm:$0xff]  ;;  %v5246_v4 = vld [vmem:[%s17203_s4 + $0x78] sm:$0xff]  ;;  %v19160_v29 = vld [vmem:[#allocation68_spill] sm:$0xff] }
 0x708   : > { %19138 = vst [vmem:[#allocation163_spill] sm:$0xff] %v15788_v21  ;;  %9914 = vmatprep.subr.bf16.mxu1 %v15788_v21  ;;  %v15803_v55 = vpack.c.bf16 %v19142_v5, %v19140_v33  ;;  %v19147_v50 = vand.u32 4294901760, %v19146_v56  ;;  %v19152_v33 = vand.u32 4294901760, %v19151_v22  ;;  %v19165_v22 = vld [vmem:[#allocation148_spill] sm:$0xff] }
 0x709   : > { %v15797_v15 = vadd.f32 %v8902_v6, %v5551_v23  ;;  %v8903_v31 = vpop.f32.mrb[188].mxu1  ;;  %v19149_v23 = vld [vmem:[#allocation141_spill] sm:$0xff] }
 0x70a   : > { %19143 = vst [vmem:[#allocation92_spill] sm:$0xff] %v15803_v55  ;;  %6860 = vmatmul.mubr.f32.gmra.mrb[38].mxu1 %v19073_v62  ;;  %v15810_v19 = vpack.c.bf16 %v19147_v50, %v19145_v57  ;;  %v8904_v54 = vpop.f32.mrb[189].mxu1  ;;  %v19150_v6 = vand.u32 4294901760, %v19149_v23  ;;  %v5581_v57 = vadd.f32 %v15627_v34, %v5246_v4  ;;  %v19163_v34 = vld [vmem:[#allocation159_spill] sm:$0xff] }
 0x70b   : > { %9916 = vmatpush3.bf16.msra.mxu1 %v15803_v55  ;;  %v8905_v17 = vadd.f32 %v8904_v54, %v8903_v31  ;;  %6865 = vmatprep.mubr.f32.mxu1 %v19075_v36  ;;  %v19155_v36 = vld [vmem:[#allocation156_spill] sm:$0xff]  ;;  %v19164_v4 = vand.u32 4294901760, %v19163_v34 }
 0x70c   : > { %19148 = vst [vmem:[#allocation94_spill] sm:$0xff] %v15810_v19  ;;  %9918 = vmatprep.subr.bf16.mxu1 %v15810_v19  ;;  %v15825_v3 = vpack.c.bf16 %v19152_v33, %v19150_v6  ;;  %v19156_v5 = vand.u32 4294901760, %v19155_v36  ;;  %v19166_v33 = vand.u32 4294901760, %v19165_v22  ;;  %v19169_v36 = vld [vmem:[#allocation111_spill] sm:$0xff]  ;;  %v19178_v22 = vld [vmem:[#allocation121_spill] sm:$0xff] }
 0x70d   : > { %v15819_v62 = vadd.f32 %v8905_v17, %v5566_v49  ;;  %v8906_v0 = vpop.f32.mrb[190].mxu1  ;;  %v19161_v17 = vand.u32 4294901760, %v19160_v29  ;;  %v19173_v29 = vld [vmem:[#allocation66_spill] sm:$0xff] }
 0x70e   : > { %19153 = vst [vmem:[#allocation188_spill] sm:$0xff] %v15825_v3  ;;  %6867 = vmatmul.mubr.f32.gmra.mrb[40].mxu1 %v19077_v32  ;;  %v15832_v31 = vpack.c.bf16 %v19156_v5, %v19154_v8  ;;  %v8907_v51 = vpop.f32.mrb[191].mxu1  ;;  %v19158_v32 = vld [vmem:[#allocation70_spill] sm:$0xff]  ;;  %v19170_v5 = vand.u32 4294901760, %v19169_v36 }
 0x70f   : > { %9920 = vmatpush3.bf16.msra.mxu1 %v15825_v3  ;;  %v8908_v56 = vadd.f32 %v8907_v51, %v8906_v0  ;;  %6872 = vmatprep.mubr.f32.mxu1 %v19079_v45  ;;  %v19159_v49 = vand.u32 4294901760, %v19158_v32  ;;  %v15851_v0 = vpack.c.bf16 %v19166_v33, %v19164_v4  ;;  %v19168_v45 = vand.u32 4294901760, %v15269_v52  ;;  %v19171_v32 = vld [vmem:[#allocation42_spill] sm:$0xff] }
 0x710   : > { %19157 = vst [vmem:[#allocation190_spill] sm:$0xff] %v15832_v31  ;;  %9922 = vmatprep.subr.bf16.mxu1 %v15832_v31  ;;  %v7409_v51 = vsub.f32 %v19169_v36, %v19170_v5  ;;  %v19179_v33 = vand.u32 4294901760, %v19178_v22 }
 0x711   : > { %v15838_v50 = vadd.f32 %v8908_v56, %v5581_v57  ;;  %v8941_v54 = vpop.f32.mrb[192].mxu1  ;;  %v15844_v23 = vpack.c.bf16 %v19161_v17, %v19159_v49  ;;  %19167 = vst [vmem:[#allocation182_spill] sm:$0xff] %v15851_v0  ;;  %v7402_v8 = vsub.f32 %v15269_v52, %v19168_v45  ;;  %v19172_v49 = vand.u32 4294901760, %v19171_v32 }
 0x712   : > { %v8942_v6 = vpop.f32.mrb[193].mxu1  ;;  %6874 = vmatmul.mubr.f32.gmra.mrb[42].mxu1 %v19081_v11  ;;  %v19174_v17 = vand.u32 4294901760, %v19173_v29  ;;  %v7410_v5 = vand.u32 4294901760, %v7409_v51  ;;  %v19183_v29 = vld [vmem:[#allocation164_spill] sm:$0xff] }
 0x713   : > { %19162 = vst [vmem:[#allocation178_spill] sm:$0xff] %v15844_v23  ;;  %v8943_v57 = vadd.f32 %v8942_v6, %v8941_v54  ;;  %9924 = vmatpush3.bf16.msra.mxu1 %v15844_v23  ;;  %6879 = vmatprep.mubr.f32.mxu1 %v19083_v14  ;;  %v19176_v54 = vld [vmem:[#allocation76_spill] sm:$0xff]  ;;  %v7403_v45 = vand.u32 4294901760, %v7402_v8  ;;  %v19204_v23 = vld [vmem:[#allocation130_spill] sm:$0xff] }
 0x714   : > { %9926 = vmatprep.subr.bf16.mxu1 %v15851_v0  ;;  %v15869_v34 = vpack.c.bf16 %v19174_v17, %v19172_v49  ;;  %v19177_v6 = vand.u32 4294901760, %v19176_v54  ;;  %v19184_v17 = vand.u32 4294901760, %v19183_v29  ;;  %v19205_v31 = vand.u32 4294901760, %v19204_v23 }
 0x715   : > { %v15863_v11 = vadd.f32 %v8943_v57, %v15641_v9  ;;  %v8944_v56 = vpop.f32.mrb[194].mxu1  ;;  %v9933_v8 = vpack.c.bf16 %v7410_v5, %v7403_v45  ;;  %v19186_v45 = vld [vmem:[#allocation110_spill] sm:$0xff] }
 0x716   : > { %19175 = vst [vmem:[#allocation166_spill] sm:$0xff] %v15869_v34  ;;  %v8945_v4 = vpop.f32.mrb[195].mxu1  ;;  %6881 = vmatmul.mubr.f32.gmra.mrb[44].mxu1 %v19085_v16  ;;  %v15876_v14 = vpack.c.bf16 %v19179_v33, %v19177_v6  ;;  %v19181_v16 = vld [vmem:[#allocation74_spill] sm:$0xff] }
 0x717   : > { %v8946_v9 = vadd.f32 %v8945_v4, %v8944_v56  ;;  %9928 = vmatpush3.bf16.msra.mxu1 %v15869_v34  ;;  %6886 = vmatprep.mubr.f32.mxu1 %v19087_v1  ;;  %v19182_v49 = vand.u32 4294901760, %v19181_v16  ;;  %v19202_v34 = vld [vmem:[#allocation93_spill] sm:$0xff] }
 0x718   : > { %19180 = vst [vmem:[#allocation67_spill] sm:$0xff] %v15876_v14  ;;  %9930 = vmatprep.subr.bf16.mxu1 %v15876_v14 }
 0x719   : > { %v15882_v57 = vadd.f32 %v8946_v9, %v15651_v35  ;;  %v8947_v32 = vpop.f32.mrb[196].mxu1  ;;  %v15888_v54 = vpack.c.bf16 %v19184_v17, %v19182_v49  ;;  %v19188_v9 = vld [vmem:[#allocation46_spill] sm:$0xff] }
 0x71a   : > { %v8948_v6 = vpop.f32.mrb[197].mxu1  ;;  %6888 = vmatmul.mubr.f32.gmra.mrb[46].mxu1 %v19089_v40 }
 0x71b   : > { %19185 = vst [vmem:[#allocation69_spill] sm:$0xff] %v15888_v54  ;;  %v8949_v51 = vadd.f32 %v8948_v6, %v8947_v32  ;;  %9932 = vmatpush3.bf16.msra.mxu1 %v15888_v54  ;;  %6893 = vmatprep.mubr.f32.mxu1 %v19094_v38  ;;  %v19187_v38 = vand.u32 4294901760, %v19186_v45  ;;  %v19190_v32 = vld [vmem:[#allocation45_spill] sm:$0xff]  ;;  %v19194_v6 = vld [vmem:[#allocation75_spill] sm:$0xff] }
 0x71c   : > { %9934 = vmatprep.subr.bf16.mxu1 %v9933_v8  ;;  %v19191_v16 = vand.u32 4294901760, %v19190_v32  ;;  %v19195_v8 = vand.u32 4294901760, %v19194_v6  ;;  %v19200_v54 = vld [vmem:[#allocation11_spill] sm:$0xff] }
 0x71d   : > { %v15894_v1 = vadd.f32 %v8949_v51, %v15667_v53  ;;  %v8950_v35 = vpop.f32.mrb[198].mxu1  ;;  %v7297_v5 = vsub.f32 %v19186_v45, %v19187_v38 }
 0x71e   : > { %v8951_v56 = vpop.f32.mrb[199].mxu1  ;;  %6895 = vmatmul.mubr.f32.gmra.mrb[48].mxu1 %v19095_v27  ;;  %v5170_v27 = vld [vmem:[%s17202_s3 + $0x18] sm:$0xff]  ;;  %v7311_v49 = vsub.f32 %v19190_v32, %v19191_v16 }
 0x71f   : > { %v8952_v4 = vadd.f32 %v8951_v56, %v8950_v35  ;;  %6900 = vmatprep.mubr.f32.mxu1 %v19096_v10  ;;  %v19189_v10 = vand.u32 4294901760, %v19188_v9  ;;  %v19196_v56 = vld [vmem:[#allocation56_spill] sm:$0xff] }
 0x720   : > { %v7312_v19 = vand.u32 4294901760, %v7311_v49 }
 0x721   : > { %v15899_v22 = vadd.f32 %v8952_v4, %v15675_v7  ;;  %v8953_v40 = vpop.f32.mrb[200].mxu1  ;;  %v7304_v7 = vsub.f32 %v19188_v9, %v19189_v10  ;;  %v19197_v4 = vand.u32 4294901760, %v19196_v56 }
 0x722   : > { %v8954_v33 = vpop.f32.mrb[201].mxu1  ;;  %6902 = vmatmul.mubr.f32.gmra.mrb[50].mxu1 %v19097_v13  ;;  %v19192_v13 = vld [vmem:[#allocation59_spill] sm:$0xff] }
 0x723   : > { %v8955_v53 = vadd.f32 %v8954_v33, %v8953_v40  ;;  %6907 = vmatprep.mubr.f32.mxu1 %v19098_v58  ;;  %v19193_v29 = vand.u32 4294901760, %v19192_v13  ;;  %v7325_v58 = vsub.f32 %v19194_v6, %v19195_v8  ;;  %v7290_v40 = vsub.f32 %v19196_v56, %v19197_v4  ;;  %v19198_v33 = vld [vmem:[#allocation9_spill] sm:$0xff] }
 0x724   : > { %v19199_v38 = vand.u32 4294901760, %v19198_v33  ;;  %v7298_v8 = vand.u32 4294901760, %v7297_v5  ;;  %v15938_v4 = vand.u32 4294901760, %v5170_v27  ;;  %v7353_v5 = vsub.f32 %v19204_v23, %v19205_v31  ;;  %v5173_v31 = vld [vmem:[%s17202_s3 + $0x30] sm:$0xff] }
 0x725   : > { %v7318_v17 = vsub.f32 %v19192_v13, %v19193_v29  ;;  %v15922_v51 = vadd.f32 %v8955_v53, %v15683_v37  ;;  %v8956_v35 = vpop.f32.mrb[202].mxu1  ;;  %v5169_v29 = vld [vmem:[%s17202_s3 + $0x10] sm:$0xff]  ;;  %v19201_v37 = vand.u32 4294901760, %v19200_v54  ;;  %v7305_v3 = vand.u32 4294901760, %v7304_v7  ;;  %v5178_v7 = vld [vmem:[%s17202_s3 + $0x58] sm:$0xff] }
 0x726   : > { %v7339_v10 = vsub.f32 %v19198_v33, %v19199_v38  ;;  %v8957_v16 = vpop.f32.mrb[203].mxu1  ;;  %6909 = vmatmul.mubr.f32.gmra.mrb[52].mxu1 %v19099_v20  ;;  %v5174_v38 = vld [vmem:[%s17202_s3 + $0x38] sm:$0xff]  ;;  %v19203_v20 = vand.u32 4294901760, %v19202_v34  ;;  %v15952_v55 = vand.u32 4294901760, %v5169_v29  ;;  %v7291_v21 = vand.u32 4294901760, %v7290_v40 }
 0x727   : > { %v7332_v53 = vsub.f32 %v19200_v54, %v19201_v37  ;;  %v8958_v14 = vadd.f32 %v8957_v16, %v8956_v35  ;;  %6914 = vmatprep.mubr.f32.mxu1 %v19100_v26  ;;  %v7319_v37 = vand.u32 4294901760, %v7318_v17  ;;  %v7326_v35 = vand.u32 4294901760, %v7325_v58  ;;  %v19209_v58 = vld [vmem:[#allocation108_spill] sm:$0xff] }
 0x728   : > { %v7346_v0 = vsub.f32 %v19202_v34, %v19203_v20  ;;  %v7340_v24 = vand.u32 4294901760, %v7339_v10  ;;  %v15955_v20 = vand.u32 4294901760, %v5174_v38  ;;  %v19210_v40 = vand.u32 4294901760, %v19209_v58 }
 0x729   : > { %v15950_v26 = vadd.f32 %v8958_v14, %v15691_v61  ;;  %v8959_v16 = vpop.f32.mrb[204].mxu1  ;;  %v7333_v61 = vand.u32 4294901760, %v7332_v53  ;;  %v19207_v14 = vld [vmem:[#allocation64_spill] sm:$0xff]  ;;  %v15971_v30 = vsub.f32 %v5170_v27, %v15938_v4  ;;  %v7354_v12 = vand.u32 4294901760, %v7353_v5 }
 0x72a   : > { %v8960_v39 = vpop.f32.mrb[205].mxu1  ;;  %6916 = vmatmul.mubr.f32.gmra.mrb[54].mxu1 %v19101_v60  ;;  %19206 = vst [vmem:[#allocation176_spill] sm:$0xff] %v15955_v20  ;;  %v19208_v49 = vand.u32 4294901760, %v19207_v14  ;;  %v7367_v10 = vsub.f32 %v19209_v58, %v19210_v40  ;;  %v7347_v43 = vand.u32 4294901760, %v7346_v0  ;;  %v15973_v34 = vpack.c.bf16 %v7298_v8, %v7291_v21  ;;  %v5177_v8 = vld [vmem:[%s17202_s3 + $0x50] sm:$0xff]  ;;  %v19227_v58 = vld [vmem:[#allocation230_spill] sm:$0xff] }
 0x72b   : > { %v8961_v60 = vadd.f32 %v8960_v39, %v8959_v16  ;;  %6921 = vmatprep.mubr.f32.mxu1 %v19102_v63  ;;  %19211 = vst [vmem:[#allocation61_spill] sm:$0xff] %v15971_v30  ;;  %v15975_v23 = vpack.c.bf16 %v7312_v19, %v7305_v3  ;;  %v15977_v53 = vpack.c.bf16 %v7326_v35, %v7319_v37  ;;  %v15985_v39 = vand.u32 4294901760, %v5173_v31  ;;  %v19218_v35 = vld [vmem:[#allocation22_spill] sm:$0xff] }
 0x72c   : > { %v7360_v17 = vsub.f32 %v19207_v14, %v19208_v49  ;;  %v15983_v40 = vsub.f32 %v5169_v29, %v15952_v55  ;;  %v15987_v63 = vand.u32 4294901760, %v5178_v7  ;;  %v15991_v21 = vsub.f32 %v5174_v38, %v15955_v20 }
 0x72d   : > { %v15980_v49 = vadd.f32 %v8961_v60, %v15699_v25  ;;  %v8962_v14 = vpop.f32.mrb[206].mxu1  ;;  %19213 = vst [vmem:[#allocation6_spill] sm:$0xff] %v15985_v39  ;;  %v15993_v19 = vpack.c.bf16 %v7340_v24, %v7333_v61  ;;  %v7368_v0 = vand.u32 4294901760, %v7367_v10  ;;  %v16000_v5 = vpack.c.bf16 %v7354_v12, %v7347_v43  ;;  %v19220_v61 = vld [vmem:[#allocation150_spill] sm:$0xff] }
 0x72e   : > { %19212 = vst [vmem:[#allocation65_spill] sm:$0xff] %v15983_v40  ;;  %19214 = vst [vmem:[#allocation13_spill] sm:$0xff] %v15987_v63  ;;  %v8963_v27 = vpop.f32.mrb[207].mxu1  ;;  %6923 = vmatmul.mubr.f32.gmra.mrb[56].mxu1 %v19103_v46  ;;  %v7361_v3 = vand.u32 4294901760, %v7360_v17  ;;  %v19216_v46 = vand.u32 4294901760, %v15245_v42  ;;  %v19217_v24 = vand.u32 4294901760, %v15300_v48 }
 0x72f   : > { %19215 = vst [vmem:[#allocation8_spill] sm:$0xff] %v15991_v21  ;;  %v8964_v25 = vadd.f32 %v8963_v27, %v8962_v14  ;;  %6928 = vmatprep.mubr.f32.mxu1 %v19104_v18  ;;  %v19219_v16 = vand.u32 4294901760, %v19218_v35  ;;  %v19221_v14 = vand.u32 4294901760, %v19220_v61  ;;  %v19222_v10 = vld [vmem:[#allocation78_spill] sm:$0xff]  ;;  %v16034_v54 = vand.u32 4294901760, %v5177_v8 }
 0x730   : > { %v16005_v38 = vsub.f32 %v15245_v42, %v19216_v46  ;;  %v7416_v37 = vsub.f32 %v15300_v48, %v19217_v24  ;;  %v19223_v12 = vand.u32 4294901760, %v19222_v10  ;;  %v5182_v60 = vld [vmem:[%s17202_s3 + $0x78] sm:$0xff]  ;;  %v16030_v42 = vsub.f32 %v5178_v7, %v15987_v63 }
 0x731   : > { %v7423_v18 = vsub.f32 %v19218_v35, %v19219_v16  ;;  %v7430_v17 = vsub.f32 %v19220_v61, %v19221_v14  ;;  %v19224_v27 = vld [vmem:[#allocation82_spill] sm:$0xff]  ;;  %v8965_v24 = vpop.f32.mrb[208].mxu1  ;;  %v16027_v16 = vsub.f32 %v5173_v31, %v15985_v39  ;;  %19228 = vst [vmem:[#allocation118_spill] sm:$0xff] %v16034_v54  ;;  %v16036_v33 = vpack.c.bf16 %v7368_v0, %v7361_v3 }
 0x732   : > { %v7437_v43 = vsub.f32 %v19222_v10, %v19223_v12  ;;  %v16023_v46 = vadd.f32 %v8964_v25, %v19224_v27  ;;  %19226 = vst [vmem:[#allocation180_spill] sm:$0xff] %v16030_v42  ;;  %v8966_v14 = vpop.f32.mrb[209].mxu1  ;;  %6930 = vmatmul.mubr.f32.gmra.mrb[58].mxu1 %v19227_v58  ;;  %v19229_v25 = vld [vmem:[#allocation39_spill] sm:$0xff]  ;;  %v19231_v31 = vand.u32 4294901760, %v15971_v30  ;;  %v16047_v6 = vand.u32 4294901760, %v5182_v60  ;;  %v5181_v58 = vld [vmem:[%s17202_s3 + $0x70] sm:$0xff] }
 0x733   : > { %19225 = vst [vmem:[#allocation10_spill] sm:$0xff] %v16027_v16  ;;  %v19230_v27 = vand.u32 4294901760, %v19229_v25  ;;  %v8967_v29 = vadd.f32 %v8966_v14, %v8965_v24  ;;  %6935 = vmatprep.mubr.f32.mxu1 %v19107_v59  ;;  %v7417_v0 = vand.u32 4294901760, %v7416_v37  ;;  %v7424_v12 = vand.u32 4294901760, %v7423_v18  ;;  %v5186_v59 = vld [vmem:[%s17202_s3 + $0x98] sm:$0xff]  ;;  %v19233_v24 = vld [vmem:[#allocation4_spill] sm:$0xff] }
 0x734   : > { %v7048_v7 = vsub.f32 %v15971_v30, %v19231_v31  ;;  %19232 = vst [vmem:[#allocation122_spill] sm:$0xff] %v16047_v6  ;;  %v7431_v61 = vand.u32 4294901760, %v7430_v17  ;;  %v19234_v30 = vand.u32 4294901760, %v15983_v40  ;;  %v19235_v18 = vand.u32 4294901760, %v15991_v21 }
 0x735   : > { %v16041_v13 = vsub.f32 %v19229_v25, %v19230_v27  ;;  %v7438_v27 = vand.u32 4294901760, %v7437_v43  ;;  %v16057_v14 = vadd.f32 %v8967_v29, %v19233_v24  ;;  %v8968_v31 = vpop.f32.mrb[210].mxu1  ;;  %v16069_v43 = vsub.f32 %v5177_v8, %v16034_v54 }
 0x736   : > { %v7054_v25 = vsub.f32 %v15983_v40, %v19234_v30  ;;  %v8969_v37 = vpop.f32.mrb[211].mxu1  ;;  %6937 = vmatmul.mubr.f32.gmra.mrb[60].mxu1 %v19109_v47  ;;  %v7063_v17 = vsub.f32 %v15991_v21, %v19235_v18  ;;  %v16071_v29 = vand.u32 4294901760, %v5181_v58  ;;  %v19238_v30 = vld [vmem:[#allocation239_spill] sm:$0xff]  ;;  %v7049_v10 = vand.u32 4294901760, %v7048_v7  ;;  %v5185_v47 = vld [vmem:[%s17202_s3 + $0x90] sm:$0xff] }
 0x737   : > { %19236 = vst [vmem:[#allocation184_spill] sm:$0xff] %v16069_v43  ;;  %v8970_v63 = vadd.f32 %v8969_v37, %v8968_v31  ;;  %6942 = vmatprep.mubr.f32.mxu1 %v19238_v30  ;;  %v16076_v3 = vsub.f32 %v5182_v60, %v16047_v6  ;;  %v16078_v40 = vand.u32 4294901760, %v5186_v59  ;;  %v9937_v18 = vpack.c.bf16 %v7424_v12, %v7417_v0  ;;  %v19241_v21 = vld [vmem:[#allocation137_spill] sm:$0xff]  ;;  %v19243_v31 = vld [vmem:[#allocation72_spill] sm:$0xff]  ;;  %v5190_v60 = vld [vmem:[%s17202_s3 + $0xb8] sm:$0xff] }
 0x738   : > { %19237 = vst [vmem:[#allocation109_spill] sm:$0xff] %v16071_v29  ;;  %v16083_v8 = vpack.c.bf16 %v7438_v27, %v7431_v61  ;;  %v19242_v54 = vand.u32 4294901760, %v19241_v21  ;;  %v19244_v37 = vand.u32 4294901760, %v19243_v31  ;;  %v19245_v30 = vld [vmem:[#allocation7_spill] sm:$0xff]  ;;  %v7055_v61 = vand.u32 4294901760, %v7054_v25  ;;  %v5189_v25 = vld [vmem:[%s17202_s3 + $0xb0] sm:$0xff] }
 0x739   : > { %19239 = vst [vmem:[#allocation113_spill] sm:$0xff] %v16076_v3  ;;  %19240 = vst [vmem:[#allocation203_spill] sm:$0xff] %v16078_v40  ;;  %v16099_v6 = vadd.f32 %v8970_v63, %v19245_v30  ;;  %v8971_v12 = vpop.f32.mrb[212].mxu1  ;;  %v19246_v0 = vand.u32 4294901760, %v16027_v16  ;;  %v16110_v32 = vsub.f32 %v5181_v58, %v16071_v29  ;;  %v16112_v63 = vand.u32 4294901760, %v5185_v47  ;;  %v5194_v58 = vld [vmem:[%s17202_s3 + $0xd8] sm:$0xff] }
 0x73a   : > { %v16088_v24 = vsub.f32 %v19241_v21, %v19242_v54  ;;  %v16093_v7 = vsub.f32 %v19243_v31, %v19244_v37  ;;  %v19247_v54 = vand.u32 4294901760, %v16030_v42  ;;  %v8972_v9 = vpop.f32.mrb[213].mxu1  ;;  %6944 = vmatmul.mubr.f32.gmra.mrb[62].mxu1 %v19112_v41  ;;  %v7064_v37 = vand.u32 4294901760, %v7063_v17 }
 0x73b   : > { %v7069_v27 = vsub.f32 %v16027_v16, %v19246_v0  ;;  %19248 = vst [vmem:[#allocation207_spill] sm:$0xff] %v16110_v32  ;;  %19249 = vst [vmem:[#allocation194_spill] sm:$0xff] %v16112_v63  ;;  %v8973_v30 = vadd.f32 %v8972_v9, %v8971_v12  ;;  %7050 = vmatprep.mubr.f32.mxu1 %v7049_v10  ;;  %v16121_v41 = vand.u32 4294901760, %v5190_v60  ;;  %v19254_v10 = vld [vmem:[#allocation53_spill] sm:$0xff]  ;;  %v16137_v48 = vand.u32 4294901760, %v5189_v25 }
 0x73c   : > { %v7078_v21 = vsub.f32 %v16030_v42, %v19247_v54  ;;  %v16119_v54 = vsub.f32 %v5186_v59, %v16078_v40  ;;  %v7445_v17 = vand.u32 4294901760, %v16088_v24  ;;  %v7452_v31 = vand.u32 4294901760, %v16093_v7  ;;  %v19252_v42 = vld [vmem:[#allocation52_spill] sm:$0xff] }
 0x73d   : > { %19251 = vst [vmem:[#allocation79_spill] sm:$0xff] %v16121_v41  ;;  %v19253_v16 = vand.u32 4294901760, %v19252_v42  ;;  %v19255_v12 = vand.u32 4294901760, %v19254_v10  ;;  %v16135_v59 = vadd.f32 %v8973_v30, %v15731_v44  ;;  %v8974_v40 = vpop.f32.mrb[214].mxu1  ;;  %v7070_v29 = vand.u32 4294901760, %v7069_v27  ;;  %19256 = vst [vmem:[#allocation81_spill] sm:$0xff] %v16137_v48 }
 0x73e   : > { %19250 = vst [vmem:[#allocation197_spill] sm:$0xff] %v16119_v54  ;;  %v7079_v39 = vand.u32 4294901760, %v7078_v21  ;;  %v8975_v35 = vpop.f32.mrb[215].mxu1  ;;  %7056 = vmatmul.mubr.f32.vlgmr.msra.gmra.mrb[64].mxu1 %v7055_v61  ;;  %v19257_v24 = vand.u32 4294901760, %v16069_v43  ;;  %v5193_v44 = vld [vmem:[%s17202_s3 + $0xd0] sm:$0xff]  ;;  %v5198_v21 = vld [vmem:[%s17202_s3 + $0xf8] sm:$0xff] }
 0x73f   : > { %v7458_v9 = vsub.f32 %v19252_v42, %v19253_v16  ;;  %v7465_v0 = vsub.f32 %v19254_v10, %v19255_v12  ;;  %v16144_v42 = vsub.f32 %v5185_v47, %v16112_v63  ;;  %v16146_v12 = vand.u32 4294901760, %v5194_v58  ;;  %9936 = vmatpush3.bf16.msra.mxu1 %v15973_v34  ;;  %7065 = vmatprep.mubr.f32.mxu1 %v7064_v37  ;;  %v19262_v63 = vld [vmem:[#allocation50_spill] sm:$0xff] }
 0x740   : > { %v7084_v7 = vsub.f32 %v16069_v43, %v19257_v24  ;;  %v8976_v61 = vadd.f32 %v8975_v35, %v8974_v40  ;;  %v19260_v27 = vand.u32 4294901760, %v16076_v3  ;;  %v16160_v24 = vsub.f32 %v5190_v60, %v16121_v41  ;;  %9938 = vmatprep.subr.bf16.mxu1 %v9937_v18  ;;  %v19264_v40 = vld [vmem:[#allocation51_spill] sm:$0xff] }
 0x741   : > { %19258 = vst [vmem:[#allocation73_spill] sm:$0xff] %v16144_v42  ;;  %19259 = vst [vmem:[#allocation77_spill] sm:$0xff] %v16146_v12  ;;  %v7459_v16 = vand.u32 4294901760, %v7458_v9  ;;  %v7466_v43 = vand.u32 4294901760, %v7465_v0  ;;  %v19263_v10 = vand.u32 4294901760, %v19262_v63  ;;  %v19265_v35 = vand.u32 4294901760, %v19264_v40 }
 0x742   : > { %v7093_v30 = vsub.f32 %v16076_v3, %v19260_v27  ;;  %19261 = vst [vmem:[#allocation18_spill] sm:$0xff] %v16160_v24  ;;  %v16169_v37 = vadd.f32 %v8976_v61, %v15753_v2  ;;  %v8977_v27 = vpop.f32.mrb[216].mxu1  ;;  %v16172_v47 = vsub.f32 %v5189_v25, %v16137_v48  ;;  %v16174_v60 = vand.u32 4294901760, %v5193_v44  ;;  %7071 = vmatmul.mubr.f32.gmra.mrb[66].mxu1 %v7070_v29 }
 0x743   : > { %v7472_v20 = vsub.f32 %v19262_v63, %v19263_v10  ;;  %v7479_v34 = vsub.f32 %v19264_v40, %v19265_v35  ;;  %v16176_v18 = vand.u32 4294901760, %v5198_v21  ;;  %v8978_v0 = vpop.f32.mrb[217].mxu1  ;;  %v7085_v9 = vand.u32 4294901760, %v7084_v7  ;;  %9940 = vmatpush3.bf16.msra.mxu1 %v15975_v23  ;;  %7080 = vmatprep.mubr.f32.mxu1 %v7079_v39  ;;  %v5197_v7 = vld [vmem:[%s17202_s3 + $0xf0] sm:$0xff]  ;;  %v5202_v23 = vld [vmem:[%s17202_s3 + $0x118] sm:$0xff] }
 0x744   : > { %19266 = vst [vmem:[#allocation20_spill] sm:$0xff] %v16172_v47  ;;  %19267 = vst [vmem:[#allocation15_spill] sm:$0xff] %v16174_v60  ;;  %v19269_v10 = vand.u32 4294901760, %v16110_v32  ;;  %v16183_v2 = vsub.f32 %v5194_v58, %v16146_v12  ;;  %v8979_v61 = vadd.f32 %v8978_v0, %v8977_v27  ;;  %v7094_v25 = vand.u32 4294901760, %v7093_v30  ;;  %9942 = vmatprep.subr.bf16.mxu1 %v16083_v8 }
 0x745   : > { %19268 = vst [vmem:[#allocation16_spill] sm:$0xff] %v16176_v18  ;;  %v19271_v48 = vand.u32 4294901760, %v16119_v54  ;;  %v9949_v58 = vpack.c.bf16 %v7466_v43, %v7459_v16  ;;  %v7473_v35 = vand.u32 4294901760, %v7472_v20  ;;  %v7480_v27 = vand.u32 4294901760, %v7479_v34 }
 0x746   : > { %v7099_v3 = vsub.f32 %v16110_v32, %v19269_v10  ;;  %19270 = vst [vmem:[#allocation146_spill] sm:$0xff] %v16183_v2  ;;  %v9945_v10 = vpack.c.bf16 %v7452_v31, %v7445_v17  ;;  %v16198_v39 = vadd.f32 %v8979_v61, %v15775_v28  ;;  %v16202_v0 = vsub.f32 %v5193_v44, %v16174_v60 }
 0x747   : > { %v7108_v63 = vsub.f32 %v16119_v54, %v19271_v48  ;;  %v8980_v48 = vpop.f32.mrb[218].mxu1  ;;  %v16205_v29 = vsub.f32 %v5198_v21, %v16176_v18  ;;  %7086 = vmatmul.mubr.f32.gmra.mrb[68].mxu1 %v7085_v9  ;;  %v19274_v43 = vand.u32 4294901760, %v16144_v42  ;;  %v16211_v28 = vand.u32 4294901760, %v5197_v7 }
 0x748   : > { %19272 = vst [vmem:[#allocation147_spill] sm:$0xff] %v16202_v0  ;;  %v8981_v8 = vpop.f32.mrb[219].mxu1  ;;  %v7100_v20 = vand.u32 4294901760, %v7099_v3  ;;  %9944 = vmatpush3.bf16.msra.mxu1 %v15977_v53  ;;  %7095 = vmatprep.mubr.f32.mxu1 %v7094_v25  ;;  %v19276_v34 = vand.u32 4294901760, %v16160_v24  ;;  %v16217_v61 = vand.u32 4294901760, %v5202_v23  ;;  %v5201_v3 = vld [vmem:[%s17202_s3 + $0x110] sm:$0xff]  ;;  %v9953_v9 = vpack.c.bf16 %v7480_v27, %v7473_v35 }
 0x749   : > { %19273 = vst [vmem:[#allocation135_spill] sm:$0xff] %v16205_v29  ;;  %v7114_v31 = vsub.f32 %v16144_v42, %v19274_v43  ;;  %19275 = vst [vmem:[#allocation140_spill] sm:$0xff] %v16211_v28  ;;  %v8982_v16 = vadd.f32 %v8981_v8, %v8980_v48  ;;  %v7109_v44 = vand.u32 4294901760, %v7108_v63  ;;  %9946 = vmatprep.subr.bf16.mxu1 %v9945_v10  ;;  %v19278_v43 = vld [vmem:[#allocation143_spill] sm:$0xff]  ;;  %v19280_v8 = vld [vmem:[#allocation37_spill] sm:$0xff]  ;;  %v8983_v35 = vpop.f32.mrb[220].mxu1 }
 0x74a   : > { %v7123_v21 = vsub.f32 %v16160_v24, %v19276_v34  ;;  %19277 = vst [vmem:[#allocation40_spill] sm:$0xff] %v16217_v61  ;;  %v19279_v17 = vand.u32 4294901760, %v19278_v43  ;;  %v19281_v53 = vand.u32 4294901760, %v19280_v8  ;;  %v19282_v25 = vld [vmem:[#allocation34_spill] sm:$0xff]  ;;  %v19284_v27 = vand.u32 4294901760, %v16172_v47  ;;  %v8984_v54 = vpop.f32.mrb[221].mxu1 }
 0x74b   : > { %v19283_v30 = vand.u32 4294901760, %v19282_v25  ;;  %v5206_v24 = vld [vmem:[%s17202_s3 + $0x138] sm:$0xff]  ;;  %v16237_v10 = vadd.f32 %v8982_v16, %v15797_v15  ;;  %7101 = vmatmul.mubr.f32.gmra.mrb[70].mxu1 %v7100_v20  ;;  %v19285_v32 = vand.u32 4294901760, %v16183_v2  ;;  %v16248_v18 = vsub.f32 %v5197_v7, %v16211_v28  ;;  %v5205_v20 = vld [vmem:[%s17202_s3 + $0x130] sm:$0xff] }
 0x74c   : > { %v7486_v48 = vsub.f32 %v19278_v43, %v19279_v17  ;;  %v7493_v63 = vsub.f32 %v19280_v8, %v19281_v53  ;;  %v7129_v17 = vsub.f32 %v16172_v47, %v19284_v27  ;;  %v16250_v15 = vand.u32 4294901760, %v5201_v3  ;;  %9948 = vmatpush3.bf16.msra.mxu1 %v15993_v19  ;;  %7110 = vmatprep.mubr.f32.mxu1 %v7109_v44 }
 0x74d   : > { %v16231_v34 = vsub.f32 %v19282_v25, %v19283_v30  ;;  %v7115_v30 = vand.u32 4294901760, %v7114_v31  ;;  %v7138_v25 = vsub.f32 %v16183_v2, %v19285_v32  ;;  %19286 = vst [vmem:[#allocation48_spill] sm:$0xff] %v16248_v18  ;;  %v8985_v16 = vadd.f32 %v8984_v54, %v8983_v35  ;;  %9950 = vmatprep.subr.bf16.mxu1 %v9949_v58  ;;  %v19289_v2 = vld [vmem:[#allocation171_spill] sm:$0xff] }
 0x74e   : > { %19287 = vst [vmem:[#allocation225_spill] sm:$0xff] %v16250_v15  ;;  %v7124_v27 = vand.u32 4294901760, %v7123_v21  ;;  %v16254_v42 = vsub.f32 %v5202_v23, %v16217_v61  ;;  %v16256_v53 = vand.u32 4294901760, %v5206_v24  ;;  %v7487_v32 = vand.u32 4294901760, %v7486_v48  ;;  %v5210_v23 = vld [vmem:[%s17202_s3 + $0x158] sm:$0xff]  ;;  %v8986_v21 = vpop.f32.mrb[222].mxu1 }
 0x74f   : > { %v7494_v7 = vand.u32 4294901760, %v7493_v63  ;;  %v7501_v31 = vand.u32 4294901760, %v16231_v34  ;;  %v19290_v54 = vand.u32 4294901760, %v19289_v2  ;;  %v16269_v44 = vadd.f32 %v8985_v16, %v15819_v62  ;;  %v8987_v34 = vpop.f32.mrb[223].mxu1  ;;  %7116 = vmatmul.mubr.f32.gmra.mrb[72].mxu1 %v7115_v30 }
 0x750   : > { %19288 = vst [vmem:[#allocation85_spill] sm:$0xff] %v16256_v53  ;;  %v7130_v35 = vand.u32 4294901760, %v7129_v17  ;;  %v19291_v47 = vand.u32 4294901760, %v16202_v0  ;;  %v19292_v48 = vand.u32 4294901760, %v16205_v29  ;;  %v16279_v28 = vsub.f32 %v5201_v3, %v16250_v15  ;;  %v5209_v17 = vld [vmem:[%s17202_s3 + $0x150] sm:$0xff]  ;;  %9952 = vmatpush3.bf16.msra.mxu1 %v16000_v5  ;;  %7125 = vmatprep.mubr.f32.mxu1 %v7124_v27  ;;  %v5214_v3 = vld [vmem:[%s17202_s3 + $0x178] sm:$0xff] }
 0x751   : > { %v7507_v19 = vsub.f32 %v19289_v2, %v19290_v54  ;;  %v7139_v54 = vand.u32 4294901760, %v7138_v25  ;;  %v16281_v62 = vand.u32 4294901760, %v5205_v20  ;;  %v8988_v16 = vadd.f32 %v8987_v34, %v8986_v21  ;;  %9954 = vmatprep.subr.bf16.mxu1 %v9953_v9  ;;  %v19297_v5 = vld [vmem:[#allocation28_spill] sm:$0xff] }
 0x752   : > { %v7144_v58 = vsub.f32 %v16202_v0, %v19291_v47  ;;  %v7153_v63 = vsub.f32 %v16205_v29, %v19292_v48  ;;  %v16289_v30 = vsub.f32 %v5206_v24, %v16256_v53  ;;  %v16291_v25 = vand.u32 4294901760, %v5210_v23  ;;  %v19295_v29 = vld [vmem:[#allocation144_spill] sm:$0xff]  ;;  %v9021_v47 = vpop.f32.mrb[224].mxu1 }
 0x753   : > { %19293 = vst [vmem:[#allocation47_spill] sm:$0xff] %v16281_v62  ;;  %v9957_v48 = vpack.c.bf16 %v7494_v7, %v7487_v32  ;;  %v7508_v61 = vand.u32 4294901760, %v7507_v19  ;;  %v19296_v0 = vand.u32 4294901760, %v19295_v29  ;;  %v19298_v27 = vand.u32 4294901760, %v19297_v5  ;;  %v9022_v60 = vpop.f32.mrb[225].mxu1  ;;  %7131 = vmatmul.mubr.f32.gmra.mrb[74].mxu1 %v7130_v35 }
 0x754   : > { %19294 = vst [vmem:[#allocation29_spill] sm:$0xff] %v16291_v25  ;;  %v16303_v24 = vadd.f32 %v8988_v16, %v15838_v50  ;;  %v7145_v53 = vand.u32 4294901760, %v7144_v58  ;;  %v7154_v15 = vand.u32 4294901760, %v7153_v63  ;;  %v16305_v2 = vand.u32 4294901760, %v5209_v17  ;;  %v5213_v50 = vld [vmem:[%s17202_s3 + $0x170] sm:$0xff]  ;;  %v5218_v58 = vld [vmem:[%s17202_s3 + $0x198] sm:$0xff]  ;;  %9956 = vmatpush3.bf16.msra.mxu1 %v16036_v33  ;;  %7140 = vmatprep.mubr.f32.mxu1 %v7139_v54 }
 0x755   : > { %v7388_v21 = vsub.f32 %v19295_v29, %v19296_v0  ;;  %v7395_v34 = vsub.f32 %v19297_v5, %v19298_v27  ;;  %v19300_v9 = vand.u32 4294901760, %v16248_v18  ;;  %v16312_v7 = vsub.f32 %v5205_v20, %v16281_v62  ;;  %9958 = vmatprep.subr.bf16.mxu1 %v9957_v48  ;;  %v9024_v33 = vpop.f32.mrb[226].mxu1 }
 0x756   : > { %19299 = vst [vmem:[#allocation32_spill] sm:$0xff] %v16305_v2  ;;  %v16314_v19 = vand.u32 4294901760, %v5214_v3  ;;  %v9023_v35 = vadd.f32 %v9022_v60, %v9021_v47  ;;  %v19302_v63 = vand.u32 4294901760, %v16254_v42  ;;  %v17886_v20 = vand.u32 4294901760, %v16289_v30  ;;  %v9025_v48 = vpop.f32.mrb[227].mxu1 }
 0x757   : > { %v7159_v32 = vsub.f32 %v16248_v18, %v19300_v9  ;;  %v16328_v27 = vsub.f32 %v5210_v23, %v16291_v25  ;;  %v19304_v9 = vand.u32 4294901760, %v16041_v13  ;;  %v19305_v0 = vand.u32 4294901760, %v16005_v38  ;;  %7146 = vmatmul.mubr.f32.gmra.mrb[76].mxu1 %v7145_v53 }
 0x758   : > { %19301 = vst [vmem:[#allocation240_spill] sm:$0xff] %v16314_v19  ;;  %v7168_v16 = vsub.f32 %v16254_v42, %v19302_v63  ;;  %v9961_v62 = vpack.c.bf16 %v7508_v61, %v7501_v31  ;;  %v7389_v60 = vand.u32 4294901760, %v7388_v21  ;;  %v7396_v47 = vand.u32 4294901760, %v7395_v34  ;;  %7155 = vmatprep.mubr.f32.mxu1 %v7154_v15 }
 0x759   : > { %19303 = vst [vmem:[#allocation23_spill] sm:$0xff] %v16328_v27  ;;  %v9959_v18 = vpack.c.bf16 %v19305_v0, %v19304_v9  ;;  %v16335_v54 = vsub.f32 %v5209_v17, %v16305_v2  ;;  %v16337_v29 = vand.u32 4294901760, %v5213_v50  ;;  %v16339_v63 = vand.u32 4294901760, %v5218_v58 }
 0x75a   : > { %v16342_v23 = vadd.f32 %v9023_v35, %v15863_v11  ;;  %v7160_v13 = vand.u32 4294901760, %v7159_v32  ;;  %v19309_v38 = vand.u32 4294901760, %v16279_v28  ;;  %v17884_v31 = vand.u32 4294901760, %v16312_v7  ;;  %v5217_v32 = vld [vmem:[%s17202_s3 + $0x190] sm:$0xff]  ;;  %v9027_v35 = vpop.f32.mrb[228].mxu1 }
 0x75b   : > { %19306 = vst [vmem:[#allocation25_spill] sm:$0xff] %v16335_v54  ;;  %19307 = vst [vmem:[#allocation234_spill] sm:$0xff] %v16337_v29  ;;  %v16349_v21 = vsub.f32 %v5214_v3, %v16314_v19  ;;  %v9026_v17 = vadd.f32 %v9025_v48, %v9024_v33  ;;  %9960 = vmatpush3.bf16.msra.mxu1 %v9959_v18  ;;  %v7169_v34 = vand.u32 4294901760, %v7168_v16  ;;  %v17883_v53 = vand.u32 4294901760, %v16328_v27  ;;  %v5222_v3 = vld [vmem:[%s17202_s3 + $0x1b8] sm:$0xff]  ;;  %v9028_v33 = vpop.f32.mrb[229].mxu1 }
 0x75c   : > { %19308 = vst [vmem:[#allocation226_spill] sm:$0xff] %v16339_v63  ;;  %v7174_v61 = vsub.f32 %v16279_v28, %v19309_v38  ;;  %v7183_v11 = vsub.f32 %v16289_v30, %v17886_v20  ;;  %9962 = vmatprep.subr.bf16.mxu1 %v9961_v62  ;;  %v9963_v0 = vpack.c.bf16 %v7396_v47, %v7389_v60  ;;  %v17885_v18 = vand.u32 4294901760, %v16335_v54 }
 0x75d   : > { %19310 = vst [vmem:[#allocation241_spill] sm:$0xff] %v16349_v21  ;;  %v16363_v15 = vsub.f32 %v5213_v50, %v16337_v29  ;;  %v16366_v16 = vsub.f32 %v5218_v58, %v16339_v63  ;;  %v16369_v9 = vadd.f32 %v9026_v17, %v15882_v57  ;;  %7161 = vmatmul.mubr.f32.gmra.mrb[78].mxu1 %v7160_v13  ;;  %v17887_v47 = vand.u32 4294901760, %v16349_v21  ;;  %v5221_v13 = vld [vmem:[%s17202_s3 + $0x1b0] sm:$0xff]  ;;  %v5226_v17 = vld [vmem:[%s17202_s3 + $0x1d8] sm:$0xff] }
 0x75e   : > { %v7175_v62 = vand.u32 4294901760, %v7174_v61  ;;  %v7189_v60 = vsub.f32 %v16312_v7, %v17884_v31  ;;  %v16375_v48 = vand.u32 4294901760, %v5217_v32  ;;  %v9029_v38 = vadd.f32 %v9028_v33, %v9027_v35  ;;  %7170 = vmatprep.mubr.f32.mxu1 %v7169_v34  ;;  %v9030_v34 = vpop.f32.mrb[230].mxu1 }
 0x75f   : > { %19311 = vst [vmem:[#allocation227_spill] sm:$0xff] %v16363_v15  ;;  %19312 = vst [vmem:[#allocation235_spill] sm:$0xff] %v16366_v16  ;;  %9964 = vmatpush3.bf16.msra.mxu1 %v9963_v0  ;;  %v7184_v50 = vand.u32 4294901760, %v7183_v11  ;;  %v7198_v57 = vsub.f32 %v16328_v27, %v17883_v53  ;;  %v16380_v58 = vand.u32 4294901760, %v5222_v3  ;;  %v19315_v61 = vpack.c.bf16 %v19169_v36, %v15269_v52  ;;  %v9031_v53 = vpop.f32.mrb[231].mxu1 }
 0x760   : > { %19313 = vst [vmem:[#allocation244_spill] sm:$0xff] %v16375_v48  ;;  %v7204_v11 = vsub.f32 %v16335_v54, %v17885_v18  ;;  %v17894_v0 = vand.u32 4294901760, %v16363_v15  ;;  %v16397_v33 = vadd.f32 %v9029_v38, %v15894_v1  ;;  %v7190_v52 = vand.u32 4294901760, %v7189_v60  ;;  %v5230_v60 = vld [vmem:[%s17202_s3 + $0x1f8] sm:$0xff] }
 0x761   : > { %19314 = vst [vmem:[#allocation229_spill] sm:$0xff] %v16380_v58  ;;  %9966 = vmatprep.subr.bf16.mxu1 %v19315_v61  ;;  %7176 = vmatmul.mubr.f32.gmra.mrb[80].mxu1 %v7175_v62  ;;  %v7213_v36 = vsub.f32 %v16349_v21, %v17887_v47  ;;  %v16403_v61 = vsub.f32 %v5217_v32, %v16375_v48  ;;  %v16405_v31 = vand.u32 4294901760, %v5221_v13  ;;  %v7199_v20 = vand.u32 4294901760, %v7198_v57  ;;  %v5225_v62 = vld [vmem:[%s17202_s3 + $0x1d0] sm:$0xff]  ;;  %v9033_v32 = vpop.f32.mrb[232].mxu1 }
 0x762   : > { %v9032_v18 = vadd.f32 %v9031_v53, %v9030_v34  ;;  %7185 = vmatprep.mubr.f32.mxu1 %v7184_v50  ;;  %v16408_v35 = vsub.f32 %v5222_v3, %v16380_v58  ;;  %v16410_v1 = vand.u32 4294901760, %v5226_v17  ;;  %v7205_v38 = vand.u32 4294901760, %v7204_v11  ;;  %v9034_v34 = vpop.f32.mrb[233].mxu1 }
 0x763   : > { %19316 = vst [vmem:[#allocation5_spill] sm:$0xff] %v16403_v61  ;;  %19317 = vst [vmem:[#allocation24_spill] sm:$0xff] %v16405_v31  ;;  %v7219_v53 = vsub.f32 %v16363_v15, %v17894_v0  ;;  %v19320_v50 = vand.u32 4294901760, %v16366_v16  ;;  %v7214_v47 = vand.u32 4294901760, %v7213_v36  ;;  %v16429_v54 = vsub.f32 %v5221_v13, %v16405_v31 }
 0x764   : > { %19318 = vst [vmem:[#allocation26_spill] sm:$0xff] %v16408_v35  ;;  %19319 = vst [vmem:[#allocation27_spill] sm:$0xff] %v16410_v1  ;;  %v16425_v57 = vadd.f32 %v9032_v18, %v15899_v22  ;;  %v16431_v11 = vand.u32 4294901760, %v5225_v62  ;;  %v9035_v27 = vadd.f32 %v9034_v34, %v9033_v32  ;;  %v16435_v15 = vsub.f32 %v5226_v17, %v16410_v1  ;;  %v5229_v22 = vld [vmem:[%s17202_s3 + $0x1f0] sm:$0xff] }
 0x765   : > { %v7228_v3 = vsub.f32 %v16366_v16, %v19320_v50  ;;  %7191 = vmatmul.mubr.f32.gmra.mrb[82].mxu1 %v7190_v52  ;;  %v16437_v50 = vand.u32 4294901760, %v5230_v60  ;;  %v9036_v18 = vpop.f32.mrb[234].mxu1  ;;  %v7220_v52 = vand.u32 4294901760, %v7219_v53  ;;  %v16452_v0 = vand.u32 4294901760, %v5229_v22 }
 0x766   : > { %19321 = vst [vmem:[#allocation33_spill] sm:$0xff] %v16431_v11  ;;  %7200 = vmatprep.mubr.f32.mxu1 %v7199_v20  ;;  %v16443_v13 = vadd.f32 %v9035_v27, %v15922_v51  ;;  %v9037_v21 = vpop.f32.mrb[235].mxu1  ;;  %v19323_v20 = vand.u32 4294901760, %v16403_v61  ;;  %v16450_v34 = vsub.f32 %v5225_v62, %v16431_v11  ;;  %v19325_v53 = vand.u32 4294901760, %v16408_v35 }
 0x767   : > { %19322 = vst [vmem:[#allocation196_spill] sm:$0xff] %v16437_v50  ;;  %v7229_v36 = vand.u32 4294901760, %v7228_v3  ;;  %19324 = vst [vmem:[#allocation191_spill] sm:$0xff] %v16452_v0  ;;  %v9038_v16 = vadd.f32 %v9037_v21, %v9036_v18  ;;  %v17903_v27 = vand.u32 4294901760, %v16435_v15  ;;  %v16469_v18 = vsub.f32 %v5229_v22, %v16452_v0 }
 0x768   : > { %v7234_v32 = vsub.f32 %v16403_v61, %v19323_v20  ;;  %v7243_v51 = vsub.f32 %v16408_v35, %v19325_v53  ;;  %v19327_v61 = vand.u32 4294901760, %v16429_v54 }
 0x769   : > { %7206 = vmatmul.mubr.f32.gmra.mrb[84].mxu1 %v7205_v38  ;;  %v16459_v38 = vsub.f32 %v5230_v60, %v16437_v50  ;;  %v9039_v3 = vpop.f32.mrb[236].mxu1  ;;  %v16462_v20 = vadd.f32 %v9038_v16, %v15950_v26  ;;  %v7258_v26 = vsub.f32 %v16435_v15, %v17903_v27 }
 0x76a   : > { %7215 = vmatprep.mubr.f32.mxu1 %v7214_v47  ;;  %v9040_v17 = vpop.f32.mrb[237].mxu1  ;;  %v7235_v62 = vand.u32 4294901760, %v7234_v32  ;;  %v7249_v21 = vsub.f32 %v16429_v54, %v19327_v61  ;;  %v17904_v47 = vand.u32 4294901760, %v16450_v34  ;;  %v7244_v60 = vand.u32 4294901760, %v7243_v51 }
 0x76b   : > { %19326 = vst [vmem:[#allocation35_spill] sm:$0xff] %v16459_v38  ;;  %v9041_v53 = vadd.f32 %v9040_v17, %v9039_v3  ;;  %v17905_v16 = vand.u32 4294901760, %v16459_v38  ;;  %v7259_v51 = vand.u32 4294901760, %v7258_v26 }
 0x76c   : > { %v7250_v61 = vand.u32 4294901760, %v7249_v21  ;;  %v7264_v22 = vsub.f32 %v16450_v34, %v17904_v47 }
 0x76d   : > { %7221 = vmatmul.mubr.f32.gmra.mrb[86].mxu1 %v7220_v52  ;;  %v9042_v52 = vpop.f32.mrb[238].mxu1  ;;  %v16476_v32 = vadd.f32 %v9041_v53, %v15980_v49  ;;  %v7273_v3 = vsub.f32 %v16459_v38, %v17905_v16 }
 0x76e   : > { %7230 = vmatprep.mubr.f32.mxu1 %v7229_v36  ;;  %v9043_v35 = vpop.f32.mrb[239].mxu1  ;;  %v17908_v36 = vand.u32 4294901760, %v16469_v18 }
 0x76f   : > { %v9044_v17 = vadd.f32 %v9043_v35, %v9042_v52  ;;  %v7274_v35 = vand.u32 4294901760, %v7273_v3  ;;  %v19328_v3 = vpack.c.bf16 %v19186_v45, %v19196_v56  ;;  %v19337_v45 = vld [vmem:[#allocation13_spill] sm:$0xff]  ;;  %v19338_v56 = vld [vmem:[#allocation78_spill] sm:$0xff] }
 0x770   : > { %v7279_v21 = vsub.f32 %v16469_v18, %v17908_v36  ;;  %v19350_v36 = vld [vmem:[#allocation9_spill] sm:$0xff] }
 0x771   : > { %7236 = vmatmul.mubr.f32.gmra.mrb[88].mxu1 %v7235_v62  ;;  %v9045_v27 = vpop.f32.mrb[240].mxu1  ;;  %v16486_v49 = vadd.f32 %v9044_v17, %v16023_v46  ;;  %v7265_v62 = vand.u32 4294901760, %v7264_v22 }
 0x772   : > { %7245 = vmatprep.mubr.f32.mxu1 %v7244_v60  ;;  %v9046_v53 = vpop.f32.mrb[241].mxu1  ;;  %v7280_v16 = vand.u32 4294901760, %v7279_v21 }
 0x773   : > { %v9047_v47 = vadd.f32 %v9046_v53, %v9045_v27  ;;  %v19329_v53 = vld [vmem:[#allocation176_spill] sm:$0xff] }
 0x775   : > { %7251 = vmatmul.mubr.f32.gmra.mrb[90].mxu1 %v7250_v61  ;;  %v9048_v60 = vpop.f32.mrb[242].mxu1  ;;  %v16492_v26 = vadd.f32 %v9047_v47, %v16057_v14 }
 0x776   : > { %7260 = vmatprep.mubr.f32.mxu1 %v7259_v51  ;;  %v9049_v52 = vpop.f32.mrb[243].mxu1 }
 0x777   : > { %v9050_v38 = vadd.f32 %v9049_v52, %v9048_v60  ;;  %v19334_v52 = vld [vmem:[#allocation45_spill] sm:$0xff] }
 0x779   : > { %7266 = vmatmul.mubr.f32.gmra.mrb[92].mxu1 %v7265_v62  ;;  %v9051_v46 = vpop.f32.mrb[244].mxu1  ;;  %v16495_v61 = vadd.f32 %v9050_v38, %v16099_v6  ;;  %v19330_v6 = vld [vmem:[#allocation22_spill] sm:$0xff]  ;;  %v19331_v38 = vld [vmem:[#allocation21_spill] sm:$0xff] }
 0x77a   : > { %7275 = vmatprep.mubr.f32.mxu1 %v7274_v35  ;;  %v9052_v22 = vpop.f32.mrb[245].mxu1  ;;  %v19333_v35 = vld [vmem:[#allocation6_spill] sm:$0xff] }
 0x77b   : > { %v9053_v17 = vadd.f32 %v9052_v22, %v9051_v46  ;;  %v19335_v46 = vld [vmem:[#allocation46_spill] sm:$0xff] }
 0x77c   : > { %v19336_v22 = vpack.c.bf16 %v19334_v52, %v19335_v46  ;;  %v19346_v52 = vld [vmem:[#allocation72_spill] sm:$0xff]  ;;  %v19347_v46 = vld [vmem:[#allocation137_spill] sm:$0xff] }
 0x77d   : > { %7281 = vmatmul.mubr.f32.gmra.mrb[94].mxu1 %v7280_v16  ;;  %v9054_v27 = vpop.f32.mrb[246].mxu1  ;;  %v16499_v51 = vadd.f32 %v9053_v17, %v16135_v59  ;;  %v19332_v16 = vpack.c.bf16 %v19330_v6, %v19331_v38  ;;  %v19339_v17 = vld [vmem:[#allocation150_spill] sm:$0xff]  ;;  %v19342_v38 = vld [vmem:[#allocation75_spill] sm:$0xff] }
 0x77e   : > { %7511 = vmatprep.mubr.f32.mxu1 %v15938_v4  ;;  %v9055_v14 = vpop.f32.mrb[247].mxu1 }
 0x77f   : > { %v9056_v47 = vadd.f32 %v9055_v14, %v9054_v27  ;;  %v19340_v27 = vpack.c.bf16 %v19338_v56, %v19339_v17 }
 0x781   : > { %7513 = vmatmul.mubr.f32.vlgmr.msra.gmra.mrb[96].mxu1 %v15952_v55  ;;  %v9057_v62 = vpop.f32.mrb[248].mxu1  ;;  %v16510_v21 = vadd.f32 %v9056_v47, %v16169_v37  ;;  %v19341_v47 = vld [vmem:[#allocation118_spill] sm:$0xff] }
 0x782   : > { %9968 = vmatpush3.bf16.msra.mxu1 %v19328_v3  ;;  %7518 = vmatprep.mubr.f32.mxu1 %v19329_v53  ;;  %v9058_v59 = vpop.f32.mrb[249].mxu1  ;;  %v19426_v53 = vld [vmem:[#allocation101_spill] sm:$0xff] }
 0x783   : > { %9970 = vmatprep.subr.bf16.mxu1 %v19332_v16  ;;  %v9059_v60 = vadd.f32 %v9058_v59, %v9057_v62  ;;  %v19343_v16 = vld [vmem:[#allocation59_spill] sm:$0xff]  ;;  %v19345_v59 = vld [vmem:[#allocation122_spill] sm:$0xff] }
 0x784   : > { %v19344_v62 = vpack.c.bf16 %v19342_v38, %v19343_v16  ;;  %v19353_v38 = vld [vmem:[#allocation203_spill] sm:$0xff]  ;;  %v19354_v16 = vld [vmem:[#allocation53_spill] sm:$0xff] }
 0x785   : > { %7520 = vmatmul.mubr.f32.gmra.mrb[98].mxu1 %v19333_v35  ;;  %v9060_v14 = vpop.f32.mrb[250].mxu1  ;;  %v16521_v3 = vadd.f32 %v9059_v60, %v16198_v39  ;;  %v19349_v60 = vld [vmem:[#allocation109_spill] sm:$0xff] }
 0x786   : > { %9972 = vmatpush3.bf16.msra.mxu1 %v19336_v22  ;;  %7525 = vmatprep.mubr.f32.mxu1 %v19337_v45  ;;  %v9061_v37 = vpop.f32.mrb[251].mxu1  ;;  %v19348_v22 = vpack.c.bf16 %v19346_v52, %v19347_v46  ;;  %v19421_v45 = vld [vmem:[#allocation5_spill] sm:$0xff] }
 0x787   : > { %9974 = vmatprep.subr.bf16.mxu1 %v19340_v27  ;;  %v9062_v6 = vadd.f32 %v9061_v37, %v9060_v14  ;;  %v19351_v14 = vld [vmem:[#allocation11_spill] sm:$0xff] }
 0x788   : > { %v19352_v37 = vpack.c.bf16 %v19350_v36, %v19351_v14  ;;  %v19361_v36 = vld [vmem:[#allocation50_spill] sm:$0xff] }
 0x789   : > { %7527 = vmatmul.mubr.f32.gmra.mrb[100].mxu1 %v19341_v47  ;;  %v9063_v56 = vpop.f32.mrb[252].mxu1  ;;  %v16532_v17 = vadd.f32 %v9062_v6, %v16237_v10  ;;  %v19357_v6 = vld [vmem:[#allocation194_spill] sm:$0xff]  ;;  %v19362_v14 = vpack.c.bf16 %v19264_v40, %v19361_v36  ;;  %v19369_v36 = vld [vmem:[#allocation83_spill] sm:$0xff] }
 0x78a   : > { %9976 = vmatpush3.bf16.msra.mxu1 %v19344_v62  ;;  %7532 = vmatprep.mubr.f32.mxu1 %v19345_v59  ;;  %v9064_v39 = vpop.f32.mrb[253].mxu1  ;;  %v19355_v62 = vld [vmem:[#allocation52_spill] sm:$0xff]  ;;  %v19419_v47 = vld [vmem:[#allocation227_spill] sm:$0xff] }
 0x78b   : > { %9978 = vmatprep.subr.bf16.mxu1 %v19348_v22  ;;  %v9065_v27 = vadd.f32 %v9064_v39, %v9063_v56  ;;  %v19356_v59 = vpack.c.bf16 %v19354_v16, %v19355_v62  ;;  %v19359_v56 = vld [vmem:[#allocation93_spill] sm:$0xff]  ;;  %v19364_v62 = vld [vmem:[#allocation108_spill] sm:$0xff] }
 0x78d   : > { %7534 = vmatmul.mubr.f32.gmra.mrb[102].mxu1 %v19349_v60  ;;  %v9066_v52 = vpop.f32.mrb[254].mxu1  ;;  %v16543_v46 = vadd.f32 %v9065_v27, %v16269_v44  ;;  %v19358_v60 = vld [vmem:[#allocation130_spill] sm:$0xff]  ;;  %v19363_v27 = vld [vmem:[#allocation81_spill] sm:$0xff] }
 0x78e   : > { %9980 = vmatpush3.bf16.msra.mxu1 %v19352_v37  ;;  %7539 = vmatprep.mubr.f32.mxu1 %v19353_v38  ;;  %v9067_v10 = vpop.f32.mrb[255].mxu1  ;;  %v19360_v39 = vpack.c.bf16 %v19358_v60, %v19359_v56  ;;  %v19367_v60 = vpack.c.bf16 %v19280_v8, %v19278_v43  ;;  %v19412_v38 = vld [vmem:[#allocation67_spill] sm:$0xff] }
 0x78f   : > { %9982 = vmatprep.subr.bf16.mxu1 %v19356_v59  ;;  %v9068_v22 = vadd.f32 %v9067_v10, %v9066_v52  ;;  %v19365_v52 = vld [vmem:[#allocation64_spill] sm:$0xff] }
 0x790   : > { %v19366_v10 = vpack.c.bf16 %v19364_v62, %v19365_v52  ;;  %v19373_v62 = vld [vmem:[#allocation171_spill] sm:$0xff]  ;;  %v19374_v52 = vld [vmem:[#allocation34_spill] sm:$0xff] }
 0x791   : > { %7541 = vmatmul.mubr.f32.gmra.mrb[104].mxu1 %v19357_v6  ;;  %v9101_v37 = vpop.f32.mrb[0].mxu1  ;;  %v16554_v59 = vadd.f32 %v9068_v22, %v16303_v24  ;;  %v19368_v22 = vld [vmem:[#allocation15_spill] sm:$0xff]  ;;  %v19408_v6 = vld [vmem:[#allocation182_spill] sm:$0xff] }
 0x792   : > { %9984 = vmatpush3.bf16.msra.mxu1 %v19360_v39  ;;  %7546 = vmatprep.mubr.f32.mxu1 %v16121_v41  ;;  %v9102_v44 = vpop.f32.mrb[1].mxu1  ;;  %v19407_v41 = vld [vmem:[#allocation146_spill] sm:$0xff] }
 0x793   : > { %9986 = vmatprep.subr.bf16.mxu1 %v19362_v14  ;;  %v9103_v16 = vadd.f32 %v9102_v44, %v9101_v37  ;;  %v19370_v14 = vld [vmem:[#allocation39_spill] sm:$0xff]  ;;  %v19372_v44 = vld [vmem:[#allocation16_spill] sm:$0xff] }
 0x794   : > { %v19371_v37 = vpack.c.bf16 %v19369_v36, %v19370_v14  ;;  %v19379_v36 = vld [vmem:[#allocation40_spill] sm:$0xff] }
 0x795   : > { %7548 = vmatmul.mubr.f32.gmra.mrb[106].mxu1 %v19363_v27  ;;  %v16565_v40 = vadd.f32 %v9103_v16, %v16342_v23  ;;  %v9104_v56 = vpop.f32.mrb[2].mxu1  ;;  %v19376_v16 = vld [vmem:[#allocation140_spill] sm:$0xff] }
 0x796   : > { %9988 = vmatpush3.bf16.msra.mxu1 %v19366_v10  ;;  %7553 = vmatprep.mubr.f32.mxu1 %v16146_v12  ;;  %v9105_v24 = vpop.f32.mrb[3].mxu1  ;;  %v19375_v10 = vpack.c.bf16 %v19373_v62, %v19374_v52  ;;  %v19380_v14 = vld [vmem:[#allocation80_spill] sm:$0xff] }
 0x797   : > { %9990 = vmatprep.subr.bf16.mxu1 %v19367_v60  ;;  %v9106_v39 = vadd.f32 %v9105_v24, %v9104_v56  ;;  %v19377_v56 = vld [vmem:[#allocation144_spill] sm:$0xff] }
 0x798   : > { %v19378_v24 = vpack.c.bf16 %v19297_v5, %v19377_v56  ;;  %v19383_v56 = vld [vmem:[#allocation47_spill] sm:$0xff]  ;;  %v19405_v27 = vld [vmem:[#allocation20_spill] sm:$0xff] }
 0x799   : > { %7555 = vmatmul.mubr.f32.gmra.mrb[108].mxu1 %v19368_v22  ;;  %v16576_v43 = vadd.f32 %v9106_v39, %v16369_v9  ;;  %v9107_v8 = vpop.f32.mrb[4].mxu1  ;;  %v19381_v9 = vld [vmem:[#allocation225_spill] sm:$0xff]  ;;  %v19404_v22 = vld [vmem:[#allocation190_spill] sm:$0xff] }
 0x79a   : > { %9992 = vmatpush3.bf16.msra.mxu1 %v19371_v37  ;;  %7560 = vmatprep.mubr.f32.mxu1 %v19372_v44  ;;  %v9108_v23 = vpop.f32.mrb[5].mxu1  ;;  %v19403_v44 = vld [vmem:[#allocation18_spill] sm:$0xff] }
 0x79b   : > { %9994 = vmatprep.subr.bf16.mxu1 %v19375_v10  ;;  %v9109_v60 = vadd.f32 %v9108_v23, %v9107_v8  ;;  %v19382_v10 = vld [vmem:[#allocation85_spill] sm:$0xff] }
 0x79d   : > { %7562 = vmatmul.mubr.f32.gmra.mrb[110].mxu1 %v19376_v16  ;;  %v16585_v37 = vadd.f32 %v9109_v60, %v16397_v33  ;;  %v9110_v62 = vpop.f32.mrb[6].mxu1  ;;  %v19401_v16 = vld [vmem:[#allocation73_spill] sm:$0xff] }
 0x79e   : > { %9996 = vmatpush3.bf16.msra.mxu1 %v19378_v24  ;;  %7567 = vmatprep.mubr.f32.mxu1 %v19379_v36  ;;  %v9111_v52 = vpop.f32.mrb[7].mxu1 }
 0x79f   : > { %9998 = vmatprep.subr.bf16.mxu1 %v19380_v14  ;;  %v9112_v39 = vadd.f32 %v9111_v52, %v9110_v62 }
 0x7a1   : > { %7569 = vmatmul.mubr.f32.gmra.mrb[112].mxu1 %v19381_v9  ;;  %v16590_v8 = vadd.f32 %v9112_v39, %v16425_v57  ;;  %v9113_v23 = vpop.f32.mrb[8].mxu1 }
 0x7a2   : > { %7574 = vmatprep.mubr.f32.mxu1 %v19382_v10  ;;  %v9114_v5 = vpop.f32.mrb[9].mxu1  ;;  %v19400_v10 = vld [vmem:[#allocation94_spill] sm:$0xff] }
 0x7a3   : > { %v9115_v24 = vadd.f32 %v9114_v5, %v9113_v23 }
 0x7a5   : > { %7576 = vmatmul.mubr.f32.gmra.mrb[114].mxu1 %v19383_v56  ;;  %v16595_v33 = vadd.f32 %v9115_v24, %v16443_v13  ;;  %v9116_v60 = vpop.f32.mrb[10].mxu1  ;;  %v19399_v56 = vld [vmem:[#allocation197_spill] sm:$0xff] }
 0x7a6   : > { %7581 = vmatprep.mubr.f32.mxu1 %v16291_v25  ;;  %v9117_v36 = vpop.f32.mrb[11].mxu1  ;;  %v19397_v25 = vld [vmem:[#allocation207_spill] sm:$0xff] }
 0x7a7   : > { %v9118_v62 = vadd.f32 %v9117_v36, %v9116_v60 }
 0x7a9   : > { %7583 = vmatmul.mubr.f32.gmra.mrb[116].mxu1 %v16305_v2  ;;  %v16600_v57 = vadd.f32 %v9118_v62, %v16462_v20  ;;  %v9119_v52 = vpop.f32.mrb[12].mxu1 }
 0x7aa   : > { %7588 = vmatprep.mubr.f32.mxu1 %v16314_v19  ;;  %v9120_v39 = vpop.f32.mrb[13].mxu1  ;;  %v19396_v19 = vld [vmem:[#allocation163_spill] sm:$0xff] }
 0x7ab   : > { %v9121_v23 = vadd.f32 %v9120_v39, %v9119_v52 }
 0x7ad   : > { %7590 = vmatmul.mubr.f32.gmra.mrb[118].mxu1 %v16337_v29  ;;  %v16605_v13 = vadd.f32 %v9121_v23, %v16476_v32  ;;  %v9122_v5 = vpop.f32.mrb[14].mxu1  ;;  %v19395_v29 = vld [vmem:[#allocation113_spill] sm:$0xff] }
 0x7ae   : > { %7595 = vmatprep.mubr.f32.mxu1 %v16339_v63  ;;  %v9123_v24 = vpop.f32.mrb[15].mxu1  ;;  %v19393_v63 = vld [vmem:[#allocation184_spill] sm:$0xff] }
 0x7af   : > { %v9124_v36 = vadd.f32 %v9123_v24, %v9122_v5 }
 0x7b1   : > { %7597 = vmatmul.mubr.f32.gmra.mrb[120].mxu1 %v16375_v48  ;;  %v16610_v20 = vadd.f32 %v9124_v36, %v16486_v49  ;;  %v9125_v60 = vpop.f32.mrb[16].mxu1 }
 0x7b2   : > { %7602 = vmatprep.mubr.f32.mxu1 %v16380_v58  ;;  %v9126_v62 = vpop.f32.mrb[17].mxu1  ;;  %v19392_v58 = vld [vmem:[#allocation99_spill] sm:$0xff] }
 0x7b3   : > { %v9127_v52 = vadd.f32 %v9126_v62, %v9125_v60  ;;  %v19384_v62 = vld [vmem:[#allocation61_spill] sm:$0xff] }
 0x7b5   : > { %7604 = vmatmul.mubr.f32.gmra.mrb[122].mxu1 %v16405_v31  ;;  %v16615_v32 = vadd.f32 %v9127_v52, %v16492_v26  ;;  %v9128_v39 = vpop.f32.mrb[18].mxu1  ;;  %v19385_v31 = vld [vmem:[#allocation65_spill] sm:$0xff] }
 0x7b6   : > { %7609 = vmatprep.mubr.f32.mxu1 %v16410_v1  ;;  %v9129_v23 = vpop.f32.mrb[19].mxu1 }
 0x7b7   : > { %v9130_v5 = vadd.f32 %v9129_v23, %v9128_v39  ;;  %v19386_v23 = vld [vmem:[#allocation55_spill] sm:$0xff] }
 0x7b9   : > { %7611 = vmatmul.mubr.f32.gmra.mrb[124].mxu1 %v16431_v11  ;;  %v16620_v49 = vadd.f32 %v9130_v5, %v16495_v61  ;;  %v9131_v24 = vpop.f32.mrb[20].mxu1  ;;  %v19388_v61 = vld [vmem:[#allocation58_spill] sm:$0xff]  ;;  %v19391_v11 = vld [vmem:[#allocation180_spill] sm:$0xff] }
 0x7ba   : > { %7616 = vmatprep.mubr.f32.mxu1 %v16437_v50  ;;  %v9132_v36 = vpop.f32.mrb[21].mxu1  ;;  %v19387_v50 = vld [vmem:[#allocation8_spill] sm:$0xff] }
 0x7bb   : > { %v9133_v60 = vadd.f32 %v9132_v36, %v9131_v24 }
 0x7bd   : > { %7618 = vmatmul.mubr.f32.gmra.mrb[126].mxu1 %v16452_v0  ;;  %v16625_v26 = vadd.f32 %v9133_v60, %v16499_v51  ;;  %v9134_v52 = vpop.f32.mrb[22].mxu1  ;;  %v19389_v0 = vld [vmem:[#allocation10_spill] sm:$0xff]  ;;  %v19390_v60 = vld [vmem:[#allocation157_spill] sm:$0xff] }
 0x7be   : > { %7753 = vmatprep.mubr.f32.mxu1 %v19384_v62  ;;  %v9135_v1 = vpop.f32.mrb[23].mxu1 }
 0x7bf   : > { %v9136_v39 = vadd.f32 %v9135_v1, %v9134_v52 }
 0x7c1   : > { %7756 = vmatmul.mubr.f32.vlgmr.msra.gmra.mrb[128].mxu1 %v19385_v31  ;;  %v16632_v5 = vadd.f32 %v9136_v39, %v16510_v21  ;;  %v9137_v24 = vpop.f32.mrb[24].mxu1  ;;  %v19394_v39 = vld [vmem:[#allocation100_spill] sm:$0xff] }
 0x7c2   : > { %10000 = vmatpush3.bf16.msra.mxu1 %v19386_v23  ;;  %7762 = vmatprep.mubr.f32.mxu1 %v19387_v50  ;;  %v9138_v36 = vpop.f32.mrb[25].mxu1 }
 0x7c3   : > { %10002 = vmatprep.subr.bf16.mxu1 %v19388_v61  ;;  %v9139_v51 = vadd.f32 %v9138_v36, %v9137_v24 }
 0x7c5   : > { %7765 = vmatmul.mubr.f32.gmra.mrb[130].mxu1 %v19389_v0  ;;  %v16639_v1 = vadd.f32 %v9139_v51, %v16521_v3  ;;  %v9140_v52 = vpop.f32.mrb[26].mxu1  ;;  %v19398_v51 = vld [vmem:[#allocation92_spill] sm:$0xff] }
 0x7c6   : > { %10004 = vmatpush3.bf16.msra.mxu1 %v19390_v60  ;;  %7771 = vmatprep.mubr.f32.mxu1 %v19391_v11  ;;  %v9141_v48 = vpop.f32.mrb[27].mxu1 }
 0x7c7   : > { %10006 = vmatprep.subr.bf16.mxu1 %v19392_v58  ;;  %v9142_v21 = vadd.f32 %v9141_v48, %v9140_v52 }
 0x7c9   : > { %7774 = vmatmul.mubr.f32.gmra.mrb[132].mxu1 %v19393_v63  ;;  %v16646_v24 = vadd.f32 %v9142_v21, %v16532_v17  ;;  %v9143_v36 = vpop.f32.mrb[28].mxu1  ;;  %v19402_v21 = vld [vmem:[#allocation188_spill] sm:$0xff] }
 0x7ca   : > { %10008 = vmatpush3.bf16.msra.mxu1 %v19394_v39  ;;  %7780 = vmatprep.mubr.f32.mxu1 %v19395_v29  ;;  %v9144_v2 = vpop.f32.mrb[29].mxu1 }
 0x7cb   : > { %10010 = vmatprep.subr.bf16.mxu1 %v19396_v19  ;;  %v9145_v3 = vadd.f32 %v9144_v2, %v9143_v36  ;;  %v19417_v19 = vld [vmem:[#allocation25_spill] sm:$0xff] }
 0x7cd   : > { %7783 = vmatmul.mubr.f32.gmra.mrb[134].mxu1 %v19397_v25  ;;  %v16653_v48 = vadd.f32 %v9145_v3, %v16543_v46  ;;  %v9146_v52 = vpop.f32.mrb[30].mxu1  ;;  %v19406_v3 = vld [vmem:[#allocation178_spill] sm:$0xff] }
 0x7ce   : > { %10012 = vmatpush3.bf16.msra.mxu1 %v19398_v51  ;;  %7789 = vmatprep.mubr.f32.mxu1 %v19399_v56  ;;  %v9147_v9 = vpop.f32.mrb[31].mxu1  ;;  %v19415_v51 = vld [vmem:[#allocation31_spill] sm:$0xff] }
 0x7cf   : > { %10014 = vmatprep.subr.bf16.mxu1 %v19400_v10  ;;  %v9148_v17 = vadd.f32 %v9147_v9, %v9146_v52  ;;  %v19411_v10 = vld [vmem:[#allocation135_spill] sm:$0xff] }
 0x7d1   : > { %7792 = vmatmul.mubr.f32.gmra.mrb[136].mxu1 %v19401_v16  ;;  %v16660_v2 = vadd.f32 %v9148_v17, %v16554_v59  ;;  %v9181_v36 = vpop.f32.mrb[32].mxu1  ;;  %v19410_v17 = vld [vmem:[#allocation166_spill] sm:$0xff] }
 0x7d2   : > { %10016 = vmatpush3.bf16.msra.mxu1 %v19402_v21  ;;  %7798 = vmatprep.mubr.f32.mxu1 %v19403_v44  ;;  %v9182_v12 = vpop.f32.mrb[33].mxu1 }
 0x7d3   : > { %10018 = vmatprep.subr.bf16.mxu1 %v19404_v22  ;;  %v9183_v46 = vadd.f32 %v9182_v12, %v9181_v36  ;;  %v19409_v22 = vld [vmem:[#allocation147_spill] sm:$0xff] }
 0x7d5   : > { %7801 = vmatmul.mubr.f32.gmra.mrb[138].mxu1 %v19405_v27  ;;  %v16667_v9 = vadd.f32 %v9183_v46, %v16565_v40  ;;  %v9184_v52 = vpop.f32.mrb[34].mxu1  ;;  %v19414_v46 = vld [vmem:[#allocation69_spill] sm:$0xff] }
 0x7d6   : > { %10020 = vmatpush3.bf16.msra.mxu1 %v19406_v3  ;;  %7807 = vmatprep.mubr.f32.mxu1 %v19407_v41  ;;  %v9185_v21 = vpop.f32.mrb[35].mxu1 }
 0x7d7   : > { %10022 = vmatprep.subr.bf16.mxu1 %v19408_v6  ;;  %v9186_v59 = vadd.f32 %v9185_v21, %v9184_v52  ;;  %v19413_v6 = vld [vmem:[#allocation48_spill] sm:$0xff] }
 0x7d9   : > { %7810 = vmatmul.mubr.f32.gmra.mrb[140].mxu1 %v19409_v22  ;;  %v16674_v12 = vadd.f32 %v9186_v59, %v16576_v43  ;;  %v9187_v36 = vpop.f32.mrb[36].mxu1 }
 0x7da   : > { %10024 = vmatpush3.bf16.msra.mxu1 %v19410_v17  ;;  %7816 = vmatprep.mubr.f32.mxu1 %v19411_v10  ;;  %v9188_v3 = vpop.f32.mrb[37].mxu1 }
 0x7db   : > { %10026 = vmatprep.subr.bf16.mxu1 %v19412_v38  ;;  %v9189_v40 = vadd.f32 %v9188_v3, %v9187_v36  ;;  %v19416_v38 = vld [vmem:[#allocation23_spill] sm:$0xff] }
 0x7dd   : > { %7819 = vmatmul.mubr.f32.gmra.mrb[142].mxu1 %v19413_v6  ;;  %v16681_v21 = vadd.f32 %v9189_v40, %v16585_v37  ;;  %v9190_v52 = vpop.f32.mrb[38].mxu1 }
 0x7de   : > { %10028 = vmatpush3.bf16.msra.mxu1 %v19414_v46  ;;  %7825 = vmatprep.mubr.f32.mxu1 %v16254_v42  ;;  %v9191_v17 = vpop.f32.mrb[39].mxu1 }
 0x7df   : > { %10030 = vmatprep.subr.bf16.mxu1 %v19415_v51  ;;  %v9192_v43 = vadd.f32 %v9191_v17, %v9190_v52  ;;  %v19418_v52 = vld [vmem:[#allocation241_spill] sm:$0xff] }
 0x7e1   : > { %7828 = vmatmul.mubr.f32.gmra.mrb[144].mxu1 %v16279_v28  ;;  %v16686_v59 = vadd.f32 %v9192_v43, %v16590_v8  ;;  %v9193_v3 = vpop.f32.mrb[40].mxu1 }
 0x7e2   : > { %7834 = vmatprep.mubr.f32.mxu1 %v16289_v30  ;;  %v9194_v36 = vpop.f32.mrb[41].mxu1 }
 0x7e3   : > { %v9195_v46 = vadd.f32 %v9194_v36, %v9193_v3  ;;  %v19420_v36 = vld [vmem:[#allocation235_spill] sm:$0xff] }
 0x7e5   : > { %7837 = vmatmul.mubr.f32.gmra.mrb[146].mxu1 %v16312_v7  ;;  %v16691_v37 = vadd.f32 %v9195_v46, %v16595_v33  ;;  %v9196_v51 = vpop.f32.mrb[42].mxu1 }
 0x7e6   : > { %7843 = vmatprep.mubr.f32.mxu1 %v19416_v38  ;;  %v9197_v40 = vpop.f32.mrb[43].mxu1 }
 0x7e7   : > { %v9198_v17 = vadd.f32 %v9197_v40, %v9196_v51  ;;  %v19422_v40 = vld [vmem:[#allocation26_spill] sm:$0xff] }
 0x7e9   : > { %7846 = vmatmul.mubr.f32.gmra.mrb[148].mxu1 %v19417_v19  ;;  %v16696_v8 = vadd.f32 %v9198_v17, %v16600_v57  ;;  %v9199_v43 = vpop.f32.mrb[44].mxu1 }
 0x7ea   : > { %7852 = vmatprep.mubr.f32.mxu1 %v19418_v52  ;;  %v9200_v39 = vpop.f32.mrb[45].mxu1 }
 0x7eb   : > { %v9201_v3 = vadd.f32 %v9200_v39, %v9199_v43 }
 0x7ed   : > { %7855 = vmatmul.mubr.f32.gmra.mrb[150].mxu1 %v19419_v47  ;;  %v16701_v33 = vadd.f32 %v9201_v3, %v16605_v13  ;;  %v9202_v46 = vpop.f32.mrb[46].mxu1 }
 0x7ee   : > { %7861 = vmatprep.mubr.f32.mxu1 %v19420_v36  ;;  %v9203_v58 = vpop.f32.mrb[47].mxu1 }
 0x7ef   : > { %v9204_v51 = vadd.f32 %v9203_v58, %v9202_v46  ;;  %v19423_v46 = vld [vmem:[#allocation35_spill] sm:$0xff] }
 0x7f1   : > { %7864 = vmatmul.mubr.f32.gmra.mrb[152].mxu1 %v19421_v45  ;;  %v16706_v57 = vadd.f32 %v9204_v51, %v16610_v20  ;;  %v9205_v17 = vpop.f32.mrb[48].mxu1 }
 0x7f2   : > { %7870 = vmatprep.mubr.f32.mxu1 %v19422_v40  ;;  %v9206_v60 = vpop.f32.mrb[49].mxu1 }
 0x7f3   : > { %v9207_v39 = vadd.f32 %v9206_v60, %v9205_v17  ;;  %v19424_v17 = vand.u32 4294901760, %v19384_v62 }
 0x7f5   : > { %7873 = vmatmul.mubr.f32.gmra.mrb[154].mxu1 %v16429_v54  ;;  %v16711_v13 = vadd.f32 %v9207_v39, %v16615_v32  ;;  %v9208_v43 = vpop.f32.mrb[50].mxu1 }
 0x7f6   : > { %7879 = vmatprep.mubr.f32.mxu1 %v16435_v15  ;;  %v9209_v3 = vpop.f32.mrb[51].mxu1 }
 0x7f7   : > { %v9210_v58 = vadd.f32 %v9209_v3, %v9208_v43  ;;  %v19425_v43 = vand.u32 4294901760, %v19385_v31  ;;  %v19431_v31 = vand.u32 4294901760, %v19391_v11 }
 0x7f9   : > { %7882 = vmatmul.mubr.f32.gmra.mrb[156].mxu1 %v16450_v34  ;;  %v16716_v20 = vadd.f32 %v9210_v58, %v16620_v49  ;;  %v9211_v51 = vpop.f32.mrb[52].mxu1  ;;  %v19427_v49 = vand.u32 4294901760, %v19387_v50  ;;  %v19428_v58 = vld [vmem:[#allocation173_spill] sm:$0xff] }
 0x7fa   : > { %7888 = vmatprep.mubr.f32.mxu1 %v19423_v46  ;;  %v9212_v35 = vpop.f32.mrb[53].mxu1 }
 0x7fb   : > { %v9213_v60 = vadd.f32 %v9212_v35, %v9211_v51 }
 0x7fd   : > { %7891 = vmatmul.mubr.f32.gmra.mrb[158].mxu1 %v16469_v18  ;;  %v16722_v32 = vadd.f32 %v9213_v60, %v16625_v26  ;;  %v9214_v39 = vpop.f32.mrb[54].mxu1  ;;  %v19429_v26 = vand.u32 4294901760, %v19389_v0  ;;  %v19435_v0 = vand.u32 4294901760, %v19395_v29 }
 0x7fe   : > { %7995 = vmatprep.mubr.f32.mxu1 %v19424_v17  ;;  %v9215_v61 = vpop.f32.mrb[55].mxu1  ;;  %v19430_v17 = vld [vmem:[#allocation71_spill] sm:$0xff] }
 0x7ff   : > { %v9216_v3 = vadd.f32 %v9215_v61, %v9214_v39 }
 0x801   : > { %7999 = vmatmul.mubr.f32.vlgmr.msra.gmra.mrb[160].mxu1 %v19425_v43  ;;  %v16731_v35 = vadd.f32 %v9216_v3, %v16632_v5  ;;  %v9217_v62 = vpop.f32.mrb[56].mxu1  ;;  %v19433_v5 = vand.u32 4294901760, %v19393_v63  ;;  %v19434_v3 = vld [vmem:[#allocation14_spill] sm:$0xff]  ;;  %v19439_v63 = vand.u32 4294901760, %v19399_v56 }
 0x802   : > { %10032 = vmatpush3.bf16.msra.mxu1 %v19426_v53  ;;  %8006 = vmatprep.mubr.f32.mxu1 %v19427_v49  ;;  %v9218_v51 = vpop.f32.mrb[57].mxu1  ;;  %v19432_v53 = vld [vmem:[#allocation174_spill] sm:$0xff]  ;;  %v19436_v49 = vld [vmem:[#allocation165_spill] sm:$0xff] }
 0x803   : > { %10034 = vmatprep.subr.bf16.mxu1 %v19428_v58  ;;  %v9219_v60 = vadd.f32 %v9218_v51, %v9217_v62 }
 0x805   : > { %8010 = vmatmul.mubr.f32.gmra.mrb[162].mxu1 %v19429_v26  ;;  %v16740_v50 = vadd.f32 %v9219_v60, %v16639_v1  ;;  %v9220_v61 = vpop.f32.mrb[58].mxu1  ;;  %v19437_v1 = vand.u32 4294901760, %v19397_v25  ;;  %v19438_v26 = vld [vmem:[#allocation127_spill] sm:$0xff]  ;;  %v19440_v60 = vld [vmem:[#allocation168_spill] sm:$0xff]  ;;  %v19443_v25 = vand.u32 4294901760, %v19403_v44 }
 0x806   : > { %10036 = vmatpush3.bf16.msra.mxu1 %v19430_v17  ;;  %8017 = vmatprep.mubr.f32.mxu1 %v19431_v31  ;;  %v9221_v39 = vpop.f32.mrb[59].mxu1 }
 0x807   : > { %10038 = vmatprep.subr.bf16.mxu1 %v19432_v53  ;;  %v9222_v43 = vadd.f32 %v9221_v39, %v9220_v61  ;;  %v19442_v61 = vld [vmem:[#allocation128_spill] sm:$0xff]  ;;  %v19444_v39 = vld [vmem:[#allocation154_spill] sm:$0xff] }
 0x809   : > { %8021 = vmatmul.mubr.f32.gmra.mrb[164].mxu1 %v19433_v5  ;;  %v16749_v11 = vadd.f32 %v9222_v43, %v16646_v24  ;;  %v9223_v58 = vpop.f32.mrb[60].mxu1  ;;  %v19441_v24 = vand.u32 4294901760, %v19401_v16  ;;  %v19447_v16 = vand.u32 4294901760, %v19407_v41 }
 0x80a   : > { %10040 = vmatpush3.bf16.msra.mxu1 %v19434_v3  ;;  %8028 = vmatprep.mubr.f32.mxu1 %v19435_v0  ;;  %v9224_v62 = vpop.f32.mrb[61].mxu1  ;;  %v19446_v0 = vld [vmem:[#allocation49_spill] sm:$0xff] }
 0x80b   : > { %10042 = vmatprep.subr.bf16.mxu1 %v19436_v49  ;;  %v9225_v51 = vadd.f32 %v9224_v62, %v9223_v58  ;;  %v19448_v49 = vld [vmem:[#allocation84_spill] sm:$0xff] }
 0x80d   : > { %8032 = vmatmul.mubr.f32.gmra.mrb[166].mxu1 %v19437_v1  ;;  %v16758_v29 = vadd.f32 %v9225_v51, %v16653_v48  ;;  %v9226_v17 = vpop.f32.mrb[62].mxu1  ;;  %v19445_v48 = vand.u32 4294901760, %v19405_v27  ;;  %v19450_v51 = vld [vmem:[#allocation57_spill] sm:$0xff]  ;;  %v19451_v27 = vand.u32 4294901760, %v19411_v10 }
 0x80e   : > { %10044 = vmatpush3.bf16.msra.mxu1 %v19438_v26  ;;  %8039 = vmatprep.mubr.f32.mxu1 %v19439_v63  ;;  %v9227_v31 = vpop.f32.mrb[63].mxu1  ;;  %v19452_v26 = vld [vmem:[#allocation183_spill] sm:$0xff] }
 0x80f   : > { %10046 = vmatprep.subr.bf16.mxu1 %v19440_v60  ;;  %v9228_v53 = vadd.f32 %v9227_v31, %v9226_v17  ;;  %v19454_v31 = vld [vmem:[#allocation155_spill] sm:$0xff] }
 0x811   : > { %8043 = vmatmul.mubr.f32.gmra.mrb[168].mxu1 %v19441_v24  ;;  %v16767_v56 = vadd.f32 %v9228_v53, %v16660_v2  ;;  %v9261_v5 = vpop.f32.mrb[64].mxu1  ;;  %v19449_v2 = vand.u32 4294901760, %v19409_v22  ;;  %v19455_v22 = vand.u32 4294901760, %v16254_v42 }
 0x812   : > { %10048 = vmatpush3.bf16.msra.mxu1 %v19442_v61  ;;  %8050 = vmatprep.mubr.f32.mxu1 %v19443_v25  ;;  %v9262_v43 = vpop.f32.mrb[65].mxu1 }
 0x813   : > { %10050 = vmatprep.subr.bf16.mxu1 %v19444_v39  ;;  %v9263_v3 = vadd.f32 %v9262_v43, %v9261_v5  ;;  %v19458_v5 = vand.u32 4294901760, %v16312_v7 }
 0x815   : > { %8054 = vmatmul.mubr.f32.gmra.mrb[170].mxu1 %v19445_v48  ;;  %v16776_v44 = vadd.f32 %v9263_v3, %v16667_v9  ;;  %v9264_v58 = vpop.f32.mrb[66].mxu1  ;;  %v19453_v9 = vand.u32 4294901760, %v19413_v6  ;;  %v19457_v6 = vand.u32 4294901760, %v16289_v30  ;;  %v19460_v30 = vand.u32 4294901760, %v19417_v19 }
 0x816   : > { %10052 = vmatpush3.bf16.msra.mxu1 %v19446_v0  ;;  %8061 = vmatprep.mubr.f32.mxu1 %v19447_v16  ;;  %v9265_v62 = vpop.f32.mrb[67].mxu1 }
 0x817   : > { %10054 = vmatprep.subr.bf16.mxu1 %v19448_v49  ;;  %v9266_v1 = vadd.f32 %v9265_v62, %v9264_v58 }
 0x819   : > { %8065 = vmatmul.mubr.f32.gmra.mrb[172].mxu1 %v19449_v2  ;;  %v16785_v41 = vadd.f32 %v9266_v1, %v16674_v12  ;;  %v19456_v12 = vand.u32 4294901760, %v16279_v28 }
 0x81a   : > { %10056 = vmatpush3.bf16.msra.mxu1 %v19450_v51  ;;  %8072 = vmatprep.mubr.f32.mxu1 %v19451_v27  ;;  %v9267_v63 = vpop.f32.mrb[68].mxu1 }
 0x81b   : > { %10058 = vmatprep.subr.bf16.mxu1 %v19452_v26  ;;  %v9268_v60 = vpop.f32.mrb[69].mxu1 }
 0x81c   : > { %v9269_v17 = vadd.f32 %v9268_v60, %v9267_v63 }
 0x81d   : > { %8076 = vmatmul.mubr.f32.gmra.mrb[174].mxu1 %v19453_v9 }
 0x81e   : > { %10060 = vmatpush3.bf16.msra.mxu1 %v19454_v31  ;;  %8083 = vmatprep.mubr.f32.mxu1 %v19455_v22  ;;  %v16794_v10 = vadd.f32 %v9269_v17, %v16681_v21  ;;  %v9270_v24 = vpop.f32.mrb[70].mxu1  ;;  %v19459_v21 = vand.u32 4294901760, %v19416_v38  ;;  %v19462_v38 = vand.u32 4294901760, %v19419_v47 }
 0x81f   : > { %10062 = vmatprep.subr.bf16.mxu1 %v19380_v14  ;;  %v9271_v53 = vpop.f32.mrb[71].mxu1 }
 0x820   : > { %v9272_v61 = vadd.f32 %v9271_v53, %v9270_v24  ;;  %v19472_v24 = vld [vmem:[#allocation58_spill] sm:$0xff] }
 0x821   : > { %8087 = vmatmul.mubr.f32.gmra.mrb[176].mxu1 %v19456_v12 }
 0x822   : > { %8094 = vmatprep.mubr.f32.mxu1 %v19457_v6  ;;  %v16801_v25 = vadd.f32 %v9272_v61, %v16686_v59  ;;  %v9273_v39 = vpop.f32.mrb[72].mxu1  ;;  %v19461_v59 = vand.u32 4294901760, %v19418_v52  ;;  %v19464_v52 = vand.u32 4294901760, %v19421_v45  ;;  %v19473_v61 = vld [vmem:[#allocation6_spill] sm:$0xff]  ;;  %v19474_v6 = vld [vmem:[#allocation157_spill] sm:$0xff] }
 0x823   : > { %v9274_v42 = vpop.f32.mrb[73].mxu1 }
 0x824   : > { %v9275_v14 = vadd.f32 %v9274_v42, %v9273_v39  ;;  %v19475_v39 = vld [vmem:[#allocation13_spill] sm:$0xff]  ;;  %v19476_v42 = vld [vmem:[#allocation99_spill] sm:$0xff] }
 0x825   : > { %8098 = vmatmul.mubr.f32.gmra.mrb[178].mxu1 %v19458_v5 }
 0x826   : > { %8105 = vmatprep.mubr.f32.mxu1 %v19459_v21  ;;  %v16808_v43 = vadd.f32 %v9275_v14, %v16691_v37  ;;  %v9276_v28 = vpop.f32.mrb[74].mxu1  ;;  %v19463_v37 = vand.u32 4294901760, %v19420_v36  ;;  %v19466_v36 = vand.u32 4294901760, %v16429_v54  ;;  %v19477_v21 = vld [vmem:[#allocation118_spill] sm:$0xff] }
 0x827   : > { %v9277_v48 = vpop.f32.mrb[75].mxu1 }
 0x828   : > { %v9278_v3 = vadd.f32 %v9277_v48, %v9276_v28  ;;  %v19478_v28 = vld [vmem:[#allocation100_spill] sm:$0xff]  ;;  %v19479_v48 = vld [vmem:[#allocation122_spill] sm:$0xff] }
 0x829   : > { %8109 = vmatmul.mubr.f32.gmra.mrb[180].mxu1 %v19460_v30  ;;  %v19480_v30 = vld [vmem:[#allocation163_spill] sm:$0xff] }
 0x82a   : > { %8116 = vmatprep.mubr.f32.mxu1 %v19461_v59  ;;  %v16815_v0 = vadd.f32 %v9278_v3, %v16696_v8  ;;  %v9279_v7 = vpop.f32.mrb[76].mxu1  ;;  %v19465_v8 = vand.u32 4294901760, %v19422_v40  ;;  %v19468_v40 = vand.u32 4294901760, %v16450_v34 }
 0x82b   : > { %v9280_v16 = vpop.f32.mrb[77].mxu1 }
 0x82c   : > { %v9281_v49 = vadd.f32 %v9280_v16, %v9279_v7  ;;  %v19481_v16 = vld [vmem:[#allocation109_spill] sm:$0xff] }
 0x82d   : > { %8120 = vmatmul.mubr.f32.gmra.mrb[182].mxu1 %v19462_v38  ;;  %v19482_v38 = vld [vmem:[#allocation92_spill] sm:$0xff] }
 0x82e   : > { %8127 = vmatprep.mubr.f32.mxu1 %v19463_v37  ;;  %v16822_v58 = vadd.f32 %v9281_v49, %v16701_v33  ;;  %v19467_v33 = vand.u32 4294901760, %v16435_v15  ;;  %v19470_v15 = vand.u32 4294901760, %v16469_v18  ;;  %v19483_v49 = vld [vmem:[#allocation203_spill] sm:$0xff]  ;;  %v19484_v37 = vld [vmem:[#allocation94_spill] sm:$0xff] }
 0x830   : > { %v9282_v19 = vpop.f32.mrb[78].mxu1 }
 0x831   : > { %v9283_v62 = vpop.f32.mrb[79].mxu1  ;;  %8131 = vmatmul.mubr.f32.gmra.mrb[184].mxu1 %v19464_v52 }
 0x832   : > { %v9284_v2 = vadd.f32 %v9283_v62, %v9282_v19  ;;  %8138 = vmatprep.mubr.f32.mxu1 %v19465_v8  ;;  %v19486_v8 = vld [vmem:[#allocation188_spill] sm:$0xff] }
 0x834   : > { %v16829_v1 = vadd.f32 %v9284_v2, %v16706_v57  ;;  %v9285_v47 = vpop.f32.mrb[80].mxu1  ;;  %v19469_v57 = vand.u32 4294901760, %v19423_v46  ;;  %v19485_v2 = vld [vmem:[#allocation194_spill] sm:$0xff] }
 0x835   : > { %v9286_v51 = vpop.f32.mrb[81].mxu1  ;;  %8142 = vmatmul.mubr.f32.gmra.mrb[186].mxu1 %v19466_v36 }
 0x836   : > { %v9287_v27 = vadd.f32 %v9286_v51, %v9285_v47  ;;  %8149 = vmatprep.mubr.f32.mxu1 %v19467_v33  ;;  %v19487_v47 = vld [vmem:[#allocation79_spill] sm:$0xff]  ;;  %v19488_v51 = vld [vmem:[#allocation190_spill] sm:$0xff] }
 0x838   : > { %v16836_v26 = vadd.f32 %v9287_v27, %v16711_v13  ;;  %v9288_v45 = vpop.f32.mrb[82].mxu1 }
 0x839   : > { %v9289_v63 = vpop.f32.mrb[83].mxu1  ;;  %8153 = vmatmul.mubr.f32.gmra.mrb[188].mxu1 %v19468_v40  ;;  %v19491_v40 = vld [vmem:[#allocation77_spill] sm:$0xff] }
 0x83a   : > { %v9290_v60 = vadd.f32 %v9289_v63, %v9288_v45  ;;  %8160 = vmatprep.mubr.f32.mxu1 %v19469_v57  ;;  %v19489_v45 = vld [vmem:[#allocation81_spill] sm:$0xff]  ;;  %v19490_v63 = vld [vmem:[#allocation178_spill] sm:$0xff] }
 0x83c   : > { %v16843_v9 = vadd.f32 %v9290_v60, %v16716_v20  ;;  %v9291_v54 = vpop.f32.mrb[84].mxu1  ;;  %v19471_v20 = vld [vmem:[#allocation176_spill] sm:$0xff]  ;;  %v19492_v60 = vld [vmem:[#allocation182_spill] sm:$0xff] }
 0x83d   : > { %v9292_v17 = vpop.f32.mrb[85].mxu1  ;;  %8164 = vmatmul.mubr.f32.gmra.mrb[190].mxu1 %v19470_v15  ;;  %v19493_v15 = vld [vmem:[#allocation15_spill] sm:$0xff] }
 0x83e   : > { %v9293_v31 = vadd.f32 %v9292_v17, %v9291_v54  ;;  %8330 = vmatprep.mubr.f32.mxu1 %v15938_v4 }
 0x840   : > { %v16849_v13 = vadd.f32 %v9293_v31, %v16722_v32  ;;  %v9294_v34 = vpop.f32.mrb[86].mxu1  ;;  %v19494_v31 = vld [vmem:[#allocation166_spill] sm:$0xff] }
 0x841   : > { %v9295_v22 = vpop.f32.mrb[87].mxu1  ;;  %8332 = vmatmul.mubr.f32.vlgmr.msra.gmra.mrb[192].mxu1 %v15952_v55 }
 0x842   : > { %v9296_v46 = vadd.f32 %v9295_v22, %v9294_v34  ;;  %10064 = vmatpush3.bf16.msra.mxu1 %v19386_v23  ;;  %8337 = vmatprep.mubr.f32.mxu1 %v19471_v20  ;;  %v19495_v34 = vld [vmem:[#allocation16_spill] sm:$0xff]  ;;  %v19496_v22 = vld [vmem:[#allocation67_spill] sm:$0xff] }
 0x843   : > { %10066 = vmatprep.subr.bf16.mxu1 %v19472_v24 }
 0x844   : > { %v16856_v18 = vadd.f32 %v9296_v46, %v16731_v35  ;;  %v9297_v53 = vpop.f32.mrb[88].mxu1 }
 0x845   : > { %v9298_v12 = vpop.f32.mrb[89].mxu1  ;;  %8339 = vmatmul.mubr.f32.gmra.mrb[194].mxu1 %v19473_v61 }
 0x846   : > { %v9299_v32 = vadd.f32 %v9298_v12, %v9297_v53  ;;  %10068 = vmatpush3.bf16.msra.mxu1 %v19474_v6  ;;  %8344 = vmatprep.mubr.f32.mxu1 %v19475_v39  ;;  %v19497_v12 = vld [vmem:[#allocation140_spill] sm:$0xff] }
 0x847   : > { %10070 = vmatprep.subr.bf16.mxu1 %v19476_v42  ;;  %v19499_v6 = vld [vmem:[#allocation40_spill] sm:$0xff] }
 0x848   : > { %v16863_v23 = vadd.f32 %v9299_v32, %v16740_v50  ;;  %v9300_v5 = vpop.f32.mrb[90].mxu1  ;;  %v19498_v32 = vld [vmem:[#allocation69_spill] sm:$0xff] }
 0x849   : > { %v9301_v14 = vpop.f32.mrb[91].mxu1  ;;  %8346 = vmatmul.mubr.f32.gmra.mrb[196].mxu1 %v19477_v21 }
 0x84a   : > { %v9302_v35 = vadd.f32 %v9301_v14, %v9300_v5  ;;  %10072 = vmatpush3.bf16.msra.mxu1 %v19478_v28  ;;  %8351 = vmatprep.mubr.f32.mxu1 %v19479_v48 }
 0x84b   : > { %10074 = vmatprep.subr.bf16.mxu1 %v19480_v30  ;;  %v19501_v30 = vld [vmem:[#allocation85_spill] sm:$0xff] }
 0x84c   : > { %v16870_v3 = vadd.f32 %v9302_v35, %v16749_v11  ;;  %v9303_v59 = vpop.f32.mrb[92].mxu1  ;;  %v19500_v35 = vld [vmem:[#allocation225_spill] sm:$0xff] }
 0x84d   : > { %v9304_v7 = vpop.f32.mrb[93].mxu1  ;;  %8353 = vmatmul.mubr.f32.gmra.mrb[198].mxu1 %v19481_v16 }
 0x84e   : > { %v9305_v50 = vadd.f32 %v9304_v7, %v9303_v59  ;;  %10076 = vmatpush3.bf16.msra.mxu1 %v19482_v38  ;;  %8358 = vmatprep.mubr.f32.mxu1 %v19483_v49 }
 0x84f   : > { %10078 = vmatprep.subr.bf16.mxu1 %v19484_v37  ;;  %v19503_v37 = vld [vmem:[#allocation29_spill] sm:$0xff] }
 0x850   : > { %v16877_v19 = vadd.f32 %v9305_v50, %v16758_v29  ;;  %v9306_v62 = vpop.f32.mrb[94].mxu1  ;;  %v19502_v50 = vld [vmem:[#allocation47_spill] sm:$0xff] }
 0x851   : > { %v9307_v52 = vpop.f32.mrb[95].mxu1  ;;  %8360 = vmatmul.mubr.f32.gmra.mrb[200].mxu1 %v19485_v2 }
 0x852   : > { %v9308_v11 = vadd.f32 %v9307_v52, %v9306_v62  ;;  %10080 = vmatpush3.bf16.msra.mxu1 %v19486_v8  ;;  %8365 = vmatprep.mubr.f32.mxu1 %v19487_v47 }
 0x853   : > { %10082 = vmatprep.subr.bf16.mxu1 %v19488_v51  ;;  %v19505_v51 = vld [vmem:[#allocation240_spill] sm:$0xff] }
 0x854   : > { %v16884_v36 = vadd.f32 %v9308_v11, %v16767_v56  ;;  %v9341_v27 = vpop.f32.mrb[96].mxu1  ;;  %v19504_v11 = vld [vmem:[#allocation32_spill] sm:$0xff] }
 0x855   : > { %v9342_v33 = vpop.f32.mrb[97].mxu1  ;;  %8367 = vmatmul.mubr.f32.gmra.mrb[202].mxu1 %v19489_v45 }
 0x856   : > { %v9343_v29 = vadd.f32 %v9342_v33, %v9341_v27  ;;  %10084 = vmatpush3.bf16.msra.mxu1 %v19490_v63  ;;  %8372 = vmatprep.mubr.f32.mxu1 %v19491_v40 }
 0x857   : > { %10086 = vmatprep.subr.bf16.mxu1 %v19492_v60  ;;  %v19507_v60 = vld [vmem:[#allocation226_spill] sm:$0xff] }
 0x858   : > { %v16891_v57 = vadd.f32 %v9343_v29, %v16776_v44  ;;  %v9344_v54 = vpop.f32.mrb[98].mxu1  ;;  %v19506_v29 = vld [vmem:[#allocation234_spill] sm:$0xff] }
 0x859   : > { %v9345_v17 = vpop.f32.mrb[99].mxu1  ;;  %8374 = vmatmul.mubr.f32.gmra.mrb[204].mxu1 %v19493_v15 }
 0x85a   : > { %v9346_v56 = vadd.f32 %v9345_v17, %v9344_v54  ;;  %10088 = vmatpush3.bf16.msra.mxu1 %v19494_v31  ;;  %8379 = vmatprep.mubr.f32.mxu1 %v19495_v34 }
 0x85b   : > { %10090 = vmatprep.subr.bf16.mxu1 %v19496_v22  ;;  %v19509_v22 = vld [vmem:[#allocation229_spill] sm:$0xff] }
 0x85c   : > { %v16898_v46 = vadd.f32 %v9346_v56, %v16785_v41  ;;  %v9347_v24 = vpop.f32.mrb[100].mxu1  ;;  %v19508_v56 = vld [vmem:[#allocation244_spill] sm:$0xff] }
 0x85d   : > { %v9348_v53 = vpop.f32.mrb[101].mxu1  ;;  %8381 = vmatmul.mubr.f32.gmra.mrb[206].mxu1 %v19497_v12 }
 0x85e   : > { %v9349_v44 = vadd.f32 %v9348_v53, %v9347_v24  ;;  %10092 = vmatpush3.bf16.msra.mxu1 %v19498_v32  ;;  %8386 = vmatprep.mubr.f32.mxu1 %v19499_v6 }
 0x860   : > { %v16904_v42 = vadd.f32 %v9349_v44, %v16794_v10  ;;  %v9350_v5 = vpop.f32.mrb[102].mxu1  ;;  %v19510_v44 = vld [vmem:[#allocation24_spill] sm:$0xff] }
 0x861   : > { %v9351_v14 = vpop.f32.mrb[103].mxu1  ;;  %8388 = vmatmul.mubr.f32.gmra.mrb[208].mxu1 %v19500_v35 }
 0x862   : > { %v9352_v28 = vadd.f32 %v9351_v14, %v9350_v5  ;;  %8393 = vmatprep.mubr.f32.mxu1 %v19501_v30  ;;  %v19511_v5 = vld [vmem:[#allocation27_spill] sm:$0xff] }
 0x864   : > { %v16909_v41 = vadd.f32 %v9352_v28, %v16801_v25  ;;  %v9353_v59 = vpop.f32.mrb[104].mxu1 }
 0x865   : > { %v9354_v7 = vpop.f32.mrb[105].mxu1  ;;  %8395 = vmatmul.mubr.f32.gmra.mrb[210].mxu1 %v19502_v50 }
 0x866   : > { %v9355_v38 = vadd.f32 %v9354_v7, %v9353_v59  ;;  %8400 = vmatprep.mubr.f32.mxu1 %v19503_v37  ;;  %v19512_v59 = vld [vmem:[#allocation33_spill] sm:$0xff] }
 0x868   : > { %v16914_v10 = vadd.f32 %v9355_v38, %v16808_v43  ;;  %v9356_v62 = vpop.f32.mrb[106].mxu1  ;;  %v19513_v38 = vld [vmem:[#allocation196_spill] sm:$0xff] }
 0x869   : > { %v9357_v52 = vpop.f32.mrb[107].mxu1  ;;  %8402 = vmatmul.mubr.f32.gmra.mrb[212].mxu1 %v19504_v11 }
 0x86a   : > { %v9358_v8 = vadd.f32 %v9357_v52, %v9356_v62  ;;  %8407 = vmatprep.mubr.f32.mxu1 %v19505_v51 }
 0x86c   : > { %v16919_v25 = vadd.f32 %v9358_v8, %v16815_v0  ;;  %v9359_v27 = vpop.f32.mrb[108].mxu1  ;;  %v19514_v8 = vld [vmem:[#allocation191_spill] sm:$0xff] }
 0x86d   : > { %v9360_v33 = vpop.f32.mrb[109].mxu1  ;;  %8409 = vmatmul.mubr.f32.gmra.mrb[214].mxu1 %v19506_v29 }
 0x86e   : > { %v9361_v63 = vadd.f32 %v9360_v33, %v9359_v27  ;;  %8414 = vmatprep.mubr.f32.mxu1 %v19507_v60 }
 0x870   : > { %v16924_v43 = vadd.f32 %v9361_v63, %v16822_v58  ;;  %v9362_v54 = vpop.f32.mrb[110].mxu1 }
 0x871   : > { %v9363_v17 = vpop.f32.mrb[111].mxu1  ;;  %8416 = vmatmul.mubr.f32.gmra.mrb[216].mxu1 %v19508_v56 }
 0x872   : > { %v9364_v31 = vadd.f32 %v9363_v17, %v9362_v54  ;;  %8421 = vmatprep.mubr.f32.mxu1 %v19509_v22 }
 0x874   : > { %v16929_v0 = vadd.f32 %v9364_v31, %v16829_v1  ;;  %v9365_v24 = vpop.f32.mrb[112].mxu1 }
 0x875   : > { %v9366_v53 = vpop.f32.mrb[113].mxu1  ;;  %8423 = vmatmul.mubr.f32.gmra.mrb[218].mxu1 %v19510_v44 }
 0x876   : > { %v9367_v32 = vadd.f32 %v9366_v53, %v9365_v24  ;;  %8428 = vmatprep.mubr.f32.mxu1 %v19511_v5 }
 0x878   : > { %v16934_v58 = vadd.f32 %v9367_v32, %v16836_v26  ;;  %v9368_v14 = vpop.f32.mrb[114].mxu1 }
 0x879   : > { %v9369_v28 = vpop.f32.mrb[115].mxu1  ;;  %8430 = vmatmul.mubr.f32.gmra.mrb[220].mxu1 %v19512_v59 }
 0x87a   : > { %v9370_v7 = vadd.f32 %v9369_v28, %v9368_v14  ;;  %8435 = vmatprep.mubr.f32.mxu1 %v19513_v38 }
 0x87c   : > { %v16939_v1 = vadd.f32 %v9370_v7, %v16843_v9  ;;  %v9371_v62 = vpop.f32.mrb[116].mxu1 }
 0x87d   : > { %v9372_v52 = vpop.f32.mrb[117].mxu1  ;;  %8437 = vmatmul.mubr.f32.gmra.mrb[222].mxu1 %v19514_v8 }
 0x87e   : > { %v9373_v27 = vadd.f32 %v9372_v52, %v9371_v62  ;;  %8539 = vmatprep.mubr.f32.mxu1 %v15938_v4 }
 0x880   : > { %v16944_v26 = vadd.f32 %v9373_v27, %v16849_v13  ;;  %v9374_v33 = vpop.f32.mrb[118].mxu1 }
 0x881   : > { %v9375_v63 = vpop.f32.mrb[119].mxu1  ;;  %8541 = vmatmul.mubr.f32.vlgmr.msra.gmra.mrb[224].mxu1 %v15952_v55 }
 0x882   : > { %v9376_v54 = vadd.f32 %v9375_v63, %v9374_v33  ;;  %8546 = vmatprep.mubr.f32.mxu1 %v19471_v20 }
 0x884   : > { %v16949_v9 = vadd.f32 %v9376_v54, %v16856_v18  ;;  %v9377_v17 = vpop.f32.mrb[120].mxu1 }
 0x885   : > { %v9378_v31 = vpop.f32.mrb[121].mxu1  ;;  %8548 = vmatmul.mubr.f32.gmra.mrb[226].mxu1 %v19473_v61 }
 0x886   : > { %v9379_v24 = vadd.f32 %v9378_v31, %v9377_v17  ;;  %8553 = vmatprep.mubr.f32.mxu1 %v19475_v39 }
 0x888   : > { %v16954_v4 = vadd.f32 %v9379_v24, %v16863_v23  ;;  %v9380_v13 = vpop.f32.mrb[122].mxu1 }
 0x889   : > { %v9381_v53 = vpop.f32.mrb[123].mxu1  ;;  %8555 = vmatmul.mubr.f32.gmra.mrb[228].mxu1 %v19477_v21 }
 0x88a   : > { %v9382_v55 = vadd.f32 %v9381_v53, %v9380_v13  ;;  %8560 = vmatprep.mubr.f32.mxu1 %v19479_v48 }
 0x88c   : > { %v16959_v20 = vadd.f32 %v9382_v55, %v16870_v3  ;;  %v9383_v18 = vpop.f32.mrb[124].mxu1 }
 0x88d   : > { %v9384_v32 = vpop.f32.mrb[125].mxu1  ;;  %8562 = vmatmul.mubr.f32.gmra.mrb[230].mxu1 %v19481_v16 }
 0x88e   : > { %v9385_v61 = vadd.f32 %v9384_v32, %v9383_v18  ;;  %8567 = vmatprep.mubr.f32.mxu1 %v19483_v49 }
 0x890   : > { %v16964_v39 = vadd.f32 %v9385_v61, %v16877_v19  ;;  %v9386_v23 = vpop.f32.mrb[126].mxu1 }
 0x891   : > { %v9387_v14 = vpop.f32.mrb[127].mxu1  ;;  %8569 = vmatmul.mubr.f32.gmra.mrb[232].mxu1 %v19485_v2 }
 0x892   : > { %v9388_v21 = vadd.f32 %v9387_v14, %v9386_v23  ;;  %8574 = vmatprep.mubr.f32.mxu1 %v19487_v47 }
 0x894   : > { %v16969_v48 = vadd.f32 %v9388_v21, %v16884_v36  ;;  %v9421_v3 = vpop.f32.mrb[128].mxu1 }
 0x895   : > { %v9422_v28 = vpop.f32.mrb[129].mxu1  ;;  %8576 = vmatmul.mubr.f32.gmra.mrb[234].mxu1 %v19489_v45 }
 0x896   : > { %v9423_v16 = vadd.f32 %v9422_v28, %v9421_v3  ;;  %8581 = vmatprep.mubr.f32.mxu1 %v19491_v40 }
 0x898   : > { %v16974_v49 = vadd.f32 %v9423_v16, %v16891_v57  ;;  %v9424_v19 = vpop.f32.mrb[130].mxu1 }
 0x899   : > { %v9425_v7 = vpop.f32.mrb[131].mxu1  ;;  %8583 = vmatmul.mubr.f32.gmra.mrb[236].mxu1 %v19493_v15 }
 0x89a   : > { %v9426_v2 = vadd.f32 %v9425_v7, %v9424_v19  ;;  %8588 = vmatprep.mubr.f32.mxu1 %v19495_v34 }
 0x89c   : > { %v16979_v47 = vadd.f32 %v9426_v2, %v16898_v46  ;;  %v9427_v36 = vpop.f32.mrb[132].mxu1 }
 0x89d   : > { %v9428_v62 = vpop.f32.mrb[133].mxu1  ;;  %8590 = vmatmul.mubr.f32.gmra.mrb[238].mxu1 %v19497_v12 }
 0x89e   : > { %v9429_v45 = vadd.f32 %v9428_v62, %v9427_v36  ;;  %8595 = vmatprep.mubr.f32.mxu1 %v19499_v6 }
 0x8a0   : > { %v16984_v40 = vadd.f32 %v9429_v45, %v16904_v42  ;;  %v9430_v57 = vpop.f32.mrb[134].mxu1 }
 0x8a1   : > { %v9431_v52 = vpop.f32.mrb[135].mxu1  ;;  %8597 = vmatmul.mubr.f32.gmra.mrb[240].mxu1 %v19500_v35 }
 0x8a2   : > { %v9432_v15 = vadd.f32 %v9431_v52, %v9430_v57  ;;  %8602 = vmatprep.mubr.f32.mxu1 %v19501_v30 }
 0x8a4   : > { %v16989_v34 = vadd.f32 %v9432_v15, %v16909_v41  ;;  %v9433_v46 = vpop.f32.mrb[136].mxu1 }
 0x8a5   : > { %v9434_v27 = vpop.f32.mrb[137].mxu1  ;;  %8604 = vmatmul.mubr.f32.gmra.mrb[242].mxu1 %v19502_v50 }
 0x8a6   : > { %v9435_v12 = vadd.f32 %v9434_v27, %v9433_v46  ;;  %8609 = vmatprep.mubr.f32.mxu1 %v19503_v37 }
 0x8a8   : > { %v16994_v6 = vadd.f32 %v9435_v12, %v16914_v10  ;;  %v9436_v42 = vpop.f32.mrb[138].mxu1 }
 0x8a9   : > { %v9437_v33 = vpop.f32.mrb[139].mxu1  ;;  %8611 = vmatmul.mubr.f32.gmra.mrb[244].mxu1 %v19504_v11 }
 0x8aa   : > { %v9438_v35 = vadd.f32 %v9437_v33, %v9436_v42  ;;  %8616 = vmatprep.mubr.f32.mxu1 %v19505_v51 }
 0x8ac   : > { %v16999_v30 = vadd.f32 %v9438_v35, %v16919_v25  ;;  %v9439_v41 = vpop.f32.mrb[140].mxu1 }
 0x8ad   : > { %v9440_v63 = vpop.f32.mrb[141].mxu1  ;;  %8618 = vmatmul.mubr.f32.gmra.mrb[246].mxu1 %v19506_v29 }
 0x8ae   : > { %v9441_v50 = vadd.f32 %v9440_v63, %v9439_v41  ;;  %8623 = vmatprep.mubr.f32.mxu1 %v19507_v60 }
 0x8b0   : > { %v17004_v37 = vadd.f32 %v9441_v50, %v16924_v43  ;;  %v9442_v10 = vpop.f32.mrb[142].mxu1 }
 0x8b1   : > { %v9443_v54 = vpop.f32.mrb[143].mxu1  ;;  %8625 = vmatmul.mubr.f32.gmra.mrb[248].mxu1 %v19508_v56 }
 0x8b2   : > { %v9444_v11 = vadd.f32 %v9443_v54, %v9442_v10  ;;  %8630 = vmatprep.mubr.f32.mxu1 %v19509_v22 }
 0x8b4   : > { %v17009_v51 = vadd.f32 %v9444_v11, %v16929_v0  ;;  %v9445_v25 = vpop.f32.mrb[144].mxu1 }
 0x8b5   : > { %v9446_v17 = vpop.f32.mrb[145].mxu1  ;;  %8632 = vmatmul.mubr.f32.gmra.mrb[250].mxu1 %v19510_v44 }
 0x8b6   : > { %v9447_v29 = vadd.f32 %v9446_v17, %v9445_v25  ;;  %8637 = vmatprep.mubr.f32.mxu1 %v19511_v5 }
 0x8b8   : > { %v17014_v60 = vadd.f32 %v9447_v29, %v16934_v58  ;;  %v9448_v43 = vpop.f32.mrb[146].mxu1 }
 0x8b9   : > { %v9449_v31 = vpop.f32.mrb[147].mxu1  ;;  %8639 = vmatmul.mubr.f32.gmra.mrb[252].mxu1 %v19512_v59 }
 0x8ba   : > { %v9450_v56 = vadd.f32 %v9449_v31, %v9448_v43  ;;  %8644 = vmatprep.mubr.f32.mxu1 %v19513_v38 }
 0x8bc   : > { %v17019_v22 = vadd.f32 %v9450_v56, %v16939_v1  ;;  %v9451_v0 = vpop.f32.mrb[148].mxu1 }
 0x8bd   : > { %v9452_v24 = vpop.f32.mrb[149].mxu1  ;;  %8646 = vmatmul.mubr.f32.gmra.mrb[254].mxu1 %v19514_v8 }
 0x8be   : > { %v9453_v44 = vadd.f32 %v9452_v24, %v9451_v0 }
 0x8c0   : > { %v17023_v5 = vadd.f32 %v9453_v44, %v16944_v26  ;;  %v9454_v58 = vpop.f32.mrb[150].mxu1 }
 0x8c1   : > { %v9455_v13 = vpop.f32.mrb[151].mxu1 }
 0x8c2   : > { %v9456_v53 = vadd.f32 %v9455_v13, %v9454_v58 }
 0x8c4   : > { %v17026_v55 = vadd.f32 %v9456_v53, %v16949_v9  ;;  %v9457_v59 = vpop.f32.mrb[152].mxu1 }
 0x8c5   : > { %v9458_v18 = vpop.f32.mrb[153].mxu1 }
 0x8c6   : > { %v9459_v38 = vadd.f32 %v9458_v18, %v9457_v59 }
 0x8c8   : > { %v17029_v1 = vadd.f32 %v9459_v38, %v16954_v4  ;;  %v9460_v32 = vpop.f32.mrb[154].mxu1 }
 0x8c9   : > { %v9461_v61 = vpop.f32.mrb[155].mxu1 }
 0x8ca   : > { %v9462_v23 = vadd.f32 %v9461_v61, %v9460_v32 }
 0x8cc   : > { %v17032_v8 = vadd.f32 %v9462_v23, %v16959_v20  ;;  %v9463_v26 = vpop.f32.mrb[156].mxu1 }
 0x8cd   : > { %v9464_v14 = vpop.f32.mrb[157].mxu1 }
 0x8ce   : > { %v9465_v21 = vadd.f32 %v9464_v14, %v9463_v26 }
 0x8d0   : > { %v17035_v3 = vadd.f32 %v9465_v21, %v16964_v39  ;;  %v9466_v9 = vpop.f32.mrb[158].mxu1 }
 0x8d1   : > { %v9467_v28 = vpop.f32.mrb[159].mxu1 }
 0x8d2   : > { %v9468_v16 = vadd.f32 %v9467_v28, %v9466_v9 }
 0x8d4   : > { %v17038_v19 = vadd.f32 %v9468_v16, %v16969_v48  ;;  %v9501_v4 = vpop.f32.mrb[160].mxu1 }
 0x8d5   : > { %v9502_v7 = vpop.f32.mrb[161].mxu1 }
 0x8d6   : > { %v9503_v2 = vadd.f32 %v9502_v7, %v9501_v4 }
 0x8d8   : > { %v17041_v36 = vadd.f32 %v9503_v2, %v16974_v49  ;;  %v9504_v20 = vpop.f32.mrb[162].mxu1 }
 0x8d9   : > { %v9505_v62 = vpop.f32.mrb[163].mxu1 }
 0x8da   : > { %v9506_v45 = vadd.f32 %v9505_v62, %v9504_v20 }
 0x8dc   : > { %v17044_v57 = vadd.f32 %v9506_v45, %v16979_v47  ;;  %v9507_v39 = vpop.f32.mrb[164].mxu1 }
 0x8dd   : > { %v9508_v52 = vpop.f32.mrb[165].mxu1 }
 0x8de   : > { %v9509_v15 = vadd.f32 %v9508_v52, %v9507_v39 }
 0x8e0   : > { %v17047_v46 = vadd.f32 %v9509_v15, %v16984_v40  ;;  %v9510_v48 = vpop.f32.mrb[166].mxu1 }
 0x8e1   : > { %v9511_v27 = vpop.f32.mrb[167].mxu1 }
 0x8e2   : > { %v9512_v12 = vadd.f32 %v9511_v27, %v9510_v48 }
 0x8e4   : > { %v17050_v42 = vadd.f32 %v9512_v12, %v16989_v34  ;;  %v9513_v49 = vpop.f32.mrb[168].mxu1 }
 0x8e5   : > { %v9514_v33 = vpop.f32.mrb[169].mxu1 }
 0x8e6   : > { %v9515_v35 = vadd.f32 %v9514_v33, %v9513_v49 }
 0x8e8   : > { %v17053_v41 = vadd.f32 %v9515_v35, %v16994_v6  ;;  %v9516_v47 = vpop.f32.mrb[170].mxu1 }
 0x8e9   : > { %v9517_v63 = vpop.f32.mrb[171].mxu1 }
 0x8ea   : > { %v9518_v50 = vadd.f32 %v9517_v63, %v9516_v47 }
 0x8ec   : > { %v17056_v10 = vadd.f32 %v9518_v50, %v16999_v30  ;;  %v9519_v40 = vpop.f32.mrb[172].mxu1 }
 0x8ed   : > { %v9520_v54 = vpop.f32.mrb[173].mxu1 }
 0x8ee   : > { %v9521_v11 = vadd.f32 %v9520_v54, %v9519_v40 }
 0x8f0   : > { %v17059_v25 = vadd.f32 %v9521_v11, %v17004_v37  ;;  %v9522_v34 = vpop.f32.mrb[174].mxu1 }
 0x8f1   : > { %v9523_v17 = vpop.f32.mrb[175].mxu1 }
 0x8f2   : > { %v9524_v29 = vadd.f32 %v9523_v17, %v9522_v34 }
 0x8f4   : > { %v17062_v43 = vadd.f32 %v9524_v29, %v17009_v51  ;;  %v9525_v6 = vpop.f32.mrb[176].mxu1 }
 0x8f5   : > { %v9526_v31 = vpop.f32.mrb[177].mxu1 }
 0x8f6   : > { %v9527_v56 = vadd.f32 %v9526_v31, %v9525_v6 }
 0x8f8   : > { %v17065_v0 = vadd.f32 %v9527_v56, %v17014_v60  ;;  %v9528_v30 = vpop.f32.mrb[178].mxu1 }
 0x8f9   : > { %v9529_v24 = vpop.f32.mrb[179].mxu1 }
 0x8fa   : > { %v9530_v44 = vadd.f32 %v9529_v24, %v9528_v30 }
 0x8fc   : > { %v17068_v58 = vadd.f32 %v9530_v44, %v17019_v22  ;;  %v9531_v37 = vpop.f32.mrb[180].mxu1 }
 0x8fd   : > { %v9532_v13 = vpop.f32.mrb[181].mxu1 }
 0x8fe   : > { %v9533_v53 = vadd.f32 %v9532_v13, %v9531_v37 }
 0x900   : > { %v17071_v59 = vadd.f32 %v9533_v53, %v17023_v5  ;;  %v9534_v51 = vpop.f32.mrb[182].mxu1 }
 0x901   : > { %v9535_v18 = vpop.f32.mrb[183].mxu1 }
 0x902   : > { %v9536_v38 = vadd.f32 %v9535_v18, %v9534_v51 }
 0x904   : > { %v17074_v32 = vadd.f32 %v9536_v38, %v17026_v55  ;;  %v9537_v60 = vpop.f32.mrb[184].mxu1 }
 0x905   : > { %v9538_v61 = vpop.f32.mrb[185].mxu1 }
 0x906   : > { %v9539_v23 = vadd.f32 %v9538_v61, %v9537_v60 }
 0x908   : > { %v17077_v26 = vadd.f32 %v9539_v23, %v17029_v1  ;;  %v9540_v22 = vpop.f32.mrb[186].mxu1 }
 0x909   : > { %v9541_v14 = vpop.f32.mrb[187].mxu1 }
 0x90a   : > { %v9542_v21 = vadd.f32 %v9541_v14, %v9540_v22 }
 0x90c   : > { %v17080_v9 = vadd.f32 %v9542_v21, %v17032_v8  ;;  %v9543_v5 = vpop.f32.mrb[188].mxu1 }
 0x90d   : > { %v9544_v28 = vpop.f32.mrb[189].mxu1 }
 0x90e   : > { %v9545_v16 = vadd.f32 %v9544_v28, %v9543_v5 }
 0x910   : > { %v17083_v4 = vadd.f32 %v9545_v16, %v17035_v3  ;;  %v9546_v55 = vpop.f32.mrb[190].mxu1 }
 0x911   : > { %v9547_v7 = vpop.f32.mrb[191].mxu1 }
 0x912   : > { %v9548_v2 = vadd.f32 %v9547_v7, %v9546_v55 }
 0x914   : > { %v17086_v20 = vadd.f32 %v9548_v2, %v17038_v19  ;;  %v9581_v1 = vpop.f32.mrb[192].mxu1 }
 0x915   : > { %v9582_v62 = vpop.f32.mrb[193].mxu1 }
 0x916   : > { %v9583_v45 = vadd.f32 %v9582_v62, %v9581_v1 }
 0x918   : > { %v17089_v39 = vadd.f32 %v9583_v45, %v17041_v36  ;;  %v9584_v8 = vpop.f32.mrb[194].mxu1 }
 0x919   : > { %v9585_v52 = vpop.f32.mrb[195].mxu1 }
 0x91a   : > { %v9586_v15 = vadd.f32 %v9585_v52, %v9584_v8 }
 0x91c   : > { %v17092_v48 = vadd.f32 %v9586_v15, %v17044_v57  ;;  %v9587_v3 = vpop.f32.mrb[196].mxu1 }
 0x91d   : > { %v9588_v27 = vpop.f32.mrb[197].mxu1 }
 0x91e   : > { %v9589_v12 = vadd.f32 %v9588_v27, %v9587_v3 }
 0x920   : > { %v17095_v49 = vadd.f32 %v9589_v12, %v17047_v46  ;;  %v9590_v19 = vpop.f32.mrb[198].mxu1 }
 0x921   : > { %v9591_v33 = vpop.f32.mrb[199].mxu1 }
 0x922   : > { %v9592_v35 = vadd.f32 %v9591_v33, %v9590_v19 }
 0x924   : > { %v17098_v47 = vadd.f32 %v9592_v35, %v17050_v42  ;;  %v9593_v36 = vpop.f32.mrb[200].mxu1 }
 0x925   : > { %v9594_v63 = vpop.f32.mrb[201].mxu1 }
 0x926   : > { %v9595_v50 = vadd.f32 %v9594_v63, %v9593_v36 }
 0x928   : > { %v17101_v40 = vadd.f32 %v9595_v50, %v17053_v41  ;;  %v9596_v57 = vpop.f32.mrb[202].mxu1 }
 0x929   : > { %v9597_v54 = vpop.f32.mrb[203].mxu1 }
 0x92a   : > { %v9598_v11 = vadd.f32 %v9597_v54, %v9596_v57 }
 0x92c   : > { %v17104_v34 = vadd.f32 %v9598_v11, %v17056_v10  ;;  %v9599_v46 = vpop.f32.mrb[204].mxu1 }
 0x92d   : > { %v9600_v17 = vpop.f32.mrb[205].mxu1 }
 0x92e   : > { %v9601_v29 = vadd.f32 %v9600_v17, %v9599_v46 }
 0x930   : > { %v17107_v6 = vadd.f32 %v9601_v29, %v17059_v25  ;;  %v9602_v42 = vpop.f32.mrb[206].mxu1 }
 0x931   : > { %v9603_v31 = vpop.f32.mrb[207].mxu1 }
 0x932   : > { %v9604_v56 = vadd.f32 %v9603_v31, %v9602_v42 }
 0x934   : > { %v17110_v30 = vadd.f32 %v9604_v56, %v17062_v43  ;;  %v9605_v41 = vpop.f32.mrb[208].mxu1 }
 0x935   : > { %v9606_v24 = vpop.f32.mrb[209].mxu1 }
 0x936   : > { %v9607_v44 = vadd.f32 %v9606_v24, %v9605_v41 }
 0x938   : > { %v17113_v37 = vadd.f32 %v9607_v44, %v17065_v0  ;;  %v9608_v10 = vpop.f32.mrb[210].mxu1 }
 0x939   : > { %v9609_v13 = vpop.f32.mrb[211].mxu1 }
 0x93a   : > { %v9610_v53 = vadd.f32 %v9609_v13, %v9608_v10 }
 0x93c   : > { %v17116_v51 = vadd.f32 %v9610_v53, %v17068_v58  ;;  %v9611_v25 = vpop.f32.mrb[212].mxu1 }
 0x93d   : > { %v9612_v18 = vpop.f32.mrb[213].mxu1 }
 0x93e   : > { %v9613_v38 = vadd.f32 %v9612_v18, %v9611_v25 }
 0x940   : > { %v17119_v60 = vadd.f32 %v9613_v38, %v17071_v59  ;;  %v9614_v43 = vpop.f32.mrb[214].mxu1 }
 0x941   : > { %v9615_v61 = vpop.f32.mrb[215].mxu1 }
 0x942   : > { %v9616_v23 = vadd.f32 %v9615_v61, %v9614_v43 }
 0x944   : > { %v17122_v22 = vadd.f32 %v9616_v23, %v17074_v32  ;;  %v9617_v0 = vpop.f32.mrb[216].mxu1 }
 0x945   : > { %v9618_v14 = vpop.f32.mrb[217].mxu1 }
 0x946   : > { %v9619_v21 = vadd.f32 %v9618_v14, %v9617_v0 }
 0x948   : > { %v17125_v5 = vadd.f32 %v9619_v21, %v17077_v26  ;;  %v9620_v58 = vpop.f32.mrb[218].mxu1 }
 0x949   : > { %v9621_v28 = vpop.f32.mrb[219].mxu1 }
 0x94a   : > { %v9622_v16 = vadd.f32 %v9621_v28, %v9620_v58 }
 0x94c   : > { %v17128_v55 = vadd.f32 %v9622_v16, %v17080_v9  ;;  %v9623_v59 = vpop.f32.mrb[220].mxu1 }
 0x94d   : > { %v9624_v7 = vpop.f32.mrb[221].mxu1 }
 0x94e   : > { %v9625_v2 = vadd.f32 %v9624_v7, %v9623_v59 }
 0x950   : > { %v17131_v1 = vadd.f32 %v9625_v2, %v17083_v4  ;;  %v9626_v32 = vpop.f32.mrb[222].mxu1 }
 0x951   : > { %v9627_v62 = vpop.f32.mrb[223].mxu1 }
 0x952   : > { %v9628_v45 = vadd.f32 %v9627_v62, %v9626_v32 }
 0x954   : > { %v17135_v8 = vadd.f32 %v9628_v45, %v17086_v20  ;;  %v9661_v26 = vpop.f32.mrb[224].mxu1 }
 0x955   : > { %v9662_v52 = vpop.f32.mrb[225].mxu1 }
 0x956   : > { %v9663_v15 = vadd.f32 %v9662_v52, %v9661_v26 }
 0x958   : > { %v8543_v9 = vadd.f32 %v9663_v15, %v17089_v39  ;;  %v9664_v4 = vpop.f32.mrb[226].mxu1 }
 0x959   : > { %v9665_v3 = vpop.f32.mrb[227].mxu1 }
 0x95a   : > { %8651 = vst.msk [vmem:[%s17140_s25] sm:$0xff] %vm257_vm2, %v8543_v9  ;;  %v9666_v20 = vadd.f32 %v9665_v3, %v9664_v4 }
 0x95c   : > { %v8550_v27 = vadd.f32 %v9666_v20, %v17092_v48  ;;  %v9667_v12 = vpop.f32.mrb[228].mxu1 }
 0x95d   : > { %v9668_v19 = vpop.f32.mrb[229].mxu1 }
 0x95e   : > { %8652 = vst.msk [vmem:[%s17140_s25 + $0x8] sm:$0xff] %vm257_vm2, %v8550_v27  ;;  %v9669_v33 = vadd.f32 %v9668_v19, %v9667_v12 }
 0x960   : > { %v8557_v35 = vadd.f32 %v9669_v33, %v17095_v49  ;;  %v9670_v36 = vpop.f32.mrb[230].mxu1 }
 0x961   : > { %v9671_v63 = vpop.f32.mrb[231].mxu1 }
 0x962   : > { %8653 = vst.msk [vmem:[%s17140_s25 + $0x10] sm:$0xff] %vm257_vm2, %v8557_v35  ;;  %v9672_v39 = vadd.f32 %v9671_v63, %v9670_v36 }
 0x964   : > { %v8564_v50 = vadd.f32 %v9672_v39, %v17098_v47  ;;  %v9673_v57 = vpop.f32.mrb[232].mxu1 }
 0x965   : > { %v9674_v54 = vpop.f32.mrb[233].mxu1 }
 0x966   : > { %8654 = vst.msk [vmem:[%s17140_s25 + $0x18] sm:$0xff] %vm257_vm2, %v8564_v50  ;;  %v9675_v48 = vadd.f32 %v9674_v54, %v9673_v57 }
 0x968   : > { %v8571_v11 = vadd.f32 %v9675_v48, %v17101_v40  ;;  %v9676_v46 = vpop.f32.mrb[234].mxu1 }
 0x969   : > { %v9677_v17 = vpop.f32.mrb[235].mxu1 }
 0x96a   : > { %8655 = vst.msk [vmem:[%s17140_s25 + $0x20] sm:$0xff] %vm257_vm2, %v8571_v11  ;;  %v9678_v49 = vadd.f32 %v9677_v17, %v9676_v46 }
 0x96c   : > { %v8578_v29 = vadd.f32 %v9678_v49, %v17104_v34  ;;  %v9679_v42 = vpop.f32.mrb[236].mxu1 }
 0x96d   : > { %v9680_v31 = vpop.f32.mrb[237].mxu1 }
 0x96e   : > { %8656 = vst.msk [vmem:[%s17140_s25 + $0x28] sm:$0xff] %vm257_vm2, %v8578_v29  ;;  %v9681_v47 = vadd.f32 %v9680_v31, %v9679_v42 }
 0x970   : > { %v8585_v56 = vadd.f32 %v9681_v47, %v17107_v6  ;;  %v9682_v41 = vpop.f32.mrb[238].mxu1 }
 0x971   : > { %v9683_v24 = vpop.f32.mrb[239].mxu1 }
 0x972   : > { %8657 = vst.msk [vmem:[%s17140_s25 + $0x30] sm:$0xff] %vm257_vm2, %v8585_v56  ;;  %v9684_v40 = vadd.f32 %v9683_v24, %v9682_v41 }
 0x974   : > { %v8592_v44 = vadd.f32 %v9684_v40, %v17110_v30  ;;  %v9685_v10 = vpop.f32.mrb[240].mxu1 }
 0x975   : > { %v9686_v13 = vpop.f32.mrb[241].mxu1 }
 0x976   : > { %8658 = vst.msk [vmem:[%s17140_s25 + $0x38] sm:$0xff] %vm257_vm2, %v8592_v44  ;;  %v9687_v34 = vadd.f32 %v9686_v13, %v9685_v10 }
 0x978   : > { %v8599_v53 = vadd.f32 %v9687_v34, %v17113_v37  ;;  %v9688_v25 = vpop.f32.mrb[242].mxu1 }
 0x979   : > { %v9689_v18 = vpop.f32.mrb[243].mxu1 }
 0x97a   : > { %8659 = vst.msk [vmem:[%s17140_s25 + $0x40] sm:$0xff] %vm257_vm2, %v8599_v53  ;;  %v9690_v6 = vadd.f32 %v9689_v18, %v9688_v25 }
 0x97c   : > { %v8606_v38 = vadd.f32 %v9690_v6, %v17116_v51  ;;  %v9691_v43 = vpop.f32.mrb[244].mxu1 }
 0x97d   : > { %v9692_v61 = vpop.f32.mrb[245].mxu1 }
 0x97e   : > { %8660 = vst.msk [vmem:[%s17140_s25 + $0x48] sm:$0xff] %vm257_vm2, %v8606_v38  ;;  %v9693_v30 = vadd.f32 %v9692_v61, %v9691_v43 }
 0x980   : > { %v8613_v23 = vadd.f32 %v9693_v30, %v17119_v60  ;;  %v9694_v0 = vpop.f32.mrb[246].mxu1 }
 0x981   : > { %v9695_v14 = vpop.f32.mrb[247].mxu1 }
 0x982   : > { %8661 = vst.msk [vmem:[%s17140_s25 + $0x50] sm:$0xff] %vm257_vm2, %v8613_v23  ;;  %v9696_v37 = vadd.f32 %v9695_v14, %v9694_v0 }
 0x984   : > { %v8620_v21 = vadd.f32 %v9696_v37, %v17122_v22  ;;  %v9697_v58 = vpop.f32.mrb[248].mxu1 }
 0x985   : > { %v9698_v28 = vpop.f32.mrb[249].mxu1 }
 0x986   : > { %8662 = vst.msk [vmem:[%s17140_s25 + $0x58] sm:$0xff] %vm257_vm2, %v8620_v21  ;;  %v9699_v51 = vadd.f32 %v9698_v28, %v9697_v58 }
 0x988   : > { %v8627_v16 = vadd.f32 %v9699_v51, %v17125_v5  ;;  %v9700_v59 = vpop.f32.mrb[250].mxu1 }
 0x989   : > { %v9701_v7 = vpop.f32.mrb[251].mxu1 }
 0x98a   : > { %8663 = vst.msk [vmem:[%s17140_s25 + $0x60] sm:$0xff] %vm257_vm2, %v8627_v16  ;;  %v9702_v60 = vadd.f32 %v9701_v7, %v9700_v59 }
 0x98c   : > { %v8634_v2 = vadd.f32 %v9702_v60, %v17128_v55  ;;  %v9703_v32 = vpop.f32.mrb[252].mxu1 }
 0x98d   : > { %v9704_v62 = vpop.f32.mrb[253].mxu1 }
 0x98e   : > { %8664 = vst.msk [vmem:[%s17140_s25 + $0x68] sm:$0xff] %vm257_vm2, %v8634_v2  ;;  %v9705_v22 = vadd.f32 %v9704_v62, %v9703_v32 }
 0x990   : > { %v8641_v45 = vadd.f32 %v9705_v22, %v17131_v1  ;;  %v9706_v26 = vpop.f32.mrb[254].mxu1 }
 0x991   : > { %v9707_v52 = vpop.f32.mrb[255].mxu1 }
 0x992   : > { %8665 = vst.msk [vmem:[%s17140_s25 + $0x70] sm:$0xff] %vm257_vm2, %v8641_v45  ;;  %v9708_v5 = vadd.f32 %v9707_v52, %v9706_v26 }
 0x994   : > { %v8648_v15 = vadd.f32 %v9708_v5, %v17135_v8 }
 0x996   : > { %8666 = vst.msk [vmem:[%s17140_s25 + $0x78] sm:$0xff] %vm257_vm2, %v8648_v15 }
 0x997 PF: > { %s15_s20 = sadd.s32 1, %s10914_s20   ;;  %s19515_s18 = smov %s10910_s19 }
 0x998   : > { %p12_p5 = scmp.ge.s32.totalorder %s15_s20, 6   ;;  %s19516_s19 = smov %s19518_s21 }
 0x99a   :  { %14 = sbr.rel (!%p12_p5) target bundleno = 2 (0x2), region = 78 }

</bundles_post_ra>
